<compile_context>
chip_gen: v7x
topology: tpu7x:2x2x1
jax: 0.10.0
libtpu: 0.0.40
codegen_flags: <defaults>
</compile_context>

<pallas_src>
import functools

import jax
import jax.numpy as jnp
from jax import lax
from jax.experimental import pallas as pl
from jax.experimental.pallas import tpu as pltpu


def _round_up(x, m):
    return ((x + m - 1) // m) * m


def _bytes(shape, dtype):
    n = 1
    for s in shape:
        n *= int(s)
    return n * jnp.dtype(dtype).itemsize


def _mosaic(dims, block_bytes):
    # Footprint-derived limit; floor at 32 MiB, cap under v7x's 64 MiB VMEM.
    limit = int(max(32 * 1024 * 1024, min(56 * 1024 * 1024, 3 * block_bytes)))
    return pltpu.CompilerParams(dimension_semantics=dims,
                                vmem_limit_bytes=limit)


# -----------------------------------------------------------------------------
# Fused feature / phoneme-posterior projections (one launch, M-tiled).
# -----------------------------------------------------------------------------
def _feature_heads_kernel(fr_ref, wf_ref, bf_ref, wl_ref, bl_ref,
                          feat_ref, lang_ref):
    x = fr_ref[...]                                                  # bf16
    feat = jnp.dot(x, wf_ref[...], preferred_element_type=jnp.float32)
    feat = jnp.log1p(jnp.abs(feat + bf_ref[...]))
    feat_ref[...] = feat
    lang = jnp.dot(feat.astype(jnp.bfloat16), wl_ref[...],
                   preferred_element_type=jnp.float32) + bl_ref[...]
    lang_ref[...] = jax.nn.sigmoid(lang)


def feature_heads(frames2d, feat_p, lang_p, tile_m=512):
    """FeatureExtractor + PhonemeRecognitionModel stand-ins, one pallas_call."""
    M, K = frames2d.shape
    Nf = feat_p["w"].shape[1]
    Nl = lang_p["w"].shape[1]
    tm = min(tile_m, _round_up(M, 8))
    Mp = _round_up(M, tm)
    x = frames2d.astype(jnp.bfloat16)          # bf16 halves input DMA bytes
    if Mp != M:
        x = jnp.pad(x, ((0, Mp - M), (0, 0)))
    fp = (_bytes((tm, K), jnp.bfloat16) + _bytes((K, Nf), jnp.bfloat16)
          + _bytes((Nf, Nl), jnp.bfloat16) + _bytes((tm, Nf), jnp.float32)
          + _bytes((tm, Nl), jnp.float32))
    feat, lang = pl.pallas_call(
        _feature_heads_kernel,
        out_shape=(jax.ShapeDtypeStruct((Mp, Nf), jnp.float32),
                   jax.ShapeDtypeStruct((Mp, Nl), jnp.float32)),
        grid=(Mp // tm,),
        in_specs=[pl.BlockSpec((tm, K), lambda i: (i, 0)),
                  pl.BlockSpec((K, Nf), lambda i: (0, 0)),
                  pl.BlockSpec((1, Nf), lambda i: (0, 0)),
                  pl.BlockSpec((Nf, Nl), lambda i: (0, 0)),
                  pl.BlockSpec((1, Nl), lambda i: (0, 0))],
        out_specs=(pl.BlockSpec((tm, Nf), lambda i: (i, 0)),
                   pl.BlockSpec((tm, Nl), lambda i: (i, 0))),
        compiler_params=_mosaic(("parallel",), fp),
    )(x, feat_p["w"], feat_p["b"], lang_p["w"], lang_p["b"])
    if Mp != M:
        feat, lang = feat[:M], lang[:M]
    return feat, lang


# -----------------------------------------------------------------------------
# DilatedConvStack (MXU) fused with the BiLSTM input projection.
# TODO(synk): exact serenade DilatedConvStack definition not in the snippet;
# assumed 3 dilated (time 1/2/4) 3x3 conv+ReLU layers + an FC over
# (freq, channels) -> model_size.
# -----------------------------------------------------------------------------
def _zero_halo(buf_ref, F, T, off):
    """Zero only the halo border of a padded (F+2, T+2*off, C) scratch."""
    Fp, Tp, C = buf_ref.shape
    zrow = jnp.zeros((1, Tp, C), jnp.float32)
    buf_ref[0:1, :, :] = zrow
    buf_ref[F + 1:F + 2, :, :] = zrow
    if off > 0:
        zcol = jnp.zeros((Fp, off, C), jnp.float32)
        buf_ref[:, 0:off, :] = zcol
        buf_ref[:, off + T:Tp, :] = zcol


def _conv3x3(buf_ref, w_ref, b_ref, dil_t, F, T):
    """3x3 conv (time dilation dil_t) as 9 accumulated MXU matmuls + ReLU."""
    cin = buf_ref.shape[2]
    acc = jnp.zeros((F * T, w_ref.shape[3]), jnp.float32)
    for kf in range(3):
        for kt in range(3):
            xs = buf_ref[kf:kf + F, kt * dil_t:kt * dil_t + T, :]    # (F,T,cin)
            acc = acc + jnp.dot(
                xs.reshape(F * T, cin).astype(jnp.bfloat16), w_ref[kf, kt],
                preferred_element_type=jnp.float32)
    return jnp.maximum(acc + b_ref[...], 0.0)                        # (F*T,cout)


def _conv_stack_gx_kernel(x_ref, w1, b1, w2, b2, w3, b3, wfc, bfc,
                          wihf, bihf, wihb, bihb,
                          gxf_ref, gxb_ref, buf0, buf1, buf2):
    F = x_ref.shape[1]
    T = x_ref.shape[2]
    c = w2.shape[2]

    _zero_halo(buf0, F, T, 1)
    _zero_halo(buf1, F, T, 2)
    _zero_halo(buf2, F, T, 4)

    buf0[1:F + 1, 1:T + 1, :] = x_ref[0]                             # (F,T,1)
    y1 = _conv3x3(buf0, w1, b1, 1, F, T)
    buf1[1:F + 1, 2:T + 2, :] = y1.reshape(F, T, c)
    y2 = _conv3x3(buf1, w2, b2, 2, F, T)
    buf2[1:F + 1, 4:T + 4, :] = y2.reshape(F, T, c)
    y3 = _conv3x3(buf2, w3, b3, 4, F, T)                             # (F*T,2c)

    # Conv FC as ONE batched matmul over frequency + major-dim reduction.
    y3b = y3.reshape(F, T, 2 * c).astype(jnp.bfloat16)
    h = jnp.einsum("ftk,fkm->ftm", y3b, wfc[...],
                   preferred_element_type=jnp.float32)
    h = jnp.sum(h, axis=0) + bfc[...]                                # (T, ms)

    # Fused (hoisted) BiLSTM input projection, lane-dense Gp-wide outputs.
    hb = h.astype(jnp.bfloat16)
    gxf_ref[0] = jnp.dot(hb, wihf[...],
                         preferred_element_type=jnp.float32) + bihf[...]
    gxb_ref[0] = jnp.dot(hb, wihb[...],
                         preferred_element_type=jnp.float32) + bihb[...]


def conv_stack_gx(feat_btf, conv_p, rnn_p):
    """(B,T,F) features -> time-major gate pre-activations (T,B,Gp) x 2."""
    B, T, F = feat_btf.shape
    c = conv_p["w1"].shape[3]
    Gp = rnn_p["wih_f"].shape[1]
    x = jnp.transpose(feat_btf, (0, 2, 1))[..., None]                # (B,F,T,1)

    def _const(a):
        nd = a.ndim
        return pl.BlockSpec(a.shape, lambda b, _n=nd: (0,) * _n)

    consts = [conv_p["w1"], conv_p["b1"], conv_p["w2"], conv_p["b2"],
              conv_p["w3"], conv_p["b3"], conv_p["wfc"], conv_p["bfc"],
              rnn_p["wih_f"], rnn_p["bih_f"], rnn_p["wih_b"], rnn_p["bih_b"]]
    fp = (_bytes((1, F, T, 1), jnp.float32)
          + sum(_bytes(a.shape, a.dtype) for a in consts)
          + 2 * _bytes((1, T, Gp), jnp.float32)
          + _bytes((F + 2, T + 2, 1), jnp.float32)
          + 2 * _bytes((F + 2, T + 8, c), jnp.float32))

    gxf, gxb = pl.pallas_call(
        _conv_stack_gx_kernel,
        out_shape=(jax.ShapeDtypeStruct((B, T, Gp), jnp.float32),
                   jax.ShapeDtypeStruct((B, T, Gp), jnp.float32)),
        grid=(B,),
        in_specs=[pl.BlockSpec((1, F, T, 1), lambda b: (b, 0, 0, 0))]
                 + [_const(a) for a in consts],
        out_specs=(pl.BlockSpec((1, T, Gp), lambda b: (b, 0, 0)),
                   pl.BlockSpec((1, T, Gp), lambda b: (b, 0, 0))),
        scratch_shapes=[
            pltpu.VMEM((F + 2, T + 2, 1), jnp.float32),
            pltpu.VMEM((F + 2, T + 4, c), jnp.float32),
            pltpu.VMEM((F + 2, T + 8, c), jnp.float32),
        ],
        compiler_params=_mosaic(("parallel",), fp),
    )(x, *consts)
    return jnp.transpose(gxf, (1, 0, 2)), jnp.transpose(gxb, (1, 0, 2))


# -----------------------------------------------------------------------------
# Fused bidirectional LSTM recurrence (chunked over T, h/c carried in scratch).
# -----------------------------------------------------------------------------
def _bilstm_kernel(*refs, with_fc):
    if with_fc:
        (gxf_ref, gxb_ref, whh_ref, wfcf_ref, wfcb_ref,
         of_ref, ob_ref, fcf_ref, fcb_ref, hcat, cf, cb) = refs
    else:
        (gxf_ref, gxb_ref, whh_ref, of_ref, ob_ref, hcat, cf, cb) = refs
        wfcf_ref = wfcb_ref = fcf_ref = fcb_ref = None
    Tc = gxf_ref.shape[0]
    Gp = gxf_ref.shape[2]
    H = whh_ref.shape[0] // 2

    @pl.when(pl.program_id(0) == 0)
    def _():
        hcat[...] = jnp.zeros_like(hcat)
        cf[...] = jnp.zeros_like(cf)
        cb[...] = jnp.zeros_like(cb)

    def cell(pre, c_prev):
        # PyTorch LSTM gate order (i, f, g, o); gate math kept f32 (v5e has no
        # bf16 VPU/EUP path).
        i_g = jax.nn.sigmoid(pre[:, 0:H])
        f_g = jax.nn.sigmoid(pre[:, H:2 * H])
        g_g = jnp.tanh(pre[:, 2 * H:3 * H])
        o_g = jax.nn.sigmoid(pre[:, 3 * H:4 * H])
        c_new = f_g * c_prev + i_g * g_g
        return o_g * jnp.tanh(c_new), c_new

    def step(s, carry):
        # One fused recurrent matmul for both directions against the
        # block-diagonal Whh; fwd/bwd halves split at a 128-aligned offset.
        rec = jnp.dot(hcat[...].astype(jnp.bfloat16), whh_ref[...],
                      preferred_element_type=jnp.float32)            # (B,2Gp)
        pre_f = gxf_ref[s] + rec[:, 0:Gp]
        pre_b = gxb_ref[Tc - 1 - s] + rec[:, Gp:2 * Gp]
        h_f, c_f_new = cell(pre_f, cf[...])
        h_b, c_b_new = cell(pre_b, cb[...])
        cf[...] = c_f_new
        cb[...] = c_b_new
        hcat[:, 0:H] = h_f
        hcat[:, H:2 * H] = h_b
        of_ref[s] = h_f
        ob_ref[Tc - 1 - s] = h_b
        if with_fc:
            # Final Linear folded in as per-direction partial products; these
            # dots are off the recurrence critical path (nothing depends on
            # them) and store lane-dense 128-wide rows.
            fcf_ref[s] = jnp.dot(h_f.astype(jnp.bfloat16), wfcf_ref[...],
                                 preferred_element_type=jnp.float32)
            fcb_ref[Tc - 1 - s] = jnp.dot(h_b.astype(jnp.bfloat16),
                                          wfcb_ref[...],
                                          preferred_element_type=jnp.float32)
        return carry

    if Tc <= 32:
        for s in range(Tc):              # full unroll for short chunks
            step(s, 0)
    else:
        lax.fori_loop(0, Tc, step, 0, unroll=8)


def _chunk_len(T, max_chunk=64):
    if T <= max_chunk:
        return T
    for tc in range(max_chunk, 0, -1):
        if T % tc == 0:
            return tc
    return T


def bilstm_chunked(gx_f, gx_b, rnn_p, fc_w_f=None, fc_w_b=None):
    """BiLSTM recurrence over precomputed per-direction gate pre-activations.

    gx_f/gx_b: (T, B, Gp) f32 (= x@Wih + b, gate order i,f,g,o, lane padded).
    Returns (h_f, h_b), each (T, B, H); with fc weights also returns the
    per-direction partial products of the final Linear.
    """
    T, B, Gp = gx_f.shape
    whh = rnn_p["whh_bd"]
    H = whh.shape[0] // 2
    Tc = _chunk_len(T)
    nC = T // Tc
    with_fc = fc_w_f is not None

    in_specs = [pl.BlockSpec((Tc, B, Gp), lambda i: (i, 0, 0)),
                pl.BlockSpec((Tc, B, Gp), lambda i: (nC - 1 - i, 0, 0)),
                pl.BlockSpec(whh.shape, lambda i: (0, 0))]
    inputs = [gx_f, gx_b, whh]
    out_shapes = [jax.ShapeDtypeStruct((T, B, H), jnp.float32),
                  jax.ShapeDtypeStruct((T, B, H), jnp.float32)]
    out_specs = [pl.BlockSpec((Tc, B, H), lambda i: (i, 0, 0)),
                 pl.BlockSpec((Tc, B, H), lambda i: (nC - 1 - i, 0, 0))]
    fp = (2 * _bytes((Tc, B, Gp), jnp.float32) + _bytes(whh.shape, whh.dtype)
          + 2 * _bytes((Tc, B, H), jnp.float32))
    if with_fc:
        Np = fc_w_f.shape[1]
        in_specs += [pl.BlockSpec(fc_w_f.shape, lambda i: (0, 0)),
                     pl.BlockSpec(fc_w_b.shape, lambda i: (0, 0))]
        inputs += [fc_w_f, fc_w_b]
        out_shapes += [jax.ShapeDtypeStruct((T, B, Np), jnp.float32),
                       jax.ShapeDtypeStruct((T, B, Np), jnp.float32)]
        out_specs += [pl.BlockSpec((Tc, B, Np), lambda i: (i, 0, 0)),
                      pl.BlockSpec((Tc, B, Np), lambda i: (nC - 1 - i, 0, 0))]
        fp += (2 * _bytes(fc_w_f.shape, fc_w_f.dtype)
               + 2 * _bytes((Tc, B, Np), jnp.float32))

    # "arbitrary": the chunk axis carries h/c state sequentially.
    # TODO(synk): on v7x, split fwd/bwd across the two TensorCores (core_map /
    # leading parallel axis) instead of the fused block-diagonal matmul.
    return pl.pallas_call(
        functools.partial(_bilstm_kernel, with_fc=with_fc),
        out_shape=tuple(out_shapes),
        grid=(nC,),
        in_specs=in_specs,
        out_specs=tuple(out_specs),
        scratch_shapes=[pltpu.VMEM((B, 2 * H), jnp.float32),
                        pltpu.VMEM((B, H), jnp.float32),
                        pltpu.VMEM((B, H), jnp.float32)],
        compiler_params=_mosaic(("arbitrary",), fp),
    )(*inputs)


# -----------------------------------------------------------------------------
# Hoisted BiLSTM input projection for the combined RNN (two outputs, one call).
# -----------------------------------------------------------------------------
def _dual_linear_kernel(x_ref, wf_ref, bf_ref, wb_ref, bb_ref, of_ref, ob_ref):
    xb = x_ref[...]
    of_ref[...] = jnp.dot(xb, wf_ref[...],
                          preferred_element_type=jnp.float32) + bf_ref[...]
    ob_ref[...] = jnp.dot(xb, wb_ref[...],
                          preferred_element_type=jnp.float32) + bb_ref[...]


def dual_linear(x2d, rnn_p, tile_m=512):
    M, D = x2d.shape
    Gp = rnn_p["wih_f"].shape[1]
    tm = min(tile_m, _round_up(M, 8))
    Mp = _round_up(M, tm)
    x = x2d.astype(jnp.bfloat16)
    if Mp != M:
        x = jnp.pad(x, ((0, Mp - M), (0, 0)))
    fp = (_bytes((tm, D), jnp.bfloat16) + 2 * _bytes((D, Gp), jnp.bfloat16)
          + 2 * _bytes((tm, Gp), jnp.float32))
    # TODO(synk): tile K (accumulate over a K grid axis) for very large D.
    of, ob = pl.pallas_call(
        _dual_linear_kernel,
        out_shape=(jax.ShapeDtypeStruct((Mp, Gp), jnp.float32),
                   jax.ShapeDtypeStruct((Mp, Gp), jnp.float32)),
        grid=(Mp // tm,),
        in_specs=[pl.BlockSpec((tm, D), lambda i: (i, 0)),
                  pl.BlockSpec((D, Gp), lambda i: (0, 0)),
                  pl.BlockSpec((1, Gp), lambda i: (0, 0)),
                  pl.BlockSpec((D, Gp), lambda i: (0, 0)),
                  pl.BlockSpec((1, Gp), lambda i: (0, 0))],
        out_specs=(pl.BlockSpec((tm, Gp), lambda i: (i, 0)),
                   pl.BlockSpec((tm, Gp), lambda i: (i, 0))),
        compiler_params=_mosaic(("parallel",), fp),
    )(x, rnn_p["wih_f"], rnn_p["bih_f"], rnn_p["wih_b"], rnn_p["bih_b"])
    if Mp != M:
        of, ob = of[:M], ob[:M]
    return of, ob


def frame_audio(x, win, hop):
    B, L = x.shape
    T = (L - win) // hop + 1
    idx = jnp.arange(T)[:, None] * hop + jnp.arange(win)[None, :]
    return x[:, idx]                                                 # (B,T,win)


# -----------------------------------------------------------------------------
# Parameter init (deterministic, synthetic; pre-padded / bf16-converted once).
# -----------------------------------------------------------------------------
def _w(key, shape, scale=0.1):
    return (scale * jax.random.normal(key, shape)).astype(jnp.float32)


def _init_bilstm(key, din, h):
    # TODO(synk): real checkpoints must sum b_ih + b_hh and keep PyTorch's
    # (i, f, g, o) gate order when filling wih_*/bih_*/whh_bd.
    Gp = _round_up(4 * h, 128)
    ks = jax.random.split(key, 6)
    wih_f, wih_b = _w(ks[0], (din, 4 * h)), _w(ks[1], (din, 4 * h))
    whh_f, whh_b = _w(ks[2], (h, 4 * h)), _w(ks[3], (h, 4 * h))
    b_f, b_b = _w(ks[4], (1, 4 * h)), _w(ks[5], (1, 4 * h))

    def pad_g(a):
        return jnp.pad(a, ((0, 0), (0, Gp - 4 * h)))

    whh_bd = jnp.zeros((2 * h, 2 * Gp), jnp.float32)
    whh_bd = whh_bd.at[:h, :4 * h].set(whh_f)
    whh_bd = whh_bd.at[h:, Gp:Gp + 4 * h].set(whh_b)
    return {
        "wih_f": pad_g(wih_f).astype(jnp.bfloat16),
        "wih_b": pad_g(wih_b).astype(jnp.bfloat16),
        "bih_f": pad_g(b_f),
        "bih_b": pad_g(b_b),
        "whh_bd": whh_bd.astype(jnp.bfloat16),
    }


def _init_conv_stack(key, in_features, model_size):
    c = max(model_size // 16, 1)
    ks = jax.random.split(key, 8)
    return {
        "w1": _w(ks[0], (3, 3, 1, c)).astype(jnp.bfloat16),
        "b1": _w(ks[1], (1, c)),
        "w2": _w(ks[2], (3, 3, c, c)).astype(jnp.bfloat16),
        "b2": _w(ks[3], (1, c)),
        "w3": _w(ks[4], (3, 3, c, 2 * c)).astype(jnp.bfloat16),
        "b3": _w(ks[5], (1, 2 * c)),
        "wfc": _w(ks[6], (in_features, 2 * c, model_size)).astype(jnp.bfloat16),
        "bfc": _w(ks[7], (1, model_size)),
    }


def init_params(key, config):
    n_mels = config["n_mels"]
    win = config["win_length"]
    model_size = config["model_complexity"] * 16
    h = model_size // 2
    lang_in = config["lang_model_config"]["num_lbl"] - 1
    n_out = 3
    ks = jax.random.split(key, 12)

    fc_w = _w(ks[9], (model_size, n_out))
    fc_b = _w(ks[10], (1, n_out))
    n_pad = _round_up(n_out, 128)
    fc_w_f = jnp.pad(fc_w[:h], ((0, 0), (0, n_pad - n_out))).astype(jnp.bfloat16)
    fc_w_b = jnp.pad(fc_w[h:], ((0, 0), (0, n_pad - n_out))).astype(jnp.bfloat16)

    return {
        "feat": {"w": _w(ks[0], (win, n_mels)).astype(jnp.bfloat16),
                 "b": _w(ks[1], (1, n_mels))},
        "lang": {"w": _w(ks[2], (n_mels, lang_in)).astype(jnp.bfloat16),
                 "b": _w(ks[3], (1, lang_in))},
        "pitch_conv": _init_conv_stack(ks[4], n_mels, model_size),
        "lang_conv": _init_conv_stack(ks[5], lang_in, model_size),
        "pitch_rnn": _init_bilstm(ks[6], model_size, h),
        "lang_rnn": _init_bilstm(ks[7], model_size, h),
        "combined_rnn": _init_bilstm(ks[8], 2 * model_size, h),
        "fc": {"w_f": fc_w_f, "w_b": fc_w_b, "b": fc_b},
    }


# -----------------------------------------------------------------------------
# TranscriptionModel.forward
# -----------------------------------------------------------------------------
def transcription_model_forward(x, params, config):
    win, hop = config["win_length"], config["hop_length"]
    n_mels = config["n_mels"]
    model_size = config["model_complexity"] * 16
    B, _ = x.shape

    frames = frame_audio(x, win, hop)                                # (B,T,win)
    T = frames.shape[1]

    # FeatureExtractor(x).transpose(1,2) and lang_model output stand-ins.
    # TODO(synk): real FeatureExtractor is a mel spectrogram and the lang model
    # is a PhonemeRecognitionModel; stand-ins are framed-audio projections.
    feat2d, lang2d = feature_heads(frames.reshape(B * T, win),
                                   params["feat"], params["lang"])
    pitch_feature = feat2d.reshape(B, T, n_mels)
    lang_feature = lang2d.reshape(B, T, -1)

    # DilatedConvStack fused with the BiLSTM input projections (gx hoisting).
    gxf_l, gxb_l = conv_stack_gx(lang_feature, params["lang_conv"],
                                 params["lang_rnn"])
    gxf_p, gxb_p = conv_stack_gx(pitch_feature, params["pitch_conv"],
                                 params["pitch_rnn"])

    # Recurrences (time-major throughout; transpose only at model boundaries).
    hl_f, hl_b = bilstm_chunked(gxf_l, gxb_l, params["lang_rnn"])
    hp_f, hp_b = bilstm_chunked(gxf_p, gxb_p, params["pitch_rnn"])

    x_comb = jnp.concatenate([hp_f, hp_b, hl_f, hl_b], axis=-1)      # (T,B,2ms)
    gxf_c, gxb_c = dual_linear(x_comb.reshape(T * B, 2 * model_size),
                               params["combined_rnn"])
    Gp = gxf_c.shape[1]
    gxf_c = gxf_c.reshape(T, B, Gp)
    gxb_c = gxb_c.reshape(T, B, Gp)

    _, _, fc_f, fc_b = bilstm_chunked(gxf_c, gxb_c, params["combined_rnn"],
                                      fc_w_f=params["fc"]["w_f"],
                                      fc_w_b=params["fc"]["w_b"])
    n_out = params["fc"]["b"].shape[1]
    out = (fc_f + fc_b)[:, :, :n_out] + params["fc"]["b"]            # (T,B,3)
    return jnp.transpose(out, (1, 0, 2))                              # (B,T,3)


if __name__ == "__main__":
    config = {
        "n_mels": 16,
        "model_complexity": 2,          # model_size = 32
        "sample_rate": 16000,
        "win_length": 64,
        "hop_length": 32,
        "pitch_sum": "weighted",
        "lang_model_config": {"num_lbl": 17},   # lang_input_features = 16
    }
    key = jax.random.PRNGKey(0)
    pkey, xkey = jax.random.split(key)
    params = init_params(pkey, config)

    B, L = 2, 288                        # -> T = (288-64)//32 + 1 = 8 frames
    x = jax.random.normal(xkey, (B, L), dtype=jnp.float32)

    fwd = jax.jit(functools.partial(transcription_model_forward, config=config))
    out = fwd(x, params)
    out = jax.block_until_ready(out)
    assert out.shape == (B, 8, 3), out.shape
    assert bool(jnp.all(jnp.isfinite(out)))
    print("KERNEL_OK")
</pallas_src>

<mosaic_0001>
module attributes {stable_mosaic.version = 11 : i64} {
  func.func @_feature_heads_kernel(%arg0: i32, %arg1: memref<16x64xbf16, #tpu.memory_space<vmem>>, %arg2: memref<64x16xbf16, #tpu.memory_space<vmem>>, %arg3: memref<1x16xf32, #tpu.memory_space<vmem>>, %arg4: memref<16x16xbf16, #tpu.memory_space<vmem>>, %arg5: memref<1x16xf32, #tpu.memory_space<vmem>>, %arg6: memref<16x16xf32, #tpu.memory_space<vmem>>, %arg7: memref<16x16xf32, #tpu.memory_space<vmem>>) attributes {dimension_semantics = [#tpu.dimension_semantics<parallel>], iteration_bounds = array<i64: 1>, scalar_prefetch = 0 : i64, scratch_operands = 0 : i64, tpu.core_type = #tpu.core_type<tc>, window_params = [{transform_indices = @transform_0, window_bounds = array<i64: 16, 64>}, {pipeline_mode = #tpu.pipeline_mode<synchronous>, transform_indices = @transform_1, window_bounds = array<i64: 64, 16>}, {pipeline_mode = #tpu.pipeline_mode<synchronous>, transform_indices = @transform_2, window_bounds = array<i64: 1, 16>}, {pipeline_mode = #tpu.pipeline_mode<synchronous>, transform_indices = @transform_3, window_bounds = array<i64: 16, 16>}, {pipeline_mode = #tpu.pipeline_mode<synchronous>, transform_indices = @transform_4, window_bounds = array<i64: 1, 16>}, {transform_indices = @transform_5, window_bounds = array<i64: 16, 16>}, {transform_indices = @transform_6, window_bounds = array<i64: 16, 16>}]} {
    %c0 = arith.constant 0 : index
    %c0_0 = arith.constant 0 : index
    %0 = vector.load %arg1[%c0, %c0_0] : memref<16x64xbf16, #tpu.memory_space<vmem>>, vector<16x64xbf16>
    %c0_1 = arith.constant 0 : index
    %c0_2 = arith.constant 0 : index
    %1 = vector.load %arg2[%c0_1, %c0_2] : memref<64x16xbf16, #tpu.memory_space<vmem>>, vector<64x16xbf16>
    %cst = arith.constant dense<0.000000e+00> : vector<16x16xf32>
    %2 = tpu.matmul %0, %1, %cst {dimension_numbers = #tpu.dot_dimension_numbers<[1], [0], [0], [1], [0, 0, 1, 1], [], []>} : vector<16x64xbf16>, vector<64x16xbf16>, vector<16x16xf32> -> vector<16x16xf32>
    %c0_3 = arith.constant 0 : index
    %c0_4 = arith.constant 0 : index
    %3 = vector.load %arg3[%c0_3, %c0_4] : memref<1x16xf32, #tpu.memory_space<vmem>>, vector<1x16xf32>
    %4 = vector.broadcast %3 : vector<1x16xf32> to vector<16x16xf32>
    %5 = arith.addf %2, %4 : vector<16x16xf32>
    %6 = math.absf %5 : vector<16x16xf32>
    %7 = math.log1p %6 : vector<16x16xf32>
    %c0_5 = arith.constant 0 : index
    %c0_6 = arith.constant 0 : index
    %8 = vector.load %arg6[%c0_5, %c0_6] : memref<16x16xf32, #tpu.memory_space<vmem>>, vector<16x16xf32>
    tpu.vector_store %arg6[%c0_5, %c0_6], %7 {strides = array<i32>} : memref<16x16xf32, #tpu.memory_space<vmem>>, vector<16x16xf32>,
    %9 = arith.truncf %7 : vector<16x16xf32> to vector<16x16xbf16>
    %c0_7 = arith.constant 0 : index
    %c0_8 = arith.constant 0 : index
    %10 = vector.load %arg4[%c0_7, %c0_8] : memref<16x16xbf16, #tpu.memory_space<vmem>>, vector<16x16xbf16>
    %cst_9 = arith.constant dense<0.000000e+00> : vector<16x16xf32>
    %11 = tpu.matmul %9, %10, %cst_9 {dimension_numbers = #tpu.dot_dimension_numbers<[1], [0], [0], [1], [0, 0, 1, 1], [], []>} : vector<16x16xbf16>, vector<16x16xbf16>, vector<16x16xf32> -> vector<16x16xf32>
    %c0_10 = arith.constant 0 : index
    %c0_11 = arith.constant 0 : index
    %12 = vector.load %arg5[%c0_10, %c0_11] : memref<1x16xf32, #tpu.memory_space<vmem>>, vector<1x16xf32>
    %13 = vector.broadcast %12 : vector<1x16xf32> to vector<16x16xf32>
    %14 = arith.addf %11, %13 : vector<16x16xf32>
    %15 = arith.negf %14 : vector<16x16xf32>
    %16 = math.exp %15 : vector<16x16xf32>
    %cst_12 = arith.constant 1.000000e+00 : f32
    %17 = vector.broadcast %cst_12 : f32 to vector<16x16xf32>
    %18 = arith.addf %17, %16 : vector<16x16xf32>
    %19 = arith.divf %17, %18 : vector<16x16xf32>
    %c0_13 = arith.constant 0 : index
    %c0_14 = arith.constant 0 : index
    %20 = vector.load %arg7[%c0_13, %c0_14] : memref<16x16xf32, #tpu.memory_space<vmem>>, vector<16x16xf32>
    tpu.vector_store %arg7[%c0_13, %c0_14], %19 {strides = array<i32>} : memref<16x16xf32, #tpu.memory_space<vmem>>, vector<16x16xf32>,
    return
  }
  func.func @transform_0(%arg0: i32) -> (i32, i32) {
    %c0_i32 = arith.constant 0 : i32
    %c0_i32_0 = arith.constant 0 : i32
    return %arg0, %c0_i32 : i32, i32
  }
  func.func @transform_1(%arg0: i32) -> (i32, i32) {
    %c0_i32 = arith.constant 0 : i32
    %c0_i32_0 = arith.constant 0 : i32
    %c0_i32_1 = arith.constant 0 : i32
    return %c0_i32, %c0_i32_0 : i32, i32
  }
  func.func @transform_2(%arg0: i32) -> (i32, i32) {
    %c0_i32 = arith.constant 0 : i32
    %c0_i32_0 = arith.constant 0 : i32
    %c0_i32_1 = arith.constant 0 : i32
    return %c0_i32, %c0_i32_0 : i32, i32
  }
  func.func @transform_3(%arg0: i32) -> (i32, i32) {
    %c0_i32 = arith.constant 0 : i32
    %c0_i32_0 = arith.constant 0 : i32
    %c0_i32_1 = arith.constant 0 : i32
    return %c0_i32, %c0_i32_0 : i32, i32
  }
  func.func @transform_4(%arg0: i32) -> (i32, i32) {
    %c0_i32 = arith.constant 0 : i32
    %c0_i32_0 = arith.constant 0 : i32
    %c0_i32_1 = arith.constant 0 : i32
    return %c0_i32, %c0_i32_0 : i32, i32
  }
  func.func @transform_5(%arg0: i32) -> (i32, i32) {
    %c0_i32 = arith.constant 0 : i32
    %c0_i32_0 = arith.constant 0 : i32
    return %arg0, %c0_i32 : i32, i32
  }
  func.func @transform_6(%arg0: i32) -> (i32, i32) {
    %c0_i32 = arith.constant 0 : i32
    %c0_i32_0 = arith.constant 0 : i32
    return %arg0, %c0_i32 : i32, i32
  }
}

module attributes {stable_mosaic.version = 11 : i64} {
  func.func @_conv_stack_gx_kernel(%arg0: i32, %arg1: memref<1x16x8x1xf32, #tpu.memory_space<vmem>>, %arg2: memref<3x3x1x2xbf16, #tpu.memory_space<vmem>>, %arg3: memref<1x2xf32, #tpu.memory_space<vmem>>, %arg4: memref<3x3x2x2xbf16, #tpu.memory_space<vmem>>, %arg5: memref<1x2xf32, #tpu.memory_space<vmem>>, %arg6: memref<3x3x2x4xbf16, #tpu.memory_space<vmem>>, %arg7: memref<1x4xf32, #tpu.memory_space<vmem>>, %arg8: memref<16x4x32xbf16, #tpu.memory_space<vmem>>, %arg9: memref<1x32xf32, #tpu.memory_space<vmem>>, %arg10: memref<32x128xbf16, #tpu.memory_space<vmem>>, %arg11: memref<1x128xf32, #tpu.memory_space<vmem>>, %arg12: memref<32x128xbf16, #tpu.memory_space<vmem>>, %arg13: memref<1x128xf32, #tpu.memory_space<vmem>>, %arg14: memref<1x8x128xf32, #tpu.memory_space<vmem>>, %arg15: memref<1x8x128xf32, #tpu.memory_space<vmem>>, %arg16: memref<18x10x1xf32, #tpu.memory_space<vmem>>, %arg17: memref<18x12x2xf32, #tpu.memory_space<vmem>>, %arg18: memref<18x16x2xf32, #tpu.memory_space<vmem>>) attributes {dimension_semantics = [#tpu.dimension_semantics<parallel>], iteration_bounds = array<i64: 2>, scalar_prefetch = 0 : i64, scratch_operands = 3 : i64, tpu.core_type = #tpu.core_type<tc>, window_params = [{transform_indices = @transform_0, window_bounds = array<i64: 1, 16, 8, 1>}, {pipeline_mode = #tpu.pipeline_mode<synchronous>, transform_indices = @transform_1, window_bounds = array<i64: 3, 3, 1, 2>}, {pipeline_mode = #tpu.pipeline_mode<synchronous>, transform_indices = @transform_2, window_bounds = array<i64: 1, 2>}, {pipeline_mode = #tpu.pipeline_mode<synchronous>, transform_indices = @transform_3, window_bounds = array<i64: 3, 3, 2, 2>}, {pipeline_mode = #tpu.pipeline_mode<synchronous>, transform_indices = @transform_4, window_bounds = array<i64: 1, 2>}, {pipeline_mode = #tpu.pipeline_mode<synchronous>, transform_indices = @transform_5, window_bounds = array<i64: 3, 3, 2, 4>}, {pipeline_mode = #tpu.pipeline_mode<synchronous>, transform_indices = @transform_6, window_bounds = array<i64: 1, 4>}, {pipeline_mode = #tpu.pipeline_mode<synchronous>, transform_indices = @transform_7, window_bounds = array<i64: 16, 4, 32>}, {pipeline_mode = #tpu.pipeline_mode<synchronous>, transform_indices = @transform_8, window_bounds = array<i64: 1, 32>}, {pipeline_mode = #tpu.pipeline_mode<synchronous>, transform_indices = @transform_9, window_bounds = array<i64: 32, 128>}, {pipeline_mode = #tpu.pipeline_mode<synchronous>, transform_indices = @transform_10, window_bounds = array<i64: 1, 128>}, {pipeline_mode = #tpu.pipeline_mode<synchronous>, transform_indices = @transform_11, window_bounds = array<i64: 32, 128>}, {pipeline_mode = #tpu.pipeline_mode<synchronous>, transform_indices = @transform_12, window_bounds = array<i64: 1, 128>}, {transform_indices = @transform_13, window_bounds = array<i64: 1, 8, 128>}, {transform_indices = @transform_14, window_bounds = array<i64: 1, 8, 128>}]} {
    %cst = arith.constant 0.000000e+00 : f32
    %0 = vector.broadcast %cst : f32 to vector<1x10x1xf32>
    %c0 = arith.constant 0 : index
    %c0_0 = arith.constant 0 : index
    %c0_1 = arith.constant 0 : index
    %1 = vector.load %arg16[%c0, %c0_0, %c0_1] : memref<18x10x1xf32, #tpu.memory_space<vmem>>, vector<1x10x1xf32>
    tpu.vector_store %arg16[%c0, %c0_0, %c0_1], %0 {strides = array<i32>} : memref<18x10x1xf32, #tpu.memory_space<vmem>>, vector<1x10x1xf32>,
    %c17 = arith.constant 17 : index
    %c0_2 = arith.constant 0 : index
    %c0_3 = arith.constant 0 : index
    %2 = vector.load %arg16[%c17, %c0_2, %c0_3] : memref<18x10x1xf32, #tpu.memory_space<vmem>>, vector<1x10x1xf32>
    tpu.vector_store %arg16[%c17, %c0_2, %c0_3], %0 {strides = array<i32>} : memref<18x10x1xf32, #tpu.memory_space<vmem>>, vector<1x10x1xf32>,
    %cst_4 = arith.constant 0.000000e+00 : f32
    %3 = vector.broadcast %cst_4 : f32 to vector<18x1x1xf32>
    %c0_5 = arith.constant 0 : index
    %c0_6 = arith.constant 0 : index
    %c0_7 = arith.constant 0 : index
    %4 = vector.load %arg16[%c0_5, %c0_6, %c0_7] : memref<18x10x1xf32, #tpu.memory_space<vmem>>, vector<18x1x1xf32>
    tpu.vector_store %arg16[%c0_5, %c0_6, %c0_7], %3 {strides = array<i32>} : memref<18x10x1xf32, #tpu.memory_space<vmem>>, vector<18x1x1xf32>,
    %c0_8 = arith.constant 0 : index
    %c9 = arith.constant 9 : index
    %c0_9 = arith.constant 0 : index
    %5 = vector.load %arg16[%c0_8, %c9, %c0_9] : memref<18x10x1xf32, #tpu.memory_space<vmem>>, vector<18x1x1xf32>
    tpu.vector_store %arg16[%c0_8, %c9, %c0_9], %3 {strides = array<i32>} : memref<18x10x1xf32, #tpu.memory_space<vmem>>, vector<18x1x1xf32>,
    %cst_10 = arith.constant 0.000000e+00 : f32
    %6 = vector.broadcast %cst_10 : f32 to vector<1x12x2xf32>
    %c0_11 = arith.constant 0 : index
    %c0_12 = arith.constant 0 : index
    %c0_13 = arith.constant 0 : index
    %7 = vector.load %arg17[%c0_11, %c0_12, %c0_13] : memref<18x12x2xf32, #tpu.memory_space<vmem>>, vector<1x12x2xf32>
    tpu.vector_store %arg17[%c0_11, %c0_12, %c0_13], %6 {strides = array<i32>} : memref<18x12x2xf32, #tpu.memory_space<vmem>>, vector<1x12x2xf32>,
    %c17_14 = arith.constant 17 : index
    %c0_15 = arith.constant 0 : index
    %c0_16 = arith.constant 0 : index
    %8 = vector.load %arg17[%c17_14, %c0_15, %c0_16] : memref<18x12x2xf32, #tpu.memory_space<vmem>>, vector<1x12x2xf32>
    tpu.vector_store %arg17[%c17_14, %c0_15, %c0_16], %6 {strides = array<i32>} : memref<18x12x2xf32, #tpu.memory_space<vmem>>, vector<1x12x2xf32>,
    %cst_17 = arith.constant 0.000000e+00 : f32
    %9 = vector.broadcast %cst_17 : f32 to vector<18x2x2xf32>
    %c0_18 = arith.constant 0 : index
    %c0_19 = arith.constant 0 : index
    %c0_20 = arith.constant 0 : index
    %10 = vector.load %arg17[%c0_18, %c0_19, %c0_20] : memref<18x12x2xf32, #tpu.memory_space<vmem>>, vector<18x2x2xf32>
    tpu.vector_store %arg17[%c0_18, %c0_19, %c0_20], %9 {strides = array<i32>} : memref<18x12x2xf32, #tpu.memory_space<vmem>>, vector<18x2x2xf32>,
    %c0_21 = arith.constant 0 : index
    %c10 = arith.constant 10 : index
    %c0_22 = arith.constant 0 : index
    %11 = vector.load %arg17[%c0_21, %c10, %c0_22] : memref<18x12x2xf32, #tpu.memory_space<vmem>>, vector<18x2x2xf32>
    tpu.vector_store %arg17[%c0_21, %c10, %c0_22], %9 {strides = array<i32>} : memref<18x12x2xf32, #tpu.memory_space<vmem>>, vector<18x2x2xf32>,
    %cst_23 = arith.constant 0.000000e+00 : f32
    %12 = vector.broadcast %cst_23 : f32 to vector<1x16x2xf32>
    %c0_24 = arith.constant 0 : index
    %c0_25 = arith.constant 0 : index
    %c0_26 = arith.constant 0 : index
    %13 = vector.load %arg18[%c0_24, %c0_25, %c0_26] : memref<18x16x2xf32, #tpu.memory_space<vmem>>, vector<1x16x2xf32>
    tpu.vector_store %arg18[%c0_24, %c0_25, %c0_26], %12 {strides = array<i32>} : memref<18x16x2xf32, #tpu.memory_space<vmem>>, vector<1x16x2xf32>,
    %c17_27 = arith.constant 17 : index
    %c0_28 = arith.constant 0 : index
    %c0_29 = arith.constant 0 : index
    %14 = vector.load %arg18[%c17_27, %c0_28, %c0_29] : memref<18x16x2xf32, #tpu.memory_space<vmem>>, vector<1x16x2xf32>
    tpu.vector_store %arg18[%c17_27, %c0_28, %c0_29], %12 {strides = array<i32>} : memref<18x16x2xf32, #tpu.memory_space<vmem>>, vector<1x16x2xf32>,
    %cst_30 = arith.constant 0.000000e+00 : f32
    %15 = vector.broadcast %cst_30 : f32 to vector<18x4x2xf32>
    %c0_31 = arith.constant 0 : index
    %c0_32 = arith.constant 0 : index
    %c0_33 = arith.constant 0 : index
    %16 = vector.load %arg18[%c0_31, %c0_32, %c0_33] : memref<18x16x2xf32, #tpu.memory_space<vmem>>, vector<18x4x2xf32>
    tpu.vector_store %arg18[%c0_31, %c0_32, %c0_33], %15 {strides = array<i32>} : memref<18x16x2xf32, #tpu.memory_space<vmem>>, vector<18x4x2xf32>,
    %c0_34 = arith.constant 0 : index
    %c12 = arith.constant 12 : index
    %c0_35 = arith.constant 0 : index
    %17 = vector.load %arg18[%c0_34, %c12, %c0_35] : memref<18x16x2xf32, #tpu.memory_space<vmem>>, vector<18x4x2xf32>
    tpu.vector_store %arg18[%c0_34, %c12, %c0_35], %15 {strides = array<i32>} : memref<18x16x2xf32, #tpu.memory_space<vmem>>, vector<18x4x2xf32>,
    %c0_36 = arith.constant 0 : index
    %c0_37 = arith.constant 0 : index
    %c0_38 = arith.constant 0 : index
    %c0_39 = arith.constant 0 : index
    %18 = vector.load %arg1[%c0_36, %c0_37, %c0_38, %c0_39] : memref<1x16x8x1xf32, #tpu.memory_space<vmem>>, vector<1x16x8x1xf32>
    %19 = vector.shape_cast %18 : vector<1x16x8x1xf32> to vector<16x8x1xf32>
    %c1 = arith.constant 1 : index
    %c1_40 = arith.constant 1 : index
    %c0_41 = arith.constant 0 : index
    %20 = vector.load %arg16[%c1, %c1_40, %c0_41] : memref<18x10x1xf32, #tpu.memory_space<vmem>>, vector<16x8x1xf32>
    tpu.vector_store %arg16[%c1, %c1_40, %c0_41], %19 {strides = array<i32>} : memref<18x10x1xf32, #tpu.memory_space<vmem>>, vector<16x8x1xf32>,
    %cst_42 = arith.constant 0.000000e+00 : f32
    %21 = vector.broadcast %cst_42 : f32 to vector<128x2xf32>
    %c0_43 = arith.constant 0 : index
    %c0_44 = arith.constant 0 : index
    %c0_45 = arith.constant 0 : index
    %22 = vector.load %arg16[%c0_43, %c0_44, %c0_45] : memref<18x10x1xf32, #tpu.memory_space<vmem>>, vector<16x8x1xf32>
    %23 = vector.shape_cast %22 : vector<16x8x1xf32> to vector<128x1xf32>
    %24 = arith.truncf %23 : vector<128x1xf32> to vector<128x1xbf16>
    %c0_46 = arith.constant 0 : index
    %c0_47 = arith.constant 0 : index
    %c0_48 = arith.constant 0 : index
    %c0_49 = arith.constant 0 : index
    %25 = vector.load %arg2[%c0_46, %c0_47, %c0_48, %c0_49] : memref<3x3x1x2xbf16, #tpu.memory_space<vmem>>, vector<1x1x1x2xbf16>
    %26 = vector.shape_cast %25 : vector<1x1x1x2xbf16> to vector<1x2xbf16>
    %cst_50 = arith.constant dense<0.000000e+00> : vector<128x2xf32>
    %27 = tpu.matmul %24, %26, %cst_50 {dimension_numbers = #tpu.dot_dimension_numbers<[1], [0], [0], [1], [0, 0, 1, 1], [], []>} : vector<128x1xbf16>, vector<1x2xbf16>, vector<128x2xf32> -> vector<128x2xf32>
    %28 = arith.addf %21, %27 : vector<128x2xf32>
    %c0_51 = arith.constant 0 : index
    %c1_52 = arith.constant 1 : index
    %c0_53 = arith.constant 0 : index
    %29 = vector.load %arg16[%c0_51, %c1_52, %c0_53] : memref<18x10x1xf32, #tpu.memory_space<vmem>>, vector<16x8x1xf32>
    %30 = vector.shape_cast %29 : vector<16x8x1xf32> to vector<128x1xf32>
    %31 = arith.truncf %30 : vector<128x1xf32> to vector<128x1xbf16>
    %c0_54 = arith.constant 0 : index
    %c1_55 = arith.constant 1 : index
    %c0_56 = arith.constant 0 : index
    %c0_57 = arith.constant 0 : index
    %32 = vector.load %arg2[%c0_54, %c1_55, %c0_56, %c0_57] : memref<3x3x1x2xbf16, #tpu.memory_space<vmem>>, vector<1x1x1x2xbf16>
    %33 = vector.shape_cast %32 : vector<1x1x1x2xbf16> to vector<1x2xbf16>
    %cst_58 = arith.constant dense<0.000000e+00> : vector<128x2xf32>
    %34 = tpu.matmul %31, %33, %cst_58 {dimension_numbers = #tpu.dot_dimension_numbers<[1], [0], [0], [1], [0, 0, 1, 1], [], []>} : vector<128x1xbf16>, vector<1x2xbf16>, vector<128x2xf32> -> vector<128x2xf32>
    %35 = arith.addf %28, %34 : vector<128x2xf32>
    %c0_59 = arith.constant 0 : index
    %c2 = arith.constant 2 : index
    %c0_60 = arith.constant 0 : index
    %36 = vector.load %arg16[%c0_59, %c2, %c0_60] : memref<18x10x1xf32, #tpu.memory_space<vmem>>, vector<16x8x1xf32>
    %37 = vector.shape_cast %36 : vector<16x8x1xf32> to vector<128x1xf32>
    %38 = arith.truncf %37 : vector<128x1xf32> to vector<128x1xbf16>
    %c0_61 = arith.constant 0 : index
    %c2_62 = arith.constant 2 : index
    %c0_63 = arith.constant 0 : index
    %c0_64 = arith.constant 0 : index
    %39 = vector.load %arg2[%c0_61, %c2_62, %c0_63, %c0_64] : memref<3x3x1x2xbf16, #tpu.memory_space<vmem>>, vector<1x1x1x2xbf16>
    %40 = vector.shape_cast %39 : vector<1x1x1x2xbf16> to vector<1x2xbf16>
    %cst_65 = arith.constant dense<0.000000e+00> : vector<128x2xf32>
    %41 = tpu.matmul %38, %40, %cst_65 {dimension_numbers = #tpu.dot_dimension_numbers<[1], [0], [0], [1], [0, 0, 1, 1], [], []>} : vector<128x1xbf16>, vector<1x2xbf16>, vector<128x2xf32> -> vector<128x2xf32>
    %42 = arith.addf %35, %41 : vector<128x2xf32>
    %c1_66 = arith.constant 1 : index
    %c0_67 = arith.constant 0 : index
    %c0_68 = arith.constant 0 : index
    %43 = vector.load %arg16[%c1_66, %c0_67, %c0_68] : memref<18x10x1xf32, #tpu.memory_space<vmem>>, vector<16x8x1xf32>
    %44 = vector.shape_cast %43 : vector<16x8x1xf32> to vector<128x1xf32>
    %45 = arith.truncf %44 : vector<128x1xf32> to vector<128x1xbf16>
    %c1_69 = arith.constant 1 : index
    %c0_70 = arith.constant 0 : index
    %c0_71 = arith.constant 0 : index
    %c0_72 = arith.constant 0 : index
    %46 = vector.load %arg2[%c1_69, %c0_70, %c0_71, %c0_72] : memref<3x3x1x2xbf16, #tpu.memory_space<vmem>>, vector<1x1x1x2xbf16>
    %47 = vector.shape_cast %46 : vector<1x1x1x2xbf16> to vector<1x2xbf16>
    %cst_73 = arith.constant dense<0.000000e+00> : vector<128x2xf32>
    %48 = tpu.matmul %45, %47, %cst_73 {dimension_numbers = #tpu.dot_dimension_numbers<[1], [0], [0], [1], [0, 0, 1, 1], [], []>} : vector<128x1xbf16>, vector<1x2xbf16>, vector<128x2xf32> -> vector<128x2xf32>
    %49 = arith.addf %42, %48 : vector<128x2xf32>
    %c1_74 = arith.constant 1 : index
    %c1_75 = arith.constant 1 : index
    %c0_76 = arith.constant 0 : index
    %50 = vector.load %arg16[%c1_74, %c1_75, %c0_76] : memref<18x10x1xf32, #tpu.memory_space<vmem>>, vector<16x8x1xf32>
    %51 = vector.shape_cast %50 : vector<16x8x1xf32> to vector<128x1xf32>
    %52 = arith.truncf %51 : vector<128x1xf32> to vector<128x1xbf16>
    %c1_77 = arith.constant 1 : index
    %c1_78 = arith.constant 1 : index
    %c0_79 = arith.constant 0 : index
    %c0_80 = arith.constant 0 : index
    %53 = vector.load %arg2[%c1_77, %c1_78, %c0_79, %c0_80] : memref<3x3x1x2xbf16, #tpu.memory_space<vmem>>, vector<1x1x1x2xbf16>
    %54 = vector.shape_cast %53 : vector<1x1x1x2xbf16> to vector<1x2xbf16>
    %cst_81 = arith.constant dense<0.000000e+00> : vector<128x2xf32>
    %55 = tpu.matmul %52, %54, %cst_81 {dimension_numbers = #tpu.dot_dimension_numbers<[1], [0], [0], [1], [0, 0, 1, 1], [], []>} : vector<128x1xbf16>, vector<1x2xbf16>, vector<128x2xf32> -> vector<128x2xf32>
    %56 = arith.addf %49, %55 : vector<128x2xf32>
    %c1_82 = arith.constant 1 : index
    %c2_83 = arith.constant 2 : index
    %c0_84 = arith.constant 0 : index
    %57 = vector.load %arg16[%c1_82, %c2_83, %c0_84] : memref<18x10x1xf32, #tpu.memory_space<vmem>>, vector<16x8x1xf32>
    %58 = vector.shape_cast %57 : vector<16x8x1xf32> to vector<128x1xf32>
    %59 = arith.truncf %58 : vector<128x1xf32> to vector<128x1xbf16>
    %c1_85 = arith.constant 1 : index
    %c2_86 = arith.constant 2 : index
    %c0_87 = arith.constant 0 : index
    %c0_88 = arith.constant 0 : index
    %60 = vector.load %arg2[%c1_85, %c2_86, %c0_87, %c0_88] : memref<3x3x1x2xbf16, #tpu.memory_space<vmem>>, vector<1x1x1x2xbf16>
    %61 = vector.shape_cast %60 : vector<1x1x1x2xbf16> to vector<1x2xbf16>
    %cst_89 = arith.constant dense<0.000000e+00> : vector<128x2xf32>
    %62 = tpu.matmul %59, %61, %cst_89 {dimension_numbers = #tpu.dot_dimension_numbers<[1], [0], [0], [1], [0, 0, 1, 1], [], []>} : vector<128x1xbf16>, vector<1x2xbf16>, vector<128x2xf32> -> vector<128x2xf32>
    %63 = arith.addf %56, %62 : vector<128x2xf32>
    %c2_90 = arith.constant 2 : index
    %c0_91 = arith.constant 0 : index
    %c0_92 = arith.constant 0 : index
    %64 = vector.load %arg16[%c2_90, %c0_91, %c0_92] : memref<18x10x1xf32, #tpu.memory_space<vmem>>, vector<16x8x1xf32>
    %65 = vector.shape_cast %64 : vector<16x8x1xf32> to vector<128x1xf32>
    %66 = arith.truncf %65 : vector<128x1xf32> to vector<128x1xbf16>
    %c2_93 = arith.constant 2 : index
    %c0_94 = arith.constant 0 : index
    %c0_95 = arith.constant 0 : index
    %c0_96 = arith.constant 0 : index
    %67 = vector.load %arg2[%c2_93, %c0_94, %c0_95, %c0_96] : memref<3x3x1x2xbf16, #tpu.memory_space<vmem>>, vector<1x1x1x2xbf16>
    %68 = vector.shape_cast %67 : vector<1x1x1x2xbf16> to vector<1x2xbf16>
    %cst_97 = arith.constant dense<0.000000e+00> : vector<128x2xf32>
    %69 = tpu.matmul %66, %68, %cst_97 {dimension_numbers = #tpu.dot_dimension_numbers<[1], [0], [0], [1], [0, 0, 1, 1], [], []>} : vector<128x1xbf16>, vector<1x2xbf16>, vector<128x2xf32> -> vector<128x2xf32>
    %70 = arith.addf %63, %69 : vector<128x2xf32>
    %c2_98 = arith.constant 2 : index
    %c1_99 = arith.constant 1 : index
    %c0_100 = arith.constant 0 : index
    %71 = vector.load %arg16[%c2_98, %c1_99, %c0_100] : memref<18x10x1xf32, #tpu.memory_space<vmem>>, vector<16x8x1xf32>
    %72 = vector.shape_cast %71 : vector<16x8x1xf32> to vector<128x1xf32>
    %73 = arith.truncf %72 : vector<128x1xf32> to vector<128x1xbf16>
    %c2_101 = arith.constant 2 : index
    %c1_102 = arith.constant 1 : index
    %c0_103 = arith.constant 0 : index
    %c0_104 = arith.constant 0 : index
    %74 = vector.load %arg2[%c2_101, %c1_102, %c0_103, %c0_104] : memref<3x3x1x2xbf16, #tpu.memory_space<vmem>>, vector<1x1x1x2xbf16>
    %75 = vector.shape_cast %74 : vector<1x1x1x2xbf16> to vector<1x2xbf16>
    %cst_105 = arith.constant dense<0.000000e+00> : vector<128x2xf32>
    %76 = tpu.matmul %73, %75, %cst_105 {dimension_numbers = #tpu.dot_dimension_numbers<[1], [0], [0], [1], [0, 0, 1, 1], [], []>} : vector<128x1xbf16>, vector<1x2xbf16>, vector<128x2xf32> -> vector<128x2xf32>
    %77 = arith.addf %70, %76 : vector<128x2xf32>
    %c2_106 = arith.constant 2 : index
    %c2_107 = arith.constant 2 : index
    %c0_108 = arith.constant 0 : index
    %78 = vector.load %arg16[%c2_106, %c2_107, %c0_108] : memref<18x10x1xf32, #tpu.memory_space<vmem>>, vector<16x8x1xf32>
    %79 = vector.shape_cast %78 : vector<16x8x1xf32> to vector<128x1xf32>
    %80 = arith.truncf %79 : vector<128x1xf32> to vector<128x1xbf16>
    %c2_109 = arith.constant 2 : index
    %c2_110 = arith.constant 2 : index
    %c0_111 = arith.constant 0 : index
    %c0_112 = arith.constant 0 : index
    %81 = vector.load %arg2[%c2_109, %c2_110, %c0_111, %c0_112] : memref<3x3x1x2xbf16, #tpu.memory_space<vmem>>, vector<1x1x1x2xbf16>
    %82 = vector.shape_cast %81 : vector<1x1x1x2xbf16> to vector<1x2xbf16>
    %cst_113 = arith.constant dense<0.000000e+00> : vector<128x2xf32>
    %83 = tpu.matmul %80, %82, %cst_113 {dimension_numbers = #tpu.dot_dimension_numbers<[1], [0], [0], [1], [0, 0, 1, 1], [], []>} : vector<128x1xbf16>, vector<1x2xbf16>, vector<128x2xf32> -> vector<128x2xf32>
    %84 = arith.addf %77, %83 : vector<128x2xf32>
    %c0_114 = arith.constant 0 : index
    %c0_115 = arith.constant 0 : index
    %85 = vector.load %arg3[%c0_114, %c0_115] : memref<1x2xf32, #tpu.memory_space<vmem>>, vector<1x2xf32>
    %86 = vector.broadcast %85 : vector<1x2xf32> to vector<128x2xf32>
    %87 = arith.addf %84, %86 : vector<128x2xf32>
    %cst_116 = arith.constant 0.000000e+00 : f32
    %88 = vector.broadcast %cst_116 : f32 to vector<128x2xf32>
    %89 = arith.maximumf %87, %88 : vector<128x2xf32>
    %90 = vector.shape_cast %89 : vector<128x2xf32> to vector<16x8x2xf32>
    %c1_117 = arith.constant 1 : index
    %c2_118 = arith.constant 2 : index
    %c0_119 = arith.constant 0 : index
    %91 = vector.load %arg17[%c1_117, %c2_118, %c0_119] : memref<18x12x2xf32, #tpu.memory_space<vmem>>, vector<16x8x2xf32>
    tpu.vector_store %arg17[%c1_117, %c2_118, %c0_119], %90 {strides = array<i32>} : memref<18x12x2xf32, #tpu.memory_space<vmem>>, vector<16x8x2xf32>,
    %cst_120 = arith.constant 0.000000e+00 : f32
    %92 = vector.broadcast %cst_120 : f32 to vector<128x2xf32>
    %c0_121 = arith.constant 0 : index
    %c0_122 = arith.constant 0 : index
    %c0_123 = arith.constant 0 : index
    %93 = vector.load %arg17[%c0_121, %c0_122, %c0_123] : memref<18x12x2xf32, #tpu.memory_space<vmem>>, vector<16x8x2xf32>
    %94 = vector.shape_cast %93 : vector<16x8x2xf32> to vector<128x2xf32>
    %95 = arith.truncf %94 : vector<128x2xf32> to vector<128x2xbf16>
    %c0_124 = arith.constant 0 : index
    %c0_125 = arith.constant 0 : index
    %c0_126 = arith.constant 0 : index
    %c0_127 = arith.constant 0 : index
    %96 = vector.load %arg4[%c0_124, %c0_125, %c0_126, %c0_127] : memref<3x3x2x2xbf16, #tpu.memory_space<vmem>>, vector<1x1x2x2xbf16>
    %97 = vector.shape_cast %96 : vector<1x1x2x2xbf16> to vector<2x2xbf16>
    %cst_128 = arith.constant dense<0.000000e+00> : vector<128x2xf32>
    %98 = tpu.matmul %95, %97, %cst_128 {dimension_numbers = #tpu.dot_dimension_numbers<[1], [0], [0], [1], [0, 0, 1, 1], [], []>} : vector<128x2xbf16>, vector<2x2xbf16>, vector<128x2xf32> -> vector<128x2xf32>
    %99 = arith.addf %92, %98 : vector<128x2xf32>
    %c0_129 = arith.constant 0 : index
    %c2_130 = arith.constant 2 : index
    %c0_131 = arith.constant 0 : index
    %100 = vector.load %arg17[%c0_129, %c2_130, %c0_131] : memref<18x12x2xf32, #tpu.memory_space<vmem>>, vector<16x8x2xf32>
    %101 = vector.shape_cast %100 : vector<16x8x2xf32> to vector<128x2xf32>
    %102 = arith.truncf %101 : vector<128x2xf32> to vector<128x2xbf16>
    %c0_132 = arith.constant 0 : index
    %c1_133 = arith.constant 1 : index
    %c0_134 = arith.constant 0 : index
    %c0_135 = arith.constant 0 : index
    %103 = vector.load %arg4[%c0_132, %c1_133, %c0_134, %c0_135] : memref<3x3x2x2xbf16, #tpu.memory_space<vmem>>, vector<1x1x2x2xbf16>
    %104 = vector.shape_cast %103 : vector<1x1x2x2xbf16> to vector<2x2xbf16>
    %cst_136 = arith.constant dense<0.000000e+00> : vector<128x2xf32>
    %105 = tpu.matmul %102, %104, %cst_136 {dimension_numbers = #tpu.dot_dimension_numbers<[1], [0], [0], [1], [0, 0, 1, 1], [], []>} : vector<128x2xbf16>, vector<2x2xbf16>, vector<128x2xf32> -> vector<128x2xf32>
    %106 = arith.addf %99, %105 : vector<128x2xf32>
    %c0_137 = arith.constant 0 : index
    %c4 = arith.constant 4 : index
    %c0_138 = arith.constant 0 : index
    %107 = vector.load %arg17[%c0_137, %c4, %c0_138] : memref<18x12x2xf32, #tpu.memory_space<vmem>>, vector<16x8x2xf32>
    %108 = vector.shape_cast %107 : vector<16x8x2xf32> to vector<128x2xf32>
    %109 = arith.truncf %108 : vector<128x2xf32> to vector<128x2xbf16>
    %c0_139 = arith.constant 0 : index
    %c2_140 = arith.constant 2 : index
    %c0_141 = arith.constant 0 : index
    %c0_142 = arith.constant 0 : index
    %110 = vector.load %arg4[%c0_139, %c2_140, %c0_141, %c0_142] : memref<3x3x2x2xbf16, #tpu.memory_space<vmem>>, vector<1x1x2x2xbf16>
    %111 = vector.shape_cast %110 : vector<1x1x2x2xbf16> to vector<2x2xbf16>
    %cst_143 = arith.constant dense<0.000000e+00> : vector<128x2xf32>
    %112 = tpu.matmul %109, %111, %cst_143 {dimension_numbers = #tpu.dot_dimension_numbers<[1], [0], [0], [1], [0, 0, 1, 1], [], []>} : vector<128x2xbf16>, vector<2x2xbf16>, vector<128x2xf32> -> vector<128x2xf32>
    %113 = arith.addf %106, %112 : vector<128x2xf32>
    %c1_144 = arith.constant 1 : index
    %c0_145 = arith.constant 0 : index
    %c0_146 = arith.constant 0 : index
    %114 = vector.load %arg17[%c1_144, %c0_145, %c0_146] : memref<18x12x2xf32, #tpu.memory_space<vmem>>, vector<16x8x2xf32>
    %115 = vector.shape_cast %114 : vector<16x8x2xf32> to vector<128x2xf32>
    %116 = arith.truncf %115 : vector<128x2xf32> to vector<128x2xbf16>
    %c1_147 = arith.constant 1 : index
    %c0_148 = arith.constant 0 : index
    %c0_149 = arith.constant 0 : index
    %c0_150 = arith.constant 0 : index
    %117 = vector.load %arg4[%c1_147, %c0_148, %c0_149, %c0_150] : memref<3x3x2x2xbf16, #tpu.memory_space<vmem>>, vector<1x1x2x2xbf16>
    %118 = vector.shape_cast %117 : vector<1x1x2x2xbf16> to vector<2x2xbf16>
    %cst_151 = arith.constant dense<0.000000e+00> : vector<128x2xf32>
    %119 = tpu.matmul %116, %118, %cst_151 {dimension_numbers = #tpu.dot_dimension_numbers<[1], [0], [0], [1], [0, 0, 1, 1], [], []>} : vector<128x2xbf16>, vector<2x2xbf16>, vector<128x2xf32> -> vector<128x2xf32>
    %120 = arith.addf %113, %119 : vector<128x2xf32>
    %c1_152 = arith.constant 1 : index
    %c2_153 = arith.constant 2 : index
    %c0_154 = arith.constant 0 : index
    %121 = vector.load %arg17[%c1_152, %c2_153, %c0_154] : memref<18x12x2xf32, #tpu.memory_space<vmem>>, vector<16x8x2xf32>
    %122 = vector.shape_cast %121 : vector<16x8x2xf32> to vector<128x2xf32>
    %123 = arith.truncf %122 : vector<128x2xf32> to vector<128x2xbf16>
    %c1_155 = arith.constant 1 : index
    %c1_156 = arith.constant 1 : index
    %c0_157 = arith.constant 0 : index
    %c0_158 = arith.constant 0 : index
    %124 = vector.load %arg4[%c1_155, %c1_156, %c0_157, %c0_158] : memref<3x3x2x2xbf16, #tpu.memory_space<vmem>>, vector<1x1x2x2xbf16>
    %125 = vector.shape_cast %124 : vector<1x1x2x2xbf16> to vector<2x2xbf16>
    %cst_159 = arith.constant dense<0.000000e+00> : vector<128x2xf32>
    %126 = tpu.matmul %123, %125, %cst_159 {dimension_numbers = #tpu.dot_dimension_numbers<[1], [0], [0], [1], [0, 0, 1, 1], [], []>} : vector<128x2xbf16>, vector<2x2xbf16>, vector<128x2xf32> -> vector<128x2xf32>
    %127 = arith.addf %120, %126 : vector<128x2xf32>
    %c1_160 = arith.constant 1 : index
    %c4_161 = arith.constant 4 : index
    %c0_162 = arith.constant 0 : index
    %128 = vector.load %arg17[%c1_160, %c4_161, %c0_162] : memref<18x12x2xf32, #tpu.memory_space<vmem>>, vector<16x8x2xf32>
    %129 = vector.shape_cast %128 : vector<16x8x2xf32> to vector<128x2xf32>
    %130 = arith.truncf %129 : vector<128x2xf32> to vector<128x2xbf16>
    %c1_163 = arith.constant 1 : index
    %c2_164 = arith.constant 2 : index
    %c0_165 = arith.constant 0 : index
    %c0_166 = arith.constant 0 : index
    %131 = vector.load %arg4[%c1_163, %c2_164, %c0_165, %c0_166] : memref<3x3x2x2xbf16, #tpu.memory_space<vmem>>, vector<1x1x2x2xbf16>
    %132 = vector.shape_cast %131 : vector<1x1x2x2xbf16> to vector<2x2xbf16>
    %cst_167 = arith.constant dense<0.000000e+00> : vector<128x2xf32>
    %133 = tpu.matmul %130, %132, %cst_167 {dimension_numbers = #tpu.dot_dimension_numbers<[1], [0], [0], [1], [0, 0, 1, 1], [], []>} : vector<128x2xbf16>, vector<2x2xbf16>, vector<128x2xf32> -> vector<128x2xf32>
    %134 = arith.addf %127, %133 : vector<128x2xf32>
    %c2_168 = arith.constant 2 : index
    %c0_169 = arith.constant 0 : index
    %c0_170 = arith.constant 0 : index
    %135 = vector.load %arg17[%c2_168, %c0_169, %c0_170] : memref<18x12x2xf32, #tpu.memory_space<vmem>>, vector<16x8x2xf32>
    %136 = vector.shape_cast %135 : vector<16x8x2xf32> to vector<128x2xf32>
    %137 = arith.truncf %136 : vector<128x2xf32> to vector<128x2xbf16>
    %c2_171 = arith.constant 2 : index
    %c0_172 = arith.constant 0 : index
    %c0_173 = arith.constant 0 : index
    %c0_174 = arith.constant 0 : index
    %138 = vector.load %arg4[%c2_171, %c0_172, %c0_173, %c0_174] : memref<3x3x2x2xbf16, #tpu.memory_space<vmem>>, vector<1x1x2x2xbf16>
    %139 = vector.shape_cast %138 : vector<1x1x2x2xbf16> to vector<2x2xbf16>
    %cst_175 = arith.constant dense<0.000000e+00> : vector<128x2xf32>
    %140 = tpu.matmul %137, %139, %cst_175 {dimension_numbers = #tpu.dot_dimension_numbers<[1], [0], [0], [1], [0, 0, 1, 1], [], []>} : vector<128x2xbf16>, vector<2x2xbf16>, vector<128x2xf32> -> vector<128x2xf32>
    %141 = arith.addf %134, %140 : vector<128x2xf32>
    %c2_176 = arith.constant 2 : index
    %c2_177 = arith.constant 2 : index
    %c0_178 = arith.constant 0 : index
    %142 = vector.load %arg17[%c2_176, %c2_177, %c0_178] : memref<18x12x2xf32, #tpu.memory_space<vmem>>, vector<16x8x2xf32>
    %143 = vector.shape_cast %142 : vector<16x8x2xf32> to vector<128x2xf32>
    %144 = arith.truncf %143 : vector<128x2xf32> to vector<128x2xbf16>
    %c2_179 = arith.constant 2 : index
    %c1_180 = arith.constant 1 : index
    %c0_181 = arith.constant 0 : index
    %c0_182 = arith.constant 0 : index
    %145 = vector.load %arg4[%c2_179, %c1_180, %c0_181, %c0_182] : memref<3x3x2x2xbf16, #tpu.memory_space<vmem>>, vector<1x1x2x2xbf16>
    %146 = vector.shape_cast %145 : vector<1x1x2x2xbf16> to vector<2x2xbf16>
    %cst_183 = arith.constant dense<0.000000e+00> : vector<128x2xf32>
    %147 = tpu.matmul %144, %146, %cst_183 {dimension_numbers = #tpu.dot_dimension_numbers<[1], [0], [0], [1], [0, 0, 1, 1], [], []>} : vector<128x2xbf16>, vector<2x2xbf16>, vector<128x2xf32> -> vector<128x2xf32>
    %148 = arith.addf %141, %147 : vector<128x2xf32>
    %c2_184 = arith.constant 2 : index
    %c4_185 = arith.constant 4 : index
    %c0_186 = arith.constant 0 : index
    %149 = vector.load %arg17[%c2_184, %c4_185, %c0_186] : memref<18x12x2xf32, #tpu.memory_space<vmem>>, vector<16x8x2xf32>
    %150 = vector.shape_cast %149 : vector<16x8x2xf32> to vector<128x2xf32>
    %151 = arith.truncf %150 : vector<128x2xf32> to vector<128x2xbf16>
    %c2_187 = arith.constant 2 : index
    %c2_188 = arith.constant 2 : index
    %c0_189 = arith.constant 0 : index
    %c0_190 = arith.constant 0 : index
    %152 = vector.load %arg4[%c2_187, %c2_188, %c0_189, %c0_190] : memref<3x3x2x2xbf16, #tpu.memory_space<vmem>>, vector<1x1x2x2xbf16>
    %153 = vector.shape_cast %152 : vector<1x1x2x2xbf16> to vector<2x2xbf16>
    %cst_191 = arith.constant dense<0.000000e+00> : vector<128x2xf32>
    %154 = tpu.matmul %151, %153, %cst_191 {dimension_numbers = #tpu.dot_dimension_numbers<[1], [0], [0], [1], [0, 0, 1, 1], [], []>} : vector<128x2xbf16>, vector<2x2xbf16>, vector<128x2xf32> -> vector<128x2xf32>
    %155 = arith.addf %148, %154 : vector<128x2xf32>
    %c0_192 = arith.constant 0 : index
    %c0_193 = arith.constant 0 : index
    %156 = vector.load %arg5[%c0_192, %c0_193] : memref<1x2xf32, #tpu.memory_space<vmem>>, vector<1x2xf32>
    %157 = vector.broadcast %156 : vector<1x2xf32> to vector<128x2xf32>
    %158 = arith.addf %155, %157 : vector<128x2xf32>
    %cst_194 = arith.constant 0.000000e+00 : f32
    %159 = vector.broadcast %cst_194 : f32 to vector<128x2xf32>
    %160 = arith.maximumf %158, %159 : vector<128x2xf32>
    %161 = vector.shape_cast %160 : vector<128x2xf32> to vector<16x8x2xf32>
    %c1_195 = arith.constant 1 : index
    %c4_196 = arith.constant 4 : index
    %c0_197 = arith.constant 0 : index
    %162 = vector.load %arg18[%c1_195, %c4_196, %c0_197] : memref<18x16x2xf32, #tpu.memory_space<vmem>>, vector<16x8x2xf32>
    tpu.vector_store %arg18[%c1_195, %c4_196, %c0_197], %161 {strides = array<i32>} : memref<18x16x2xf32, #tpu.memory_space<vmem>>, vector<16x8x2xf32>,
    %cst_198 = arith.constant 0.000000e+00 : f32
    %163 = vector.broadcast %cst_198 : f32 to vector<128x4xf32>
    %c0_199 = arith.constant 0 : index
    %c0_200 = arith.constant 0 : index
    %c0_201 = arith.constant 0 : index
    %164 = vector.load %arg18[%c0_199, %c0_200, %c0_201] : memref<18x16x2xf32, #tpu.memory_space<vmem>>, vector<16x8x2xf32>
    %165 = vector.shape_cast %164 : vector<16x8x2xf32> to vector<128x2xf32>
    %166 = arith.truncf %165 : vector<128x2xf32> to vector<128x2xbf16>
    %c0_202 = arith.constant 0 : index
    %c0_203 = arith.constant 0 : index
    %c0_204 = arith.constant 0 : index
    %c0_205 = arith.constant 0 : index
    %167 = vector.load %arg6[%c0_202, %c0_203, %c0_204, %c0_205] : memref<3x3x2x4xbf16, #tpu.memory_space<vmem>>, vector<1x1x2x4xbf16>
    %168 = vector.shape_cast %167 : vector<1x1x2x4xbf16> to vector<2x4xbf16>
    %cst_206 = arith.constant dense<0.000000e+00> : vector<128x4xf32>
    %169 = tpu.matmul %166, %168, %cst_206 {dimension_numbers = #tpu.dot_dimension_numbers<[1], [0], [0], [1], [0, 0, 1, 1], [], []>} : vector<128x2xbf16>, vector<2x4xbf16>, vector<128x4xf32> -> vector<128x4xf32>
    %170 = arith.addf %163, %169 : vector<128x4xf32>
    %c0_207 = arith.constant 0 : index
    %c4_208 = arith.constant 4 : index
    %c0_209 = arith.constant 0 : index
    %171 = vector.load %arg18[%c0_207, %c4_208, %c0_209] : memref<18x16x2xf32, #tpu.memory_space<vmem>>, vector<16x8x2xf32>
    %172 = vector.shape_cast %171 : vector<16x8x2xf32> to vector<128x2xf32>
    %173 = arith.truncf %172 : vector<128x2xf32> to vector<128x2xbf16>
    %c0_210 = arith.constant 0 : index
    %c1_211 = arith.constant 1 : index
    %c0_212 = arith.constant 0 : index
    %c0_213 = arith.constant 0 : index
    %174 = vector.load %arg6[%c0_210, %c1_211, %c0_212, %c0_213] : memref<3x3x2x4xbf16, #tpu.memory_space<vmem>>, vector<1x1x2x4xbf16>
    %175 = vector.shape_cast %174 : vector<1x1x2x4xbf16> to vector<2x4xbf16>
    %cst_214 = arith.constant dense<0.000000e+00> : vector<128x4xf32>
    %176 = tpu.matmul %173, %175, %cst_214 {dimension_numbers = #tpu.dot_dimension_numbers<[1], [0], [0], [1], [0, 0, 1, 1], [], []>} : vector<128x2xbf16>, vector<2x4xbf16>, vector<128x4xf32> -> vector<128x4xf32>
    %177 = arith.addf %170, %176 : vector<128x4xf32>
    %c0_215 = arith.constant 0 : index
    %c8 = arith.constant 8 : index
    %c0_216 = arith.constant 0 : index
    %178 = vector.load %arg18[%c0_215, %c8, %c0_216] : memref<18x16x2xf32, #tpu.memory_space<vmem>>, vector<16x8x2xf32>
    %179 = vector.shape_cast %178 : vector<16x8x2xf32> to vector<128x2xf32>
    %180 = arith.truncf %179 : vector<128x2xf32> to vector<128x2xbf16>
    %c0_217 = arith.constant 0 : index
    %c2_218 = arith.constant 2 : index
    %c0_219 = arith.constant 0 : index
    %c0_220 = arith.constant 0 : index
    %181 = vector.load %arg6[%c0_217, %c2_218, %c0_219, %c0_220] : memref<3x3x2x4xbf16, #tpu.memory_space<vmem>>, vector<1x1x2x4xbf16>
    %182 = vector.shape_cast %181 : vector<1x1x2x4xbf16> to vector<2x4xbf16>
    %cst_221 = arith.constant dense<0.000000e+00> : vector<128x4xf32>
    %183 = tpu.matmul %180, %182, %cst_221 {dimension_numbers = #tpu.dot_dimension_numbers<[1], [0], [0], [1], [0, 0, 1, 1], [], []>} : vector<128x2xbf16>, vector<2x4xbf16>, vector<128x4xf32> -> vector<128x4xf32>
    %184 = arith.addf %177, %183 : vector<128x4xf32>
    %c1_222 = arith.constant 1 : index
    %c0_223 = arith.constant 0 : index
    %c0_224 = arith.constant 0 : index
    %185 = vector.load %arg18[%c1_222, %c0_223, %c0_224] : memref<18x16x2xf32, #tpu.memory_space<vmem>>, vector<16x8x2xf32>
    %186 = vector.shape_cast %185 : vector<16x8x2xf32> to vector<128x2xf32>
    %187 = arith.truncf %186 : vector<128x2xf32> to vector<128x2xbf16>
    %c1_225 = arith.constant 1 : index
    %c0_226 = arith.constant 0 : index
    %c0_227 = arith.constant 0 : index
    %c0_228 = arith.constant 0 : index
    %188 = vector.load %arg6[%c1_225, %c0_226, %c0_227, %c0_228] : memref<3x3x2x4xbf16, #tpu.memory_space<vmem>>, vector<1x1x2x4xbf16>
    %189 = vector.shape_cast %188 : vector<1x1x2x4xbf16> to vector<2x4xbf16>
    %cst_229 = arith.constant dense<0.000000e+00> : vector<128x4xf32>
    %190 = tpu.matmul %187, %189, %cst_229 {dimension_numbers = #tpu.dot_dimension_numbers<[1], [0], [0], [1], [0, 0, 1, 1], [], []>} : vector<128x2xbf16>, vector<2x4xbf16>, vector<128x4xf32> -> vector<128x4xf32>
    %191 = arith.addf %184, %190 : vector<128x4xf32>
    %c1_230 = arith.constant 1 : index
    %c4_231 = arith.constant 4 : index
    %c0_232 = arith.constant 0 : index
    %192 = vector.load %arg18[%c1_230, %c4_231, %c0_232] : memref<18x16x2xf32, #tpu.memory_space<vmem>>, vector<16x8x2xf32>
    %193 = vector.shape_cast %192 : vector<16x8x2xf32> to vector<128x2xf32>
    %194 = arith.truncf %193 : vector<128x2xf32> to vector<128x2xbf16>
    %c1_233 = arith.constant 1 : index
    %c1_234 = arith.constant 1 : index
    %c0_235 = arith.constant 0 : index
    %c0_236 = arith.constant 0 : index
    %195 = vector.load %arg6[%c1_233, %c1_234, %c0_235, %c0_236] : memref<3x3x2x4xbf16, #tpu.memory_space<vmem>>, vector<1x1x2x4xbf16>
    %196 = vector.shape_cast %195 : vector<1x1x2x4xbf16> to vector<2x4xbf16>
    %cst_237 = arith.constant dense<0.000000e+00> : vector<128x4xf32>
    %197 = tpu.matmul %194, %196, %cst_237 {dimension_numbers = #tpu.dot_dimension_numbers<[1], [0], [0], [1], [0, 0, 1, 1], [], []>} : vector<128x2xbf16>, vector<2x4xbf16>, vector<128x4xf32> -> vector<128x4xf32>
    %198 = arith.addf %191, %197 : vector<128x4xf32>
    %c1_238 = arith.constant 1 : index
    %c8_239 = arith.constant 8 : index
    %c0_240 = arith.constant 0 : index
    %199 = vector.load %arg18[%c1_238, %c8_239, %c0_240] : memref<18x16x2xf32, #tpu.memory_space<vmem>>, vector<16x8x2xf32>
    %200 = vector.shape_cast %199 : vector<16x8x2xf32> to vector<128x2xf32>
    %201 = arith.truncf %200 : vector<128x2xf32> to vector<128x2xbf16>
    %c1_241 = arith.constant 1 : index
    %c2_242 = arith.constant 2 : index
    %c0_243 = arith.constant 0 : index
    %c0_244 = arith.constant 0 : index
    %202 = vector.load %arg6[%c1_241, %c2_242, %c0_243, %c0_244] : memref<3x3x2x4xbf16, #tpu.memory_space<vmem>>, vector<1x1x2x4xbf16>
    %203 = vector.shape_cast %202 : vector<1x1x2x4xbf16> to vector<2x4xbf16>
    %cst_245 = arith.constant dense<0.000000e+00> : vector<128x4xf32>
    %204 = tpu.matmul %201, %203, %cst_245 {dimension_numbers = #tpu.dot_dimension_numbers<[1], [0], [0], [1], [0, 0, 1, 1], [], []>} : vector<128x2xbf16>, vector<2x4xbf16>, vector<128x4xf32> -> vector<128x4xf32>
    %205 = arith.addf %198, %204 : vector<128x4xf32>
    %c2_246 = arith.constant 2 : index
    %c0_247 = arith.constant 0 : index
    %c0_248 = arith.constant 0 : index
    %206 = vector.load %arg18[%c2_246, %c0_247, %c0_248] : memref<18x16x2xf32, #tpu.memory_space<vmem>>, vector<16x8x2xf32>
    %207 = vector.shape_cast %206 : vector<16x8x2xf32> to vector<128x2xf32>
    %208 = arith.truncf %207 : vector<128x2xf32> to vector<128x2xbf16>
    %c2_249 = arith.constant 2 : index
    %c0_250 = arith.constant 0 : index
    %c0_251 = arith.constant 0 : index
    %c0_252 = arith.constant 0 : index
    %209 = vector.load %arg6[%c2_249, %c0_250, %c0_251, %c0_252] : memref<3x3x2x4xbf16, #tpu.memory_space<vmem>>, vector<1x1x2x4xbf16>
    %210 = vector.shape_cast %209 : vector<1x1x2x4xbf16> to vector<2x4xbf16>
    %cst_253 = arith.constant dense<0.000000e+00> : vector<128x4xf32>
    %211 = tpu.matmul %208, %210, %cst_253 {dimension_numbers = #tpu.dot_dimension_numbers<[1], [0], [0], [1], [0, 0, 1, 1], [], []>} : vector<128x2xbf16>, vector<2x4xbf16>, vector<128x4xf32> -> vector<128x4xf32>
    %212 = arith.addf %205, %211 : vector<128x4xf32>
    %c2_254 = arith.constant 2 : index
    %c4_255 = arith.constant 4 : index
    %c0_256 = arith.constant 0 : index
    %213 = vector.load %arg18[%c2_254, %c4_255, %c0_256] : memref<18x16x2xf32, #tpu.memory_space<vmem>>, vector<16x8x2xf32>
    %214 = vector.shape_cast %213 : vector<16x8x2xf32> to vector<128x2xf32>
    %215 = arith.truncf %214 : vector<128x2xf32> to vector<128x2xbf16>
    %c2_257 = arith.constant 2 : index
    %c1_258 = arith.constant 1 : index
    %c0_259 = arith.constant 0 : index
    %c0_260 = arith.constant 0 : index
    %216 = vector.load %arg6[%c2_257, %c1_258, %c0_259, %c0_260] : memref<3x3x2x4xbf16, #tpu.memory_space<vmem>>, vector<1x1x2x4xbf16>
    %217 = vector.shape_cast %216 : vector<1x1x2x4xbf16> to vector<2x4xbf16>
    %cst_261 = arith.constant dense<0.000000e+00> : vector<128x4xf32>
    %218 = tpu.matmul %215, %217, %cst_261 {dimension_numbers = #tpu.dot_dimension_numbers<[1], [0], [0], [1], [0, 0, 1, 1], [], []>} : vector<128x2xbf16>, vector<2x4xbf16>, vector<128x4xf32> -> vector<128x4xf32>
    %219 = arith.addf %212, %218 : vector<128x4xf32>
    %c2_262 = arith.constant 2 : index
    %c8_263 = arith.constant 8 : index
    %c0_264 = arith.constant 0 : index
    %220 = vector.load %arg18[%c2_262, %c8_263, %c0_264] : memref<18x16x2xf32, #tpu.memory_space<vmem>>, vector<16x8x2xf32>
    %221 = vector.shape_cast %220 : vector<16x8x2xf32> to vector<128x2xf32>
    %222 = arith.truncf %221 : vector<128x2xf32> to vector<128x2xbf16>
    %c2_265 = arith.constant 2 : index
    %c2_266 = arith.constant 2 : index
    %c0_267 = arith.constant 0 : index
    %c0_268 = arith.constant 0 : index
    %223 = vector.load %arg6[%c2_265, %c2_266, %c0_267, %c0_268] : memref<3x3x2x4xbf16, #tpu.memory_space<vmem>>, vector<1x1x2x4xbf16>
    %224 = vector.shape_cast %223 : vector<1x1x2x4xbf16> to vector<2x4xbf16>
    %cst_269 = arith.constant dense<0.000000e+00> : vector<128x4xf32>
    %225 = tpu.matmul %222, %224, %cst_269 {dimension_numbers = #tpu.dot_dimension_numbers<[1], [0], [0], [1], [0, 0, 1, 1], [], []>} : vector<128x2xbf16>, vector<2x4xbf16>, vector<128x4xf32> -> vector<128x4xf32>
    %226 = arith.addf %219, %225 : vector<128x4xf32>
    %c0_270 = arith.constant 0 : index
    %c0_271 = arith.constant 0 : index
    %227 = vector.load %arg7[%c0_270, %c0_271] : memref<1x4xf32, #tpu.memory_space<vmem>>, vector<1x4xf32>
    %228 = vector.broadcast %227 : vector<1x4xf32> to vector<128x4xf32>
    %229 = arith.addf %226, %228 : vector<128x4xf32>
    %cst_272 = arith.constant 0.000000e+00 : f32
    %230 = vector.broadcast %cst_272 : f32 to vector<128x4xf32>
    %231 = arith.maximumf %229, %230 : vector<128x4xf32>
    %232 = vector.shape_cast %231 : vector<128x4xf32> to vector<16x8x4xf32>
    %233 = arith.truncf %232 : vector<16x8x4xf32> to vector<16x8x4xbf16>
    %c0_273 = arith.constant 0 : index
    %c0_274 = arith.constant 0 : index
    %c0_275 = arith.constant 0 : index
    %234 = vector.load %arg8[%c0_273, %c0_274, %c0_275] : memref<16x4x32xbf16, #tpu.memory_space<vmem>>, vector<16x4x32xbf16>
    "tpu.trace_start"() <{level = 10 : i32, message = "ftk,fkm->ftm"}> : () -> ()
    %cst_276 = arith.constant dense<0.000000e+00> : vector<16x8x32xf32>
    %235 = tpu.matmul %233, %234, %cst_276 {dimension_numbers = #tpu.dot_dimension_numbers<[2], [1], [1], [2], [0, 0, 0, 1, 1, 2], [0], [0]>} : vector<16x8x4xbf16>, vector<16x4x32xbf16>, vector<16x8x32xf32> -> vector<16x8x32xf32>
    "tpu.trace_stop"() : () -> ()
    %cst_277 = arith.constant dense<0.000000e+00> : vector<8x32xf32>
    %236 = vector.multi_reduction <add>, %235, %cst_277 [0] : vector<16x8x32xf32> to vector<8x32xf32>
    %c0_278 = arith.constant 0 : index
    %c0_279 = arith.constant 0 : index
    %237 = vector.load %arg9[%c0_278, %c0_279] : memref<1x32xf32, #tpu.memory_space<vmem>>, vector<1x32xf32>
    %238 = vector.broadcast %237 : vector<1x32xf32> to vector<8x32xf32>
    %239 = arith.addf %236, %238 : vector<8x32xf32>
    %240 = arith.truncf %239 : vector<8x32xf32> to vector<8x32xbf16>
    %c0_280 = arith.constant 0 : index
    %c0_281 = arith.constant 0 : index
    %241 = vector.load %arg10[%c0_280, %c0_281] : memref<32x128xbf16, #tpu.memory_space<vmem>>, vector<32x128xbf16>
    %cst_282 = arith.constant dense<0.000000e+00> : vector<8x128xf32>
    %242 = tpu.matmul %240, %241, %cst_282 {dimension_numbers = #tpu.dot_dimension_numbers<[1], [0], [0], [1], [0, 0, 1, 1], [], []>} : vector<8x32xbf16>, vector<32x128xbf16>, vector<8x128xf32> -> vector<8x128xf32>
    %c0_283 = arith.constant 0 : index
    %c0_284 = arith.constant 0 : index
    %243 = vector.load %arg11[%c0_283, %c0_284] : memref<1x128xf32, #tpu.memory_space<vmem>>, vector<1x128xf32>
    %244 = vector.broadcast %243 : vector<1x128xf32> to vector<8x128xf32>
    %245 = arith.addf %242, %244 : vector<8x128xf32>
    %c0_285 = arith.constant 0 : index
    %c0_286 = arith.constant 0 : index
    %c0_287 = arith.constant 0 : index
    %246 = vector.load %arg14[%c0_285, %c0_286, %c0_287] : memref<1x8x128xf32, #tpu.memory_space<vmem>>, vector<1x8x128xf32>
    %247 = vector.shape_cast %246 : vector<1x8x128xf32> to vector<8x128xf32>
    %248 = vector.shape_cast %245 : vector<8x128xf32> to vector<1x8x128xf32>
    tpu.vector_store %arg14[%c0_285, %c0_286, %c0_287], %248 {strides = array<i32>} : memref<1x8x128xf32, #tpu.memory_space<vmem>>, vector<1x8x128xf32>,
    %c0_288 = arith.constant 0 : index
    %c0_289 = arith.constant 0 : index
    %249 = vector.load %arg12[%c0_288, %c0_289] : memref<32x128xbf16, #tpu.memory_space<vmem>>, vector<32x128xbf16>
    %cst_290 = arith.constant dense<0.000000e+00> : vector<8x128xf32>
    %250 = tpu.matmul %240, %249, %cst_290 {dimension_numbers = #tpu.dot_dimension_numbers<[1], [0], [0], [1], [0, 0, 1, 1], [], []>} : vector<8x32xbf16>, vector<32x128xbf16>, vector<8x128xf32> -> vector<8x128xf32>
    %c0_291 = arith.constant 0 : index
    %c0_292 = arith.constant 0 : index
    %251 = vector.load %arg13[%c0_291, %c0_292] : memref<1x128xf32, #tpu.memory_space<vmem>>, vector<1x128xf32>
    %252 = vector.broadcast %251 : vector<1x128xf32> to vector<8x128xf32>
    %253 = arith.addf %250, %252 : vector<8x128xf32>
    %c0_293 = arith.constant 0 : index
    %c0_294 = arith.constant 0 : index
    %c0_295 = arith.constant 0 : index
    %254 = vector.load %arg15[%c0_293, %c0_294, %c0_295] : memref<1x8x128xf32, #tpu.memory_space<vmem>>, vector<1x8x128xf32>
    %255 = vector.shape_cast %254 : vector<1x8x128xf32> to vector<8x128xf32>
    %256 = vector.shape_cast %253 : vector<8x128xf32> to vector<1x8x128xf32>
    tpu.vector_store %arg15[%c0_293, %c0_294, %c0_295], %256 {strides = array<i32>} : memref<1x8x128xf32, #tpu.memory_space<vmem>>, vector<1x8x128xf32>,
    return
  }
  func.func @transform_0(%arg0: i32) -> (i32, i32, i32, i32) {
    %c0_i32 = arith.constant 0 : i32
    %c0_i32_0 = arith.constant 0 : i32
    %c0_i32_1 = arith.constant 0 : i32
    %c0_i32_2 = arith.constant 0 : i32
    return %arg0, %c0_i32, %c0_i32_0, %c0_i32_1 : i32, i32, i32, i32
  }
  func.func @transform_1(%arg0: i32) -> (i32, i32, i32, i32) {
    %c0_i32 = arith.constant 0 : i32
    %c0_i32_0 = arith.constant 0 : i32
    %c0_i32_1 = arith.constant 0 : i32
    %c0_i32_2 = arith.constant 0 : i32
    %c0_i32_3 = arith.constant 0 : i32
    return %c0_i32, %c0_i32_0, %c0_i32_1, %c0_i32_2 : i32, i32, i32, i32
  }
  func.func @transform_2(%arg0: i32) -> (i32, i32) {
    %c0_i32 = arith.constant 0 : i32
    %c0_i32_0 = arith.constant 0 : i32
    %c0_i32_1 = arith.constant 0 : i32
    return %c0_i32, %c0_i32_0 : i32, i32
  }
  func.func @transform_3(%arg0: i32) -> (i32, i32, i32, i32) {
    %c0_i32 = arith.constant 0 : i32
    %c0_i32_0 = arith.constant 0 : i32
    %c0_i32_1 = arith.constant 0 : i32
    %c0_i32_2 = arith.constant 0 : i32
    %c0_i32_3 = arith.constant 0 : i32
    return %c0_i32, %c0_i32_0, %c0_i32_1, %c0_i32_2 : i32, i32, i32, i32
  }
  func.func @transform_4(%arg0: i32) -> (i32, i32) {
    %c0_i32 = arith.constant 0 : i32
    %c0_i32_0 = arith.constant 0 : i32
    %c0_i32_1 = arith.constant 0 : i32
    return %c0_i32, %c0_i32_0 : i32, i32
  }
  func.func @transform_5(%arg0: i32) -> (i32, i32, i32, i32) {
    %c0_i32 = arith.constant 0 : i32
    %c0_i32_0 = arith.constant 0 : i32
    %c0_i32_1 = arith.constant 0 : i32
    %c0_i32_2 = arith.constant 0 : i32
    %c0_i32_3 = arith.constant 0 : i32
    return %c0_i32, %c0_i32_0, %c0_i32_1, %c0_i32_2 : i32, i32, i32, i32
  }
  func.func @transform_6(%arg0: i32) -> (i32, i32) {
    %c0_i32 = arith.constant 0 : i32
    %c0_i32_0 = arith.constant 0 : i32
    %c0_i32_1 = arith.constant 0 : i32
    return %c0_i32, %c0_i32_0 : i32, i32
  }
  func.func @transform_7(%arg0: i32) -> (i32, i32, i32) {
    %c0_i32 = arith.constant 0 : i32
    %c0_i32_0 = arith.constant 0 : i32
    %c0_i32_1 = arith.constant 0 : i32
    %c0_i32_2 = arith.constant 0 : i32
    return %c0_i32, %c0_i32_0, %c0_i32_1 : i32, i32, i32
  }
  func.func @transform_8(%arg0: i32) -> (i32, i32) {
    %c0_i32 = arith.constant 0 : i32
    %c0_i32_0 = arith.constant 0 : i32
    %c0_i32_1 = arith.constant 0 : i32
    return %c0_i32, %c0_i32_0 : i32, i32
  }
  func.func @transform_9(%arg0: i32) -> (i32, i32) {
    %c0_i32 = arith.constant 0 : i32
    %c0_i32_0 = arith.constant 0 : i32
    %c0_i32_1 = arith.constant 0 : i32
    return %c0_i32, %c0_i32_0 : i32, i32
  }
  func.func @transform_10(%arg0: i32) -> (i32, i32) {
    %c0_i32 = arith.constant 0 : i32
    %c0_i32_0 = arith.constant 0 : i32
    %c0_i32_1 = arith.constant 0 : i32
    return %c0_i32, %c0_i32_0 : i32, i32
  }
  func.func @transform_11(%arg0: i32) -> (i32, i32) {
    %c0_i32 = arith.constant 0 : i32
    %c0_i32_0 = arith.constant 0 : i32
    %c0_i32_1 = arith.constant 0 : i32
    return %c0_i32, %c0_i32_0 : i32, i32
  }
  func.func @transform_12(%arg0: i32) -> (i32, i32) {
    %c0_i32 = arith.constant 0 : i32
    %c0_i32_0 = arith.constant 0 : i32
    %c0_i32_1 = arith.constant 0 : i32
    return %c0_i32, %c0_i32_0 : i32, i32
  }
  func.func @transform_13(%arg0: i32) -> (i32, i32, i32) {
    %c0_i32 = arith.constant 0 : i32
    %c0_i32_0 = arith.constant 0 : i32
    %c0_i32_1 = arith.constant 0 : i32
    return %arg0, %c0_i32, %c0_i32_0 : i32, i32, i32
  }
  func.func @transform_14(%arg0: i32) -> (i32, i32, i32) {
    %c0_i32 = arith.constant 0 : i32
    %c0_i32_0 = arith.constant 0 : i32
    %c0_i32_1 = arith.constant 0 : i32
    return %arg0, %c0_i32, %c0_i32_0 : i32, i32, i32
  }
}

module attributes {stable_mosaic.version = 11 : i64} {
  func.func @_bilstm_kernel(%arg0: i32, %arg1: memref<8x2x128xf32, #tpu.memory_space<vmem>>, %arg2: memref<8x2x128xf32, #tpu.memory_space<vmem>>, %arg3: memref<32x256xbf16, #tpu.memory_space<vmem>>, %arg4: memref<8x2x16xf32, #tpu.memory_space<vmem>>, %arg5: memref<8x2x16xf32, #tpu.memory_space<vmem>>, %arg6: memref<2x32xf32, #tpu.memory_space<vmem>>, %arg7: memref<2x16xf32, #tpu.memory_space<vmem>>, %arg8: memref<2x16xf32, #tpu.memory_space<vmem>>) attributes {dimension_semantics = [#tpu.dimension_semantics<arbitrary>], iteration_bounds = array<i64: 1>, scalar_prefetch = 0 : i64, scratch_operands = 3 : i64, tpu.core_type = #tpu.core_type<tc>, window_params = [{transform_indices = @transform_0, window_bounds = array<i64: 8, 2, 128>}, {transform_indices = @transform_1, window_bounds = array<i64: 8, 2, 128>}, {pipeline_mode = #tpu.pipeline_mode<synchronous>, transform_indices = @transform_2, window_bounds = array<i64: 32, 256>}, {transform_indices = @transform_3, window_bounds = array<i64: 8, 2, 16>}, {transform_indices = @transform_4, window_bounds = array<i64: 8, 2, 16>}]} {
    %c0_i32 = arith.constant 0 : i32
    %0 = arith.cmpi eq, %arg0, %c0_i32 : i32
    %1 = arith.extui %0 : i1 to i32
    %c0_i32_0 = arith.constant 0 : i32
    %2 = arith.cmpi ne, %1, %c0_i32_0 : i32
    scf.if %2 {
      %cst_271 = arith.constant 0.000000e+00 : f32
      %595 = vector.broadcast %cst_271 : f32 to vector<2x32xf32>
      %c0_272 = arith.constant 0 : index
      %c0_273 = arith.constant 0 : index
      %596 = vector.load %arg6[%c0_272, %c0_273] : memref<2x32xf32, #tpu.memory_space<vmem>>, vector<2x32xf32>
      tpu.vector_store %arg6[%c0_272, %c0_273], %595 {strides = array<i32>} : memref<2x32xf32, #tpu.memory_space<vmem>>, vector<2x32xf32>,
      %cst_274 = arith.constant 0.000000e+00 : f32
      %597 = vector.broadcast %cst_274 : f32 to vector<2x16xf32>
      %c0_275 = arith.constant 0 : index
      %c0_276 = arith.constant 0 : index
      %598 = vector.load %arg7[%c0_275, %c0_276] : memref<2x16xf32, #tpu.memory_space<vmem>>, vector<2x16xf32>
      tpu.vector_store %arg7[%c0_275, %c0_276], %597 {strides = array<i32>} : memref<2x16xf32, #tpu.memory_space<vmem>>, vector<2x16xf32>,
      %cst_277 = arith.constant 0.000000e+00 : f32
      %599 = vector.broadcast %cst_277 : f32 to vector<2x16xf32>
      %c0_278 = arith.constant 0 : index
      %c0_279 = arith.constant 0 : index
      %600 = vector.load %arg8[%c0_278, %c0_279] : memref<2x16xf32, #tpu.memory_space<vmem>>, vector<2x16xf32>
      tpu.vector_store %arg8[%c0_278, %c0_279], %599 {strides = array<i32>} : memref<2x16xf32, #tpu.memory_space<vmem>>, vector<2x16xf32>,
    } else {
    }
    %c0 = arith.constant 0 : index
    %c0_1 = arith.constant 0 : index
    %3 = vector.load %arg6[%c0, %c0_1] : memref<2x32xf32, #tpu.memory_space<vmem>>, vector<2x32xf32>
    %4 = arith.truncf %3 : vector<2x32xf32> to vector<2x32xbf16>
    %c0_2 = arith.constant 0 : index
    %c0_3 = arith.constant 0 : index
    %5 = vector.load %arg3[%c0_2, %c0_3] : memref<32x256xbf16, #tpu.memory_space<vmem>>, vector<32x256xbf16>
    %cst = arith.constant dense<0.000000e+00> : vector<2x256xf32>
    %6 = tpu.matmul %4, %5, %cst {dimension_numbers = #tpu.dot_dimension_numbers<[1], [0], [0], [1], [0, 0, 1, 1], [], []>} : vector<2x32xbf16>, vector<32x256xbf16>, vector<2x256xf32> -> vector<2x256xf32>
    %c0_4 = arith.constant 0 : index
    %c0_5 = arith.constant 0 : index
    %c0_6 = arith.constant 0 : index
    %7 = vector.load %arg1[%c0_4, %c0_5, %c0_6] : memref<8x2x128xf32, #tpu.memory_space<vmem>>, vector<1x2x128xf32>
    %8 = vector.shape_cast %7 : vector<1x2x128xf32> to vector<2x128xf32>
    %9 = vector.extract_strided_slice %6 {offsets = [0, 0], sizes = [2, 128], strides = [1, 1]} : vector<2x256xf32> to vector<2x128xf32>
    %10 = arith.addf %8, %9 : vector<2x128xf32>
    %c7 = arith.constant 7 : index
    %c0_7 = arith.constant 0 : index
    %c0_8 = arith.constant 0 : index
    %11 = vector.load %arg2[%c7, %c0_7, %c0_8] : memref<8x2x128xf32, #tpu.memory_space<vmem>>, vector<1x2x128xf32>
    %12 = vector.shape_cast %11 : vector<1x2x128xf32> to vector<2x128xf32>
    %13 = vector.extract_strided_slice %6 {offsets = [0, 128], sizes = [2, 128], strides = [1, 1]} : vector<2x256xf32> to vector<2x128xf32>
    %14 = arith.addf %12, %13 : vector<2x128xf32>
    %c0_9 = arith.constant 0 : index
    %c0_10 = arith.constant 0 : index
    %15 = vector.load %arg7[%c0_9, %c0_10] : memref<2x16xf32, #tpu.memory_space<vmem>>, vector<2x16xf32>
    %16 = vector.extract_strided_slice %10 {offsets = [0, 0], sizes = [2, 16], strides = [1, 1]} : vector<2x128xf32> to vector<2x16xf32>
    %17 = arith.negf %16 : vector<2x16xf32>
    %18 = math.exp %17 : vector<2x16xf32>
    %cst_11 = arith.constant 1.000000e+00 : f32
    %19 = vector.broadcast %cst_11 : f32 to vector<2x16xf32>
    %20 = arith.addf %19, %18 : vector<2x16xf32>
    %21 = arith.divf %19, %20 : vector<2x16xf32>
    %22 = vector.extract_strided_slice %10 {offsets = [0, 16], sizes = [2, 16], strides = [1, 1]} : vector<2x128xf32> to vector<2x16xf32>
    %23 = arith.negf %22 : vector<2x16xf32>
    %24 = math.exp %23 : vector<2x16xf32>
    %cst_12 = arith.constant 1.000000e+00 : f32
    %25 = vector.broadcast %cst_12 : f32 to vector<2x16xf32>
    %26 = arith.addf %25, %24 : vector<2x16xf32>
    %27 = arith.divf %25, %26 : vector<2x16xf32>
    %28 = vector.extract_strided_slice %10 {offsets = [0, 32], sizes = [2, 16], strides = [1, 1]} : vector<2x128xf32> to vector<2x16xf32>
    %29 = math.tanh %28 : vector<2x16xf32>
    %30 = vector.extract_strided_slice %10 {offsets = [0, 48], sizes = [2, 16], strides = [1, 1]} : vector<2x128xf32> to vector<2x16xf32>
    %31 = arith.negf %30 : vector<2x16xf32>
    %32 = math.exp %31 : vector<2x16xf32>
    %cst_13 = arith.constant 1.000000e+00 : f32
    %33 = vector.broadcast %cst_13 : f32 to vector<2x16xf32>
    %34 = arith.addf %33, %32 : vector<2x16xf32>
    %35 = arith.divf %33, %34 : vector<2x16xf32>
    %36 = arith.mulf %27, %15 : vector<2x16xf32>
    %37 = arith.mulf %21, %29 : vector<2x16xf32>
    %38 = arith.addf %36, %37 : vector<2x16xf32>
    %39 = math.tanh %38 : vector<2x16xf32>
    %40 = arith.mulf %35, %39 : vector<2x16xf32>
    %c0_14 = arith.constant 0 : index
    %c0_15 = arith.constant 0 : index
    %41 = vector.load %arg8[%c0_14, %c0_15] : memref<2x16xf32, #tpu.memory_space<vmem>>, vector<2x16xf32>
    %42 = vector.extract_strided_slice %14 {offsets = [0, 0], sizes = [2, 16], strides = [1, 1]} : vector<2x128xf32> to vector<2x16xf32>
    %43 = arith.negf %42 : vector<2x16xf32>
    %44 = math.exp %43 : vector<2x16xf32>
    %cst_16 = arith.constant 1.000000e+00 : f32
    %45 = vector.broadcast %cst_16 : f32 to vector<2x16xf32>
    %46 = arith.addf %45, %44 : vector<2x16xf32>
    %47 = arith.divf %45, %46 : vector<2x16xf32>
    %48 = vector.extract_strided_slice %14 {offsets = [0, 16], sizes = [2, 16], strides = [1, 1]} : vector<2x128xf32> to vector<2x16xf32>
    %49 = arith.negf %48 : vector<2x16xf32>
    %50 = math.exp %49 : vector<2x16xf32>
    %cst_17 = arith.constant 1.000000e+00 : f32
    %51 = vector.broadcast %cst_17 : f32 to vector<2x16xf32>
    %52 = arith.addf %51, %50 : vector<2x16xf32>
    %53 = arith.divf %51, %52 : vector<2x16xf32>
    %54 = vector.extract_strided_slice %14 {offsets = [0, 32], sizes = [2, 16], strides = [1, 1]} : vector<2x128xf32> to vector<2x16xf32>
    %55 = math.tanh %54 : vector<2x16xf32>
    %56 = vector.extract_strided_slice %14 {offsets = [0, 48], sizes = [2, 16], strides = [1, 1]} : vector<2x128xf32> to vector<2x16xf32>
    %57 = arith.negf %56 : vector<2x16xf32>
    %58 = math.exp %57 : vector<2x16xf32>
    %cst_18 = arith.constant 1.000000e+00 : f32
    %59 = vector.broadcast %cst_18 : f32 to vector<2x16xf32>
    %60 = arith.addf %59, %58 : vector<2x16xf32>
    %61 = arith.divf %59, %60 : vector<2x16xf32>
    %62 = arith.mulf %53, %41 : vector<2x16xf32>
    %63 = arith.mulf %47, %55 : vector<2x16xf32>
    %64 = arith.addf %62, %63 : vector<2x16xf32>
    %65 = math.tanh %64 : vector<2x16xf32>
    %66 = arith.mulf %61, %65 : vector<2x16xf32>
    %c0_19 = arith.constant 0 : index
    %c0_20 = arith.constant 0 : index
    %67 = vector.load %arg7[%c0_19, %c0_20] : memref<2x16xf32, #tpu.memory_space<vmem>>, vector<2x16xf32>
    tpu.vector_store %arg7[%c0_19, %c0_20], %38 {strides = array<i32>} : memref<2x16xf32, #tpu.memory_space<vmem>>, vector<2x16xf32>,
    %c0_21 = arith.constant 0 : index
    %c0_22 = arith.constant 0 : index
    %68 = vector.load %arg8[%c0_21, %c0_22] : memref<2x16xf32, #tpu.memory_space<vmem>>, vector<2x16xf32>
    tpu.vector_store %arg8[%c0_21, %c0_22], %64 {strides = array<i32>} : memref<2x16xf32, #tpu.memory_space<vmem>>, vector<2x16xf32>,
    %c0_23 = arith.constant 0 : index
    %c0_24 = arith.constant 0 : index
    %69 = vector.load %arg6[%c0_23, %c0_24] : memref<2x32xf32, #tpu.memory_space<vmem>>, vector<2x16xf32>
    tpu.vector_store %arg6[%c0_23, %c0_24], %40 {strides = array<i32>} : memref<2x32xf32, #tpu.memory_space<vmem>>, vector<2x16xf32>,
    %c0_25 = arith.constant 0 : index
    %c16 = arith.constant 16 : index
    %70 = vector.load %arg6[%c0_25, %c16] : memref<2x32xf32, #tpu.memory_space<vmem>>, vector<2x16xf32>
    tpu.vector_store %arg6[%c0_25, %c16], %66 {strides = array<i32>} : memref<2x32xf32, #tpu.memory_space<vmem>>, vector<2x16xf32>,
    %c0_26 = arith.constant 0 : index
    %c0_27 = arith.constant 0 : index
    %c0_28 = arith.constant 0 : index
    %71 = vector.load %arg4[%c0_26, %c0_27, %c0_28] : memref<8x2x16xf32, #tpu.memory_space<vmem>>, vector<1x2x16xf32>
    %72 = vector.shape_cast %71 : vector<1x2x16xf32> to vector<2x16xf32>
    %73 = vector.shape_cast %40 : vector<2x16xf32> to vector<1x2x16xf32>
    tpu.vector_store %arg4[%c0_26, %c0_27, %c0_28], %73 {strides = array<i32>} : memref<8x2x16xf32, #tpu.memory_space<vmem>>, vector<1x2x16xf32>,
    %c7_29 = arith.constant 7 : index
    %c0_30 = arith.constant 0 : index
    %c0_31 = arith.constant 0 : index
    %74 = vector.load %arg5[%c7_29, %c0_30, %c0_31] : memref<8x2x16xf32, #tpu.memory_space<vmem>>, vector<1x2x16xf32>
    %75 = vector.shape_cast %74 : vector<1x2x16xf32> to vector<2x16xf32>
    %76 = vector.shape_cast %66 : vector<2x16xf32> to vector<1x2x16xf32>
    tpu.vector_store %arg5[%c7_29, %c0_30, %c0_31], %76 {strides = array<i32>} : memref<8x2x16xf32, #tpu.memory_space<vmem>>, vector<1x2x16xf32>,
    %c0_32 = arith.constant 0 : index
    %c0_33 = arith.constant 0 : index
    %77 = vector.load %arg6[%c0_32, %c0_33] : memref<2x32xf32, #tpu.memory_space<vmem>>, vector<2x32xf32>
    %78 = arith.truncf %77 : vector<2x32xf32> to vector<2x32xbf16>
    %c0_34 = arith.constant 0 : index
    %c0_35 = arith.constant 0 : index
    %79 = vector.load %arg3[%c0_34, %c0_35] : memref<32x256xbf16, #tpu.memory_space<vmem>>, vector<32x256xbf16>
    %cst_36 = arith.constant dense<0.000000e+00> : vector<2x256xf32>
    %80 = tpu.matmul %78, %79, %cst_36 {dimension_numbers = #tpu.dot_dimension_numbers<[1], [0], [0], [1], [0, 0, 1, 1], [], []>} : vector<2x32xbf16>, vector<32x256xbf16>, vector<2x256xf32> -> vector<2x256xf32>
    %c1 = arith.constant 1 : index
    %c0_37 = arith.constant 0 : index
    %c0_38 = arith.constant 0 : index
    %81 = vector.load %arg1[%c1, %c0_37, %c0_38] : memref<8x2x128xf32, #tpu.memory_space<vmem>>, vector<1x2x128xf32>
    %82 = vector.shape_cast %81 : vector<1x2x128xf32> to vector<2x128xf32>
    %83 = vector.extract_strided_slice %80 {offsets = [0, 0], sizes = [2, 128], strides = [1, 1]} : vector<2x256xf32> to vector<2x128xf32>
    %84 = arith.addf %82, %83 : vector<2x128xf32>
    %c6 = arith.constant 6 : index
    %c0_39 = arith.constant 0 : index
    %c0_40 = arith.constant 0 : index
    %85 = vector.load %arg2[%c6, %c0_39, %c0_40] : memref<8x2x128xf32, #tpu.memory_space<vmem>>, vector<1x2x128xf32>
    %86 = vector.shape_cast %85 : vector<1x2x128xf32> to vector<2x128xf32>
    %87 = vector.extract_strided_slice %80 {offsets = [0, 128], sizes = [2, 128], strides = [1, 1]} : vector<2x256xf32> to vector<2x128xf32>
    %88 = arith.addf %86, %87 : vector<2x128xf32>
    %c0_41 = arith.constant 0 : index
    %c0_42 = arith.constant 0 : index
    %89 = vector.load %arg7[%c0_41, %c0_42] : memref<2x16xf32, #tpu.memory_space<vmem>>, vector<2x16xf32>
    %90 = vector.extract_strided_slice %84 {offsets = [0, 0], sizes = [2, 16], strides = [1, 1]} : vector<2x128xf32> to vector<2x16xf32>
    %91 = arith.negf %90 : vector<2x16xf32>
    %92 = math.exp %91 : vector<2x16xf32>
    %cst_43 = arith.constant 1.000000e+00 : f32
    %93 = vector.broadcast %cst_43 : f32 to vector<2x16xf32>
    %94 = arith.addf %93, %92 : vector<2x16xf32>
    %95 = arith.divf %93, %94 : vector<2x16xf32>
    %96 = vector.extract_strided_slice %84 {offsets = [0, 16], sizes = [2, 16], strides = [1, 1]} : vector<2x128xf32> to vector<2x16xf32>
    %97 = arith.negf %96 : vector<2x16xf32>
    %98 = math.exp %97 : vector<2x16xf32>
    %cst_44 = arith.constant 1.000000e+00 : f32
    %99 = vector.broadcast %cst_44 : f32 to vector<2x16xf32>
    %100 = arith.addf %99, %98 : vector<2x16xf32>
    %101 = arith.divf %99, %100 : vector<2x16xf32>
    %102 = vector.extract_strided_slice %84 {offsets = [0, 32], sizes = [2, 16], strides = [1, 1]} : vector<2x128xf32> to vector<2x16xf32>
    %103 = math.tanh %102 : vector<2x16xf32>
    %104 = vector.extract_strided_slice %84 {offsets = [0, 48], sizes = [2, 16], strides = [1, 1]} : vector<2x128xf32> to vector<2x16xf32>
    %105 = arith.negf %104 : vector<2x16xf32>
    %106 = math.exp %105 : vector<2x16xf32>
    %cst_45 = arith.constant 1.000000e+00 : f32
    %107 = vector.broadcast %cst_45 : f32 to vector<2x16xf32>
    %108 = arith.addf %107, %106 : vector<2x16xf32>
    %109 = arith.divf %107, %108 : vector<2x16xf32>
    %110 = arith.mulf %101, %89 : vector<2x16xf32>
    %111 = arith.mulf %95, %103 : vector<2x16xf32>
    %112 = arith.addf %110, %111 : vector<2x16xf32>
    %113 = math.tanh %112 : vector<2x16xf32>
    %114 = arith.mulf %109, %113 : vector<2x16xf32>
    %c0_46 = arith.constant 0 : index
    %c0_47 = arith.constant 0 : index
    %115 = vector.load %arg8[%c0_46, %c0_47] : memref<2x16xf32, #tpu.memory_space<vmem>>, vector<2x16xf32>
    %116 = vector.extract_strided_slice %88 {offsets = [0, 0], sizes = [2, 16], strides = [1, 1]} : vector<2x128xf32> to vector<2x16xf32>
    %117 = arith.negf %116 : vector<2x16xf32>
    %118 = math.exp %117 : vector<2x16xf32>
    %cst_48 = arith.constant 1.000000e+00 : f32
    %119 = vector.broadcast %cst_48 : f32 to vector<2x16xf32>
    %120 = arith.addf %119, %118 : vector<2x16xf32>
    %121 = arith.divf %119, %120 : vector<2x16xf32>
    %122 = vector.extract_strided_slice %88 {offsets = [0, 16], sizes = [2, 16], strides = [1, 1]} : vector<2x128xf32> to vector<2x16xf32>
    %123 = arith.negf %122 : vector<2x16xf32>
    %124 = math.exp %123 : vector<2x16xf32>
    %cst_49 = arith.constant 1.000000e+00 : f32
    %125 = vector.broadcast %cst_49 : f32 to vector<2x16xf32>
    %126 = arith.addf %125, %124 : vector<2x16xf32>
    %127 = arith.divf %125, %126 : vector<2x16xf32>
    %128 = vector.extract_strided_slice %88 {offsets = [0, 32], sizes = [2, 16], strides = [1, 1]} : vector<2x128xf32> to vector<2x16xf32>
    %129 = math.tanh %128 : vector<2x16xf32>
    %130 = vector.extract_strided_slice %88 {offsets = [0, 48], sizes = [2, 16], strides = [1, 1]} : vector<2x128xf32> to vector<2x16xf32>
    %131 = arith.negf %130 : vector<2x16xf32>
    %132 = math.exp %131 : vector<2x16xf32>
    %cst_50 = arith.constant 1.000000e+00 : f32
    %133 = vector.broadcast %cst_50 : f32 to vector<2x16xf32>
    %134 = arith.addf %133, %132 : vector<2x16xf32>
    %135 = arith.divf %133, %134 : vector<2x16xf32>
    %136 = arith.mulf %127, %115 : vector<2x16xf32>
    %137 = arith.mulf %121, %129 : vector<2x16xf32>
    %138 = arith.addf %136, %137 : vector<2x16xf32>
    %139 = math.tanh %138 : vector<2x16xf32>
    %140 = arith.mulf %135, %139 : vector<2x16xf32>
    %c0_51 = arith.constant 0 : index
    %c0_52 = arith.constant 0 : index
    %141 = vector.load %arg7[%c0_51, %c0_52] : memref<2x16xf32, #tpu.memory_space<vmem>>, vector<2x16xf32>
    tpu.vector_store %arg7[%c0_51, %c0_52], %112 {strides = array<i32>} : memref<2x16xf32, #tpu.memory_space<vmem>>, vector<2x16xf32>,
    %c0_53 = arith.constant 0 : index
    %c0_54 = arith.constant 0 : index
    %142 = vector.load %arg8[%c0_53, %c0_54] : memref<2x16xf32, #tpu.memory_space<vmem>>, vector<2x16xf32>
    tpu.vector_store %arg8[%c0_53, %c0_54], %138 {strides = array<i32>} : memref<2x16xf32, #tpu.memory_space<vmem>>, vector<2x16xf32>,
    %c0_55 = arith.constant 0 : index
    %c0_56 = arith.constant 0 : index
    %143 = vector.load %arg6[%c0_55, %c0_56] : memref<2x32xf32, #tpu.memory_space<vmem>>, vector<2x16xf32>
    tpu.vector_store %arg6[%c0_55, %c0_56], %114 {strides = array<i32>} : memref<2x32xf32, #tpu.memory_space<vmem>>, vector<2x16xf32>,
    %c0_57 = arith.constant 0 : index
    %c16_58 = arith.constant 16 : index
    %144 = vector.load %arg6[%c0_57, %c16_58] : memref<2x32xf32, #tpu.memory_space<vmem>>, vector<2x16xf32>
    tpu.vector_store %arg6[%c0_57, %c16_58], %140 {strides = array<i32>} : memref<2x32xf32, #tpu.memory_space<vmem>>, vector<2x16xf32>,
    %c1_59 = arith.constant 1 : index
    %c0_60 = arith.constant 0 : index
    %c0_61 = arith.constant 0 : index
    %145 = vector.load %arg4[%c1_59, %c0_60, %c0_61] : memref<8x2x16xf32, #tpu.memory_space<vmem>>, vector<1x2x16xf32>
    %146 = vector.shape_cast %145 : vector<1x2x16xf32> to vector<2x16xf32>
    %147 = vector.shape_cast %114 : vector<2x16xf32> to vector<1x2x16xf32>
    tpu.vector_store %arg4[%c1_59, %c0_60, %c0_61], %147 {strides = array<i32>} : memref<8x2x16xf32, #tpu.memory_space<vmem>>, vector<1x2x16xf32>,
    %c6_62 = arith.constant 6 : index
    %c0_63 = arith.constant 0 : index
    %c0_64 = arith.constant 0 : index
    %148 = vector.load %arg5[%c6_62, %c0_63, %c0_64] : memref<8x2x16xf32, #tpu.memory_space<vmem>>, vector<1x2x16xf32>
    %149 = vector.shape_cast %148 : vector<1x2x16xf32> to vector<2x16xf32>
    %150 = vector.shape_cast %140 : vector<2x16xf32> to vector<1x2x16xf32>
    tpu.vector_store %arg5[%c6_62, %c0_63, %c0_64], %150 {strides = array<i32>} : memref<8x2x16xf32, #tpu.memory_space<vmem>>, vector<1x2x16xf32>,
    %c0_65 = arith.constant 0 : index
    %c0_66 = arith.constant 0 : index
    %151 = vector.load %arg6[%c0_65, %c0_66] : memref<2x32xf32, #tpu.memory_space<vmem>>, vector<2x32xf32>
    %152 = arith.truncf %151 : vector<2x32xf32> to vector<2x32xbf16>
    %c0_67 = arith.constant 0 : index
    %c0_68 = arith.constant 0 : index
    %153 = vector.load %arg3[%c0_67, %c0_68] : memref<32x256xbf16, #tpu.memory_space<vmem>>, vector<32x256xbf16>
    %cst_69 = arith.constant dense<0.000000e+00> : vector<2x256xf32>
    %154 = tpu.matmul %152, %153, %cst_69 {dimension_numbers = #tpu.dot_dimension_numbers<[1], [0], [0], [1], [0, 0, 1, 1], [], []>} : vector<2x32xbf16>, vector<32x256xbf16>, vector<2x256xf32> -> vector<2x256xf32>
    %c2 = arith.constant 2 : index
    %c0_70 = arith.constant 0 : index
    %c0_71 = arith.constant 0 : index
    %155 = vector.load %arg1[%c2, %c0_70, %c0_71] : memref<8x2x128xf32, #tpu.memory_space<vmem>>, vector<1x2x128xf32>
    %156 = vector.shape_cast %155 : vector<1x2x128xf32> to vector<2x128xf32>
    %157 = vector.extract_strided_slice %154 {offsets = [0, 0], sizes = [2, 128], strides = [1, 1]} : vector<2x256xf32> to vector<2x128xf32>
    %158 = arith.addf %156, %157 : vector<2x128xf32>
    %c5 = arith.constant 5 : index
    %c0_72 = arith.constant 0 : index
    %c0_73 = arith.constant 0 : index
    %159 = vector.load %arg2[%c5, %c0_72, %c0_73] : memref<8x2x128xf32, #tpu.memory_space<vmem>>, vector<1x2x128xf32>
    %160 = vector.shape_cast %159 : vector<1x2x128xf32> to vector<2x128xf32>
    %161 = vector.extract_strided_slice %154 {offsets = [0, 128], sizes = [2, 128], strides = [1, 1]} : vector<2x256xf32> to vector<2x128xf32>
    %162 = arith.addf %160, %161 : vector<2x128xf32>
    %c0_74 = arith.constant 0 : index
    %c0_75 = arith.constant 0 : index
    %163 = vector.load %arg7[%c0_74, %c0_75] : memref<2x16xf32, #tpu.memory_space<vmem>>, vector<2x16xf32>
    %164 = vector.extract_strided_slice %158 {offsets = [0, 0], sizes = [2, 16], strides = [1, 1]} : vector<2x128xf32> to vector<2x16xf32>
    %165 = arith.negf %164 : vector<2x16xf32>
    %166 = math.exp %165 : vector<2x16xf32>
    %cst_76 = arith.constant 1.000000e+00 : f32
    %167 = vector.broadcast %cst_76 : f32 to vector<2x16xf32>
    %168 = arith.addf %167, %166 : vector<2x16xf32>
    %169 = arith.divf %167, %168 : vector<2x16xf32>
    %170 = vector.extract_strided_slice %158 {offsets = [0, 16], sizes = [2, 16], strides = [1, 1]} : vector<2x128xf32> to vector<2x16xf32>
    %171 = arith.negf %170 : vector<2x16xf32>
    %172 = math.exp %171 : vector<2x16xf32>
    %cst_77 = arith.constant 1.000000e+00 : f32
    %173 = vector.broadcast %cst_77 : f32 to vector<2x16xf32>
    %174 = arith.addf %173, %172 : vector<2x16xf32>
    %175 = arith.divf %173, %174 : vector<2x16xf32>
    %176 = vector.extract_strided_slice %158 {offsets = [0, 32], sizes = [2, 16], strides = [1, 1]} : vector<2x128xf32> to vector<2x16xf32>
    %177 = math.tanh %176 : vector<2x16xf32>
    %178 = vector.extract_strided_slice %158 {offsets = [0, 48], sizes = [2, 16], strides = [1, 1]} : vector<2x128xf32> to vector<2x16xf32>
    %179 = arith.negf %178 : vector<2x16xf32>
    %180 = math.exp %179 : vector<2x16xf32>
    %cst_78 = arith.constant 1.000000e+00 : f32
    %181 = vector.broadcast %cst_78 : f32 to vector<2x16xf32>
    %182 = arith.addf %181, %180 : vector<2x16xf32>
    %183 = arith.divf %181, %182 : vector<2x16xf32>
    %184 = arith.mulf %175, %163 : vector<2x16xf32>
    %185 = arith.mulf %169, %177 : vector<2x16xf32>
    %186 = arith.addf %184, %185 : vector<2x16xf32>
    %187 = math.tanh %186 : vector<2x16xf32>
    %188 = arith.mulf %183, %187 : vector<2x16xf32>
    %c0_79 = arith.constant 0 : index
    %c0_80 = arith.constant 0 : index
    %189 = vector.load %arg8[%c0_79, %c0_80] : memref<2x16xf32, #tpu.memory_space<vmem>>, vector<2x16xf32>
    %190 = vector.extract_strided_slice %162 {offsets = [0, 0], sizes = [2, 16], strides = [1, 1]} : vector<2x128xf32> to vector<2x16xf32>
    %191 = arith.negf %190 : vector<2x16xf32>
    %192 = math.exp %191 : vector<2x16xf32>
    %cst_81 = arith.constant 1.000000e+00 : f32
    %193 = vector.broadcast %cst_81 : f32 to vector<2x16xf32>
    %194 = arith.addf %193, %192 : vector<2x16xf32>
    %195 = arith.divf %193, %194 : vector<2x16xf32>
    %196 = vector.extract_strided_slice %162 {offsets = [0, 16], sizes = [2, 16], strides = [1, 1]} : vector<2x128xf32> to vector<2x16xf32>
    %197 = arith.negf %196 : vector<2x16xf32>
    %198 = math.exp %197 : vector<2x16xf32>
    %cst_82 = arith.constant 1.000000e+00 : f32
    %199 = vector.broadcast %cst_82 : f32 to vector<2x16xf32>
    %200 = arith.addf %199, %198 : vector<2x16xf32>
    %201 = arith.divf %199, %200 : vector<2x16xf32>
    %202 = vector.extract_strided_slice %162 {offsets = [0, 32], sizes = [2, 16], strides = [1, 1]} : vector<2x128xf32> to vector<2x16xf32>
    %203 = math.tanh %202 : vector<2x16xf32>
    %204 = vector.extract_strided_slice %162 {offsets = [0, 48], sizes = [2, 16], strides = [1, 1]} : vector<2x128xf32> to vector<2x16xf32>
    %205 = arith.negf %204 : vector<2x16xf32>
    %206 = math.exp %205 : vector<2x16xf32>
    %cst_83 = arith.constant 1.000000e+00 : f32
    %207 = vector.broadcast %cst_83 : f32 to vector<2x16xf32>
    %208 = arith.addf %207, %206 : vector<2x16xf32>
    %209 = arith.divf %207, %208 : vector<2x16xf32>
    %210 = arith.mulf %201, %189 : vector<2x16xf32>
    %211 = arith.mulf %195, %203 : vector<2x16xf32>
    %212 = arith.addf %210, %211 : vector<2x16xf32>
    %213 = math.tanh %212 : vector<2x16xf32>
    %214 = arith.mulf %209, %213 : vector<2x16xf32>
    %c0_84 = arith.constant 0 : index
    %c0_85 = arith.constant 0 : index
    %215 = vector.load %arg7[%c0_84, %c0_85] : memref<2x16xf32, #tpu.memory_space<vmem>>, vector<2x16xf32>
    tpu.vector_store %arg7[%c0_84, %c0_85], %186 {strides = array<i32>} : memref<2x16xf32, #tpu.memory_space<vmem>>, vector<2x16xf32>,
    %c0_86 = arith.constant 0 : index
    %c0_87 = arith.constant 0 : index
    %216 = vector.load %arg8[%c0_86, %c0_87] : memref<2x16xf32, #tpu.memory_space<vmem>>, vector<2x16xf32>
    tpu.vector_store %arg8[%c0_86, %c0_87], %212 {strides = array<i32>} : memref<2x16xf32, #tpu.memory_space<vmem>>, vector<2x16xf32>,
    %c0_88 = arith.constant 0 : index
    %c0_89 = arith.constant 0 : index
    %217 = vector.load %arg6[%c0_88, %c0_89] : memref<2x32xf32, #tpu.memory_space<vmem>>, vector<2x16xf32>
    tpu.vector_store %arg6[%c0_88, %c0_89], %188 {strides = array<i32>} : memref<2x32xf32, #tpu.memory_space<vmem>>, vector<2x16xf32>,
    %c0_90 = arith.constant 0 : index
    %c16_91 = arith.constant 16 : index
    %218 = vector.load %arg6[%c0_90, %c16_91] : memref<2x32xf32, #tpu.memory_space<vmem>>, vector<2x16xf32>
    tpu.vector_store %arg6[%c0_90, %c16_91], %214 {strides = array<i32>} : memref<2x32xf32, #tpu.memory_space<vmem>>, vector<2x16xf32>,
    %c2_92 = arith.constant 2 : index
    %c0_93 = arith.constant 0 : index
    %c0_94 = arith.constant 0 : index
    %219 = vector.load %arg4[%c2_92, %c0_93, %c0_94] : memref<8x2x16xf32, #tpu.memory_space<vmem>>, vector<1x2x16xf32>
    %220 = vector.shape_cast %219 : vector<1x2x16xf32> to vector<2x16xf32>
    %221 = vector.shape_cast %188 : vector<2x16xf32> to vector<1x2x16xf32>
    tpu.vector_store %arg4[%c2_92, %c0_93, %c0_94], %221 {strides = array<i32>} : memref<8x2x16xf32, #tpu.memory_space<vmem>>, vector<1x2x16xf32>,
    %c5_95 = arith.constant 5 : index
    %c0_96 = arith.constant 0 : index
    %c0_97 = arith.constant 0 : index
    %222 = vector.load %arg5[%c5_95, %c0_96, %c0_97] : memref<8x2x16xf32, #tpu.memory_space<vmem>>, vector<1x2x16xf32>
    %223 = vector.shape_cast %222 : vector<1x2x16xf32> to vector<2x16xf32>
    %224 = vector.shape_cast %214 : vector<2x16xf32> to vector<1x2x16xf32>
    tpu.vector_store %arg5[%c5_95, %c0_96, %c0_97], %224 {strides = array<i32>} : memref<8x2x16xf32, #tpu.memory_space<vmem>>, vector<1x2x16xf32>,
    %c0_98 = arith.constant 0 : index
    %c0_99 = arith.constant 0 : index
    %225 = vector.load %arg6[%c0_98, %c0_99] : memref<2x32xf32, #tpu.memory_space<vmem>>, vector<2x32xf32>
    %226 = arith.truncf %225 : vector<2x32xf32> to vector<2x32xbf16>
    %c0_100 = arith.constant 0 : index
    %c0_101 = arith.constant 0 : index
    %227 = vector.load %arg3[%c0_100, %c0_101] : memref<32x256xbf16, #tpu.memory_space<vmem>>, vector<32x256xbf16>
    %cst_102 = arith.constant dense<0.000000e+00> : vector<2x256xf32>
    %228 = tpu.matmul %226, %227, %cst_102 {dimension_numbers = #tpu.dot_dimension_numbers<[1], [0], [0], [1], [0, 0, 1, 1], [], []>} : vector<2x32xbf16>, vector<32x256xbf16>, vector<2x256xf32> -> vector<2x256xf32>
    %c3 = arith.constant 3 : index
    %c0_103 = arith.constant 0 : index
    %c0_104 = arith.constant 0 : index
    %229 = vector.load %arg1[%c3, %c0_103, %c0_104] : memref<8x2x128xf32, #tpu.memory_space<vmem>>, vector<1x2x128xf32>
    %230 = vector.shape_cast %229 : vector<1x2x128xf32> to vector<2x128xf32>
    %231 = vector.extract_strided_slice %228 {offsets = [0, 0], sizes = [2, 128], strides = [1, 1]} : vector<2x256xf32> to vector<2x128xf32>
    %232 = arith.addf %230, %231 : vector<2x128xf32>
    %c4 = arith.constant 4 : index
    %c0_105 = arith.constant 0 : index
    %c0_106 = arith.constant 0 : index
    %233 = vector.load %arg2[%c4, %c0_105, %c0_106] : memref<8x2x128xf32, #tpu.memory_space<vmem>>, vector<1x2x128xf32>
    %234 = vector.shape_cast %233 : vector<1x2x128xf32> to vector<2x128xf32>
    %235 = vector.extract_strided_slice %228 {offsets = [0, 128], sizes = [2, 128], strides = [1, 1]} : vector<2x256xf32> to vector<2x128xf32>
    %236 = arith.addf %234, %235 : vector<2x128xf32>
    %c0_107 = arith.constant 0 : index
    %c0_108 = arith.constant 0 : index
    %237 = vector.load %arg7[%c0_107, %c0_108] : memref<2x16xf32, #tpu.memory_space<vmem>>, vector<2x16xf32>
    %238 = vector.extract_strided_slice %232 {offsets = [0, 0], sizes = [2, 16], strides = [1, 1]} : vector<2x128xf32> to vector<2x16xf32>
    %239 = arith.negf %238 : vector<2x16xf32>
    %240 = math.exp %239 : vector<2x16xf32>
    %cst_109 = arith.constant 1.000000e+00 : f32
    %241 = vector.broadcast %cst_109 : f32 to vector<2x16xf32>
    %242 = arith.addf %241, %240 : vector<2x16xf32>
    %243 = arith.divf %241, %242 : vector<2x16xf32>
    %244 = vector.extract_strided_slice %232 {offsets = [0, 16], sizes = [2, 16], strides = [1, 1]} : vector<2x128xf32> to vector<2x16xf32>
    %245 = arith.negf %244 : vector<2x16xf32>
    %246 = math.exp %245 : vector<2x16xf32>
    %cst_110 = arith.constant 1.000000e+00 : f32
    %247 = vector.broadcast %cst_110 : f32 to vector<2x16xf32>
    %248 = arith.addf %247, %246 : vector<2x16xf32>
    %249 = arith.divf %247, %248 : vector<2x16xf32>
    %250 = vector.extract_strided_slice %232 {offsets = [0, 32], sizes = [2, 16], strides = [1, 1]} : vector<2x128xf32> to vector<2x16xf32>
    %251 = math.tanh %250 : vector<2x16xf32>
    %252 = vector.extract_strided_slice %232 {offsets = [0, 48], sizes = [2, 16], strides = [1, 1]} : vector<2x128xf32> to vector<2x16xf32>
    %253 = arith.negf %252 : vector<2x16xf32>
    %254 = math.exp %253 : vector<2x16xf32>
    %cst_111 = arith.constant 1.000000e+00 : f32
    %255 = vector.broadcast %cst_111 : f32 to vector<2x16xf32>
    %256 = arith.addf %255, %254 : vector<2x16xf32>
    %257 = arith.divf %255, %256 : vector<2x16xf32>
    %258 = arith.mulf %249, %237 : vector<2x16xf32>
    %259 = arith.mulf %243, %251 : vector<2x16xf32>
    %260 = arith.addf %258, %259 : vector<2x16xf32>
    %261 = math.tanh %260 : vector<2x16xf32>
    %262 = arith.mulf %257, %261 : vector<2x16xf32>
    %c0_112 = arith.constant 0 : index
    %c0_113 = arith.constant 0 : index
    %263 = vector.load %arg8[%c0_112, %c0_113] : memref<2x16xf32, #tpu.memory_space<vmem>>, vector<2x16xf32>
    %264 = vector.extract_strided_slice %236 {offsets = [0, 0], sizes = [2, 16], strides = [1, 1]} : vector<2x128xf32> to vector<2x16xf32>
    %265 = arith.negf %264 : vector<2x16xf32>
    %266 = math.exp %265 : vector<2x16xf32>
    %cst_114 = arith.constant 1.000000e+00 : f32
    %267 = vector.broadcast %cst_114 : f32 to vector<2x16xf32>
    %268 = arith.addf %267, %266 : vector<2x16xf32>
    %269 = arith.divf %267, %268 : vector<2x16xf32>
    %270 = vector.extract_strided_slice %236 {offsets = [0, 16], sizes = [2, 16], strides = [1, 1]} : vector<2x128xf32> to vector<2x16xf32>
    %271 = arith.negf %270 : vector<2x16xf32>
    %272 = math.exp %271 : vector<2x16xf32>
    %cst_115 = arith.constant 1.000000e+00 : f32
    %273 = vector.broadcast %cst_115 : f32 to vector<2x16xf32>
    %274 = arith.addf %273, %272 : vector<2x16xf32>
    %275 = arith.divf %273, %274 : vector<2x16xf32>
    %276 = vector.extract_strided_slice %236 {offsets = [0, 32], sizes = [2, 16], strides = [1, 1]} : vector<2x128xf32> to vector<2x16xf32>
    %277 = math.tanh %276 : vector<2x16xf32>
    %278 = vector.extract_strided_slice %236 {offsets = [0, 48], sizes = [2, 16], strides = [1, 1]} : vector<2x128xf32> to vector<2x16xf32>
    %279 = arith.negf %278 : vector<2x16xf32>
    %280 = math.exp %279 : vector<2x16xf32>
    %cst_116 = arith.constant 1.000000e+00 : f32
    %281 = vector.broadcast %cst_116 : f32 to vector<2x16xf32>
    %282 = arith.addf %281, %280 : vector<2x16xf32>
    %283 = arith.divf %281, %282 : vector<2x16xf32>
    %284 = arith.mulf %275, %263 : vector<2x16xf32>
    %285 = arith.mulf %269, %277 : vector<2x16xf32>
    %286 = arith.addf %284, %285 : vector<2x16xf32>
    %287 = math.tanh %286 : vector<2x16xf32>
    %288 = arith.mulf %283, %287 : vector<2x16xf32>
    %c0_117 = arith.constant 0 : index
    %c0_118 = arith.constant 0 : index
    %289 = vector.load %arg7[%c0_117, %c0_118] : memref<2x16xf32, #tpu.memory_space<vmem>>, vector<2x16xf32>
    tpu.vector_store %arg7[%c0_117, %c0_118], %260 {strides = array<i32>} : memref<2x16xf32, #tpu.memory_space<vmem>>, vector<2x16xf32>,
    %c0_119 = arith.constant 0 : index
    %c0_120 = arith.constant 0 : index
    %290 = vector.load %arg8[%c0_119, %c0_120] : memref<2x16xf32, #tpu.memory_space<vmem>>, vector<2x16xf32>
    tpu.vector_store %arg8[%c0_119, %c0_120], %286 {strides = array<i32>} : memref<2x16xf32, #tpu.memory_space<vmem>>, vector<2x16xf32>,
    %c0_121 = arith.constant 0 : index
    %c0_122 = arith.constant 0 : index
    %291 = vector.load %arg6[%c0_121, %c0_122] : memref<2x32xf32, #tpu.memory_space<vmem>>, vector<2x16xf32>
    tpu.vector_store %arg6[%c0_121, %c0_122], %262 {strides = array<i32>} : memref<2x32xf32, #tpu.memory_space<vmem>>, vector<2x16xf32>,
    %c0_123 = arith.constant 0 : index
    %c16_124 = arith.constant 16 : index
    %292 = vector.load %arg6[%c0_123, %c16_124] : memref<2x32xf32, #tpu.memory_space<vmem>>, vector<2x16xf32>
    tpu.vector_store %arg6[%c0_123, %c16_124], %288 {strides = array<i32>} : memref<2x32xf32, #tpu.memory_space<vmem>>, vector<2x16xf32>,
    %c3_125 = arith.constant 3 : index
    %c0_126 = arith.constant 0 : index
    %c0_127 = arith.constant 0 : index
    %293 = vector.load %arg4[%c3_125, %c0_126, %c0_127] : memref<8x2x16xf32, #tpu.memory_space<vmem>>, vector<1x2x16xf32>
    %294 = vector.shape_cast %293 : vector<1x2x16xf32> to vector<2x16xf32>
    %295 = vector.shape_cast %262 : vector<2x16xf32> to vector<1x2x16xf32>
    tpu.vector_store %arg4[%c3_125, %c0_126, %c0_127], %295 {strides = array<i32>} : memref<8x2x16xf32, #tpu.memory_space<vmem>>, vector<1x2x16xf32>,
    %c4_128 = arith.constant 4 : index
    %c0_129 = arith.constant 0 : index
    %c0_130 = arith.constant 0 : index
    %296 = vector.load %arg5[%c4_128, %c0_129, %c0_130] : memref<8x2x16xf32, #tpu.memory_space<vmem>>, vector<1x2x16xf32>
    %297 = vector.shape_cast %296 : vector<1x2x16xf32> to vector<2x16xf32>
    %298 = vector.shape_cast %288 : vector<2x16xf32> to vector<1x2x16xf32>
    tpu.vector_store %arg5[%c4_128, %c0_129, %c0_130], %298 {strides = array<i32>} : memref<8x2x16xf32, #tpu.memory_space<vmem>>, vector<1x2x16xf32>,
    %c0_131 = arith.constant 0 : index
    %c0_132 = arith.constant 0 : index
    %299 = vector.load %arg6[%c0_131, %c0_132] : memref<2x32xf32, #tpu.memory_space<vmem>>, vector<2x32xf32>
    %300 = arith.truncf %299 : vector<2x32xf32> to vector<2x32xbf16>
    %c0_133 = arith.constant 0 : index
    %c0_134 = arith.constant 0 : index
    %301 = vector.load %arg3[%c0_133, %c0_134] : memref<32x256xbf16, #tpu.memory_space<vmem>>, vector<32x256xbf16>
    %cst_135 = arith.constant dense<0.000000e+00> : vector<2x256xf32>
    %302 = tpu.matmul %300, %301, %cst_135 {dimension_numbers = #tpu.dot_dimension_numbers<[1], [0], [0], [1], [0, 0, 1, 1], [], []>} : vector<2x32xbf16>, vector<32x256xbf16>, vector<2x256xf32> -> vector<2x256xf32>
    %c4_136 = arith.constant 4 : index
    %c0_137 = arith.constant 0 : index
    %c0_138 = arith.constant 0 : index
    %303 = vector.load %arg1[%c4_136, %c0_137, %c0_138] : memref<8x2x128xf32, #tpu.memory_space<vmem>>, vector<1x2x128xf32>
    %304 = vector.shape_cast %303 : vector<1x2x128xf32> to vector<2x128xf32>
    %305 = vector.extract_strided_slice %302 {offsets = [0, 0], sizes = [2, 128], strides = [1, 1]} : vector<2x256xf32> to vector<2x128xf32>
    %306 = arith.addf %304, %305 : vector<2x128xf32>
    %c3_139 = arith.constant 3 : index
    %c0_140 = arith.constant 0 : index
    %c0_141 = arith.constant 0 : index
    %307 = vector.load %arg2[%c3_139, %c0_140, %c0_141] : memref<8x2x128xf32, #tpu.memory_space<vmem>>, vector<1x2x128xf32>
    %308 = vector.shape_cast %307 : vector<1x2x128xf32> to vector<2x128xf32>
    %309 = vector.extract_strided_slice %302 {offsets = [0, 128], sizes = [2, 128], strides = [1, 1]} : vector<2x256xf32> to vector<2x128xf32>
    %310 = arith.addf %308, %309 : vector<2x128xf32>
    %c0_142 = arith.constant 0 : index
    %c0_143 = arith.constant 0 : index
    %311 = vector.load %arg7[%c0_142, %c0_143] : memref<2x16xf32, #tpu.memory_space<vmem>>, vector<2x16xf32>
    %312 = vector.extract_strided_slice %306 {offsets = [0, 0], sizes = [2, 16], strides = [1, 1]} : vector<2x128xf32> to vector<2x16xf32>
    %313 = arith.negf %312 : vector<2x16xf32>
    %314 = math.exp %313 : vector<2x16xf32>
    %cst_144 = arith.constant 1.000000e+00 : f32
    %315 = vector.broadcast %cst_144 : f32 to vector<2x16xf32>
    %316 = arith.addf %315, %314 : vector<2x16xf32>
    %317 = arith.divf %315, %316 : vector<2x16xf32>
    %318 = vector.extract_strided_slice %306 {offsets = [0, 16], sizes = [2, 16], strides = [1, 1]} : vector<2x128xf32> to vector<2x16xf32>
    %319 = arith.negf %318 : vector<2x16xf32>
    %320 = math.exp %319 : vector<2x16xf32>
    %cst_145 = arith.constant 1.000000e+00 : f32
    %321 = vector.broadcast %cst_145 : f32 to vector<2x16xf32>
    %322 = arith.addf %321, %320 : vector<2x16xf32>
    %323 = arith.divf %321, %322 : vector<2x16xf32>
    %324 = vector.extract_strided_slice %306 {offsets = [0, 32], sizes = [2, 16], strides = [1, 1]} : vector<2x128xf32> to vector<2x16xf32>
    %325 = math.tanh %324 : vector<2x16xf32>
    %326 = vector.extract_strided_slice %306 {offsets = [0, 48], sizes = [2, 16], strides = [1, 1]} : vector<2x128xf32> to vector<2x16xf32>
    %327 = arith.negf %326 : vector<2x16xf32>
    %328 = math.exp %327 : vector<2x16xf32>
    %cst_146 = arith.constant 1.000000e+00 : f32
    %329 = vector.broadcast %cst_146 : f32 to vector<2x16xf32>
    %330 = arith.addf %329, %328 : vector<2x16xf32>
    %331 = arith.divf %329, %330 : vector<2x16xf32>
    %332 = arith.mulf %323, %311 : vector<2x16xf32>
    %333 = arith.mulf %317, %325 : vector<2x16xf32>
    %334 = arith.addf %332, %333 : vector<2x16xf32>
    %335 = math.tanh %334 : vector<2x16xf32>
    %336 = arith.mulf %331, %335 : vector<2x16xf32>
    %c0_147 = arith.constant 0 : index
    %c0_148 = arith.constant 0 : index
    %337 = vector.load %arg8[%c0_147, %c0_148] : memref<2x16xf32, #tpu.memory_space<vmem>>, vector<2x16xf32>
    %338 = vector.extract_strided_slice %310 {offsets = [0, 0], sizes = [2, 16], strides = [1, 1]} : vector<2x128xf32> to vector<2x16xf32>
    %339 = arith.negf %338 : vector<2x16xf32>
    %340 = math.exp %339 : vector<2x16xf32>
    %cst_149 = arith.constant 1.000000e+00 : f32
    %341 = vector.broadcast %cst_149 : f32 to vector<2x16xf32>
    %342 = arith.addf %341, %340 : vector<2x16xf32>
    %343 = arith.divf %341, %342 : vector<2x16xf32>
    %344 = vector.extract_strided_slice %310 {offsets = [0, 16], sizes = [2, 16], strides = [1, 1]} : vector<2x128xf32> to vector<2x16xf32>
    %345 = arith.negf %344 : vector<2x16xf32>
    %346 = math.exp %345 : vector<2x16xf32>
    %cst_150 = arith.constant 1.000000e+00 : f32
    %347 = vector.broadcast %cst_150 : f32 to vector<2x16xf32>
    %348 = arith.addf %347, %346 : vector<2x16xf32>
    %349 = arith.divf %347, %348 : vector<2x16xf32>
    %350 = vector.extract_strided_slice %310 {offsets = [0, 32], sizes = [2, 16], strides = [1, 1]} : vector<2x128xf32> to vector<2x16xf32>
    %351 = math.tanh %350 : vector<2x16xf32>
    %352 = vector.extract_strided_slice %310 {offsets = [0, 48], sizes = [2, 16], strides = [1, 1]} : vector<2x128xf32> to vector<2x16xf32>
    %353 = arith.negf %352 : vector<2x16xf32>
    %354 = math.exp %353 : vector<2x16xf32>
    %cst_151 = arith.constant 1.000000e+00 : f32
    %355 = vector.broadcast %cst_151 : f32 to vector<2x16xf32>
    %356 = arith.addf %355, %354 : vector<2x16xf32>
    %357 = arith.divf %355, %356 : vector<2x16xf32>
    %358 = arith.mulf %349, %337 : vector<2x16xf32>
    %359 = arith.mulf %343, %351 : vector<2x16xf32>
    %360 = arith.addf %358, %359 : vector<2x16xf32>
    %361 = math.tanh %360 : vector<2x16xf32>
    %362 = arith.mulf %357, %361 : vector<2x16xf32>
    %c0_152 = arith.constant 0 : index
    %c0_153 = arith.constant 0 : index
    %363 = vector.load %arg7[%c0_152, %c0_153] : memref<2x16xf32, #tpu.memory_space<vmem>>, vector<2x16xf32>
    tpu.vector_store %arg7[%c0_152, %c0_153], %334 {strides = array<i32>} : memref<2x16xf32, #tpu.memory_space<vmem>>, vector<2x16xf32>,
    %c0_154 = arith.constant 0 : index
    %c0_155 = arith.constant 0 : index
    %364 = vector.load %arg8[%c0_154, %c0_155] : memref<2x16xf32, #tpu.memory_space<vmem>>, vector<2x16xf32>
    tpu.vector_store %arg8[%c0_154, %c0_155], %360 {strides = array<i32>} : memref<2x16xf32, #tpu.memory_space<vmem>>, vector<2x16xf32>,
    %c0_156 = arith.constant 0 : index
    %c0_157 = arith.constant 0 : index
    %365 = vector.load %arg6[%c0_156, %c0_157] : memref<2x32xf32, #tpu.memory_space<vmem>>, vector<2x16xf32>
    tpu.vector_store %arg6[%c0_156, %c0_157], %336 {strides = array<i32>} : memref<2x32xf32, #tpu.memory_space<vmem>>, vector<2x16xf32>,
    %c0_158 = arith.constant 0 : index
    %c16_159 = arith.constant 16 : index
    %366 = vector.load %arg6[%c0_158, %c16_159] : memref<2x32xf32, #tpu.memory_space<vmem>>, vector<2x16xf32>
    tpu.vector_store %arg6[%c0_158, %c16_159], %362 {strides = array<i32>} : memref<2x32xf32, #tpu.memory_space<vmem>>, vector<2x16xf32>,
    %c4_160 = arith.constant 4 : index
    %c0_161 = arith.constant 0 : index
    %c0_162 = arith.constant 0 : index
    %367 = vector.load %arg4[%c4_160, %c0_161, %c0_162] : memref<8x2x16xf32, #tpu.memory_space<vmem>>, vector<1x2x16xf32>
    %368 = vector.shape_cast %367 : vector<1x2x16xf32> to vector<2x16xf32>
    %369 = vector.shape_cast %336 : vector<2x16xf32> to vector<1x2x16xf32>
    tpu.vector_store %arg4[%c4_160, %c0_161, %c0_162], %369 {strides = array<i32>} : memref<8x2x16xf32, #tpu.memory_space<vmem>>, vector<1x2x16xf32>,
    %c3_163 = arith.constant 3 : index
    %c0_164 = arith.constant 0 : index
    %c0_165 = arith.constant 0 : index
    %370 = vector.load %arg5[%c3_163, %c0_164, %c0_165] : memref<8x2x16xf32, #tpu.memory_space<vmem>>, vector<1x2x16xf32>
    %371 = vector.shape_cast %370 : vector<1x2x16xf32> to vector<2x16xf32>
    %372 = vector.shape_cast %362 : vector<2x16xf32> to vector<1x2x16xf32>
    tpu.vector_store %arg5[%c3_163, %c0_164, %c0_165], %372 {strides = array<i32>} : memref<8x2x16xf32, #tpu.memory_space<vmem>>, vector<1x2x16xf32>,
    %c0_166 = arith.constant 0 : index
    %c0_167 = arith.constant 0 : index
    %373 = vector.load %arg6[%c0_166, %c0_167] : memref<2x32xf32, #tpu.memory_space<vmem>>, vector<2x32xf32>
    %374 = arith.truncf %373 : vector<2x32xf32> to vector<2x32xbf16>
    %c0_168 = arith.constant 0 : index
    %c0_169 = arith.constant 0 : index
    %375 = vector.load %arg3[%c0_168, %c0_169] : memref<32x256xbf16, #tpu.memory_space<vmem>>, vector<32x256xbf16>
    %cst_170 = arith.constant dense<0.000000e+00> : vector<2x256xf32>
    %376 = tpu.matmul %374, %375, %cst_170 {dimension_numbers = #tpu.dot_dimension_numbers<[1], [0], [0], [1], [0, 0, 1, 1], [], []>} : vector<2x32xbf16>, vector<32x256xbf16>, vector<2x256xf32> -> vector<2x256xf32>
    %c5_171 = arith.constant 5 : index
    %c0_172 = arith.constant 0 : index
    %c0_173 = arith.constant 0 : index
    %377 = vector.load %arg1[%c5_171, %c0_172, %c0_173] : memref<8x2x128xf32, #tpu.memory_space<vmem>>, vector<1x2x128xf32>
    %378 = vector.shape_cast %377 : vector<1x2x128xf32> to vector<2x128xf32>
    %379 = vector.extract_strided_slice %376 {offsets = [0, 0], sizes = [2, 128], strides = [1, 1]} : vector<2x256xf32> to vector<2x128xf32>
    %380 = arith.addf %378, %379 : vector<2x128xf32>
    %c2_174 = arith.constant 2 : index
    %c0_175 = arith.constant 0 : index
    %c0_176 = arith.constant 0 : index
    %381 = vector.load %arg2[%c2_174, %c0_175, %c0_176] : memref<8x2x128xf32, #tpu.memory_space<vmem>>, vector<1x2x128xf32>
    %382 = vector.shape_cast %381 : vector<1x2x128xf32> to vector<2x128xf32>
    %383 = vector.extract_strided_slice %376 {offsets = [0, 128], sizes = [2, 128], strides = [1, 1]} : vector<2x256xf32> to vector<2x128xf32>
    %384 = arith.addf %382, %383 : vector<2x128xf32>
    %c0_177 = arith.constant 0 : index
    %c0_178 = arith.constant 0 : index
    %385 = vector.load %arg7[%c0_177, %c0_178] : memref<2x16xf32, #tpu.memory_space<vmem>>, vector<2x16xf32>
    %386 = vector.extract_strided_slice %380 {offsets = [0, 0], sizes = [2, 16], strides = [1, 1]} : vector<2x128xf32> to vector<2x16xf32>
    %387 = arith.negf %386 : vector<2x16xf32>
    %388 = math.exp %387 : vector<2x16xf32>
    %cst_179 = arith.constant 1.000000e+00 : f32
    %389 = vector.broadcast %cst_179 : f32 to vector<2x16xf32>
    %390 = arith.addf %389, %388 : vector<2x16xf32>
    %391 = arith.divf %389, %390 : vector<2x16xf32>
    %392 = vector.extract_strided_slice %380 {offsets = [0, 16], sizes = [2, 16], strides = [1, 1]} : vector<2x128xf32> to vector<2x16xf32>
    %393 = arith.negf %392 : vector<2x16xf32>
    %394 = math.exp %393 : vector<2x16xf32>
    %cst_180 = arith.constant 1.000000e+00 : f32
    %395 = vector.broadcast %cst_180 : f32 to vector<2x16xf32>
    %396 = arith.addf %395, %394 : vector<2x16xf32>
    %397 = arith.divf %395, %396 : vector<2x16xf32>
    %398 = vector.extract_strided_slice %380 {offsets = [0, 32], sizes = [2, 16], strides = [1, 1]} : vector<2x128xf32> to vector<2x16xf32>
    %399 = math.tanh %398 : vector<2x16xf32>
    %400 = vector.extract_strided_slice %380 {offsets = [0, 48], sizes = [2, 16], strides = [1, 1]} : vector<2x128xf32> to vector<2x16xf32>
    %401 = arith.negf %400 : vector<2x16xf32>
    %402 = math.exp %401 : vector<2x16xf32>
    %cst_181 = arith.constant 1.000000e+00 : f32
    %403 = vector.broadcast %cst_181 : f32 to vector<2x16xf32>
    %404 = arith.addf %403, %402 : vector<2x16xf32>
    %405 = arith.divf %403, %404 : vector<2x16xf32>
    %406 = arith.mulf %397, %385 : vector<2x16xf32>
    %407 = arith.mulf %391, %399 : vector<2x16xf32>
    %408 = arith.addf %406, %407 : vector<2x16xf32>
    %409 = math.tanh %408 : vector<2x16xf32>
    %410 = arith.mulf %405, %409 : vector<2x16xf32>
    %c0_182 = arith.constant 0 : index
    %c0_183 = arith.constant 0 : index
    %411 = vector.load %arg8[%c0_182, %c0_183] : memref<2x16xf32, #tpu.memory_space<vmem>>, vector<2x16xf32>
    %412 = vector.extract_strided_slice %384 {offsets = [0, 0], sizes = [2, 16], strides = [1, 1]} : vector<2x128xf32> to vector<2x16xf32>
    %413 = arith.negf %412 : vector<2x16xf32>
    %414 = math.exp %413 : vector<2x16xf32>
    %cst_184 = arith.constant 1.000000e+00 : f32
    %415 = vector.broadcast %cst_184 : f32 to vector<2x16xf32>
    %416 = arith.addf %415, %414 : vector<2x16xf32>
    %417 = arith.divf %415, %416 : vector<2x16xf32>
    %418 = vector.extract_strided_slice %384 {offsets = [0, 16], sizes = [2, 16], strides = [1, 1]} : vector<2x128xf32> to vector<2x16xf32>
    %419 = arith.negf %418 : vector<2x16xf32>
    %420 = math.exp %419 : vector<2x16xf32>
    %cst_185 = arith.constant 1.000000e+00 : f32
    %421 = vector.broadcast %cst_185 : f32 to vector<2x16xf32>
    %422 = arith.addf %421, %420 : vector<2x16xf32>
    %423 = arith.divf %421, %422 : vector<2x16xf32>
    %424 = vector.extract_strided_slice %384 {offsets = [0, 32], sizes = [2, 16], strides = [1, 1]} : vector<2x128xf32> to vector<2x16xf32>
    %425 = math.tanh %424 : vector<2x16xf32>
    %426 = vector.extract_strided_slice %384 {offsets = [0, 48], sizes = [2, 16], strides = [1, 1]} : vector<2x128xf32> to vector<2x16xf32>
    %427 = arith.negf %426 : vector<2x16xf32>
    %428 = math.exp %427 : vector<2x16xf32>
    %cst_186 = arith.constant 1.000000e+00 : f32
    %429 = vector.broadcast %cst_186 : f32 to vector<2x16xf32>
    %430 = arith.addf %429, %428 : vector<2x16xf32>
    %431 = arith.divf %429, %430 : vector<2x16xf32>
    %432 = arith.mulf %423, %411 : vector<2x16xf32>
    %433 = arith.mulf %417, %425 : vector<2x16xf32>
    %434 = arith.addf %432, %433 : vector<2x16xf32>
    %435 = math.tanh %434 : vector<2x16xf32>
    %436 = arith.mulf %431, %435 : vector<2x16xf32>
    %c0_187 = arith.constant 0 : index
    %c0_188 = arith.constant 0 : index
    %437 = vector.load %arg7[%c0_187, %c0_188] : memref<2x16xf32, #tpu.memory_space<vmem>>, vector<2x16xf32>
    tpu.vector_store %arg7[%c0_187, %c0_188], %408 {strides = array<i32>} : memref<2x16xf32, #tpu.memory_space<vmem>>, vector<2x16xf32>,
    %c0_189 = arith.constant 0 : index
    %c0_190 = arith.constant 0 : index
    %438 = vector.load %arg8[%c0_189, %c0_190] : memref<2x16xf32, #tpu.memory_space<vmem>>, vector<2x16xf32>
    tpu.vector_store %arg8[%c0_189, %c0_190], %434 {strides = array<i32>} : memref<2x16xf32, #tpu.memory_space<vmem>>, vector<2x16xf32>,
    %c0_191 = arith.constant 0 : index
    %c0_192 = arith.constant 0 : index
    %439 = vector.load %arg6[%c0_191, %c0_192] : memref<2x32xf32, #tpu.memory_space<vmem>>, vector<2x16xf32>
    tpu.vector_store %arg6[%c0_191, %c0_192], %410 {strides = array<i32>} : memref<2x32xf32, #tpu.memory_space<vmem>>, vector<2x16xf32>,
    %c0_193 = arith.constant 0 : index
    %c16_194 = arith.constant 16 : index
    %440 = vector.load %arg6[%c0_193, %c16_194] : memref<2x32xf32, #tpu.memory_space<vmem>>, vector<2x16xf32>
    tpu.vector_store %arg6[%c0_193, %c16_194], %436 {strides = array<i32>} : memref<2x32xf32, #tpu.memory_space<vmem>>, vector<2x16xf32>,
    %c5_195 = arith.constant 5 : index
    %c0_196 = arith.constant 0 : index
    %c0_197 = arith.constant 0 : index
    %441 = vector.load %arg4[%c5_195, %c0_196, %c0_197] : memref<8x2x16xf32, #tpu.memory_space<vmem>>, vector<1x2x16xf32>
    %442 = vector.shape_cast %441 : vector<1x2x16xf32> to vector<2x16xf32>
    %443 = vector.shape_cast %410 : vector<2x16xf32> to vector<1x2x16xf32>
    tpu.vector_store %arg4[%c5_195, %c0_196, %c0_197], %443 {strides = array<i32>} : memref<8x2x16xf32, #tpu.memory_space<vmem>>, vector<1x2x16xf32>,
    %c2_198 = arith.constant 2 : index
    %c0_199 = arith.constant 0 : index
    %c0_200 = arith.constant 0 : index
    %444 = vector.load %arg5[%c2_198, %c0_199, %c0_200] : memref<8x2x16xf32, #tpu.memory_space<vmem>>, vector<1x2x16xf32>
    %445 = vector.shape_cast %444 : vector<1x2x16xf32> to vector<2x16xf32>
    %446 = vector.shape_cast %436 : vector<2x16xf32> to vector<1x2x16xf32>
    tpu.vector_store %arg5[%c2_198, %c0_199, %c0_200], %446 {strides = array<i32>} : memref<8x2x16xf32, #tpu.memory_space<vmem>>, vector<1x2x16xf32>,
    %c0_201 = arith.constant 0 : index
    %c0_202 = arith.constant 0 : index
    %447 = vector.load %arg6[%c0_201, %c0_202] : memref<2x32xf32, #tpu.memory_space<vmem>>, vector<2x32xf32>
    %448 = arith.truncf %447 : vector<2x32xf32> to vector<2x32xbf16>
    %c0_203 = arith.constant 0 : index
    %c0_204 = arith.constant 0 : index
    %449 = vector.load %arg3[%c0_203, %c0_204] : memref<32x256xbf16, #tpu.memory_space<vmem>>, vector<32x256xbf16>
    %cst_205 = arith.constant dense<0.000000e+00> : vector<2x256xf32>
    %450 = tpu.matmul %448, %449, %cst_205 {dimension_numbers = #tpu.dot_dimension_numbers<[1], [0], [0], [1], [0, 0, 1, 1], [], []>} : vector<2x32xbf16>, vector<32x256xbf16>, vector<2x256xf32> -> vector<2x256xf32>
    %c6_206 = arith.constant 6 : index
    %c0_207 = arith.constant 0 : index
    %c0_208 = arith.constant 0 : index
    %451 = vector.load %arg1[%c6_206, %c0_207, %c0_208] : memref<8x2x128xf32, #tpu.memory_space<vmem>>, vector<1x2x128xf32>
    %452 = vector.shape_cast %451 : vector<1x2x128xf32> to vector<2x128xf32>
    %453 = vector.extract_strided_slice %450 {offsets = [0, 0], sizes = [2, 128], strides = [1, 1]} : vector<2x256xf32> to vector<2x128xf32>
    %454 = arith.addf %452, %453 : vector<2x128xf32>
    %c1_209 = arith.constant 1 : index
    %c0_210 = arith.constant 0 : index
    %c0_211 = arith.constant 0 : index
    %455 = vector.load %arg2[%c1_209, %c0_210, %c0_211] : memref<8x2x128xf32, #tpu.memory_space<vmem>>, vector<1x2x128xf32>
    %456 = vector.shape_cast %455 : vector<1x2x128xf32> to vector<2x128xf32>
    %457 = vector.extract_strided_slice %450 {offsets = [0, 128], sizes = [2, 128], strides = [1, 1]} : vector<2x256xf32> to vector<2x128xf32>
    %458 = arith.addf %456, %457 : vector<2x128xf32>
    %c0_212 = arith.constant 0 : index
    %c0_213 = arith.constant 0 : index
    %459 = vector.load %arg7[%c0_212, %c0_213] : memref<2x16xf32, #tpu.memory_space<vmem>>, vector<2x16xf32>
    %460 = vector.extract_strided_slice %454 {offsets = [0, 0], sizes = [2, 16], strides = [1, 1]} : vector<2x128xf32> to vector<2x16xf32>
    %461 = arith.negf %460 : vector<2x16xf32>
    %462 = math.exp %461 : vector<2x16xf32>
    %cst_214 = arith.constant 1.000000e+00 : f32
    %463 = vector.broadcast %cst_214 : f32 to vector<2x16xf32>
    %464 = arith.addf %463, %462 : vector<2x16xf32>
    %465 = arith.divf %463, %464 : vector<2x16xf32>
    %466 = vector.extract_strided_slice %454 {offsets = [0, 16], sizes = [2, 16], strides = [1, 1]} : vector<2x128xf32> to vector<2x16xf32>
    %467 = arith.negf %466 : vector<2x16xf32>
    %468 = math.exp %467 : vector<2x16xf32>
    %cst_215 = arith.constant 1.000000e+00 : f32
    %469 = vector.broadcast %cst_215 : f32 to vector<2x16xf32>
    %470 = arith.addf %469, %468 : vector<2x16xf32>
    %471 = arith.divf %469, %470 : vector<2x16xf32>
    %472 = vector.extract_strided_slice %454 {offsets = [0, 32], sizes = [2, 16], strides = [1, 1]} : vector<2x128xf32> to vector<2x16xf32>
    %473 = math.tanh %472 : vector<2x16xf32>
    %474 = vector.extract_strided_slice %454 {offsets = [0, 48], sizes = [2, 16], strides = [1, 1]} : vector<2x128xf32> to vector<2x16xf32>
    %475 = arith.negf %474 : vector<2x16xf32>
    %476 = math.exp %475 : vector<2x16xf32>
    %cst_216 = arith.constant 1.000000e+00 : f32
    %477 = vector.broadcast %cst_216 : f32 to vector<2x16xf32>
    %478 = arith.addf %477, %476 : vector<2x16xf32>
    %479 = arith.divf %477, %478 : vector<2x16xf32>
    %480 = arith.mulf %471, %459 : vector<2x16xf32>
    %481 = arith.mulf %465, %473 : vector<2x16xf32>
    %482 = arith.addf %480, %481 : vector<2x16xf32>
    %483 = math.tanh %482 : vector<2x16xf32>
    %484 = arith.mulf %479, %483 : vector<2x16xf32>
    %c0_217 = arith.constant 0 : index
    %c0_218 = arith.constant 0 : index
    %485 = vector.load %arg8[%c0_217, %c0_218] : memref<2x16xf32, #tpu.memory_space<vmem>>, vector<2x16xf32>
    %486 = vector.extract_strided_slice %458 {offsets = [0, 0], sizes = [2, 16], strides = [1, 1]} : vector<2x128xf32> to vector<2x16xf32>
    %487 = arith.negf %486 : vector<2x16xf32>
    %488 = math.exp %487 : vector<2x16xf32>
    %cst_219 = arith.constant 1.000000e+00 : f32
    %489 = vector.broadcast %cst_219 : f32 to vector<2x16xf32>
    %490 = arith.addf %489, %488 : vector<2x16xf32>
    %491 = arith.divf %489, %490 : vector<2x16xf32>
    %492 = vector.extract_strided_slice %458 {offsets = [0, 16], sizes = [2, 16], strides = [1, 1]} : vector<2x128xf32> to vector<2x16xf32>
    %493 = arith.negf %492 : vector<2x16xf32>
    %494 = math.exp %493 : vector<2x16xf32>
    %cst_220 = arith.constant 1.000000e+00 : f32
    %495 = vector.broadcast %cst_220 : f32 to vector<2x16xf32>
    %496 = arith.addf %495, %494 : vector<2x16xf32>
    %497 = arith.divf %495, %496 : vector<2x16xf32>
    %498 = vector.extract_strided_slice %458 {offsets = [0, 32], sizes = [2, 16], strides = [1, 1]} : vector<2x128xf32> to vector<2x16xf32>
    %499 = math.tanh %498 : vector<2x16xf32>
    %500 = vector.extract_strided_slice %458 {offsets = [0, 48], sizes = [2, 16], strides = [1, 1]} : vector<2x128xf32> to vector<2x16xf32>
    %501 = arith.negf %500 : vector<2x16xf32>
    %502 = math.exp %501 : vector<2x16xf32>
    %cst_221 = arith.constant 1.000000e+00 : f32
    %503 = vector.broadcast %cst_221 : f32 to vector<2x16xf32>
    %504 = arith.addf %503, %502 : vector<2x16xf32>
    %505 = arith.divf %503, %504 : vector<2x16xf32>
    %506 = arith.mulf %497, %485 : vector<2x16xf32>
    %507 = arith.mulf %491, %499 : vector<2x16xf32>
    %508 = arith.addf %506, %507 : vector<2x16xf32>
    %509 = math.tanh %508 : vector<2x16xf32>
    %510 = arith.mulf %505, %509 : vector<2x16xf32>
    %c0_222 = arith.constant 0 : index
    %c0_223 = arith.constant 0 : index
    %511 = vector.load %arg7[%c0_222, %c0_223] : memref<2x16xf32, #tpu.memory_space<vmem>>, vector<2x16xf32>
    tpu.vector_store %arg7[%c0_222, %c0_223], %482 {strides = array<i32>} : memref<2x16xf32, #tpu.memory_space<vmem>>, vector<2x16xf32>,
    %c0_224 = arith.constant 0 : index
    %c0_225 = arith.constant 0 : index
    %512 = vector.load %arg8[%c0_224, %c0_225] : memref<2x16xf32, #tpu.memory_space<vmem>>, vector<2x16xf32>
    tpu.vector_store %arg8[%c0_224, %c0_225], %508 {strides = array<i32>} : memref<2x16xf32, #tpu.memory_space<vmem>>, vector<2x16xf32>,
    %c0_226 = arith.constant 0 : index
    %c0_227 = arith.constant 0 : index
    %513 = vector.load %arg6[%c0_226, %c0_227] : memref<2x32xf32, #tpu.memory_space<vmem>>, vector<2x16xf32>
    tpu.vector_store %arg6[%c0_226, %c0_227], %484 {strides = array<i32>} : memref<2x32xf32, #tpu.memory_space<vmem>>, vector<2x16xf32>,
    %c0_228 = arith.constant 0 : index
    %c16_229 = arith.constant 16 : index
    %514 = vector.load %arg6[%c0_228, %c16_229] : memref<2x32xf32, #tpu.memory_space<vmem>>, vector<2x16xf32>
    tpu.vector_store %arg6[%c0_228, %c16_229], %510 {strides = array<i32>} : memref<2x32xf32, #tpu.memory_space<vmem>>, vector<2x16xf32>,
    %c6_230 = arith.constant 6 : index
    %c0_231 = arith.constant 0 : index
    %c0_232 = arith.constant 0 : index
    %515 = vector.load %arg4[%c6_230, %c0_231, %c0_232] : memref<8x2x16xf32, #tpu.memory_space<vmem>>, vector<1x2x16xf32>
    %516 = vector.shape_cast %515 : vector<1x2x16xf32> to vector<2x16xf32>
    %517 = vector.shape_cast %484 : vector<2x16xf32> to vector<1x2x16xf32>
    tpu.vector_store %arg4[%c6_230, %c0_231, %c0_232], %517 {strides = array<i32>} : memref<8x2x16xf32, #tpu.memory_space<vmem>>, vector<1x2x16xf32>,
    %c1_233 = arith.constant 1 : index
    %c0_234 = arith.constant 0 : index
    %c0_235 = arith.constant 0 : index
    %518 = vector.load %arg5[%c1_233, %c0_234, %c0_235] : memref<8x2x16xf32, #tpu.memory_space<vmem>>, vector<1x2x16xf32>
    %519 = vector.shape_cast %518 : vector<1x2x16xf32> to vector<2x16xf32>
    %520 = vector.shape_cast %510 : vector<2x16xf32> to vector<1x2x16xf32>
    tpu.vector_store %arg5[%c1_233, %c0_234, %c0_235], %520 {strides = array<i32>} : memref<8x2x16xf32, #tpu.memory_space<vmem>>, vector<1x2x16xf32>,
    %c0_236 = arith.constant 0 : index
    %c0_237 = arith.constant 0 : index
    %521 = vector.load %arg6[%c0_236, %c0_237] : memref<2x32xf32, #tpu.memory_space<vmem>>, vector<2x32xf32>
    %522 = arith.truncf %521 : vector<2x32xf32> to vector<2x32xbf16>
    %c0_238 = arith.constant 0 : index
    %c0_239 = arith.constant 0 : index
    %523 = vector.load %arg3[%c0_238, %c0_239] : memref<32x256xbf16, #tpu.memory_space<vmem>>, vector<32x256xbf16>
    %cst_240 = arith.constant dense<0.000000e+00> : vector<2x256xf32>
    %524 = tpu.matmul %522, %523, %cst_240 {dimension_numbers = #tpu.dot_dimension_numbers<[1], [0], [0], [1], [0, 0, 1, 1], [], []>} : vector<2x32xbf16>, vector<32x256xbf16>, vector<2x256xf32> -> vector<2x256xf32>
    %c7_241 = arith.constant 7 : index
    %c0_242 = arith.constant 0 : index
    %c0_243 = arith.constant 0 : index
    %525 = vector.load %arg1[%c7_241, %c0_242, %c0_243] : memref<8x2x128xf32, #tpu.memory_space<vmem>>, vector<1x2x128xf32>
    %526 = vector.shape_cast %525 : vector<1x2x128xf32> to vector<2x128xf32>
    %527 = vector.extract_strided_slice %524 {offsets = [0, 0], sizes = [2, 128], strides = [1, 1]} : vector<2x256xf32> to vector<2x128xf32>
    %528 = arith.addf %526, %527 : vector<2x128xf32>
    %c0_244 = arith.constant 0 : index
    %c0_245 = arith.constant 0 : index
    %c0_246 = arith.constant 0 : index
    %529 = vector.load %arg2[%c0_244, %c0_245, %c0_246] : memref<8x2x128xf32, #tpu.memory_space<vmem>>, vector<1x2x128xf32>
    %530 = vector.shape_cast %529 : vector<1x2x128xf32> to vector<2x128xf32>
    %531 = vector.extract_strided_slice %524 {offsets = [0, 128], sizes = [2, 128], strides = [1, 1]} : vector<2x256xf32> to vector<2x128xf32>
    %532 = arith.addf %530, %531 : vector<2x128xf32>
    %c0_247 = arith.constant 0 : index
    %c0_248 = arith.constant 0 : index
    %533 = vector.load %arg7[%c0_247, %c0_248] : memref<2x16xf32, #tpu.memory_space<vmem>>, vector<2x16xf32>
    %534 = vector.extract_strided_slice %528 {offsets = [0, 0], sizes = [2, 16], strides = [1, 1]} : vector<2x128xf32> to vector<2x16xf32>
    %535 = arith.negf %534 : vector<2x16xf32>
    %536 = math.exp %535 : vector<2x16xf32>
    %cst_249 = arith.constant 1.000000e+00 : f32
    %537 = vector.broadcast %cst_249 : f32 to vector<2x16xf32>
    %538 = arith.addf %537, %536 : vector<2x16xf32>
    %539 = arith.divf %537, %538 : vector<2x16xf32>
    %540 = vector.extract_strided_slice %528 {offsets = [0, 16], sizes = [2, 16], strides = [1, 1]} : vector<2x128xf32> to vector<2x16xf32>
    %541 = arith.negf %540 : vector<2x16xf32>
    %542 = math.exp %541 : vector<2x16xf32>
    %cst_250 = arith.constant 1.000000e+00 : f32
    %543 = vector.broadcast %cst_250 : f32 to vector<2x16xf32>
    %544 = arith.addf %543, %542 : vector<2x16xf32>
    %545 = arith.divf %543, %544 : vector<2x16xf32>
    %546 = vector.extract_strided_slice %528 {offsets = [0, 32], sizes = [2, 16], strides = [1, 1]} : vector<2x128xf32> to vector<2x16xf32>
    %547 = math.tanh %546 : vector<2x16xf32>
    %548 = vector.extract_strided_slice %528 {offsets = [0, 48], sizes = [2, 16], strides = [1, 1]} : vector<2x128xf32> to vector<2x16xf32>
    %549 = arith.negf %548 : vector<2x16xf32>
    %550 = math.exp %549 : vector<2x16xf32>
    %cst_251 = arith.constant 1.000000e+00 : f32
    %551 = vector.broadcast %cst_251 : f32 to vector<2x16xf32>
    %552 = arith.addf %551, %550 : vector<2x16xf32>
    %553 = arith.divf %551, %552 : vector<2x16xf32>
    %554 = arith.mulf %545, %533 : vector<2x16xf32>
    %555 = arith.mulf %539, %547 : vector<2x16xf32>
    %556 = arith.addf %554, %555 : vector<2x16xf32>
    %557 = math.tanh %556 : vector<2x16xf32>
    %558 = arith.mulf %553, %557 : vector<2x16xf32>
    %c0_252 = arith.constant 0 : index
    %c0_253 = arith.constant 0 : index
    %559 = vector.load %arg8[%c0_252, %c0_253] : memref<2x16xf32, #tpu.memory_space<vmem>>, vector<2x16xf32>
    %560 = vector.extract_strided_slice %532 {offsets = [0, 0], sizes = [2, 16], strides = [1, 1]} : vector<2x128xf32> to vector<2x16xf32>
    %561 = arith.negf %560 : vector<2x16xf32>
    %562 = math.exp %561 : vector<2x16xf32>
    %cst_254 = arith.constant 1.000000e+00 : f32
    %563 = vector.broadcast %cst_254 : f32 to vector<2x16xf32>
    %564 = arith.addf %563, %562 : vector<2x16xf32>
    %565 = arith.divf %563, %564 : vector<2x16xf32>
    %566 = vector.extract_strided_slice %532 {offsets = [0, 16], sizes = [2, 16], strides = [1, 1]} : vector<2x128xf32> to vector<2x16xf32>
    %567 = arith.negf %566 : vector<2x16xf32>
    %568 = math.exp %567 : vector<2x16xf32>
    %cst_255 = arith.constant 1.000000e+00 : f32
    %569 = vector.broadcast %cst_255 : f32 to vector<2x16xf32>
    %570 = arith.addf %569, %568 : vector<2x16xf32>
    %571 = arith.divf %569, %570 : vector<2x16xf32>
    %572 = vector.extract_strided_slice %532 {offsets = [0, 32], sizes = [2, 16], strides = [1, 1]} : vector<2x128xf32> to vector<2x16xf32>
    %573 = math.tanh %572 : vector<2x16xf32>
    %574 = vector.extract_strided_slice %532 {offsets = [0, 48], sizes = [2, 16], strides = [1, 1]} : vector<2x128xf32> to vector<2x16xf32>
    %575 = arith.negf %574 : vector<2x16xf32>
    %576 = math.exp %575 : vector<2x16xf32>
    %cst_256 = arith.constant 1.000000e+00 : f32
    %577 = vector.broadcast %cst_256 : f32 to vector<2x16xf32>
    %578 = arith.addf %577, %576 : vector<2x16xf32>
    %579 = arith.divf %577, %578 : vector<2x16xf32>
    %580 = arith.mulf %571, %559 : vector<2x16xf32>
    %581 = arith.mulf %565, %573 : vector<2x16xf32>
    %582 = arith.addf %580, %581 : vector<2x16xf32>
    %583 = math.tanh %582 : vector<2x16xf32>
    %584 = arith.mulf %579, %583 : vector<2x16xf32>
    %c0_257 = arith.constant 0 : index
    %c0_258 = arith.constant 0 : index
    %585 = vector.load %arg7[%c0_257, %c0_258] : memref<2x16xf32, #tpu.memory_space<vmem>>, vector<2x16xf32>
    tpu.vector_store %arg7[%c0_257, %c0_258], %556 {strides = array<i32>} : memref<2x16xf32, #tpu.memory_space<vmem>>, vector<2x16xf32>,
    %c0_259 = arith.constant 0 : index
    %c0_260 = arith.constant 0 : index
    %586 = vector.load %arg8[%c0_259, %c0_260] : memref<2x16xf32, #tpu.memory_space<vmem>>, vector<2x16xf32>
    tpu.vector_store %arg8[%c0_259, %c0_260], %582 {strides = array<i32>} : memref<2x16xf32, #tpu.memory_space<vmem>>, vector<2x16xf32>,
    %c0_261 = arith.constant 0 : index
    %c0_262 = arith.constant 0 : index
    %587 = vector.load %arg6[%c0_261, %c0_262] : memref<2x32xf32, #tpu.memory_space<vmem>>, vector<2x16xf32>
    tpu.vector_store %arg6[%c0_261, %c0_262], %558 {strides = array<i32>} : memref<2x32xf32, #tpu.memory_space<vmem>>, vector<2x16xf32>,
    %c0_263 = arith.constant 0 : index
    %c16_264 = arith.constant 16 : index
    %588 = vector.load %arg6[%c0_263, %c16_264] : memref<2x32xf32, #tpu.memory_space<vmem>>, vector<2x16xf32>
    tpu.vector_store %arg6[%c0_263, %c16_264], %584 {strides = array<i32>} : memref<2x32xf32, #tpu.memory_space<vmem>>, vector<2x16xf32>,
    %c7_265 = arith.constant 7 : index
    %c0_266 = arith.constant 0 : index
    %c0_267 = arith.constant 0 : index
    %589 = vector.load %arg4[%c7_265, %c0_266, %c0_267] : memref<8x2x16xf32, #tpu.memory_space<vmem>>, vector<1x2x16xf32>
    %590 = vector.shape_cast %589 : vector<1x2x16xf32> to vector<2x16xf32>
    %591 = vector.shape_cast %558 : vector<2x16xf32> to vector<1x2x16xf32>
    tpu.vector_store %arg4[%c7_265, %c0_266, %c0_267], %591 {strides = array<i32>} : memref<8x2x16xf32, #tpu.memory_space<vmem>>, vector<1x2x16xf32>,
    %c0_268 = arith.constant 0 : index
    %c0_269 = arith.constant 0 : index
    %c0_270 = arith.constant 0 : index
    %592 = vector.load %arg5[%c0_268, %c0_269, %c0_270] : memref<8x2x16xf32, #tpu.memory_space<vmem>>, vector<1x2x16xf32>
    %593 = vector.shape_cast %592 : vector<1x2x16xf32> to vector<2x16xf32>
    %594 = vector.shape_cast %584 : vector<2x16xf32> to vector<1x2x16xf32>
    tpu.vector_store %arg5[%c0_268, %c0_269, %c0_270], %594 {strides = array<i32>} : memref<8x2x16xf32, #tpu.memory_space<vmem>>, vector<1x2x16xf32>,
    return
  }
  func.func @transform_0(%arg0: i32) -> (i32, i32, i32) {
    %c0_i32 = arith.constant 0 : i32
    %c0_i32_0 = arith.constant 0 : i32
    %c0_i32_1 = arith.constant 0 : i32
    return %arg0, %c0_i32, %c0_i32_0 : i32, i32, i32
  }
  func.func @transform_1(%arg0: i32) -> (i32, i32, i32) {
    %c0_i32 = arith.constant 0 : i32
    %0 = arith.subi %c0_i32, %arg0 : i32
    %c0_i32_0 = arith.constant 0 : i32
    %c0_i32_1 = arith.constant 0 : i32
    %c0_i32_2 = arith.constant 0 : i32
    return %0, %c0_i32_0, %c0_i32_1 : i32, i32, i32
  }
  func.func @transform_2(%arg0: i32) -> (i32, i32) {
    %c0_i32 = arith.constant 0 : i32
    %c0_i32_0 = arith.constant 0 : i32
    %c0_i32_1 = arith.constant 0 : i32
    return %c0_i32, %c0_i32_0 : i32, i32
  }
  func.func @transform_3(%arg0: i32) -> (i32, i32, i32) {
    %c0_i32 = arith.constant 0 : i32
    %c0_i32_0 = arith.constant 0 : i32
    %c0_i32_1 = arith.constant 0 : i32
    return %arg0, %c0_i32, %c0_i32_0 : i32, i32, i32
  }
  func.func @transform_4(%arg0: i32) -> (i32, i32, i32) {
    %c0_i32 = arith.constant 0 : i32
    %0 = arith.subi %c0_i32, %arg0 : i32
    %c0_i32_0 = arith.constant 0 : i32
    %c0_i32_1 = arith.constant 0 : i32
    %c0_i32_2 = arith.constant 0 : i32
    return %0, %c0_i32_0, %c0_i32_1 : i32, i32, i32
  }
}

module attributes {stable_mosaic.version = 11 : i64} {
  func.func @_dual_linear_kernel(%arg0: i32, %arg1: memref<16x64xbf16, #tpu.memory_space<vmem>>, %arg2: memref<64x128xbf16, #tpu.memory_space<vmem>>, %arg3: memref<1x128xf32, #tpu.memory_space<vmem>>, %arg4: memref<64x128xbf16, #tpu.memory_space<vmem>>, %arg5: memref<1x128xf32, #tpu.memory_space<vmem>>, %arg6: memref<16x128xf32, #tpu.memory_space<vmem>>, %arg7: memref<16x128xf32, #tpu.memory_space<vmem>>) attributes {dimension_semantics = [#tpu.dimension_semantics<parallel>], iteration_bounds = array<i64: 1>, scalar_prefetch = 0 : i64, scratch_operands = 0 : i64, tpu.core_type = #tpu.core_type<tc>, window_params = [{transform_indices = @transform_0, window_bounds = array<i64: 16, 64>}, {pipeline_mode = #tpu.pipeline_mode<synchronous>, transform_indices = @transform_1, window_bounds = array<i64: 64, 128>}, {pipeline_mode = #tpu.pipeline_mode<synchronous>, transform_indices = @transform_2, window_bounds = array<i64: 1, 128>}, {pipeline_mode = #tpu.pipeline_mode<synchronous>, transform_indices = @transform_3, window_bounds = array<i64: 64, 128>}, {pipeline_mode = #tpu.pipeline_mode<synchronous>, transform_indices = @transform_4, window_bounds = array<i64: 1, 128>}, {transform_indices = @transform_5, window_bounds = array<i64: 16, 128>}, {transform_indices = @transform_6, window_bounds = array<i64: 16, 128>}]} {
    %c0 = arith.constant 0 : index
    %c0_0 = arith.constant 0 : index
    %0 = vector.load %arg1[%c0, %c0_0] : memref<16x64xbf16, #tpu.memory_space<vmem>>, vector<16x64xbf16>
    %c0_1 = arith.constant 0 : index
    %c0_2 = arith.constant 0 : index
    %1 = vector.load %arg2[%c0_1, %c0_2] : memref<64x128xbf16, #tpu.memory_space<vmem>>, vector<64x128xbf16>
    %cst = arith.constant dense<0.000000e+00> : vector<16x128xf32>
    %2 = tpu.matmul %0, %1, %cst {dimension_numbers = #tpu.dot_dimension_numbers<[1], [0], [0], [1], [0, 0, 1, 1], [], []>} : vector<16x64xbf16>, vector<64x128xbf16>, vector<16x128xf32> -> vector<16x128xf32>
    %c0_3 = arith.constant 0 : index
    %c0_4 = arith.constant 0 : index
    %3 = vector.load %arg3[%c0_3, %c0_4] : memref<1x128xf32, #tpu.memory_space<vmem>>, vector<1x128xf32>
    %4 = vector.broadcast %3 : vector<1x128xf32> to vector<16x128xf32>
    %5 = arith.addf %2, %4 : vector<16x128xf32>
    %c0_5 = arith.constant 0 : index
    %c0_6 = arith.constant 0 : index
    %6 = vector.load %arg6[%c0_5, %c0_6] : memref<16x128xf32, #tpu.memory_space<vmem>>, vector<16x128xf32>
    tpu.vector_store %arg6[%c0_5, %c0_6], %5 {strides = array<i32>} : memref<16x128xf32, #tpu.memory_space<vmem>>, vector<16x128xf32>,
    %c0_7 = arith.constant 0 : index
    %c0_8 = arith.constant 0 : index
    %7 = vector.load %arg4[%c0_7, %c0_8] : memref<64x128xbf16, #tpu.memory_space<vmem>>, vector<64x128xbf16>
    %cst_9 = arith.constant dense<0.000000e+00> : vector<16x128xf32>
    %8 = tpu.matmul %0, %7, %cst_9 {dimension_numbers = #tpu.dot_dimension_numbers<[1], [0], [0], [1], [0, 0, 1, 1], [], []>} : vector<16x64xbf16>, vector<64x128xbf16>, vector<16x128xf32> -> vector<16x128xf32>
    %c0_10 = arith.constant 0 : index
    %c0_11 = arith.constant 0 : index
    %9 = vector.load %arg5[%c0_10, %c0_11] : memref<1x128xf32, #tpu.memory_space<vmem>>, vector<1x128xf32>
    %10 = vector.broadcast %9 : vector<1x128xf32> to vector<16x128xf32>
    %11 = arith.addf %8, %10 : vector<16x128xf32>
    %c0_12 = arith.constant 0 : index
    %c0_13 = arith.constant 0 : index
    %12 = vector.load %arg7[%c0_12, %c0_13] : memref<16x128xf32, #tpu.memory_space<vmem>>, vector<16x128xf32>
    tpu.vector_store %arg7[%c0_12, %c0_13], %11 {strides = array<i32>} : memref<16x128xf32, #tpu.memory_space<vmem>>, vector<16x128xf32>,
    return
  }
  func.func @transform_0(%arg0: i32) -> (i32, i32) {
    %c0_i32 = arith.constant 0 : i32
    %c0_i32_0 = arith.constant 0 : i32
    return %arg0, %c0_i32 : i32, i32
  }
  func.func @transform_1(%arg0: i32) -> (i32, i32) {
    %c0_i32 = arith.constant 0 : i32
    %c0_i32_0 = arith.constant 0 : i32
    %c0_i32_1 = arith.constant 0 : i32
    return %c0_i32, %c0_i32_0 : i32, i32
  }
  func.func @transform_2(%arg0: i32) -> (i32, i32) {
    %c0_i32 = arith.constant 0 : i32
    %c0_i32_0 = arith.constant 0 : i32
    %c0_i32_1 = arith.constant 0 : i32
    return %c0_i32, %c0_i32_0 : i32, i32
  }
  func.func @transform_3(%arg0: i32) -> (i32, i32) {
    %c0_i32 = arith.constant 0 : i32
    %c0_i32_0 = arith.constant 0 : i32
    %c0_i32_1 = arith.constant 0 : i32
    return %c0_i32, %c0_i32_0 : i32, i32
  }
  func.func @transform_4(%arg0: i32) -> (i32, i32) {
    %c0_i32 = arith.constant 0 : i32
    %c0_i32_0 = arith.constant 0 : i32
    %c0_i32_1 = arith.constant 0 : i32
    return %c0_i32, %c0_i32_0 : i32, i32
  }
  func.func @transform_5(%arg0: i32) -> (i32, i32) {
    %c0_i32 = arith.constant 0 : i32
    %c0_i32_0 = arith.constant 0 : i32
    return %arg0, %c0_i32 : i32, i32
  }
  func.func @transform_6(%arg0: i32) -> (i32, i32) {
    %c0_i32 = arith.constant 0 : i32
    %c0_i32_0 = arith.constant 0 : i32
    return %arg0, %c0_i32 : i32, i32
  }
}

module attributes {stable_mosaic.version = 11 : i64} {
  func.func @_bilstm_kernel(%arg0: i32, %arg1: memref<8x2x128xf32, #tpu.memory_space<vmem>>, %arg2: memref<8x2x128xf32, #tpu.memory_space<vmem>>, %arg3: memref<32x256xbf16, #tpu.memory_space<vmem>>, %arg4: memref<16x128xbf16, #tpu.memory_space<vmem>>, %arg5: memref<16x128xbf16, #tpu.memory_space<vmem>>, %arg6: memref<8x2x16xf32, #tpu.memory_space<vmem>>, %arg7: memref<8x2x16xf32, #tpu.memory_space<vmem>>, %arg8: memref<8x2x128xf32, #tpu.memory_space<vmem>>, %arg9: memref<8x2x128xf32, #tpu.memory_space<vmem>>, %arg10: memref<2x32xf32, #tpu.memory_space<vmem>>, %arg11: memref<2x16xf32, #tpu.memory_space<vmem>>, %arg12: memref<2x16xf32, #tpu.memory_space<vmem>>) attributes {dimension_semantics = [#tpu.dimension_semantics<arbitrary>], iteration_bounds = array<i64: 1>, scalar_prefetch = 0 : i64, scratch_operands = 3 : i64, tpu.core_type = #tpu.core_type<tc>, window_params = [{transform_indices = @transform_0, window_bounds = array<i64: 8, 2, 128>}, {transform_indices = @transform_1, window_bounds = array<i64: 8, 2, 128>}, {pipeline_mode = #tpu.pipeline_mode<synchronous>, transform_indices = @transform_2, window_bounds = array<i64: 32, 256>}, {pipeline_mode = #tpu.pipeline_mode<synchronous>, transform_indices = @transform_3, window_bounds = array<i64: 16, 128>}, {pipeline_mode = #tpu.pipeline_mode<synchronous>, transform_indices = @transform_4, window_bounds = array<i64: 16, 128>}, {transform_indices = @transform_5, window_bounds = array<i64: 8, 2, 16>}, {transform_indices = @transform_6, window_bounds = array<i64: 8, 2, 16>}, {transform_indices = @transform_7, window_bounds = array<i64: 8, 2, 128>}, {transform_indices = @transform_8, window_bounds = array<i64: 8, 2, 128>}]} {
    %c0_i32 = arith.constant 0 : i32
    %0 = arith.cmpi eq, %arg0, %c0_i32 : i32
    %1 = arith.extui %0 : i1 to i32
    %c0_i32_0 = arith.constant 0 : i32
    %2 = arith.cmpi ne, %1, %c0_i32_0 : i32
    scf.if %2 {
      %cst_367 = arith.constant 0.000000e+00 : f32
      %691 = vector.broadcast %cst_367 : f32 to vector<2x32xf32>
      %c0_368 = arith.constant 0 : index
      %c0_369 = arith.constant 0 : index
      %692 = vector.load %arg10[%c0_368, %c0_369] : memref<2x32xf32, #tpu.memory_space<vmem>>, vector<2x32xf32>
      tpu.vector_store %arg10[%c0_368, %c0_369], %691 {strides = array<i32>} : memref<2x32xf32, #tpu.memory_space<vmem>>, vector<2x32xf32>,
      %cst_370 = arith.constant 0.000000e+00 : f32
      %693 = vector.broadcast %cst_370 : f32 to vector<2x16xf32>
      %c0_371 = arith.constant 0 : index
      %c0_372 = arith.constant 0 : index
      %694 = vector.load %arg11[%c0_371, %c0_372] : memref<2x16xf32, #tpu.memory_space<vmem>>, vector<2x16xf32>
      tpu.vector_store %arg11[%c0_371, %c0_372], %693 {strides = array<i32>} : memref<2x16xf32, #tpu.memory_space<vmem>>, vector<2x16xf32>,
      %cst_373 = arith.constant 0.000000e+00 : f32
      %695 = vector.broadcast %cst_373 : f32 to vector<2x16xf32>
      %c0_374 = arith.constant 0 : index
      %c0_375 = arith.constant 0 : index
      %696 = vector.load %arg12[%c0_374, %c0_375] : memref<2x16xf32, #tpu.memory_space<vmem>>, vector<2x16xf32>
      tpu.vector_store %arg12[%c0_374, %c0_375], %695 {strides = array<i32>} : memref<2x16xf32, #tpu.memory_space<vmem>>, vector<2x16xf32>,
    } else {
    }
    %c0 = arith.constant 0 : index
    %c0_1 = arith.constant 0 : index
    %3 = vector.load %arg10[%c0, %c0_1] : memref<2x32xf32, #tpu.memory_space<vmem>>, vector<2x32xf32>
    %4 = arith.truncf %3 : vector<2x32xf32> to vector<2x32xbf16>
    %c0_2 = arith.constant 0 : index
    %c0_3 = arith.constant 0 : index
    %5 = vector.load %arg3[%c0_2, %c0_3] : memref<32x256xbf16, #tpu.memory_space<vmem>>, vector<32x256xbf16>
    %cst = arith.constant dense<0.000000e+00> : vector<2x256xf32>
    %6 = tpu.matmul %4, %5, %cst {dimension_numbers = #tpu.dot_dimension_numbers<[1], [0], [0], [1], [0, 0, 1, 1], [], []>} : vector<2x32xbf16>, vector<32x256xbf16>, vector<2x256xf32> -> vector<2x256xf32>
    %c0_4 = arith.constant 0 : index
    %c0_5 = arith.constant 0 : index
    %c0_6 = arith.constant 0 : index
    %7 = vector.load %arg1[%c0_4, %c0_5, %c0_6] : memref<8x2x128xf32, #tpu.memory_space<vmem>>, vector<1x2x128xf32>
    %8 = vector.shape_cast %7 : vector<1x2x128xf32> to vector<2x128xf32>
    %9 = vector.extract_strided_slice %6 {offsets = [0, 0], sizes = [2, 128], strides = [1, 1]} : vector<2x256xf32> to vector<2x128xf32>
    %10 = arith.addf %8, %9 : vector<2x128xf32>
    %c7 = arith.constant 7 : index
    %c0_7 = arith.constant 0 : index
    %c0_8 = arith.constant 0 : index
    %11 = vector.load %arg2[%c7, %c0_7, %c0_8] : memref<8x2x128xf32, #tpu.memory_space<vmem>>, vector<1x2x128xf32>
    %12 = vector.shape_cast %11 : vector<1x2x128xf32> to vector<2x128xf32>
    %13 = vector.extract_strided_slice %6 {offsets = [0, 128], sizes = [2, 128], strides = [1, 1]} : vector<2x256xf32> to vector<2x128xf32>
    %14 = arith.addf %12, %13 : vector<2x128xf32>
    %c0_9 = arith.constant 0 : index
    %c0_10 = arith.constant 0 : index
    %15 = vector.load %arg11[%c0_9, %c0_10] : memref<2x16xf32, #tpu.memory_space<vmem>>, vector<2x16xf32>
    %16 = vector.extract_strided_slice %10 {offsets = [0, 0], sizes = [2, 16], strides = [1, 1]} : vector<2x128xf32> to vector<2x16xf32>
    %17 = arith.negf %16 : vector<2x16xf32>
    %18 = math.exp %17 : vector<2x16xf32>
    %cst_11 = arith.constant 1.000000e+00 : f32
    %19 = vector.broadcast %cst_11 : f32 to vector<2x16xf32>
    %20 = arith.addf %19, %18 : vector<2x16xf32>
    %21 = arith.divf %19, %20 : vector<2x16xf32>
    %22 = vector.extract_strided_slice %10 {offsets = [0, 16], sizes = [2, 16], strides = [1, 1]} : vector<2x128xf32> to vector<2x16xf32>
    %23 = arith.negf %22 : vector<2x16xf32>
    %24 = math.exp %23 : vector<2x16xf32>
    %cst_12 = arith.constant 1.000000e+00 : f32
    %25 = vector.broadcast %cst_12 : f32 to vector<2x16xf32>
    %26 = arith.addf %25, %24 : vector<2x16xf32>
    %27 = arith.divf %25, %26 : vector<2x16xf32>
    %28 = vector.extract_strided_slice %10 {offsets = [0, 32], sizes = [2, 16], strides = [1, 1]} : vector<2x128xf32> to vector<2x16xf32>
    %29 = math.tanh %28 : vector<2x16xf32>
    %30 = vector.extract_strided_slice %10 {offsets = [0, 48], sizes = [2, 16], strides = [1, 1]} : vector<2x128xf32> to vector<2x16xf32>
    %31 = arith.negf %30 : vector<2x16xf32>
    %32 = math.exp %31 : vector<2x16xf32>
    %cst_13 = arith.constant 1.000000e+00 : f32
    %33 = vector.broadcast %cst_13 : f32 to vector<2x16xf32>
    %34 = arith.addf %33, %32 : vector<2x16xf32>
    %35 = arith.divf %33, %34 : vector<2x16xf32>
    %36 = arith.mulf %27, %15 : vector<2x16xf32>
    %37 = arith.mulf %21, %29 : vector<2x16xf32>
    %38 = arith.addf %36, %37 : vector<2x16xf32>
    %39 = math.tanh %38 : vector<2x16xf32>
    %40 = arith.mulf %35, %39 : vector<2x16xf32>
    %c0_14 = arith.constant 0 : index
    %c0_15 = arith.constant 0 : index
    %41 = vector.load %arg12[%c0_14, %c0_15] : memref<2x16xf32, #tpu.memory_space<vmem>>, vector<2x16xf32>
    %42 = vector.extract_strided_slice %14 {offsets = [0, 0], sizes = [2, 16], strides = [1, 1]} : vector<2x128xf32> to vector<2x16xf32>
    %43 = arith.negf %42 : vector<2x16xf32>
    %44 = math.exp %43 : vector<2x16xf32>
    %cst_16 = arith.constant 1.000000e+00 : f32
    %45 = vector.broadcast %cst_16 : f32 to vector<2x16xf32>
    %46 = arith.addf %45, %44 : vector<2x16xf32>
    %47 = arith.divf %45, %46 : vector<2x16xf32>
    %48 = vector.extract_strided_slice %14 {offsets = [0, 16], sizes = [2, 16], strides = [1, 1]} : vector<2x128xf32> to vector<2x16xf32>
    %49 = arith.negf %48 : vector<2x16xf32>
    %50 = math.exp %49 : vector<2x16xf32>
    %cst_17 = arith.constant 1.000000e+00 : f32
    %51 = vector.broadcast %cst_17 : f32 to vector<2x16xf32>
    %52 = arith.addf %51, %50 : vector<2x16xf32>
    %53 = arith.divf %51, %52 : vector<2x16xf32>
    %54 = vector.extract_strided_slice %14 {offsets = [0, 32], sizes = [2, 16], strides = [1, 1]} : vector<2x128xf32> to vector<2x16xf32>
    %55 = math.tanh %54 : vector<2x16xf32>
    %56 = vector.extract_strided_slice %14 {offsets = [0, 48], sizes = [2, 16], strides = [1, 1]} : vector<2x128xf32> to vector<2x16xf32>
    %57 = arith.negf %56 : vector<2x16xf32>
    %58 = math.exp %57 : vector<2x16xf32>
    %cst_18 = arith.constant 1.000000e+00 : f32
    %59 = vector.broadcast %cst_18 : f32 to vector<2x16xf32>
    %60 = arith.addf %59, %58 : vector<2x16xf32>
    %61 = arith.divf %59, %60 : vector<2x16xf32>
    %62 = arith.mulf %53, %41 : vector<2x16xf32>
    %63 = arith.mulf %47, %55 : vector<2x16xf32>
    %64 = arith.addf %62, %63 : vector<2x16xf32>
    %65 = math.tanh %64 : vector<2x16xf32>
    %66 = arith.mulf %61, %65 : vector<2x16xf32>
    %c0_19 = arith.constant 0 : index
    %c0_20 = arith.constant 0 : index
    %67 = vector.load %arg11[%c0_19, %c0_20] : memref<2x16xf32, #tpu.memory_space<vmem>>, vector<2x16xf32>
    tpu.vector_store %arg11[%c0_19, %c0_20], %38 {strides = array<i32>} : memref<2x16xf32, #tpu.memory_space<vmem>>, vector<2x16xf32>,
    %c0_21 = arith.constant 0 : index
    %c0_22 = arith.constant 0 : index
    %68 = vector.load %arg12[%c0_21, %c0_22] : memref<2x16xf32, #tpu.memory_space<vmem>>, vector<2x16xf32>
    tpu.vector_store %arg12[%c0_21, %c0_22], %64 {strides = array<i32>} : memref<2x16xf32, #tpu.memory_space<vmem>>, vector<2x16xf32>,
    %c0_23 = arith.constant 0 : index
    %c0_24 = arith.constant 0 : index
    %69 = vector.load %arg10[%c0_23, %c0_24] : memref<2x32xf32, #tpu.memory_space<vmem>>, vector<2x16xf32>
    tpu.vector_store %arg10[%c0_23, %c0_24], %40 {strides = array<i32>} : memref<2x32xf32, #tpu.memory_space<vmem>>, vector<2x16xf32>,
    %c0_25 = arith.constant 0 : index
    %c16 = arith.constant 16 : index
    %70 = vector.load %arg10[%c0_25, %c16] : memref<2x32xf32, #tpu.memory_space<vmem>>, vector<2x16xf32>
    tpu.vector_store %arg10[%c0_25, %c16], %66 {strides = array<i32>} : memref<2x32xf32, #tpu.memory_space<vmem>>, vector<2x16xf32>,
    %c0_26 = arith.constant 0 : index
    %c0_27 = arith.constant 0 : index
    %c0_28 = arith.constant 0 : index
    %71 = vector.load %arg6[%c0_26, %c0_27, %c0_28] : memref<8x2x16xf32, #tpu.memory_space<vmem>>, vector<1x2x16xf32>
    %72 = vector.shape_cast %71 : vector<1x2x16xf32> to vector<2x16xf32>
    %73 = vector.shape_cast %40 : vector<2x16xf32> to vector<1x2x16xf32>
    tpu.vector_store %arg6[%c0_26, %c0_27, %c0_28], %73 {strides = array<i32>} : memref<8x2x16xf32, #tpu.memory_space<vmem>>, vector<1x2x16xf32>,
    %c7_29 = arith.constant 7 : index
    %c0_30 = arith.constant 0 : index
    %c0_31 = arith.constant 0 : index
    %74 = vector.load %arg7[%c7_29, %c0_30, %c0_31] : memref<8x2x16xf32, #tpu.memory_space<vmem>>, vector<1x2x16xf32>
    %75 = vector.shape_cast %74 : vector<1x2x16xf32> to vector<2x16xf32>
    %76 = vector.shape_cast %66 : vector<2x16xf32> to vector<1x2x16xf32>
    tpu.vector_store %arg7[%c7_29, %c0_30, %c0_31], %76 {strides = array<i32>} : memref<8x2x16xf32, #tpu.memory_space<vmem>>, vector<1x2x16xf32>,
    %77 = arith.truncf %40 : vector<2x16xf32> to vector<2x16xbf16>
    %c0_32 = arith.constant 0 : index
    %c0_33 = arith.constant 0 : index
    %78 = vector.load %arg4[%c0_32, %c0_33] : memref<16x128xbf16, #tpu.memory_space<vmem>>, vector<16x128xbf16>
    %cst_34 = arith.constant dense<0.000000e+00> : vector<2x128xf32>
    %79 = tpu.matmul %77, %78, %cst_34 {dimension_numbers = #tpu.dot_dimension_numbers<[1], [0], [0], [1], [0, 0, 1, 1], [], []>} : vector<2x16xbf16>, vector<16x128xbf16>, vector<2x128xf32> -> vector<2x128xf32>
    %c0_35 = arith.constant 0 : index
    %c0_36 = arith.constant 0 : index
    %c0_37 = arith.constant 0 : index
    %80 = vector.load %arg8[%c0_35, %c0_36, %c0_37] : memref<8x2x128xf32, #tpu.memory_space<vmem>>, vector<1x2x128xf32>
    %81 = vector.shape_cast %80 : vector<1x2x128xf32> to vector<2x128xf32>
    %82 = vector.shape_cast %79 : vector<2x128xf32> to vector<1x2x128xf32>
    tpu.vector_store %arg8[%c0_35, %c0_36, %c0_37], %82 {strides = array<i32>} : memref<8x2x128xf32, #tpu.memory_space<vmem>>, vector<1x2x128xf32>,
    %83 = arith.truncf %66 : vector<2x16xf32> to vector<2x16xbf16>
    %c0_38 = arith.constant 0 : index
    %c0_39 = arith.constant 0 : index
    %84 = vector.load %arg5[%c0_38, %c0_39] : memref<16x128xbf16, #tpu.memory_space<vmem>>, vector<16x128xbf16>
    %cst_40 = arith.constant dense<0.000000e+00> : vector<2x128xf32>
    %85 = tpu.matmul %83, %84, %cst_40 {dimension_numbers = #tpu.dot_dimension_numbers<[1], [0], [0], [1], [0, 0, 1, 1], [], []>} : vector<2x16xbf16>, vector<16x128xbf16>, vector<2x128xf32> -> vector<2x128xf32>
    %c7_41 = arith.constant 7 : index
    %c0_42 = arith.constant 0 : index
    %c0_43 = arith.constant 0 : index
    %86 = vector.load %arg9[%c7_41, %c0_42, %c0_43] : memref<8x2x128xf32, #tpu.memory_space<vmem>>, vector<1x2x128xf32>
    %87 = vector.shape_cast %86 : vector<1x2x128xf32> to vector<2x128xf32>
    %88 = vector.shape_cast %85 : vector<2x128xf32> to vector<1x2x128xf32>
    tpu.vector_store %arg9[%c7_41, %c0_42, %c0_43], %88 {strides = array<i32>} : memref<8x2x128xf32, #tpu.memory_space<vmem>>, vector<1x2x128xf32>,
    %c0_44 = arith.constant 0 : index
    %c0_45 = arith.constant 0 : index
    %89 = vector.load %arg10[%c0_44, %c0_45] : memref<2x32xf32, #tpu.memory_space<vmem>>, vector<2x32xf32>
    %90 = arith.truncf %89 : vector<2x32xf32> to vector<2x32xbf16>
    %c0_46 = arith.constant 0 : index
    %c0_47 = arith.constant 0 : index
    %91 = vector.load %arg3[%c0_46, %c0_47] : memref<32x256xbf16, #tpu.memory_space<vmem>>, vector<32x256xbf16>
    %cst_48 = arith.constant dense<0.000000e+00> : vector<2x256xf32>
    %92 = tpu.matmul %90, %91, %cst_48 {dimension_numbers = #tpu.dot_dimension_numbers<[1], [0], [0], [1], [0, 0, 1, 1], [], []>} : vector<2x32xbf16>, vector<32x256xbf16>, vector<2x256xf32> -> vector<2x256xf32>
    %c1 = arith.constant 1 : index
    %c0_49 = arith.constant 0 : index
    %c0_50 = arith.constant 0 : index
    %93 = vector.load %arg1[%c1, %c0_49, %c0_50] : memref<8x2x128xf32, #tpu.memory_space<vmem>>, vector<1x2x128xf32>
    %94 = vector.shape_cast %93 : vector<1x2x128xf32> to vector<2x128xf32>
    %95 = vector.extract_strided_slice %92 {offsets = [0, 0], sizes = [2, 128], strides = [1, 1]} : vector<2x256xf32> to vector<2x128xf32>
    %96 = arith.addf %94, %95 : vector<2x128xf32>
    %c6 = arith.constant 6 : index
    %c0_51 = arith.constant 0 : index
    %c0_52 = arith.constant 0 : index
    %97 = vector.load %arg2[%c6, %c0_51, %c0_52] : memref<8x2x128xf32, #tpu.memory_space<vmem>>, vector<1x2x128xf32>
    %98 = vector.shape_cast %97 : vector<1x2x128xf32> to vector<2x128xf32>
    %99 = vector.extract_strided_slice %92 {offsets = [0, 128], sizes = [2, 128], strides = [1, 1]} : vector<2x256xf32> to vector<2x128xf32>
    %100 = arith.addf %98, %99 : vector<2x128xf32>
    %c0_53 = arith.constant 0 : index
    %c0_54 = arith.constant 0 : index
    %101 = vector.load %arg11[%c0_53, %c0_54] : memref<2x16xf32, #tpu.memory_space<vmem>>, vector<2x16xf32>
    %102 = vector.extract_strided_slice %96 {offsets = [0, 0], sizes = [2, 16], strides = [1, 1]} : vector<2x128xf32> to vector<2x16xf32>
    %103 = arith.negf %102 : vector<2x16xf32>
    %104 = math.exp %103 : vector<2x16xf32>
    %cst_55 = arith.constant 1.000000e+00 : f32
    %105 = vector.broadcast %cst_55 : f32 to vector<2x16xf32>
    %106 = arith.addf %105, %104 : vector<2x16xf32>
    %107 = arith.divf %105, %106 : vector<2x16xf32>
    %108 = vector.extract_strided_slice %96 {offsets = [0, 16], sizes = [2, 16], strides = [1, 1]} : vector<2x128xf32> to vector<2x16xf32>
    %109 = arith.negf %108 : vector<2x16xf32>
    %110 = math.exp %109 : vector<2x16xf32>
    %cst_56 = arith.constant 1.000000e+00 : f32
    %111 = vector.broadcast %cst_56 : f32 to vector<2x16xf32>
    %112 = arith.addf %111, %110 : vector<2x16xf32>
    %113 = arith.divf %111, %112 : vector<2x16xf32>
    %114 = vector.extract_strided_slice %96 {offsets = [0, 32], sizes = [2, 16], strides = [1, 1]} : vector<2x128xf32> to vector<2x16xf32>
    %115 = math.tanh %114 : vector<2x16xf32>
    %116 = vector.extract_strided_slice %96 {offsets = [0, 48], sizes = [2, 16], strides = [1, 1]} : vector<2x128xf32> to vector<2x16xf32>
    %117 = arith.negf %116 : vector<2x16xf32>
    %118 = math.exp %117 : vector<2x16xf32>
    %cst_57 = arith.constant 1.000000e+00 : f32
    %119 = vector.broadcast %cst_57 : f32 to vector<2x16xf32>
    %120 = arith.addf %119, %118 : vector<2x16xf32>
    %121 = arith.divf %119, %120 : vector<2x16xf32>
    %122 = arith.mulf %113, %101 : vector<2x16xf32>
    %123 = arith.mulf %107, %115 : vector<2x16xf32>
    %124 = arith.addf %122, %123 : vector<2x16xf32>
    %125 = math.tanh %124 : vector<2x16xf32>
    %126 = arith.mulf %121, %125 : vector<2x16xf32>
    %c0_58 = arith.constant 0 : index
    %c0_59 = arith.constant 0 : index
    %127 = vector.load %arg12[%c0_58, %c0_59] : memref<2x16xf32, #tpu.memory_space<vmem>>, vector<2x16xf32>
    %128 = vector.extract_strided_slice %100 {offsets = [0, 0], sizes = [2, 16], strides = [1, 1]} : vector<2x128xf32> to vector<2x16xf32>
    %129 = arith.negf %128 : vector<2x16xf32>
    %130 = math.exp %129 : vector<2x16xf32>
    %cst_60 = arith.constant 1.000000e+00 : f32
    %131 = vector.broadcast %cst_60 : f32 to vector<2x16xf32>
    %132 = arith.addf %131, %130 : vector<2x16xf32>
    %133 = arith.divf %131, %132 : vector<2x16xf32>
    %134 = vector.extract_strided_slice %100 {offsets = [0, 16], sizes = [2, 16], strides = [1, 1]} : vector<2x128xf32> to vector<2x16xf32>
    %135 = arith.negf %134 : vector<2x16xf32>
    %136 = math.exp %135 : vector<2x16xf32>
    %cst_61 = arith.constant 1.000000e+00 : f32
    %137 = vector.broadcast %cst_61 : f32 to vector<2x16xf32>
    %138 = arith.addf %137, %136 : vector<2x16xf32>
    %139 = arith.divf %137, %138 : vector<2x16xf32>
    %140 = vector.extract_strided_slice %100 {offsets = [0, 32], sizes = [2, 16], strides = [1, 1]} : vector<2x128xf32> to vector<2x16xf32>
    %141 = math.tanh %140 : vector<2x16xf32>
    %142 = vector.extract_strided_slice %100 {offsets = [0, 48], sizes = [2, 16], strides = [1, 1]} : vector<2x128xf32> to vector<2x16xf32>
    %143 = arith.negf %142 : vector<2x16xf32>
    %144 = math.exp %143 : vector<2x16xf32>
    %cst_62 = arith.constant 1.000000e+00 : f32
    %145 = vector.broadcast %cst_62 : f32 to vector<2x16xf32>
    %146 = arith.addf %145, %144 : vector<2x16xf32>
    %147 = arith.divf %145, %146 : vector<2x16xf32>
    %148 = arith.mulf %139, %127 : vector<2x16xf32>
    %149 = arith.mulf %133, %141 : vector<2x16xf32>
    %150 = arith.addf %148, %149 : vector<2x16xf32>
    %151 = math.tanh %150 : vector<2x16xf32>
    %152 = arith.mulf %147, %151 : vector<2x16xf32>
    %c0_63 = arith.constant 0 : index
    %c0_64 = arith.constant 0 : index
    %153 = vector.load %arg11[%c0_63, %c0_64] : memref<2x16xf32, #tpu.memory_space<vmem>>, vector<2x16xf32>
    tpu.vector_store %arg11[%c0_63, %c0_64], %124 {strides = array<i32>} : memref<2x16xf32, #tpu.memory_space<vmem>>, vector<2x16xf32>,
    %c0_65 = arith.constant 0 : index
    %c0_66 = arith.constant 0 : index
    %154 = vector.load %arg12[%c0_65, %c0_66] : memref<2x16xf32, #tpu.memory_space<vmem>>, vector<2x16xf32>
    tpu.vector_store %arg12[%c0_65, %c0_66], %150 {strides = array<i32>} : memref<2x16xf32, #tpu.memory_space<vmem>>, vector<2x16xf32>,
    %c0_67 = arith.constant 0 : index
    %c0_68 = arith.constant 0 : index
    %155 = vector.load %arg10[%c0_67, %c0_68] : memref<2x32xf32, #tpu.memory_space<vmem>>, vector<2x16xf32>
    tpu.vector_store %arg10[%c0_67, %c0_68], %126 {strides = array<i32>} : memref<2x32xf32, #tpu.memory_space<vmem>>, vector<2x16xf32>,
    %c0_69 = arith.constant 0 : index
    %c16_70 = arith.constant 16 : index
    %156 = vector.load %arg10[%c0_69, %c16_70] : memref<2x32xf32, #tpu.memory_space<vmem>>, vector<2x16xf32>
    tpu.vector_store %arg10[%c0_69, %c16_70], %152 {strides = array<i32>} : memref<2x32xf32, #tpu.memory_space<vmem>>, vector<2x16xf32>,
    %c1_71 = arith.constant 1 : index
    %c0_72 = arith.constant 0 : index
    %c0_73 = arith.constant 0 : index
    %157 = vector.load %arg6[%c1_71, %c0_72, %c0_73] : memref<8x2x16xf32, #tpu.memory_space<vmem>>, vector<1x2x16xf32>
    %158 = vector.shape_cast %157 : vector<1x2x16xf32> to vector<2x16xf32>
    %159 = vector.shape_cast %126 : vector<2x16xf32> to vector<1x2x16xf32>
    tpu.vector_store %arg6[%c1_71, %c0_72, %c0_73], %159 {strides = array<i32>} : memref<8x2x16xf32, #tpu.memory_space<vmem>>, vector<1x2x16xf32>,
    %c6_74 = arith.constant 6 : index
    %c0_75 = arith.constant 0 : index
    %c0_76 = arith.constant 0 : index
    %160 = vector.load %arg7[%c6_74, %c0_75, %c0_76] : memref<8x2x16xf32, #tpu.memory_space<vmem>>, vector<1x2x16xf32>
    %161 = vector.shape_cast %160 : vector<1x2x16xf32> to vector<2x16xf32>
    %162 = vector.shape_cast %152 : vector<2x16xf32> to vector<1x2x16xf32>
    tpu.vector_store %arg7[%c6_74, %c0_75, %c0_76], %162 {strides = array<i32>} : memref<8x2x16xf32, #tpu.memory_space<vmem>>, vector<1x2x16xf32>,
    %163 = arith.truncf %126 : vector<2x16xf32> to vector<2x16xbf16>
    %c0_77 = arith.constant 0 : index
    %c0_78 = arith.constant 0 : index
    %164 = vector.load %arg4[%c0_77, %c0_78] : memref<16x128xbf16, #tpu.memory_space<vmem>>, vector<16x128xbf16>
    %cst_79 = arith.constant dense<0.000000e+00> : vector<2x128xf32>
    %165 = tpu.matmul %163, %164, %cst_79 {dimension_numbers = #tpu.dot_dimension_numbers<[1], [0], [0], [1], [0, 0, 1, 1], [], []>} : vector<2x16xbf16>, vector<16x128xbf16>, vector<2x128xf32> -> vector<2x128xf32>
    %c1_80 = arith.constant 1 : index
    %c0_81 = arith.constant 0 : index
    %c0_82 = arith.constant 0 : index
    %166 = vector.load %arg8[%c1_80, %c0_81, %c0_82] : memref<8x2x128xf32, #tpu.memory_space<vmem>>, vector<1x2x128xf32>
    %167 = vector.shape_cast %166 : vector<1x2x128xf32> to vector<2x128xf32>
    %168 = vector.shape_cast %165 : vector<2x128xf32> to vector<1x2x128xf32>
    tpu.vector_store %arg8[%c1_80, %c0_81, %c0_82], %168 {strides = array<i32>} : memref<8x2x128xf32, #tpu.memory_space<vmem>>, vector<1x2x128xf32>,
    %169 = arith.truncf %152 : vector<2x16xf32> to vector<2x16xbf16>
    %c0_83 = arith.constant 0 : index
    %c0_84 = arith.constant 0 : index
    %170 = vector.load %arg5[%c0_83, %c0_84] : memref<16x128xbf16, #tpu.memory_space<vmem>>, vector<16x128xbf16>
    %cst_85 = arith.constant dense<0.000000e+00> : vector<2x128xf32>
    %171 = tpu.matmul %169, %170, %cst_85 {dimension_numbers = #tpu.dot_dimension_numbers<[1], [0], [0], [1], [0, 0, 1, 1], [], []>} : vector<2x16xbf16>, vector<16x128xbf16>, vector<2x128xf32> -> vector<2x128xf32>
    %c6_86 = arith.constant 6 : index
    %c0_87 = arith.constant 0 : index
    %c0_88 = arith.constant 0 : index
    %172 = vector.load %arg9[%c6_86, %c0_87, %c0_88] : memref<8x2x128xf32, #tpu.memory_space<vmem>>, vector<1x2x128xf32>
    %173 = vector.shape_cast %172 : vector<1x2x128xf32> to vector<2x128xf32>
    %174 = vector.shape_cast %171 : vector<2x128xf32> to vector<1x2x128xf32>
    tpu.vector_store %arg9[%c6_86, %c0_87, %c0_88], %174 {strides = array<i32>} : memref<8x2x128xf32, #tpu.memory_space<vmem>>, vector<1x2x128xf32>,
    %c0_89 = arith.constant 0 : index
    %c0_90 = arith.constant 0 : index
    %175 = vector.load %arg10[%c0_89, %c0_90] : memref<2x32xf32, #tpu.memory_space<vmem>>, vector<2x32xf32>
    %176 = arith.truncf %175 : vector<2x32xf32> to vector<2x32xbf16>
    %c0_91 = arith.constant 0 : index
    %c0_92 = arith.constant 0 : index
    %177 = vector.load %arg3[%c0_91, %c0_92] : memref<32x256xbf16, #tpu.memory_space<vmem>>, vector<32x256xbf16>
    %cst_93 = arith.constant dense<0.000000e+00> : vector<2x256xf32>
    %178 = tpu.matmul %176, %177, %cst_93 {dimension_numbers = #tpu.dot_dimension_numbers<[1], [0], [0], [1], [0, 0, 1, 1], [], []>} : vector<2x32xbf16>, vector<32x256xbf16>, vector<2x256xf32> -> vector<2x256xf32>
    %c2 = arith.constant 2 : index
    %c0_94 = arith.constant 0 : index
    %c0_95 = arith.constant 0 : index
    %179 = vector.load %arg1[%c2, %c0_94, %c0_95] : memref<8x2x128xf32, #tpu.memory_space<vmem>>, vector<1x2x128xf32>
    %180 = vector.shape_cast %179 : vector<1x2x128xf32> to vector<2x128xf32>
    %181 = vector.extract_strided_slice %178 {offsets = [0, 0], sizes = [2, 128], strides = [1, 1]} : vector<2x256xf32> to vector<2x128xf32>
    %182 = arith.addf %180, %181 : vector<2x128xf32>
    %c5 = arith.constant 5 : index
    %c0_96 = arith.constant 0 : index
    %c0_97 = arith.constant 0 : index
    %183 = vector.load %arg2[%c5, %c0_96, %c0_97] : memref<8x2x128xf32, #tpu.memory_space<vmem>>, vector<1x2x128xf32>
    %184 = vector.shape_cast %183 : vector<1x2x128xf32> to vector<2x128xf32>
    %185 = vector.extract_strided_slice %178 {offsets = [0, 128], sizes = [2, 128], strides = [1, 1]} : vector<2x256xf32> to vector<2x128xf32>
    %186 = arith.addf %184, %185 : vector<2x128xf32>
    %c0_98 = arith.constant 0 : index
    %c0_99 = arith.constant 0 : index
    %187 = vector.load %arg11[%c0_98, %c0_99] : memref<2x16xf32, #tpu.memory_space<vmem>>, vector<2x16xf32>
    %188 = vector.extract_strided_slice %182 {offsets = [0, 0], sizes = [2, 16], strides = [1, 1]} : vector<2x128xf32> to vector<2x16xf32>
    %189 = arith.negf %188 : vector<2x16xf32>
    %190 = math.exp %189 : vector<2x16xf32>
    %cst_100 = arith.constant 1.000000e+00 : f32
    %191 = vector.broadcast %cst_100 : f32 to vector<2x16xf32>
    %192 = arith.addf %191, %190 : vector<2x16xf32>
    %193 = arith.divf %191, %192 : vector<2x16xf32>
    %194 = vector.extract_strided_slice %182 {offsets = [0, 16], sizes = [2, 16], strides = [1, 1]} : vector<2x128xf32> to vector<2x16xf32>
    %195 = arith.negf %194 : vector<2x16xf32>
    %196 = math.exp %195 : vector<2x16xf32>
    %cst_101 = arith.constant 1.000000e+00 : f32
    %197 = vector.broadcast %cst_101 : f32 to vector<2x16xf32>
    %198 = arith.addf %197, %196 : vector<2x16xf32>
    %199 = arith.divf %197, %198 : vector<2x16xf32>
    %200 = vector.extract_strided_slice %182 {offsets = [0, 32], sizes = [2, 16], strides = [1, 1]} : vector<2x128xf32> to vector<2x16xf32>
    %201 = math.tanh %200 : vector<2x16xf32>
    %202 = vector.extract_strided_slice %182 {offsets = [0, 48], sizes = [2, 16], strides = [1, 1]} : vector<2x128xf32> to vector<2x16xf32>
    %203 = arith.negf %202 : vector<2x16xf32>
    %204 = math.exp %203 : vector<2x16xf32>
    %cst_102 = arith.constant 1.000000e+00 : f32
    %205 = vector.broadcast %cst_102 : f32 to vector<2x16xf32>
    %206 = arith.addf %205, %204 : vector<2x16xf32>
    %207 = arith.divf %205, %206 : vector<2x16xf32>
    %208 = arith.mulf %199, %187 : vector<2x16xf32>
    %209 = arith.mulf %193, %201 : vector<2x16xf32>
    %210 = arith.addf %208, %209 : vector<2x16xf32>
    %211 = math.tanh %210 : vector<2x16xf32>
    %212 = arith.mulf %207, %211 : vector<2x16xf32>
    %c0_103 = arith.constant 0 : index
    %c0_104 = arith.constant 0 : index
    %213 = vector.load %arg12[%c0_103, %c0_104] : memref<2x16xf32, #tpu.memory_space<vmem>>, vector<2x16xf32>
    %214 = vector.extract_strided_slice %186 {offsets = [0, 0], sizes = [2, 16], strides = [1, 1]} : vector<2x128xf32> to vector<2x16xf32>
    %215 = arith.negf %214 : vector<2x16xf32>
    %216 = math.exp %215 : vector<2x16xf32>
    %cst_105 = arith.constant 1.000000e+00 : f32
    %217 = vector.broadcast %cst_105 : f32 to vector<2x16xf32>
    %218 = arith.addf %217, %216 : vector<2x16xf32>
    %219 = arith.divf %217, %218 : vector<2x16xf32>
    %220 = vector.extract_strided_slice %186 {offsets = [0, 16], sizes = [2, 16], strides = [1, 1]} : vector<2x128xf32> to vector<2x16xf32>
    %221 = arith.negf %220 : vector<2x16xf32>
    %222 = math.exp %221 : vector<2x16xf32>
    %cst_106 = arith.constant 1.000000e+00 : f32
    %223 = vector.broadcast %cst_106 : f32 to vector<2x16xf32>
    %224 = arith.addf %223, %222 : vector<2x16xf32>
    %225 = arith.divf %223, %224 : vector<2x16xf32>
    %226 = vector.extract_strided_slice %186 {offsets = [0, 32], sizes = [2, 16], strides = [1, 1]} : vector<2x128xf32> to vector<2x16xf32>
    %227 = math.tanh %226 : vector<2x16xf32>
    %228 = vector.extract_strided_slice %186 {offsets = [0, 48], sizes = [2, 16], strides = [1, 1]} : vector<2x128xf32> to vector<2x16xf32>
    %229 = arith.negf %228 : vector<2x16xf32>
    %230 = math.exp %229 : vector<2x16xf32>
    %cst_107 = arith.constant 1.000000e+00 : f32
    %231 = vector.broadcast %cst_107 : f32 to vector<2x16xf32>
    %232 = arith.addf %231, %230 : vector<2x16xf32>
    %233 = arith.divf %231, %232 : vector<2x16xf32>
    %234 = arith.mulf %225, %213 : vector<2x16xf32>
    %235 = arith.mulf %219, %227 : vector<2x16xf32>
    %236 = arith.addf %234, %235 : vector<2x16xf32>
    %237 = math.tanh %236 : vector<2x16xf32>
    %238 = arith.mulf %233, %237 : vector<2x16xf32>
    %c0_108 = arith.constant 0 : index
    %c0_109 = arith.constant 0 : index
    %239 = vector.load %arg11[%c0_108, %c0_109] : memref<2x16xf32, #tpu.memory_space<vmem>>, vector<2x16xf32>
    tpu.vector_store %arg11[%c0_108, %c0_109], %210 {strides = array<i32>} : memref<2x16xf32, #tpu.memory_space<vmem>>, vector<2x16xf32>,
    %c0_110 = arith.constant 0 : index
    %c0_111 = arith.constant 0 : index
    %240 = vector.load %arg12[%c0_110, %c0_111] : memref<2x16xf32, #tpu.memory_space<vmem>>, vector<2x16xf32>
    tpu.vector_store %arg12[%c0_110, %c0_111], %236 {strides = array<i32>} : memref<2x16xf32, #tpu.memory_space<vmem>>, vector<2x16xf32>,
    %c0_112 = arith.constant 0 : index
    %c0_113 = arith.constant 0 : index
    %241 = vector.load %arg10[%c0_112, %c0_113] : memref<2x32xf32, #tpu.memory_space<vmem>>, vector<2x16xf32>
    tpu.vector_store %arg10[%c0_112, %c0_113], %212 {strides = array<i32>} : memref<2x32xf32, #tpu.memory_space<vmem>>, vector<2x16xf32>,
    %c0_114 = arith.constant 0 : index
    %c16_115 = arith.constant 16 : index
    %242 = vector.load %arg10[%c0_114, %c16_115] : memref<2x32xf32, #tpu.memory_space<vmem>>, vector<2x16xf32>
    tpu.vector_store %arg10[%c0_114, %c16_115], %238 {strides = array<i32>} : memref<2x32xf32, #tpu.memory_space<vmem>>, vector<2x16xf32>,
    %c2_116 = arith.constant 2 : index
    %c0_117 = arith.constant 0 : index
    %c0_118 = arith.constant 0 : index
    %243 = vector.load %arg6[%c2_116, %c0_117, %c0_118] : memref<8x2x16xf32, #tpu.memory_space<vmem>>, vector<1x2x16xf32>
    %244 = vector.shape_cast %243 : vector<1x2x16xf32> to vector<2x16xf32>
    %245 = vector.shape_cast %212 : vector<2x16xf32> to vector<1x2x16xf32>
    tpu.vector_store %arg6[%c2_116, %c0_117, %c0_118], %245 {strides = array<i32>} : memref<8x2x16xf32, #tpu.memory_space<vmem>>, vector<1x2x16xf32>,
    %c5_119 = arith.constant 5 : index
    %c0_120 = arith.constant 0 : index
    %c0_121 = arith.constant 0 : index
    %246 = vector.load %arg7[%c5_119, %c0_120, %c0_121] : memref<8x2x16xf32, #tpu.memory_space<vmem>>, vector<1x2x16xf32>
    %247 = vector.shape_cast %246 : vector<1x2x16xf32> to vector<2x16xf32>
    %248 = vector.shape_cast %238 : vector<2x16xf32> to vector<1x2x16xf32>
    tpu.vector_store %arg7[%c5_119, %c0_120, %c0_121], %248 {strides = array<i32>} : memref<8x2x16xf32, #tpu.memory_space<vmem>>, vector<1x2x16xf32>,
    %249 = arith.truncf %212 : vector<2x16xf32> to vector<2x16xbf16>
    %c0_122 = arith.constant 0 : index
    %c0_123 = arith.constant 0 : index
    %250 = vector.load %arg4[%c0_122, %c0_123] : memref<16x128xbf16, #tpu.memory_space<vmem>>, vector<16x128xbf16>
    %cst_124 = arith.constant dense<0.000000e+00> : vector<2x128xf32>
    %251 = tpu.matmul %249, %250, %cst_124 {dimension_numbers = #tpu.dot_dimension_numbers<[1], [0], [0], [1], [0, 0, 1, 1], [], []>} : vector<2x16xbf16>, vector<16x128xbf16>, vector<2x128xf32> -> vector<2x128xf32>
    %c2_125 = arith.constant 2 : index
    %c0_126 = arith.constant 0 : index
    %c0_127 = arith.constant 0 : index
    %252 = vector.load %arg8[%c2_125, %c0_126, %c0_127] : memref<8x2x128xf32, #tpu.memory_space<vmem>>, vector<1x2x128xf32>
    %253 = vector.shape_cast %252 : vector<1x2x128xf32> to vector<2x128xf32>
    %254 = vector.shape_cast %251 : vector<2x128xf32> to vector<1x2x128xf32>
    tpu.vector_store %arg8[%c2_125, %c0_126, %c0_127], %254 {strides = array<i32>} : memref<8x2x128xf32, #tpu.memory_space<vmem>>, vector<1x2x128xf32>,
    %255 = arith.truncf %238 : vector<2x16xf32> to vector<2x16xbf16>
    %c0_128 = arith.constant 0 : index
    %c0_129 = arith.constant 0 : index
    %256 = vector.load %arg5[%c0_128, %c0_129] : memref<16x128xbf16, #tpu.memory_space<vmem>>, vector<16x128xbf16>
    %cst_130 = arith.constant dense<0.000000e+00> : vector<2x128xf32>
    %257 = tpu.matmul %255, %256, %cst_130 {dimension_numbers = #tpu.dot_dimension_numbers<[1], [0], [0], [1], [0, 0, 1, 1], [], []>} : vector<2x16xbf16>, vector<16x128xbf16>, vector<2x128xf32> -> vector<2x128xf32>
    %c5_131 = arith.constant 5 : index
    %c0_132 = arith.constant 0 : index
    %c0_133 = arith.constant 0 : index
    %258 = vector.load %arg9[%c5_131, %c0_132, %c0_133] : memref<8x2x128xf32, #tpu.memory_space<vmem>>, vector<1x2x128xf32>
    %259 = vector.shape_cast %258 : vector<1x2x128xf32> to vector<2x128xf32>
    %260 = vector.shape_cast %257 : vector<2x128xf32> to vector<1x2x128xf32>
    tpu.vector_store %arg9[%c5_131, %c0_132, %c0_133], %260 {strides = array<i32>} : memref<8x2x128xf32, #tpu.memory_space<vmem>>, vector<1x2x128xf32>,
    %c0_134 = arith.constant 0 : index
    %c0_135 = arith.constant 0 : index
    %261 = vector.load %arg10[%c0_134, %c0_135] : memref<2x32xf32, #tpu.memory_space<vmem>>, vector<2x32xf32>
    %262 = arith.truncf %261 : vector<2x32xf32> to vector<2x32xbf16>
    %c0_136 = arith.constant 0 : index
    %c0_137 = arith.constant 0 : index
    %263 = vector.load %arg3[%c0_136, %c0_137] : memref<32x256xbf16, #tpu.memory_space<vmem>>, vector<32x256xbf16>
    %cst_138 = arith.constant dense<0.000000e+00> : vector<2x256xf32>
    %264 = tpu.matmul %262, %263, %cst_138 {dimension_numbers = #tpu.dot_dimension_numbers<[1], [0], [0], [1], [0, 0, 1, 1], [], []>} : vector<2x32xbf16>, vector<32x256xbf16>, vector<2x256xf32> -> vector<2x256xf32>
    %c3 = arith.constant 3 : index
    %c0_139 = arith.constant 0 : index
    %c0_140 = arith.constant 0 : index
    %265 = vector.load %arg1[%c3, %c0_139, %c0_140] : memref<8x2x128xf32, #tpu.memory_space<vmem>>, vector<1x2x128xf32>
    %266 = vector.shape_cast %265 : vector<1x2x128xf32> to vector<2x128xf32>
    %267 = vector.extract_strided_slice %264 {offsets = [0, 0], sizes = [2, 128], strides = [1, 1]} : vector<2x256xf32> to vector<2x128xf32>
    %268 = arith.addf %266, %267 : vector<2x128xf32>
    %c4 = arith.constant 4 : index
    %c0_141 = arith.constant 0 : index
    %c0_142 = arith.constant 0 : index
    %269 = vector.load %arg2[%c4, %c0_141, %c0_142] : memref<8x2x128xf32, #tpu.memory_space<vmem>>, vector<1x2x128xf32>
    %270 = vector.shape_cast %269 : vector<1x2x128xf32> to vector<2x128xf32>
    %271 = vector.extract_strided_slice %264 {offsets = [0, 128], sizes = [2, 128], strides = [1, 1]} : vector<2x256xf32> to vector<2x128xf32>
    %272 = arith.addf %270, %271 : vector<2x128xf32>
    %c0_143 = arith.constant 0 : index
    %c0_144 = arith.constant 0 : index
    %273 = vector.load %arg11[%c0_143, %c0_144] : memref<2x16xf32, #tpu.memory_space<vmem>>, vector<2x16xf32>
    %274 = vector.extract_strided_slice %268 {offsets = [0, 0], sizes = [2, 16], strides = [1, 1]} : vector<2x128xf32> to vector<2x16xf32>
    %275 = arith.negf %274 : vector<2x16xf32>
    %276 = math.exp %275 : vector<2x16xf32>
    %cst_145 = arith.constant 1.000000e+00 : f32
    %277 = vector.broadcast %cst_145 : f32 to vector<2x16xf32>
    %278 = arith.addf %277, %276 : vector<2x16xf32>
    %279 = arith.divf %277, %278 : vector<2x16xf32>
    %280 = vector.extract_strided_slice %268 {offsets = [0, 16], sizes = [2, 16], strides = [1, 1]} : vector<2x128xf32> to vector<2x16xf32>
    %281 = arith.negf %280 : vector<2x16xf32>
    %282 = math.exp %281 : vector<2x16xf32>
    %cst_146 = arith.constant 1.000000e+00 : f32
    %283 = vector.broadcast %cst_146 : f32 to vector<2x16xf32>
    %284 = arith.addf %283, %282 : vector<2x16xf32>
    %285 = arith.divf %283, %284 : vector<2x16xf32>
    %286 = vector.extract_strided_slice %268 {offsets = [0, 32], sizes = [2, 16], strides = [1, 1]} : vector<2x128xf32> to vector<2x16xf32>
    %287 = math.tanh %286 : vector<2x16xf32>
    %288 = vector.extract_strided_slice %268 {offsets = [0, 48], sizes = [2, 16], strides = [1, 1]} : vector<2x128xf32> to vector<2x16xf32>
    %289 = arith.negf %288 : vector<2x16xf32>
    %290 = math.exp %289 : vector<2x16xf32>
    %cst_147 = arith.constant 1.000000e+00 : f32
    %291 = vector.broadcast %cst_147 : f32 to vector<2x16xf32>
    %292 = arith.addf %291, %290 : vector<2x16xf32>
    %293 = arith.divf %291, %292 : vector<2x16xf32>
    %294 = arith.mulf %285, %273 : vector<2x16xf32>
    %295 = arith.mulf %279, %287 : vector<2x16xf32>
    %296 = arith.addf %294, %295 : vector<2x16xf32>
    %297 = math.tanh %296 : vector<2x16xf32>
    %298 = arith.mulf %293, %297 : vector<2x16xf32>
    %c0_148 = arith.constant 0 : index
    %c0_149 = arith.constant 0 : index
    %299 = vector.load %arg12[%c0_148, %c0_149] : memref<2x16xf32, #tpu.memory_space<vmem>>, vector<2x16xf32>
    %300 = vector.extract_strided_slice %272 {offsets = [0, 0], sizes = [2, 16], strides = [1, 1]} : vector<2x128xf32> to vector<2x16xf32>
    %301 = arith.negf %300 : vector<2x16xf32>
    %302 = math.exp %301 : vector<2x16xf32>
    %cst_150 = arith.constant 1.000000e+00 : f32
    %303 = vector.broadcast %cst_150 : f32 to vector<2x16xf32>
    %304 = arith.addf %303, %302 : vector<2x16xf32>
    %305 = arith.divf %303, %304 : vector<2x16xf32>
    %306 = vector.extract_strided_slice %272 {offsets = [0, 16], sizes = [2, 16], strides = [1, 1]} : vector<2x128xf32> to vector<2x16xf32>
    %307 = arith.negf %306 : vector<2x16xf32>
    %308 = math.exp %307 : vector<2x16xf32>
    %cst_151 = arith.constant 1.000000e+00 : f32
    %309 = vector.broadcast %cst_151 : f32 to vector<2x16xf32>
    %310 = arith.addf %309, %308 : vector<2x16xf32>
    %311 = arith.divf %309, %310 : vector<2x16xf32>
    %312 = vector.extract_strided_slice %272 {offsets = [0, 32], sizes = [2, 16], strides = [1, 1]} : vector<2x128xf32> to vector<2x16xf32>
    %313 = math.tanh %312 : vector<2x16xf32>
    %314 = vector.extract_strided_slice %272 {offsets = [0, 48], sizes = [2, 16], strides = [1, 1]} : vector<2x128xf32> to vector<2x16xf32>
    %315 = arith.negf %314 : vector<2x16xf32>
    %316 = math.exp %315 : vector<2x16xf32>
    %cst_152 = arith.constant 1.000000e+00 : f32
    %317 = vector.broadcast %cst_152 : f32 to vector<2x16xf32>
    %318 = arith.addf %317, %316 : vector<2x16xf32>
    %319 = arith.divf %317, %318 : vector<2x16xf32>
    %320 = arith.mulf %311, %299 : vector<2x16xf32>
    %321 = arith.mulf %305, %313 : vector<2x16xf32>
    %322 = arith.addf %320, %321 : vector<2x16xf32>
    %323 = math.tanh %322 : vector<2x16xf32>
    %324 = arith.mulf %319, %323 : vector<2x16xf32>
    %c0_153 = arith.constant 0 : index
    %c0_154 = arith.constant 0 : index
    %325 = vector.load %arg11[%c0_153, %c0_154] : memref<2x16xf32, #tpu.memory_space<vmem>>, vector<2x16xf32>
    tpu.vector_store %arg11[%c0_153, %c0_154], %296 {strides = array<i32>} : memref<2x16xf32, #tpu.memory_space<vmem>>, vector<2x16xf32>,
    %c0_155 = arith.constant 0 : index
    %c0_156 = arith.constant 0 : index
    %326 = vector.load %arg12[%c0_155, %c0_156] : memref<2x16xf32, #tpu.memory_space<vmem>>, vector<2x16xf32>
    tpu.vector_store %arg12[%c0_155, %c0_156], %322 {strides = array<i32>} : memref<2x16xf32, #tpu.memory_space<vmem>>, vector<2x16xf32>,
    %c0_157 = arith.constant 0 : index
    %c0_158 = arith.constant 0 : index
    %327 = vector.load %arg10[%c0_157, %c0_158] : memref<2x32xf32, #tpu.memory_space<vmem>>, vector<2x16xf32>
    tpu.vector_store %arg10[%c0_157, %c0_158], %298 {strides = array<i32>} : memref<2x32xf32, #tpu.memory_space<vmem>>, vector<2x16xf32>,
    %c0_159 = arith.constant 0 : index
    %c16_160 = arith.constant 16 : index
    %328 = vector.load %arg10[%c0_159, %c16_160] : memref<2x32xf32, #tpu.memory_space<vmem>>, vector<2x16xf32>
    tpu.vector_store %arg10[%c0_159, %c16_160], %324 {strides = array<i32>} : memref<2x32xf32, #tpu.memory_space<vmem>>, vector<2x16xf32>,
    %c3_161 = arith.constant 3 : index
    %c0_162 = arith.constant 0 : index
    %c0_163 = arith.constant 0 : index
    %329 = vector.load %arg6[%c3_161, %c0_162, %c0_163] : memref<8x2x16xf32, #tpu.memory_space<vmem>>, vector<1x2x16xf32>
    %330 = vector.shape_cast %329 : vector<1x2x16xf32> to vector<2x16xf32>
    %331 = vector.shape_cast %298 : vector<2x16xf32> to vector<1x2x16xf32>
    tpu.vector_store %arg6[%c3_161, %c0_162, %c0_163], %331 {strides = array<i32>} : memref<8x2x16xf32, #tpu.memory_space<vmem>>, vector<1x2x16xf32>,
    %c4_164 = arith.constant 4 : index
    %c0_165 = arith.constant 0 : index
    %c0_166 = arith.constant 0 : index
    %332 = vector.load %arg7[%c4_164, %c0_165, %c0_166] : memref<8x2x16xf32, #tpu.memory_space<vmem>>, vector<1x2x16xf32>
    %333 = vector.shape_cast %332 : vector<1x2x16xf32> to vector<2x16xf32>
    %334 = vector.shape_cast %324 : vector<2x16xf32> to vector<1x2x16xf32>
    tpu.vector_store %arg7[%c4_164, %c0_165, %c0_166], %334 {strides = array<i32>} : memref<8x2x16xf32, #tpu.memory_space<vmem>>, vector<1x2x16xf32>,
    %335 = arith.truncf %298 : vector<2x16xf32> to vector<2x16xbf16>
    %c0_167 = arith.constant 0 : index
    %c0_168 = arith.constant 0 : index
    %336 = vector.load %arg4[%c0_167, %c0_168] : memref<16x128xbf16, #tpu.memory_space<vmem>>, vector<16x128xbf16>
    %cst_169 = arith.constant dense<0.000000e+00> : vector<2x128xf32>
    %337 = tpu.matmul %335, %336, %cst_169 {dimension_numbers = #tpu.dot_dimension_numbers<[1], [0], [0], [1], [0, 0, 1, 1], [], []>} : vector<2x16xbf16>, vector<16x128xbf16>, vector<2x128xf32> -> vector<2x128xf32>
    %c3_170 = arith.constant 3 : index
    %c0_171 = arith.constant 0 : index
    %c0_172 = arith.constant 0 : index
    %338 = vector.load %arg8[%c3_170, %c0_171, %c0_172] : memref<8x2x128xf32, #tpu.memory_space<vmem>>, vector<1x2x128xf32>
    %339 = vector.shape_cast %338 : vector<1x2x128xf32> to vector<2x128xf32>
    %340 = vector.shape_cast %337 : vector<2x128xf32> to vector<1x2x128xf32>
    tpu.vector_store %arg8[%c3_170, %c0_171, %c0_172], %340 {strides = array<i32>} : memref<8x2x128xf32, #tpu.memory_space<vmem>>, vector<1x2x128xf32>,
    %341 = arith.truncf %324 : vector<2x16xf32> to vector<2x16xbf16>
    %c0_173 = arith.constant 0 : index
    %c0_174 = arith.constant 0 : index
    %342 = vector.load %arg5[%c0_173, %c0_174] : memref<16x128xbf16, #tpu.memory_space<vmem>>, vector<16x128xbf16>
    %cst_175 = arith.constant dense<0.000000e+00> : vector<2x128xf32>
    %343 = tpu.matmul %341, %342, %cst_175 {dimension_numbers = #tpu.dot_dimension_numbers<[1], [0], [0], [1], [0, 0, 1, 1], [], []>} : vector<2x16xbf16>, vector<16x128xbf16>, vector<2x128xf32> -> vector<2x128xf32>
    %c4_176 = arith.constant 4 : index
    %c0_177 = arith.constant 0 : index
    %c0_178 = arith.constant 0 : index
    %344 = vector.load %arg9[%c4_176, %c0_177, %c0_178] : memref<8x2x128xf32, #tpu.memory_space<vmem>>, vector<1x2x128xf32>
    %345 = vector.shape_cast %344 : vector<1x2x128xf32> to vector<2x128xf32>
    %346 = vector.shape_cast %343 : vector<2x128xf32> to vector<1x2x128xf32>
    tpu.vector_store %arg9[%c4_176, %c0_177, %c0_178], %346 {strides = array<i32>} : memref<8x2x128xf32, #tpu.memory_space<vmem>>, vector<1x2x128xf32>,
    %c0_179 = arith.constant 0 : index
    %c0_180 = arith.constant 0 : index
    %347 = vector.load %arg10[%c0_179, %c0_180] : memref<2x32xf32, #tpu.memory_space<vmem>>, vector<2x32xf32>
    %348 = arith.truncf %347 : vector<2x32xf32> to vector<2x32xbf16>
    %c0_181 = arith.constant 0 : index
    %c0_182 = arith.constant 0 : index
    %349 = vector.load %arg3[%c0_181, %c0_182] : memref<32x256xbf16, #tpu.memory_space<vmem>>, vector<32x256xbf16>
    %cst_183 = arith.constant dense<0.000000e+00> : vector<2x256xf32>
    %350 = tpu.matmul %348, %349, %cst_183 {dimension_numbers = #tpu.dot_dimension_numbers<[1], [0], [0], [1], [0, 0, 1, 1], [], []>} : vector<2x32xbf16>, vector<32x256xbf16>, vector<2x256xf32> -> vector<2x256xf32>
    %c4_184 = arith.constant 4 : index
    %c0_185 = arith.constant 0 : index
    %c0_186 = arith.constant 0 : index
    %351 = vector.load %arg1[%c4_184, %c0_185, %c0_186] : memref<8x2x128xf32, #tpu.memory_space<vmem>>, vector<1x2x128xf32>
    %352 = vector.shape_cast %351 : vector<1x2x128xf32> to vector<2x128xf32>
    %353 = vector.extract_strided_slice %350 {offsets = [0, 0], sizes = [2, 128], strides = [1, 1]} : vector<2x256xf32> to vector<2x128xf32>
    %354 = arith.addf %352, %353 : vector<2x128xf32>
    %c3_187 = arith.constant 3 : index
    %c0_188 = arith.constant 0 : index
    %c0_189 = arith.constant 0 : index
    %355 = vector.load %arg2[%c3_187, %c0_188, %c0_189] : memref<8x2x128xf32, #tpu.memory_space<vmem>>, vector<1x2x128xf32>
    %356 = vector.shape_cast %355 : vector<1x2x128xf32> to vector<2x128xf32>
    %357 = vector.extract_strided_slice %350 {offsets = [0, 128], sizes = [2, 128], strides = [1, 1]} : vector<2x256xf32> to vector<2x128xf32>
    %358 = arith.addf %356, %357 : vector<2x128xf32>
    %c0_190 = arith.constant 0 : index
    %c0_191 = arith.constant 0 : index
    %359 = vector.load %arg11[%c0_190, %c0_191] : memref<2x16xf32, #tpu.memory_space<vmem>>, vector<2x16xf32>
    %360 = vector.extract_strided_slice %354 {offsets = [0, 0], sizes = [2, 16], strides = [1, 1]} : vector<2x128xf32> to vector<2x16xf32>
    %361 = arith.negf %360 : vector<2x16xf32>
    %362 = math.exp %361 : vector<2x16xf32>
    %cst_192 = arith.constant 1.000000e+00 : f32
    %363 = vector.broadcast %cst_192 : f32 to vector<2x16xf32>
    %364 = arith.addf %363, %362 : vector<2x16xf32>
    %365 = arith.divf %363, %364 : vector<2x16xf32>
    %366 = vector.extract_strided_slice %354 {offsets = [0, 16], sizes = [2, 16], strides = [1, 1]} : vector<2x128xf32> to vector<2x16xf32>
    %367 = arith.negf %366 : vector<2x16xf32>
    %368 = math.exp %367 : vector<2x16xf32>
    %cst_193 = arith.constant 1.000000e+00 : f32
    %369 = vector.broadcast %cst_193 : f32 to vector<2x16xf32>
    %370 = arith.addf %369, %368 : vector<2x16xf32>
    %371 = arith.divf %369, %370 : vector<2x16xf32>
    %372 = vector.extract_strided_slice %354 {offsets = [0, 32], sizes = [2, 16], strides = [1, 1]} : vector<2x128xf32> to vector<2x16xf32>
    %373 = math.tanh %372 : vector<2x16xf32>
    %374 = vector.extract_strided_slice %354 {offsets = [0, 48], sizes = [2, 16], strides = [1, 1]} : vector<2x128xf32> to vector<2x16xf32>
    %375 = arith.negf %374 : vector<2x16xf32>
    %376 = math.exp %375 : vector<2x16xf32>
    %cst_194 = arith.constant 1.000000e+00 : f32
    %377 = vector.broadcast %cst_194 : f32 to vector<2x16xf32>
    %378 = arith.addf %377, %376 : vector<2x16xf32>
    %379 = arith.divf %377, %378 : vector<2x16xf32>
    %380 = arith.mulf %371, %359 : vector<2x16xf32>
    %381 = arith.mulf %365, %373 : vector<2x16xf32>
    %382 = arith.addf %380, %381 : vector<2x16xf32>
    %383 = math.tanh %382 : vector<2x16xf32>
    %384 = arith.mulf %379, %383 : vector<2x16xf32>
    %c0_195 = arith.constant 0 : index
    %c0_196 = arith.constant 0 : index
    %385 = vector.load %arg12[%c0_195, %c0_196] : memref<2x16xf32, #tpu.memory_space<vmem>>, vector<2x16xf32>
    %386 = vector.extract_strided_slice %358 {offsets = [0, 0], sizes = [2, 16], strides = [1, 1]} : vector<2x128xf32> to vector<2x16xf32>
    %387 = arith.negf %386 : vector<2x16xf32>
    %388 = math.exp %387 : vector<2x16xf32>
    %cst_197 = arith.constant 1.000000e+00 : f32
    %389 = vector.broadcast %cst_197 : f32 to vector<2x16xf32>
    %390 = arith.addf %389, %388 : vector<2x16xf32>
    %391 = arith.divf %389, %390 : vector<2x16xf32>
    %392 = vector.extract_strided_slice %358 {offsets = [0, 16], sizes = [2, 16], strides = [1, 1]} : vector<2x128xf32> to vector<2x16xf32>
    %393 = arith.negf %392 : vector<2x16xf32>
    %394 = math.exp %393 : vector<2x16xf32>
    %cst_198 = arith.constant 1.000000e+00 : f32
    %395 = vector.broadcast %cst_198 : f32 to vector<2x16xf32>
    %396 = arith.addf %395, %394 : vector<2x16xf32>
    %397 = arith.divf %395, %396 : vector<2x16xf32>
    %398 = vector.extract_strided_slice %358 {offsets = [0, 32], sizes = [2, 16], strides = [1, 1]} : vector<2x128xf32> to vector<2x16xf32>
    %399 = math.tanh %398 : vector<2x16xf32>
    %400 = vector.extract_strided_slice %358 {offsets = [0, 48], sizes = [2, 16], strides = [1, 1]} : vector<2x128xf32> to vector<2x16xf32>
    %401 = arith.negf %400 : vector<2x16xf32>
    %402 = math.exp %401 : vector<2x16xf32>
    %cst_199 = arith.constant 1.000000e+00 : f32
    %403 = vector.broadcast %cst_199 : f32 to vector<2x16xf32>
    %404 = arith.addf %403, %402 : vector<2x16xf32>
    %405 = arith.divf %403, %404 : vector<2x16xf32>
    %406 = arith.mulf %397, %385 : vector<2x16xf32>
    %407 = arith.mulf %391, %399 : vector<2x16xf32>
    %408 = arith.addf %406, %407 : vector<2x16xf32>
    %409 = math.tanh %408 : vector<2x16xf32>
    %410 = arith.mulf %405, %409 : vector<2x16xf32>
    %c0_200 = arith.constant 0 : index
    %c0_201 = arith.constant 0 : index
    %411 = vector.load %arg11[%c0_200, %c0_201] : memref<2x16xf32, #tpu.memory_space<vmem>>, vector<2x16xf32>
    tpu.vector_store %arg11[%c0_200, %c0_201], %382 {strides = array<i32>} : memref<2x16xf32, #tpu.memory_space<vmem>>, vector<2x16xf32>,
    %c0_202 = arith.constant 0 : index
    %c0_203 = arith.constant 0 : index
    %412 = vector.load %arg12[%c0_202, %c0_203] : memref<2x16xf32, #tpu.memory_space<vmem>>, vector<2x16xf32>
    tpu.vector_store %arg12[%c0_202, %c0_203], %408 {strides = array<i32>} : memref<2x16xf32, #tpu.memory_space<vmem>>, vector<2x16xf32>,
    %c0_204 = arith.constant 0 : index
    %c0_205 = arith.constant 0 : index
    %413 = vector.load %arg10[%c0_204, %c0_205] : memref<2x32xf32, #tpu.memory_space<vmem>>, vector<2x16xf32>
    tpu.vector_store %arg10[%c0_204, %c0_205], %384 {strides = array<i32>} : memref<2x32xf32, #tpu.memory_space<vmem>>, vector<2x16xf32>,
    %c0_206 = arith.constant 0 : index
    %c16_207 = arith.constant 16 : index
    %414 = vector.load %arg10[%c0_206, %c16_207] : memref<2x32xf32, #tpu.memory_space<vmem>>, vector<2x16xf32>
    tpu.vector_store %arg10[%c0_206, %c16_207], %410 {strides = array<i32>} : memref<2x32xf32, #tpu.memory_space<vmem>>, vector<2x16xf32>,
    %c4_208 = arith.constant 4 : index
    %c0_209 = arith.constant 0 : index
    %c0_210 = arith.constant 0 : index
    %415 = vector.load %arg6[%c4_208, %c0_209, %c0_210] : memref<8x2x16xf32, #tpu.memory_space<vmem>>, vector<1x2x16xf32>
    %416 = vector.shape_cast %415 : vector<1x2x16xf32> to vector<2x16xf32>
    %417 = vector.shape_cast %384 : vector<2x16xf32> to vector<1x2x16xf32>
    tpu.vector_store %arg6[%c4_208, %c0_209, %c0_210], %417 {strides = array<i32>} : memref<8x2x16xf32, #tpu.memory_space<vmem>>, vector<1x2x16xf32>,
    %c3_211 = arith.constant 3 : index
    %c0_212 = arith.constant 0 : index
    %c0_213 = arith.constant 0 : index
    %418 = vector.load %arg7[%c3_211, %c0_212, %c0_213] : memref<8x2x16xf32, #tpu.memory_space<vmem>>, vector<1x2x16xf32>
    %419 = vector.shape_cast %418 : vector<1x2x16xf32> to vector<2x16xf32>
    %420 = vector.shape_cast %410 : vector<2x16xf32> to vector<1x2x16xf32>
    tpu.vector_store %arg7[%c3_211, %c0_212, %c0_213], %420 {strides = array<i32>} : memref<8x2x16xf32, #tpu.memory_space<vmem>>, vector<1x2x16xf32>,
    %421 = arith.truncf %384 : vector<2x16xf32> to vector<2x16xbf16>
    %c0_214 = arith.constant 0 : index
    %c0_215 = arith.constant 0 : index
    %422 = vector.load %arg4[%c0_214, %c0_215] : memref<16x128xbf16, #tpu.memory_space<vmem>>, vector<16x128xbf16>
    %cst_216 = arith.constant dense<0.000000e+00> : vector<2x128xf32>
    %423 = tpu.matmul %421, %422, %cst_216 {dimension_numbers = #tpu.dot_dimension_numbers<[1], [0], [0], [1], [0, 0, 1, 1], [], []>} : vector<2x16xbf16>, vector<16x128xbf16>, vector<2x128xf32> -> vector<2x128xf32>
    %c4_217 = arith.constant 4 : index
    %c0_218 = arith.constant 0 : index
    %c0_219 = arith.constant 0 : index
    %424 = vector.load %arg8[%c4_217, %c0_218, %c0_219] : memref<8x2x128xf32, #tpu.memory_space<vmem>>, vector<1x2x128xf32>
    %425 = vector.shape_cast %424 : vector<1x2x128xf32> to vector<2x128xf32>
    %426 = vector.shape_cast %423 : vector<2x128xf32> to vector<1x2x128xf32>
    tpu.vector_store %arg8[%c4_217, %c0_218, %c0_219], %426 {strides = array<i32>} : memref<8x2x128xf32, #tpu.memory_space<vmem>>, vector<1x2x128xf32>,
    %427 = arith.truncf %410 : vector<2x16xf32> to vector<2x16xbf16>
    %c0_220 = arith.constant 0 : index
    %c0_221 = arith.constant 0 : index
    %428 = vector.load %arg5[%c0_220, %c0_221] : memref<16x128xbf16, #tpu.memory_space<vmem>>, vector<16x128xbf16>
    %cst_222 = arith.constant dense<0.000000e+00> : vector<2x128xf32>
    %429 = tpu.matmul %427, %428, %cst_222 {dimension_numbers = #tpu.dot_dimension_numbers<[1], [0], [0], [1], [0, 0, 1, 1], [], []>} : vector<2x16xbf16>, vector<16x128xbf16>, vector<2x128xf32> -> vector<2x128xf32>
    %c3_223 = arith.constant 3 : index
    %c0_224 = arith.constant 0 : index
    %c0_225 = arith.constant 0 : index
    %430 = vector.load %arg9[%c3_223, %c0_224, %c0_225] : memref<8x2x128xf32, #tpu.memory_space<vmem>>, vector<1x2x128xf32>
    %431 = vector.shape_cast %430 : vector<1x2x128xf32> to vector<2x128xf32>
    %432 = vector.shape_cast %429 : vector<2x128xf32> to vector<1x2x128xf32>
    tpu.vector_store %arg9[%c3_223, %c0_224, %c0_225], %432 {strides = array<i32>} : memref<8x2x128xf32, #tpu.memory_space<vmem>>, vector<1x2x128xf32>,
    %c0_226 = arith.constant 0 : index
    %c0_227 = arith.constant 0 : index
    %433 = vector.load %arg10[%c0_226, %c0_227] : memref<2x32xf32, #tpu.memory_space<vmem>>, vector<2x32xf32>
    %434 = arith.truncf %433 : vector<2x32xf32> to vector<2x32xbf16>
    %c0_228 = arith.constant 0 : index
    %c0_229 = arith.constant 0 : index
    %435 = vector.load %arg3[%c0_228, %c0_229] : memref<32x256xbf16, #tpu.memory_space<vmem>>, vector<32x256xbf16>
    %cst_230 = arith.constant dense<0.000000e+00> : vector<2x256xf32>
    %436 = tpu.matmul %434, %435, %cst_230 {dimension_numbers = #tpu.dot_dimension_numbers<[1], [0], [0], [1], [0, 0, 1, 1], [], []>} : vector<2x32xbf16>, vector<32x256xbf16>, vector<2x256xf32> -> vector<2x256xf32>
    %c5_231 = arith.constant 5 : index
    %c0_232 = arith.constant 0 : index
    %c0_233 = arith.constant 0 : index
    %437 = vector.load %arg1[%c5_231, %c0_232, %c0_233] : memref<8x2x128xf32, #tpu.memory_space<vmem>>, vector<1x2x128xf32>
    %438 = vector.shape_cast %437 : vector<1x2x128xf32> to vector<2x128xf32>
    %439 = vector.extract_strided_slice %436 {offsets = [0, 0], sizes = [2, 128], strides = [1, 1]} : vector<2x256xf32> to vector<2x128xf32>
    %440 = arith.addf %438, %439 : vector<2x128xf32>
    %c2_234 = arith.constant 2 : index
    %c0_235 = arith.constant 0 : index
    %c0_236 = arith.constant 0 : index
    %441 = vector.load %arg2[%c2_234, %c0_235, %c0_236] : memref<8x2x128xf32, #tpu.memory_space<vmem>>, vector<1x2x128xf32>
    %442 = vector.shape_cast %441 : vector<1x2x128xf32> to vector<2x128xf32>
    %443 = vector.extract_strided_slice %436 {offsets = [0, 128], sizes = [2, 128], strides = [1, 1]} : vector<2x256xf32> to vector<2x128xf32>
    %444 = arith.addf %442, %443 : vector<2x128xf32>
    %c0_237 = arith.constant 0 : index
    %c0_238 = arith.constant 0 : index
    %445 = vector.load %arg11[%c0_237, %c0_238] : memref<2x16xf32, #tpu.memory_space<vmem>>, vector<2x16xf32>
    %446 = vector.extract_strided_slice %440 {offsets = [0, 0], sizes = [2, 16], strides = [1, 1]} : vector<2x128xf32> to vector<2x16xf32>
    %447 = arith.negf %446 : vector<2x16xf32>
    %448 = math.exp %447 : vector<2x16xf32>
    %cst_239 = arith.constant 1.000000e+00 : f32
    %449 = vector.broadcast %cst_239 : f32 to vector<2x16xf32>
    %450 = arith.addf %449, %448 : vector<2x16xf32>
    %451 = arith.divf %449, %450 : vector<2x16xf32>
    %452 = vector.extract_strided_slice %440 {offsets = [0, 16], sizes = [2, 16], strides = [1, 1]} : vector<2x128xf32> to vector<2x16xf32>
    %453 = arith.negf %452 : vector<2x16xf32>
    %454 = math.exp %453 : vector<2x16xf32>
    %cst_240 = arith.constant 1.000000e+00 : f32
    %455 = vector.broadcast %cst_240 : f32 to vector<2x16xf32>
    %456 = arith.addf %455, %454 : vector<2x16xf32>
    %457 = arith.divf %455, %456 : vector<2x16xf32>
    %458 = vector.extract_strided_slice %440 {offsets = [0, 32], sizes = [2, 16], strides = [1, 1]} : vector<2x128xf32> to vector<2x16xf32>
    %459 = math.tanh %458 : vector<2x16xf32>
    %460 = vector.extract_strided_slice %440 {offsets = [0, 48], sizes = [2, 16], strides = [1, 1]} : vector<2x128xf32> to vector<2x16xf32>
    %461 = arith.negf %460 : vector<2x16xf32>
    %462 = math.exp %461 : vector<2x16xf32>
    %cst_241 = arith.constant 1.000000e+00 : f32
    %463 = vector.broadcast %cst_241 : f32 to vector<2x16xf32>
    %464 = arith.addf %463, %462 : vector<2x16xf32>
    %465 = arith.divf %463, %464 : vector<2x16xf32>
    %466 = arith.mulf %457, %445 : vector<2x16xf32>
    %467 = arith.mulf %451, %459 : vector<2x16xf32>
    %468 = arith.addf %466, %467 : vector<2x16xf32>
    %469 = math.tanh %468 : vector<2x16xf32>
    %470 = arith.mulf %465, %469 : vector<2x16xf32>
    %c0_242 = arith.constant 0 : index
    %c0_243 = arith.constant 0 : index
    %471 = vector.load %arg12[%c0_242, %c0_243] : memref<2x16xf32, #tpu.memory_space<vmem>>, vector<2x16xf32>
    %472 = vector.extract_strided_slice %444 {offsets = [0, 0], sizes = [2, 16], strides = [1, 1]} : vector<2x128xf32> to vector<2x16xf32>
    %473 = arith.negf %472 : vector<2x16xf32>
    %474 = math.exp %473 : vector<2x16xf32>
    %cst_244 = arith.constant 1.000000e+00 : f32
    %475 = vector.broadcast %cst_244 : f32 to vector<2x16xf32>
    %476 = arith.addf %475, %474 : vector<2x16xf32>
    %477 = arith.divf %475, %476 : vector<2x16xf32>
    %478 = vector.extract_strided_slice %444 {offsets = [0, 16], sizes = [2, 16], strides = [1, 1]} : vector<2x128xf32> to vector<2x16xf32>
    %479 = arith.negf %478 : vector<2x16xf32>
    %480 = math.exp %479 : vector<2x16xf32>
    %cst_245 = arith.constant 1.000000e+00 : f32
    %481 = vector.broadcast %cst_245 : f32 to vector<2x16xf32>
    %482 = arith.addf %481, %480 : vector<2x16xf32>
    %483 = arith.divf %481, %482 : vector<2x16xf32>
    %484 = vector.extract_strided_slice %444 {offsets = [0, 32], sizes = [2, 16], strides = [1, 1]} : vector<2x128xf32> to vector<2x16xf32>
    %485 = math.tanh %484 : vector<2x16xf32>
    %486 = vector.extract_strided_slice %444 {offsets = [0, 48], sizes = [2, 16], strides = [1, 1]} : vector<2x128xf32> to vector<2x16xf32>
    %487 = arith.negf %486 : vector<2x16xf32>
    %488 = math.exp %487 : vector<2x16xf32>
    %cst_246 = arith.constant 1.000000e+00 : f32
    %489 = vector.broadcast %cst_246 : f32 to vector<2x16xf32>
    %490 = arith.addf %489, %488 : vector<2x16xf32>
    %491 = arith.divf %489, %490 : vector<2x16xf32>
    %492 = arith.mulf %483, %471 : vector<2x16xf32>
    %493 = arith.mulf %477, %485 : vector<2x16xf32>
    %494 = arith.addf %492, %493 : vector<2x16xf32>
    %495 = math.tanh %494 : vector<2x16xf32>
    %496 = arith.mulf %491, %495 : vector<2x16xf32>
    %c0_247 = arith.constant 0 : index
    %c0_248 = arith.constant 0 : index
    %497 = vector.load %arg11[%c0_247, %c0_248] : memref<2x16xf32, #tpu.memory_space<vmem>>, vector<2x16xf32>
    tpu.vector_store %arg11[%c0_247, %c0_248], %468 {strides = array<i32>} : memref<2x16xf32, #tpu.memory_space<vmem>>, vector<2x16xf32>,
    %c0_249 = arith.constant 0 : index
    %c0_250 = arith.constant 0 : index
    %498 = vector.load %arg12[%c0_249, %c0_250] : memref<2x16xf32, #tpu.memory_space<vmem>>, vector<2x16xf32>
    tpu.vector_store %arg12[%c0_249, %c0_250], %494 {strides = array<i32>} : memref<2x16xf32, #tpu.memory_space<vmem>>, vector<2x16xf32>,
    %c0_251 = arith.constant 0 : index
    %c0_252 = arith.constant 0 : index
    %499 = vector.load %arg10[%c0_251, %c0_252] : memref<2x32xf32, #tpu.memory_space<vmem>>, vector<2x16xf32>
    tpu.vector_store %arg10[%c0_251, %c0_252], %470 {strides = array<i32>} : memref<2x32xf32, #tpu.memory_space<vmem>>, vector<2x16xf32>,
    %c0_253 = arith.constant 0 : index
    %c16_254 = arith.constant 16 : index
    %500 = vector.load %arg10[%c0_253, %c16_254] : memref<2x32xf32, #tpu.memory_space<vmem>>, vector<2x16xf32>
    tpu.vector_store %arg10[%c0_253, %c16_254], %496 {strides = array<i32>} : memref<2x32xf32, #tpu.memory_space<vmem>>, vector<2x16xf32>,
    %c5_255 = arith.constant 5 : index
    %c0_256 = arith.constant 0 : index
    %c0_257 = arith.constant 0 : index
    %501 = vector.load %arg6[%c5_255, %c0_256, %c0_257] : memref<8x2x16xf32, #tpu.memory_space<vmem>>, vector<1x2x16xf32>
    %502 = vector.shape_cast %501 : vector<1x2x16xf32> to vector<2x16xf32>
    %503 = vector.shape_cast %470 : vector<2x16xf32> to vector<1x2x16xf32>
    tpu.vector_store %arg6[%c5_255, %c0_256, %c0_257], %503 {strides = array<i32>} : memref<8x2x16xf32, #tpu.memory_space<vmem>>, vector<1x2x16xf32>,
    %c2_258 = arith.constant 2 : index
    %c0_259 = arith.constant 0 : index
    %c0_260 = arith.constant 0 : index
    %504 = vector.load %arg7[%c2_258, %c0_259, %c0_260] : memref<8x2x16xf32, #tpu.memory_space<vmem>>, vector<1x2x16xf32>
    %505 = vector.shape_cast %504 : vector<1x2x16xf32> to vector<2x16xf32>
    %506 = vector.shape_cast %496 : vector<2x16xf32> to vector<1x2x16xf32>
    tpu.vector_store %arg7[%c2_258, %c0_259, %c0_260], %506 {strides = array<i32>} : memref<8x2x16xf32, #tpu.memory_space<vmem>>, vector<1x2x16xf32>,
    %507 = arith.truncf %470 : vector<2x16xf32> to vector<2x16xbf16>
    %c0_261 = arith.constant 0 : index
    %c0_262 = arith.constant 0 : index
    %508 = vector.load %arg4[%c0_261, %c0_262] : memref<16x128xbf16, #tpu.memory_space<vmem>>, vector<16x128xbf16>
    %cst_263 = arith.constant dense<0.000000e+00> : vector<2x128xf32>
    %509 = tpu.matmul %507, %508, %cst_263 {dimension_numbers = #tpu.dot_dimension_numbers<[1], [0], [0], [1], [0, 0, 1, 1], [], []>} : vector<2x16xbf16>, vector<16x128xbf16>, vector<2x128xf32> -> vector<2x128xf32>
    %c5_264 = arith.constant 5 : index
    %c0_265 = arith.constant 0 : index
    %c0_266 = arith.constant 0 : index
    %510 = vector.load %arg8[%c5_264, %c0_265, %c0_266] : memref<8x2x128xf32, #tpu.memory_space<vmem>>, vector<1x2x128xf32>
    %511 = vector.shape_cast %510 : vector<1x2x128xf32> to vector<2x128xf32>
    %512 = vector.shape_cast %509 : vector<2x128xf32> to vector<1x2x128xf32>
    tpu.vector_store %arg8[%c5_264, %c0_265, %c0_266], %512 {strides = array<i32>} : memref<8x2x128xf32, #tpu.memory_space<vmem>>, vector<1x2x128xf32>,
    %513 = arith.truncf %496 : vector<2x16xf32> to vector<2x16xbf16>
    %c0_267 = arith.constant 0 : index
    %c0_268 = arith.constant 0 : index
    %514 = vector.load %arg5[%c0_267, %c0_268] : memref<16x128xbf16, #tpu.memory_space<vmem>>, vector<16x128xbf16>
    %cst_269 = arith.constant dense<0.000000e+00> : vector<2x128xf32>
    %515 = tpu.matmul %513, %514, %cst_269 {dimension_numbers = #tpu.dot_dimension_numbers<[1], [0], [0], [1], [0, 0, 1, 1], [], []>} : vector<2x16xbf16>, vector<16x128xbf16>, vector<2x128xf32> -> vector<2x128xf32>
    %c2_270 = arith.constant 2 : index
    %c0_271 = arith.constant 0 : index
    %c0_272 = arith.constant 0 : index
    %516 = vector.load %arg9[%c2_270, %c0_271, %c0_272] : memref<8x2x128xf32, #tpu.memory_space<vmem>>, vector<1x2x128xf32>
    %517 = vector.shape_cast %516 : vector<1x2x128xf32> to vector<2x128xf32>
    %518 = vector.shape_cast %515 : vector<2x128xf32> to vector<1x2x128xf32>
    tpu.vector_store %arg9[%c2_270, %c0_271, %c0_272], %518 {strides = array<i32>} : memref<8x2x128xf32, #tpu.memory_space<vmem>>, vector<1x2x128xf32>,
    %c0_273 = arith.constant 0 : index
    %c0_274 = arith.constant 0 : index
    %519 = vector.load %arg10[%c0_273, %c0_274] : memref<2x32xf32, #tpu.memory_space<vmem>>, vector<2x32xf32>
    %520 = arith.truncf %519 : vector<2x32xf32> to vector<2x32xbf16>
    %c0_275 = arith.constant 0 : index
    %c0_276 = arith.constant 0 : index
    %521 = vector.load %arg3[%c0_275, %c0_276] : memref<32x256xbf16, #tpu.memory_space<vmem>>, vector<32x256xbf16>
    %cst_277 = arith.constant dense<0.000000e+00> : vector<2x256xf32>
    %522 = tpu.matmul %520, %521, %cst_277 {dimension_numbers = #tpu.dot_dimension_numbers<[1], [0], [0], [1], [0, 0, 1, 1], [], []>} : vector<2x32xbf16>, vector<32x256xbf16>, vector<2x256xf32> -> vector<2x256xf32>
    %c6_278 = arith.constant 6 : index
    %c0_279 = arith.constant 0 : index
    %c0_280 = arith.constant 0 : index
    %523 = vector.load %arg1[%c6_278, %c0_279, %c0_280] : memref<8x2x128xf32, #tpu.memory_space<vmem>>, vector<1x2x128xf32>
    %524 = vector.shape_cast %523 : vector<1x2x128xf32> to vector<2x128xf32>
    %525 = vector.extract_strided_slice %522 {offsets = [0, 0], sizes = [2, 128], strides = [1, 1]} : vector<2x256xf32> to vector<2x128xf32>
    %526 = arith.addf %524, %525 : vector<2x128xf32>
    %c1_281 = arith.constant 1 : index
    %c0_282 = arith.constant 0 : index
    %c0_283 = arith.constant 0 : index
    %527 = vector.load %arg2[%c1_281, %c0_282, %c0_283] : memref<8x2x128xf32, #tpu.memory_space<vmem>>, vector<1x2x128xf32>
    %528 = vector.shape_cast %527 : vector<1x2x128xf32> to vector<2x128xf32>
    %529 = vector.extract_strided_slice %522 {offsets = [0, 128], sizes = [2, 128], strides = [1, 1]} : vector<2x256xf32> to vector<2x128xf32>
    %530 = arith.addf %528, %529 : vector<2x128xf32>
    %c0_284 = arith.constant 0 : index
    %c0_285 = arith.constant 0 : index
    %531 = vector.load %arg11[%c0_284, %c0_285] : memref<2x16xf32, #tpu.memory_space<vmem>>, vector<2x16xf32>
    %532 = vector.extract_strided_slice %526 {offsets = [0, 0], sizes = [2, 16], strides = [1, 1]} : vector<2x128xf32> to vector<2x16xf32>
    %533 = arith.negf %532 : vector<2x16xf32>
    %534 = math.exp %533 : vector<2x16xf32>
    %cst_286 = arith.constant 1.000000e+00 : f32
    %535 = vector.broadcast %cst_286 : f32 to vector<2x16xf32>
    %536 = arith.addf %535, %534 : vector<2x16xf32>
    %537 = arith.divf %535, %536 : vector<2x16xf32>
    %538 = vector.extract_strided_slice %526 {offsets = [0, 16], sizes = [2, 16], strides = [1, 1]} : vector<2x128xf32> to vector<2x16xf32>
    %539 = arith.negf %538 : vector<2x16xf32>
    %540 = math.exp %539 : vector<2x16xf32>
    %cst_287 = arith.constant 1.000000e+00 : f32
    %541 = vector.broadcast %cst_287 : f32 to vector<2x16xf32>
    %542 = arith.addf %541, %540 : vector<2x16xf32>
    %543 = arith.divf %541, %542 : vector<2x16xf32>
    %544 = vector.extract_strided_slice %526 {offsets = [0, 32], sizes = [2, 16], strides = [1, 1]} : vector<2x128xf32> to vector<2x16xf32>
    %545 = math.tanh %544 : vector<2x16xf32>
    %546 = vector.extract_strided_slice %526 {offsets = [0, 48], sizes = [2, 16], strides = [1, 1]} : vector<2x128xf32> to vector<2x16xf32>
    %547 = arith.negf %546 : vector<2x16xf32>
    %548 = math.exp %547 : vector<2x16xf32>
    %cst_288 = arith.constant 1.000000e+00 : f32
    %549 = vector.broadcast %cst_288 : f32 to vector<2x16xf32>
    %550 = arith.addf %549, %548 : vector<2x16xf32>
    %551 = arith.divf %549, %550 : vector<2x16xf32>
    %552 = arith.mulf %543, %531 : vector<2x16xf32>
    %553 = arith.mulf %537, %545 : vector<2x16xf32>
    %554 = arith.addf %552, %553 : vector<2x16xf32>
    %555 = math.tanh %554 : vector<2x16xf32>
    %556 = arith.mulf %551, %555 : vector<2x16xf32>
    %c0_289 = arith.constant 0 : index
    %c0_290 = arith.constant 0 : index
    %557 = vector.load %arg12[%c0_289, %c0_290] : memref<2x16xf32, #tpu.memory_space<vmem>>, vector<2x16xf32>
    %558 = vector.extract_strided_slice %530 {offsets = [0, 0], sizes = [2, 16], strides = [1, 1]} : vector<2x128xf32> to vector<2x16xf32>
    %559 = arith.negf %558 : vector<2x16xf32>
    %560 = math.exp %559 : vector<2x16xf32>
    %cst_291 = arith.constant 1.000000e+00 : f32
    %561 = vector.broadcast %cst_291 : f32 to vector<2x16xf32>
    %562 = arith.addf %561, %560 : vector<2x16xf32>
    %563 = arith.divf %561, %562 : vector<2x16xf32>
    %564 = vector.extract_strided_slice %530 {offsets = [0, 16], sizes = [2, 16], strides = [1, 1]} : vector<2x128xf32> to vector<2x16xf32>
    %565 = arith.negf %564 : vector<2x16xf32>
    %566 = math.exp %565 : vector<2x16xf32>
    %cst_292 = arith.constant 1.000000e+00 : f32
    %567 = vector.broadcast %cst_292 : f32 to vector<2x16xf32>
    %568 = arith.addf %567, %566 : vector<2x16xf32>
    %569 = arith.divf %567, %568 : vector<2x16xf32>
    %570 = vector.extract_strided_slice %530 {offsets = [0, 32], sizes = [2, 16], strides = [1, 1]} : vector<2x128xf32> to vector<2x16xf32>
    %571 = math.tanh %570 : vector<2x16xf32>
    %572 = vector.extract_strided_slice %530 {offsets = [0, 48], sizes = [2, 16], strides = [1, 1]} : vector<2x128xf32> to vector<2x16xf32>
    %573 = arith.negf %572 : vector<2x16xf32>
    %574 = math.exp %573 : vector<2x16xf32>
    %cst_293 = arith.constant 1.000000e+00 : f32
    %575 = vector.broadcast %cst_293 : f32 to vector<2x16xf32>
    %576 = arith.addf %575, %574 : vector<2x16xf32>
    %577 = arith.divf %575, %576 : vector<2x16xf32>
    %578 = arith.mulf %569, %557 : vector<2x16xf32>
    %579 = arith.mulf %563, %571 : vector<2x16xf32>
    %580 = arith.addf %578, %579 : vector<2x16xf32>
    %581 = math.tanh %580 : vector<2x16xf32>
    %582 = arith.mulf %577, %581 : vector<2x16xf32>
    %c0_294 = arith.constant 0 : index
    %c0_295 = arith.constant 0 : index
    %583 = vector.load %arg11[%c0_294, %c0_295] : memref<2x16xf32, #tpu.memory_space<vmem>>, vector<2x16xf32>
    tpu.vector_store %arg11[%c0_294, %c0_295], %554 {strides = array<i32>} : memref<2x16xf32, #tpu.memory_space<vmem>>, vector<2x16xf32>,
    %c0_296 = arith.constant 0 : index
    %c0_297 = arith.constant 0 : index
    %584 = vector.load %arg12[%c0_296, %c0_297] : memref<2x16xf32, #tpu.memory_space<vmem>>, vector<2x16xf32>
    tpu.vector_store %arg12[%c0_296, %c0_297], %580 {strides = array<i32>} : memref<2x16xf32, #tpu.memory_space<vmem>>, vector<2x16xf32>,
    %c0_298 = arith.constant 0 : index
    %c0_299 = arith.constant 0 : index
    %585 = vector.load %arg10[%c0_298, %c0_299] : memref<2x32xf32, #tpu.memory_space<vmem>>, vector<2x16xf32>
    tpu.vector_store %arg10[%c0_298, %c0_299], %556 {strides = array<i32>} : memref<2x32xf32, #tpu.memory_space<vmem>>, vector<2x16xf32>,
    %c0_300 = arith.constant 0 : index
    %c16_301 = arith.constant 16 : index
    %586 = vector.load %arg10[%c0_300, %c16_301] : memref<2x32xf32, #tpu.memory_space<vmem>>, vector<2x16xf32>
    tpu.vector_store %arg10[%c0_300, %c16_301], %582 {strides = array<i32>} : memref<2x32xf32, #tpu.memory_space<vmem>>, vector<2x16xf32>,
    %c6_302 = arith.constant 6 : index
    %c0_303 = arith.constant 0 : index
    %c0_304 = arith.constant 0 : index
    %587 = vector.load %arg6[%c6_302, %c0_303, %c0_304] : memref<8x2x16xf32, #tpu.memory_space<vmem>>, vector<1x2x16xf32>
    %588 = vector.shape_cast %587 : vector<1x2x16xf32> to vector<2x16xf32>
    %589 = vector.shape_cast %556 : vector<2x16xf32> to vector<1x2x16xf32>
    tpu.vector_store %arg6[%c6_302, %c0_303, %c0_304], %589 {strides = array<i32>} : memref<8x2x16xf32, #tpu.memory_space<vmem>>, vector<1x2x16xf32>,
    %c1_305 = arith.constant 1 : index
    %c0_306 = arith.constant 0 : index
    %c0_307 = arith.constant 0 : index
    %590 = vector.load %arg7[%c1_305, %c0_306, %c0_307] : memref<8x2x16xf32, #tpu.memory_space<vmem>>, vector<1x2x16xf32>
    %591 = vector.shape_cast %590 : vector<1x2x16xf32> to vector<2x16xf32>
    %592 = vector.shape_cast %582 : vector<2x16xf32> to vector<1x2x16xf32>
    tpu.vector_store %arg7[%c1_305, %c0_306, %c0_307], %592 {strides = array<i32>} : memref<8x2x16xf32, #tpu.memory_space<vmem>>, vector<1x2x16xf32>,
    %593 = arith.truncf %556 : vector<2x16xf32> to vector<2x16xbf16>
    %c0_308 = arith.constant 0 : index
    %c0_309 = arith.constant 0 : index
    %594 = vector.load %arg4[%c0_308, %c0_309] : memref<16x128xbf16, #tpu.memory_space<vmem>>, vector<16x128xbf16>
    %cst_310 = arith.constant dense<0.000000e+00> : vector<2x128xf32>
    %595 = tpu.matmul %593, %594, %cst_310 {dimension_numbers = #tpu.dot_dimension_numbers<[1], [0], [0], [1], [0, 0, 1, 1], [], []>} : vector<2x16xbf16>, vector<16x128xbf16>, vector<2x128xf32> -> vector<2x128xf32>
    %c6_311 = arith.constant 6 : index
    %c0_312 = arith.constant 0 : index
    %c0_313 = arith.constant 0 : index
    %596 = vector.load %arg8[%c6_311, %c0_312, %c0_313] : memref<8x2x128xf32, #tpu.memory_space<vmem>>, vector<1x2x128xf32>
    %597 = vector.shape_cast %596 : vector<1x2x128xf32> to vector<2x128xf32>
    %598 = vector.shape_cast %595 : vector<2x128xf32> to vector<1x2x128xf32>
    tpu.vector_store %arg8[%c6_311, %c0_312, %c0_313], %598 {strides = array<i32>} : memref<8x2x128xf32, #tpu.memory_space<vmem>>, vector<1x2x128xf32>,
    %599 = arith.truncf %582 : vector<2x16xf32> to vector<2x16xbf16>
    %c0_314 = arith.constant 0 : index
    %c0_315 = arith.constant 0 : index
    %600 = vector.load %arg5[%c0_314, %c0_315] : memref<16x128xbf16, #tpu.memory_space<vmem>>, vector<16x128xbf16>
    %cst_316 = arith.constant dense<0.000000e+00> : vector<2x128xf32>
    %601 = tpu.matmul %599, %600, %cst_316 {dimension_numbers = #tpu.dot_dimension_numbers<[1], [0], [0], [1], [0, 0, 1, 1], [], []>} : vector<2x16xbf16>, vector<16x128xbf16>, vector<2x128xf32> -> vector<2x128xf32>
    %c1_317 = arith.constant 1 : index
    %c0_318 = arith.constant 0 : index
    %c0_319 = arith.constant 0 : index
    %602 = vector.load %arg9[%c1_317, %c0_318, %c0_319] : memref<8x2x128xf32, #tpu.memory_space<vmem>>, vector<1x2x128xf32>
    %603 = vector.shape_cast %602 : vector<1x2x128xf32> to vector<2x128xf32>
    %604 = vector.shape_cast %601 : vector<2x128xf32> to vector<1x2x128xf32>
    tpu.vector_store %arg9[%c1_317, %c0_318, %c0_319], %604 {strides = array<i32>} : memref<8x2x128xf32, #tpu.memory_space<vmem>>, vector<1x2x128xf32>,
    %c0_320 = arith.constant 0 : index
    %c0_321 = arith.constant 0 : index
    %605 = vector.load %arg10[%c0_320, %c0_321] : memref<2x32xf32, #tpu.memory_space<vmem>>, vector<2x32xf32>
    %606 = arith.truncf %605 : vector<2x32xf32> to vector<2x32xbf16>
    %c0_322 = arith.constant 0 : index
    %c0_323 = arith.constant 0 : index
    %607 = vector.load %arg3[%c0_322, %c0_323] : memref<32x256xbf16, #tpu.memory_space<vmem>>, vector<32x256xbf16>
    %cst_324 = arith.constant dense<0.000000e+00> : vector<2x256xf32>
    %608 = tpu.matmul %606, %607, %cst_324 {dimension_numbers = #tpu.dot_dimension_numbers<[1], [0], [0], [1], [0, 0, 1, 1], [], []>} : vector<2x32xbf16>, vector<32x256xbf16>, vector<2x256xf32> -> vector<2x256xf32>
    %c7_325 = arith.constant 7 : index
    %c0_326 = arith.constant 0 : index
    %c0_327 = arith.constant 0 : index
    %609 = vector.load %arg1[%c7_325, %c0_326, %c0_327] : memref<8x2x128xf32, #tpu.memory_space<vmem>>, vector<1x2x128xf32>
    %610 = vector.shape_cast %609 : vector<1x2x128xf32> to vector<2x128xf32>
    %611 = vector.extract_strided_slice %608 {offsets = [0, 0], sizes = [2, 128], strides = [1, 1]} : vector<2x256xf32> to vector<2x128xf32>
    %612 = arith.addf %610, %611 : vector<2x128xf32>
    %c0_328 = arith.constant 0 : index
    %c0_329 = arith.constant 0 : index
    %c0_330 = arith.constant 0 : index
    %613 = vector.load %arg2[%c0_328, %c0_329, %c0_330] : memref<8x2x128xf32, #tpu.memory_space<vmem>>, vector<1x2x128xf32>
    %614 = vector.shape_cast %613 : vector<1x2x128xf32> to vector<2x128xf32>
    %615 = vector.extract_strided_slice %608 {offsets = [0, 128], sizes = [2, 128], strides = [1, 1]} : vector<2x256xf32> to vector<2x128xf32>
    %616 = arith.addf %614, %615 : vector<2x128xf32>
    %c0_331 = arith.constant 0 : index
    %c0_332 = arith.constant 0 : index
    %617 = vector.load %arg11[%c0_331, %c0_332] : memref<2x16xf32, #tpu.memory_space<vmem>>, vector<2x16xf32>
    %618 = vector.extract_strided_slice %612 {offsets = [0, 0], sizes = [2, 16], strides = [1, 1]} : vector<2x128xf32> to vector<2x16xf32>
    %619 = arith.negf %618 : vector<2x16xf32>
    %620 = math.exp %619 : vector<2x16xf32>
    %cst_333 = arith.constant 1.000000e+00 : f32
    %621 = vector.broadcast %cst_333 : f32 to vector<2x16xf32>
    %622 = arith.addf %621, %620 : vector<2x16xf32>
    %623 = arith.divf %621, %622 : vector<2x16xf32>
    %624 = vector.extract_strided_slice %612 {offsets = [0, 16], sizes = [2, 16], strides = [1, 1]} : vector<2x128xf32> to vector<2x16xf32>
    %625 = arith.negf %624 : vector<2x16xf32>
    %626 = math.exp %625 : vector<2x16xf32>
    %cst_334 = arith.constant 1.000000e+00 : f32
    %627 = vector.broadcast %cst_334 : f32 to vector<2x16xf32>
    %628 = arith.addf %627, %626 : vector<2x16xf32>
    %629 = arith.divf %627, %628 : vector<2x16xf32>
    %630 = vector.extract_strided_slice %612 {offsets = [0, 32], sizes = [2, 16], strides = [1, 1]} : vector<2x128xf32> to vector<2x16xf32>
    %631 = math.tanh %630 : vector<2x16xf32>
    %632 = vector.extract_strided_slice %612 {offsets = [0, 48], sizes = [2, 16], strides = [1, 1]} : vector<2x128xf32> to vector<2x16xf32>
    %633 = arith.negf %632 : vector<2x16xf32>
    %634 = math.exp %633 : vector<2x16xf32>
    %cst_335 = arith.constant 1.000000e+00 : f32
    %635 = vector.broadcast %cst_335 : f32 to vector<2x16xf32>
    %636 = arith.addf %635, %634 : vector<2x16xf32>
    %637 = arith.divf %635, %636 : vector<2x16xf32>
    %638 = arith.mulf %629, %617 : vector<2x16xf32>
    %639 = arith.mulf %623, %631 : vector<2x16xf32>
    %640 = arith.addf %638, %639 : vector<2x16xf32>
    %641 = math.tanh %640 : vector<2x16xf32>
    %642 = arith.mulf %637, %641 : vector<2x16xf32>
    %c0_336 = arith.constant 0 : index
    %c0_337 = arith.constant 0 : index
    %643 = vector.load %arg12[%c0_336, %c0_337] : memref<2x16xf32, #tpu.memory_space<vmem>>, vector<2x16xf32>
    %644 = vector.extract_strided_slice %616 {offsets = [0, 0], sizes = [2, 16], strides = [1, 1]} : vector<2x128xf32> to vector<2x16xf32>
    %645 = arith.negf %644 : vector<2x16xf32>
    %646 = math.exp %645 : vector<2x16xf32>
    %cst_338 = arith.constant 1.000000e+00 : f32
    %647 = vector.broadcast %cst_338 : f32 to vector<2x16xf32>
    %648 = arith.addf %647, %646 : vector<2x16xf32>
    %649 = arith.divf %647, %648 : vector<2x16xf32>
    %650 = vector.extract_strided_slice %616 {offsets = [0, 16], sizes = [2, 16], strides = [1, 1]} : vector<2x128xf32> to vector<2x16xf32>
    %651 = arith.negf %650 : vector<2x16xf32>
    %652 = math.exp %651 : vector<2x16xf32>
    %cst_339 = arith.constant 1.000000e+00 : f32
    %653 = vector.broadcast %cst_339 : f32 to vector<2x16xf32>
    %654 = arith.addf %653, %652 : vector<2x16xf32>
    %655 = arith.divf %653, %654 : vector<2x16xf32>
    %656 = vector.extract_strided_slice %616 {offsets = [0, 32], sizes = [2, 16], strides = [1, 1]} : vector<2x128xf32> to vector<2x16xf32>
    %657 = math.tanh %656 : vector<2x16xf32>
    %658 = vector.extract_strided_slice %616 {offsets = [0, 48], sizes = [2, 16], strides = [1, 1]} : vector<2x128xf32> to vector<2x16xf32>
    %659 = arith.negf %658 : vector<2x16xf32>
    %660 = math.exp %659 : vector<2x16xf32>
    %cst_340 = arith.constant 1.000000e+00 : f32
    %661 = vector.broadcast %cst_340 : f32 to vector<2x16xf32>
    %662 = arith.addf %661, %660 : vector<2x16xf32>
    %663 = arith.divf %661, %662 : vector<2x16xf32>
    %664 = arith.mulf %655, %643 : vector<2x16xf32>
    %665 = arith.mulf %649, %657 : vector<2x16xf32>
    %666 = arith.addf %664, %665 : vector<2x16xf32>
    %667 = math.tanh %666 : vector<2x16xf32>
    %668 = arith.mulf %663, %667 : vector<2x16xf32>
    %c0_341 = arith.constant 0 : index
    %c0_342 = arith.constant 0 : index
    %669 = vector.load %arg11[%c0_341, %c0_342] : memref<2x16xf32, #tpu.memory_space<vmem>>, vector<2x16xf32>
    tpu.vector_store %arg11[%c0_341, %c0_342], %640 {strides = array<i32>} : memref<2x16xf32, #tpu.memory_space<vmem>>, vector<2x16xf32>,
    %c0_343 = arith.constant 0 : index
    %c0_344 = arith.constant 0 : index
    %670 = vector.load %arg12[%c0_343, %c0_344] : memref<2x16xf32, #tpu.memory_space<vmem>>, vector<2x16xf32>
    tpu.vector_store %arg12[%c0_343, %c0_344], %666 {strides = array<i32>} : memref<2x16xf32, #tpu.memory_space<vmem>>, vector<2x16xf32>,
    %c0_345 = arith.constant 0 : index
    %c0_346 = arith.constant 0 : index
    %671 = vector.load %arg10[%c0_345, %c0_346] : memref<2x32xf32, #tpu.memory_space<vmem>>, vector<2x16xf32>
    tpu.vector_store %arg10[%c0_345, %c0_346], %642 {strides = array<i32>} : memref<2x32xf32, #tpu.memory_space<vmem>>, vector<2x16xf32>,
    %c0_347 = arith.constant 0 : index
    %c16_348 = arith.constant 16 : index
    %672 = vector.load %arg10[%c0_347, %c16_348] : memref<2x32xf32, #tpu.memory_space<vmem>>, vector<2x16xf32>
    tpu.vector_store %arg10[%c0_347, %c16_348], %668 {strides = array<i32>} : memref<2x32xf32, #tpu.memory_space<vmem>>, vector<2x16xf32>,
    %c7_349 = arith.constant 7 : index
    %c0_350 = arith.constant 0 : index
    %c0_351 = arith.constant 0 : index
    %673 = vector.load %arg6[%c7_349, %c0_350, %c0_351] : memref<8x2x16xf32, #tpu.memory_space<vmem>>, vector<1x2x16xf32>
    %674 = vector.shape_cast %673 : vector<1x2x16xf32> to vector<2x16xf32>
    %675 = vector.shape_cast %642 : vector<2x16xf32> to vector<1x2x16xf32>
    tpu.vector_store %arg6[%c7_349, %c0_350, %c0_351], %675 {strides = array<i32>} : memref<8x2x16xf32, #tpu.memory_space<vmem>>, vector<1x2x16xf32>,
    %c0_352 = arith.constant 0 : index
    %c0_353 = arith.constant 0 : index
    %c0_354 = arith.constant 0 : index
    %676 = vector.load %arg7[%c0_352, %c0_353, %c0_354] : memref<8x2x16xf32, #tpu.memory_space<vmem>>, vector<1x2x16xf32>
    %677 = vector.shape_cast %676 : vector<1x2x16xf32> to vector<2x16xf32>
    %678 = vector.shape_cast %668 : vector<2x16xf32> to vector<1x2x16xf32>
    tpu.vector_store %arg7[%c0_352, %c0_353, %c0_354], %678 {strides = array<i32>} : memref<8x2x16xf32, #tpu.memory_space<vmem>>, vector<1x2x16xf32>,
    %679 = arith.truncf %642 : vector<2x16xf32> to vector<2x16xbf16>
    %c0_355 = arith.constant 0 : index
    %c0_356 = arith.constant 0 : index
    %680 = vector.load %arg4[%c0_355, %c0_356] : memref<16x128xbf16, #tpu.memory_space<vmem>>, vector<16x128xbf16>
    %cst_357 = arith.constant dense<0.000000e+00> : vector<2x128xf32>
    %681 = tpu.matmul %679, %680, %cst_357 {dimension_numbers = #tpu.dot_dimension_numbers<[1], [0], [0], [1], [0, 0, 1, 1], [], []>} : vector<2x16xbf16>, vector<16x128xbf16>, vector<2x128xf32> -> vector<2x128xf32>
    %c7_358 = arith.constant 7 : index
    %c0_359 = arith.constant 0 : index
    %c0_360 = arith.constant 0 : index
    %682 = vector.load %arg8[%c7_358, %c0_359, %c0_360] : memref<8x2x128xf32, #tpu.memory_space<vmem>>, vector<1x2x128xf32>
    %683 = vector.shape_cast %682 : vector<1x2x128xf32> to vector<2x128xf32>
    %684 = vector.shape_cast %681 : vector<2x128xf32> to vector<1x2x128xf32>
    tpu.vector_store %arg8[%c7_358, %c0_359, %c0_360], %684 {strides = array<i32>} : memref<8x2x128xf32, #tpu.memory_space<vmem>>, vector<1x2x128xf32>,
    %685 = arith.truncf %668 : vector<2x16xf32> to vector<2x16xbf16>
    %c0_361 = arith.constant 0 : index
    %c0_362 = arith.constant 0 : index
    %686 = vector.load %arg5[%c0_361, %c0_362] : memref<16x128xbf16, #tpu.memory_space<vmem>>, vector<16x128xbf16>
    %cst_363 = arith.constant dense<0.000000e+00> : vector<2x128xf32>
    %687 = tpu.matmul %685, %686, %cst_363 {dimension_numbers = #tpu.dot_dimension_numbers<[1], [0], [0], [1], [0, 0, 1, 1], [], []>} : vector<2x16xbf16>, vector<16x128xbf16>, vector<2x128xf32> -> vector<2x128xf32>
    %c0_364 = arith.constant 0 : index
    %c0_365 = arith.constant 0 : index
    %c0_366 = arith.constant 0 : index
    %688 = vector.load %arg9[%c0_364, %c0_365, %c0_366] : memref<8x2x128xf32, #tpu.memory_space<vmem>>, vector<1x2x128xf32>
    %689 = vector.shape_cast %688 : vector<1x2x128xf32> to vector<2x128xf32>
    %690 = vector.shape_cast %687 : vector<2x128xf32> to vector<1x2x128xf32>
    tpu.vector_store %arg9[%c0_364, %c0_365, %c0_366], %690 {strides = array<i32>} : memref<8x2x128xf32, #tpu.memory_space<vmem>>, vector<1x2x128xf32>,
    return
  }
  func.func @transform_0(%arg0: i32) -> (i32, i32, i32) {
    %c0_i32 = arith.constant 0 : i32
    %c0_i32_0 = arith.constant 0 : i32
    %c0_i32_1 = arith.constant 0 : i32
    return %arg0, %c0_i32, %c0_i32_0 : i32, i32, i32
  }
  func.func @transform_1(%arg0: i32) -> (i32, i32, i32) {
    %c0_i32 = arith.constant 0 : i32
    %0 = arith.subi %c0_i32, %arg0 : i32
    %c0_i32_0 = arith.constant 0 : i32
    %c0_i32_1 = arith.constant 0 : i32
    %c0_i32_2 = arith.constant 0 : i32
    return %0, %c0_i32_0, %c0_i32_1 : i32, i32, i32
  }
  func.func @transform_2(%arg0: i32) -> (i32, i32) {
    %c0_i32 = arith.constant 0 : i32
    %c0_i32_0 = arith.constant 0 : i32
    %c0_i32_1 = arith.constant 0 : i32
    return %c0_i32, %c0_i32_0 : i32, i32
  }
  func.func @transform_3(%arg0: i32) -> (i32, i32) {
    %c0_i32 = arith.constant 0 : i32
    %c0_i32_0 = arith.constant 0 : i32
    %c0_i32_1 = arith.constant 0 : i32
    return %c0_i32, %c0_i32_0 : i32, i32
  }
  func.func @transform_4(%arg0: i32) -> (i32, i32) {
    %c0_i32 = arith.constant 0 : i32
    %c0_i32_0 = arith.constant 0 : i32
    %c0_i32_1 = arith.constant 0 : i32
    return %c0_i32, %c0_i32_0 : i32, i32
  }
  func.func @transform_5(%arg0: i32) -> (i32, i32, i32) {
    %c0_i32 = arith.constant 0 : i32
    %c0_i32_0 = arith.constant 0 : i32
    %c0_i32_1 = arith.constant 0 : i32
    return %arg0, %c0_i32, %c0_i32_0 : i32, i32, i32
  }
  func.func @transform_6(%arg0: i32) -> (i32, i32, i32) {
    %c0_i32 = arith.constant 0 : i32
    %0 = arith.subi %c0_i32, %arg0 : i32
    %c0_i32_0 = arith.constant 0 : i32
    %c0_i32_1 = arith.constant 0 : i32
    %c0_i32_2 = arith.constant 0 : i32
    return %0, %c0_i32_0, %c0_i32_1 : i32, i32, i32
  }
  func.func @transform_7(%arg0: i32) -> (i32, i32, i32) {
    %c0_i32 = arith.constant 0 : i32
    %c0_i32_0 = arith.constant 0 : i32
    %c0_i32_1 = arith.constant 0 : i32
    return %arg0, %c0_i32, %c0_i32_0 : i32, i32, i32
  }
  func.func @transform_8(%arg0: i32) -> (i32, i32, i32) {
    %c0_i32 = arith.constant 0 : i32
    %0 = arith.subi %c0_i32, %arg0 : i32
    %c0_i32_0 = arith.constant 0 : i32
    %c0_i32_1 = arith.constant 0 : i32
    %c0_i32_2 = arith.constant 0 : i32
    return %0, %c0_i32_0, %c0_i32_1 : i32, i32, i32
  }
}

</mosaic_0001>

<bundles_post_ra>
// kernel: transcription_model_forward.7
= control target key start
LH: loop header
LB: loop body
LE: loop exit
PB: predicated region body
PF: predicated region fallthrough
CT: control target
= control target key end

     0   :  { %v276_v0 = vmov 0.0   ;;  %vm277_vm0 = vmmov 0   ;;  %vm69_vm1 = vcmask 523264   ;;  %vm134_vm2 = vcmask 130048   ;;  %s354_s1 = inlined_call_operand.vmem [shape: bf16[64,16], index: 1, kind: input, shape index: {}]   ;;  %s355_s0 = inlined_call_operand.vmem [shape: bf16[16,64], index: 0, kind: input, shape index: {}]   ;;  %s356_s3 = inlined_call_operand.vmem [shape: bf16[16,16], index: 3, kind: input, shape index: {}]   ;;  %s357_s2 = inlined_call_operand.vmem [shape: f32[1,16], index: 2, kind: input, shape index: {}]   ;;  %s358_s5 = inlined_call_operand.vmem [shape: f32[16,16], index: 5, kind: output, shape index: {0}]   ;;  %s359_s4 = inlined_call_operand.vmem [shape: f32[1,16], index: 4, kind: input, shape index: {}]   ;;  %s360_s6 = inlined_call_operand.vmem [shape: f32[16,16], index: 6, kind: output, shape index: {1}]  }
   0x1   :  { %238 = vmatprep.subr.bf16.mxu0 %v276_v0  ;;  %v258_v1 = vld [vmem:[%s354_s1] sm:$0xff]   ;;  %246 = vmatprep.mubr.msk.bf16.mxu0 %vm277_vm0, %v276_v0  ;;  %v259_v2 = vld [vmem:[%s354_s1 + $0x8] sm:$0xff]   ;;  %v260_v3 = vld [vmem:[%s354_s1 + $0x10] sm:$0xff]  }
   0x2   :  { %250 = vmatprep.subr.bf16.mxu1 %v276_v0  ;;  %252 = vmatprep.mubr.msk.bf16.mxu1 %vm277_vm0, %v276_v0  ;;  %v261_v4 = vld [vmem:[%s354_s1 + $0x18] sm:$0xff]   ;;  %v262_v5 = vld [vmem:[%s355_s0] sm:$0xff]  }
   0x3   :  { %239 = vmatpush3.bf16.msra.mxu0 %v258_v1  ;;  %v263_v6 = vld [vmem:[%s356_s3] sm:$0xff]  }
   0x4   :  { %240 = vmatprep.subr.bf16.mxu0 %v276_v0  ;;  %251 = vmatpush3.bf16.msra.mxu1 %v263_v6  ;;  %v219_v7 = vld [vmem:[%s357_s2] ss:$0 sm:$0xff] }
   0x5   :  { %v226_v31 = vld [vmem:[%s359_s4] ss:$0 sm:$0xff] }
   0x7   :  { %241 = vmatpush3.bf16.msra.mxu0 %v259_v2 }
   0x8   :  { %242 = vmatprep.subr.bf16.mxu0 %v276_v0 }
   0xb   :  { %243 = vmatpush3.bf16.msra.mxu0 %v260_v3 }
   0xc   :  { %244 = vmatprep.subr.bf16.mxu0 %v276_v0 }
   0xf   :  { %245 = vmatpush3.bf16.msra.mxu0 %v261_v4 }
  0x12   :  { %247 = vmatmul.mubr.msk.bf16.vlgmr.msra.gmra.mrb[0].mxu0 %vm69_vm1, %v262_v5 }
  0xe5   :  { %v107_v8 = vpop.f32.mrb[0].mxu0 }
  0xe6   :  { %v108_v9 = vadd.f32 %v219_v7, %v107_v8  ;;  %v248_v10 = vpop.f32.mrb[1].mxu0 }
  0xe7   :  { %v110_v11 = vpop.f32.mrb[2].mxu0 }
  0xe8   :  { %v114_v12 = vand.u32 2147483647, %v108_v9  ;;  %v111_v13 = vadd.f32 %v219_v7, %v110_v11  ;;  %v249_v14 = vpop.f32.mrb[3].mxu0 }
  0xea   :  { %v116_v15 = vadd.f32 1.0, %v114_v12  ;;  %v115_v16 = vand.u32 2147483647, %v111_v13  ;;  %v119_v18 = vmul.f32 -0.5, %v114_v12  ;;  %vm123_vm3 = vcmp.lt.f32.partialorder %v114_v12, 0.0004427343 }
  0xec   :  { %264 = vlog2.f32 %v116_v15  ;;  %v125_v17 = vadd.f32 1.0, %v115_v16  ;;  %v128_v19 = vmul.f32 -0.5, %v115_v16  ;;  %v120_v20 = vadd.f32 1.0, %v119_v18 }
  0xed   :  { %vm132_vm4 = vcmp.lt.f32.partialorder %v115_v16, 0.0004427343 }
  0xee   :  { %266 = vlog2.f32 %v125_v17  ;;  %v129_v21 = vadd.f32 1.0, %v128_v19  ;;  %v121_v24 = vmul.f32 %v120_v20, %v114_v12 }
  0xf0   :  { %v130_v27 = vmul.f32 %v129_v21, %v115_v16 }
  0xf6   :  { %v265_v22 = vpop.eup %264 }
  0xf7   :  { %v118_v23 = vmul.f32 0.6931472, %v265_v22 }
  0xf8   :  { %v267_v25 = vpop.eup %266 }
  0xf9   :  { %v127_v26 = vmul.f32 0.6931472, %v267_v25  ;;  %v124_v28 = vsel %vm123_vm3, %v121_v24, %v118_v23 }
  0xfa   :  { %135 = vst.msk [vmem:[%s358_s5] sm:$0xff] %vm134_vm2, %v124_v28 }
  0xfb   :  { %v133_v29 = vsel %vm132_vm4, %v130_v27, %v127_v26 }
  0xfc   :  { %136 = vst.msk [vmem:[%s358_s5 + $0x8] sm:$0xff] %vm134_vm2, %v133_v29  ;;  %v137_v30 = vpack.c.bf16 %v133_v29, %v124_v28 }
  0xfe   :  { %253 = vmatmul.mubr.msk.bf16.vlgmr.msra.gmra.mrb[0].mxu1 %vm134_vm2, %v137_v30 }
 0x1d1   :  { %v190_v32 = vpop.f32.mrb[0].mxu1 }
 0x1d2   :  { %v191_v33 = vadd.f32 %v226_v31, %v190_v32  ;;  %v254_v34 = vpop.f32.mrb[1].mxu1 }
 0x1d3   :  { %v193_v35 = vpop.f32.mrb[2].mxu1 }
 0x1d4   :  { %v229_v36 = vmul.f32 -1.442695, %v191_v33  ;;  %v194_v37 = vadd.f32 %v226_v31, %v193_v35  ;;  %v255_v38 = vpop.f32.mrb[3].mxu1 }
 0x1d6   :  { %268 = vpow2.f32 %v229_v36  ;;  %v230_v39 = vmul.f32 -1.442695, %v194_v37 }
 0x1d8   :  { %270 = vpow2.f32 %v230_v39 }
 0x1e0   :  { %v269_v40 = vpop.eup %268 }
 0x1e1   :  { %v203_v41 = vadd.f32 1.0, %v269_v40 }
 0x1e2   :  { %v271_v42 = vpop.eup %270 }
 0x1e3   :  { %272 = vrcp.f32 %v203_v41  ;;  %v204_v43 = vadd.f32 1.0, %v271_v42 }
 0x1e5   :  { %274 = vrcp.f32 %v204_v43 }
 0x1ed   :  { %v273_v44 = vpop.eup %272 }
 0x1ee   :  { %209 = vst.msk [vmem:[%s360_s6] sm:$0xff] %vm134_vm2, %v273_v44 }
 0x1ef   :  { %v275_v45 = vpop.eup %274 }
 0x1f0   :  { %210 = vst.msk [vmem:[%s360_s6 + $0x8] sm:$0xff] %vm134_vm2, %v275_v45 }

// kernel: transcription_model_forward.12
= control target key start
LH: loop header
LB: loop body
LE: loop exit
PB: predicated region body
PF: predicated region fallthrough
CT: control target
= control target key end

     0   :  { %v264_v0 = vmov 0.0   ;;  %vm265_vm0 = vmmov 0   ;;  %vm69_vm1 = vcmask 523264   ;;  %s346_s1 = inlined_call_operand.vmem [shape: bf16[64,128], index: 1, kind: input, shape index: {}]   ;;  %s347_s3 = inlined_call_operand.vmem [shape: bf16[64,128], index: 3, kind: input, shape index: {}]   ;;  %s348_s0 = inlined_call_operand.vmem [shape: bf16[16,64], index: 0, kind: input, shape index: {}]   ;;  %s349_s2 = inlined_call_operand.vmem [shape: f32[1,128], index: 2, kind: input, shape index: {}]   ;;  %s350_s4 = inlined_call_operand.vmem [shape: f32[1,128], index: 4, kind: input, shape index: {}]   ;;  %s351_s5 = inlined_call_operand.vmem [shape: f32[16,128], index: 5, kind: output, shape index: {0}]   ;;  %s352_s6 = inlined_call_operand.vmem [shape: f32[16,128], index: 6, kind: output, shape index: {1}]  }
   0x1   :  { %229 = vmatprep.subr.bf16.mxu0 %v264_v0  ;;  %241 = vmatprep.subr.bf16.mxu1 %v264_v0  ;;  %v255_v1 = vld [vmem:[%s346_s1] sm:$0xff]   ;;  %v257_v3 = vld [vmem:[%s346_s1 + $0x8] sm:$0xff]   ;;  %v259_v5 = vld [vmem:[%s346_s1 + $0x10] sm:$0xff]  }
   0x2   :  { %v256_v2 = vld [vmem:[%s347_s3] sm:$0xff]   ;;  %237 = vmatprep.mubr.msk.bf16.mxu0 %vm265_vm0, %v264_v0  ;;  %249 = vmatprep.mubr.msk.bf16.mxu1 %vm265_vm0, %v264_v0  ;;  %v258_v4 = vld [vmem:[%s347_s3 + $0x8] sm:$0xff]   ;;  %v260_v6 = vld [vmem:[%s347_s3 + $0x10] sm:$0xff]  }
   0x3   :  { %230 = vmatpush3.bf16.msra.mxu0 %v255_v1  ;;  %242 = vmatpush3.bf16.msra.mxu1 %v256_v2  ;;  %v261_v7 = vld [vmem:[%s346_s1 + $0x18] sm:$0xff]   ;;  %v263_v9 = vld [vmem:[%s348_s0] sm:$0xff]  }
   0x4   :  { %231 = vmatprep.subr.bf16.mxu0 %v264_v0  ;;  %243 = vmatprep.subr.bf16.mxu1 %v264_v0  ;;  %v262_v8 = vld [vmem:[%s347_s3 + $0x18] sm:$0xff]   ;;  %v206_v10 = vld [vmem:[%s349_s2] ss:$0 sm:$0xff] }
   0x5   :  { %v213_v11 = vld [vmem:[%s350_s4] ss:$0 sm:$0xff] }
   0x7   :  { %232 = vmatpush3.bf16.msra.mxu0 %v257_v3  ;;  %244 = vmatpush3.bf16.msra.mxu1 %v258_v4 }
   0x8   :  { %233 = vmatprep.subr.bf16.mxu0 %v264_v0  ;;  %245 = vmatprep.subr.bf16.mxu1 %v264_v0 }
   0xb   :  { %234 = vmatpush3.bf16.msra.mxu0 %v259_v5  ;;  %246 = vmatpush3.bf16.msra.mxu1 %v260_v6 }
   0xc   :  { %235 = vmatprep.subr.bf16.mxu0 %v264_v0  ;;  %247 = vmatprep.subr.bf16.mxu1 %v264_v0 }
   0xf   :  { %236 = vmatpush3.bf16.msra.mxu0 %v261_v7  ;;  %248 = vmatpush3.bf16.msra.mxu1 %v262_v8 }
  0x12   :  { %238 = vmatmul.mubr.msk.bf16.vlgmr.msra.gmra.mrb[0].mxu0 %vm69_vm1, %v263_v9  ;;  %250 = vmatmul.mubr.msk.bf16.vlgmr.msra.gmra.mrb[0].mxu1 %vm69_vm1, %v263_v9 }
  0xe5   :  { %v107_v12 = vpop.f32.mrb[0].mxu0  ;;  %v189_v14 = vpop.f32.mrb[0].mxu1 }
  0xe6   :  { %v108_v13 = vadd.f32 %v206_v10, %v107_v12  ;;  %v239_v15 = vpop.f32.mrb[1].mxu0  ;;  %v190_v16 = vadd.f32 %v213_v11, %v189_v14  ;;  %v251_v17 = vpop.f32.mrb[1].mxu1 }
  0xe7   :  { %v110_v18 = vpop.f32.mrb[2].mxu0  ;;  %v192_v20 = vpop.f32.mrb[2].mxu1 }
  0xe8   :  { %114 = vst [vmem:[%s351_s5] sm:$0xff] %v108_v13  ;;  %v111_v19 = vadd.f32 %v206_v10, %v110_v18  ;;  %v240_v21 = vpop.f32.mrb[3].mxu0  ;;  %196 = vst [vmem:[%s352_s6] sm:$0xff] %v190_v16  ;;  %v193_v22 = vadd.f32 %v213_v11, %v192_v20  ;;  %v252_v23 = vpop.f32.mrb[3].mxu1 }
  0xea   :  { %115 = vst [vmem:[%s351_s5 + $0x8] sm:$0xff] %v111_v19  ;;  %197 = vst [vmem:[%s352_s6 + $0x8] sm:$0xff] %v193_v22 }

// kernel: transcription_model_forward.11
= control target key start
LH: loop header
LB: loop body
LE: loop exit
PB: predicated region body
PF: predicated region fallthrough
CT: control target
= control target key end

     0   :  { %vm57_vm0 = vcmask 254976   ;;  %v1616_v1 = vmov 0   ;;  %v1617_v2 = vmov 0.0   ;;  %vm59_vm1 = vcmask 123904   ;;  %s1618_s23 = smov 16   ;;  %s1619_s28 = smov 96   ;;  %s2002_s2 = inlined_call_operand.vmem [shape: bf16[32,256], index: 2, kind: input, shape index: {}]   ;;  %s2003_s0 = inlined_call_operand.vmem [shape: f32[8,2,128], index: 0, kind: input, shape index: {}]   ;;  %s2004_s1 = inlined_call_operand.vmem [shape: f32[8,2,128], index: 1, kind: input, shape index: {}]   ;;  %s2005_s3 = inlined_call_operand.vmem [shape: f32[8,2,16], index: 3, kind: output, shape index: {0}]   ;;  %s2006_s4 = inlined_call_operand.vmem [shape: f32[8,2,16], index: 4, kind: output, shape index: {1}]  }
   0x1   :  { %v1651_v0 = vld [vmem:[%s2002_s2 + $0x4] ss:$8 sps:$4 sm:$0xff]   ;;  %124 = vmatprep.mubr.bf16.mxu0 %v1616_v1  ;;  %58 = vst.msk [vmem:[#allocation2] sm:$0x3] %vm57_vm0, %v1617_v2  ;;  %285 = vmatprep.mubr.bf16.mxu1 %v1616_v1  ;;  %v1658_v3 = vld [vmem:[%s2002_s2] ss:$8 sps:$4 sm:$0xff]  }
   0x2   :  { %60 = vst.msk [vmem:[#allocation3] sm:$0x3] %vm59_vm1, %v1617_v2  ;;  %61 = vst.msk [vmem:[#allocation4] sm:$0x3] %vm59_vm1, %v1617_v2  ;;  %92 = vmatprep.subr.bf16.mxu0 %v1651_v0  ;;  %v1666_v4 = vld [vmem:[%s2002_s2 + $0x14] ss:$8 sps:$4 sm:$0xff]   ;;  %253 = vmatprep.subr.bf16.mxu1 %v1651_v0 }
   0x3   :  { %v1671_v5 = vld [vmem:[%s2002_s2 + $0x10] ss:$8 sps:$4 sm:$0xff]   ;;  %93 = vmatpush1.bf16.msra.mxu0 %v1658_v3  ;;  %254 = vmatpush1.bf16.msra.mxu1 %v1658_v3  ;;  %vm88_vm2 = vcmask 261120   ;;  %v133_v10 = vld [vmem:[%s2003_s0] sm:$0x3]  ;;  %s1620_s29 = smov 32  }
   0x4   :  { %94 = vmatprep.subr.bf16.mxu0 %v1666_v4  ;;  %255 = vmatprep.subr.bf16.mxu1 %v1666_v4  ;;  %v1390_v12 = vld [vmem:[%s2004_s1 + $0xe] sm:$0x3]  ;;  %s1621_s30 = smov 80   ;;  %s1622_s5 = smov 112   ;;  %vm216_vm3 = vcmask 255104  }
   0x5   :  { %v1399_v52 = vld [vmem:[%s2003_s0 + $0x2] sm:$0x3]  ;;  %v1400_v53 = vld [vmem:[%s2004_s1 + $0xc] sm:$0x3] }
   0x7   :  { %95 = vmatpush1.bf16.msra.mxu0 %v1671_v5  ;;  %256 = vmatpush1.bf16.msra.mxu1 %v1671_v5 }
   0x8   :  { %v62_v6 = vld [vmem:[#allocation2] sm:$0x3]  ;;  %414 = vmatprep.subr.bf16.mxu0 %v1651_v0  ;;  %575 = vmatprep.subr.bf16.mxu1 %v1651_v0 }
   0x9   :  { %v63_v7 = vpack.c.bf16 %v62_v6, %v62_v6  ;;  %v138_v8 = vld [vmem:[#allocation3] sm:$0x3]  ;;  %v167_v9 = vld [vmem:[#allocation4] sm:$0x3] }
   0xa   :  { %147 = vrot.lane.b32.xlu1 %v138_v8, %s1618_s23 }
   0xb   :  { %1389 = vmatmul.mubr.msk.bf16.vlgmr.msra.gmra.mrb[0].mxu0 %vm88_vm2, %v63_v7 }
   0xc   :  { %415 = vmatpush1.bf16.msra.mxu0 %v1658_v3  ;;  %446 = vmatprep.mubr.bf16.mxu0 %v1616_v1 }
   0xd   :  { %416 = vmatprep.subr.bf16.mxu0 %v1666_v4 }
   0xe   :  { %176 = vrot.lane.b32.xlu1 %v167_v9, %s1618_s23 }
  0x10   :  { %417 = vmatpush1.bf16.msra.mxu0 %v1671_v5 }
  0x11   :  { %736 = vmatprep.subr.bf16.mxu0 %v1651_v0 }
  0x7c   :  { %v148_v32 = vpop.permute.xlu1 %147 }
  0x80   :  { %v177_v34 = vpop.permute.xlu1 %176 }
  0xde   :  { %v126_v11 = vpop.f32.mrb[0].mxu0 }
  0xdf   :  { %v134_v13 = vadd.f32 %v133_v10, %v126_v11  ;;  %v128_v14 = vpop.f32.mrb[1].mxu0 }
  0xe0   :  { %v130_v15 = vpop.f32.mrb[2].mxu0  ;;  %v137_v16 = vadd.f32 %v1390_v12, %v128_v14 }
  0xe1   :  { %1488 = vtanh.f32 %v134_v13  ;;  %v131_v17 = vpop.f32.mrb[3].mxu0  ;;  %v1391_v20 = vmul.f32 -1.442695, %v134_v13 }
  0xe2   :  { %1490 = vtanh.f32 %v137_v16  ;;  %v1392_v21 = vmul.f32 -1.442695, %v137_v16 }
  0xe3   :  { %1492 = vpow2.f32 %v1391_v20 }
  0xe4   :  { %1494 = vpow2.f32 %v1392_v21 }
  0xeb   :  { %v1489_v18 = vpop.eup %1488 }
  0xec   :  { %152 = vrot.lane.b32.xlu0 %v1489_v18, %s1619_s28  ;;  %v1491_v19 = vpop.eup %1490 }
  0xed   :  { %v1493_v22 = vpop.eup %1492 }
  0xee   :  { %v142_v23 = vadd.f32 1.0, %v1493_v22  ;;  %v1495_v24 = vpop.eup %1494 }
  0xef   :  { %v171_v25 = vadd.f32 1.0, %v1495_v24 }
  0xf0   :  { %181 = vrot.lane.b32.xlu0 %v1491_v19, %s1619_s28  ;;  %1496 = vrcp.f32 %v142_v23 }
  0xf1   :  { %1498 = vrcp.f32 %v171_v25 }
  0xfa   :  { %v1497_v26 = vpop.eup %1496 }
  0xfb   :  { %v1499_v29 = vpop.eup %1498  ;;  %v150_v33 = vmul.f32 %v1497_v26, %v148_v32 }
  0xfc   :  { %v179_v37 = vmul.f32 %v1499_v29, %v177_v34 }
 0x15e   :  { %v153_v27 = vpop.permute.xlu0 %152 }
 0x15f   :  { %v155_v28 = vmul.f32 %v1497_v26, %v153_v27 }
 0x161   :  { %157 = vrot.lane.b32.xlu0 %v155_v28, %s1618_s23 }
 0x162   :  { %v182_v30 = vpop.permute.xlu0 %181 }
 0x163   :  { %v184_v31 = vmul.f32 %v1499_v29, %v182_v30 }
 0x165   :  { %186 = vrot.lane.b32.xlu1 %v184_v31, %s1618_s23 }
 0x1d3   :  { %v158_v35 = vpop.permute.xlu0 %157 }
 0x1d4   :  { %v160_v36 = vadd.f32 %v158_v35, %v150_v33 }
 0x1d6   :  { %1500 = vtanh.f32 %v160_v36 }
 0x1d7   :  { %v187_v38 = vpop.permute.xlu1 %186 }
 0x1d8   :  { %v189_v39 = vadd.f32 %v187_v38, %v179_v37  ;;  %v1410_v37 = vld [vmem:[%s2003_s0 + $0x4] sm:$0x3]  ;;  %v1411_v38 = vld [vmem:[%s2004_s1 + $0xa] sm:$0x3] }
 0x1da   :  { %1502 = vtanh.f32 %v189_v39 }
 0x1e0   :  { %v1501_v40 = vpop.eup %1500 }
 0x1e1   :  { %163 = vrot.lane.b32.xlu0 %v1501_v40, %s1620_s29 }
 0x1e4   :  { %v1503_v41 = vpop.eup %1502 }
 0x1e5   :  { %192 = vrot.lane.b32.xlu1 %v1503_v41, %s1620_s29 }
 0x253   :  { %v164_v42 = vpop.permute.xlu0 %163 }
 0x254   :  { %v166_v43 = vmul.f32 %v1497_v26, %v164_v42 }
 0x256   :  { %208 = vrot.lane.b32.xlu0 %v166_v43, %s1621_s30 }
 0x257   :  { %v193_v44 = vpop.permute.xlu1 %192 }
 0x258   :  { %v1703_v45 = vmul.f32 %v1499_v29, %v193_v44 }
 0x25a   :  { %213 = vrot.lane.b32.xlu1 %v1703_v45, %s1619_s28  ;;  %197 = vrot.lane.b32.xlu0 %v160_v36, %s1622_s5 }
 0x25e   :  { %203 = vrot.lane.b32.xlu1 %v189_v39, %s1622_s5 }
 0x2c8   :  { %v209_v46 = vpop.permute.xlu0 %208 }
 0x2c9   :  { %211 = vst.msk [vmem:[#allocation2] sm:$0x3] %vm59_vm1, %v209_v46  ;;  %218 = vst.msk [vmem:[%s2005_s3] sm:$0x3] %vm59_vm1, %v209_v46 }
 0x2cc   :  { %v214_v47 = vpop.permute.xlu1 %213  ;;  %v198_v48 = vpop.permute.xlu0 %197 }
 0x2cd   :  { %217 = vst.msk [vmem:[#allocation2] sm:$0x3] %vm216_vm3, %v214_v47 }
 0x2ce   :  { %201 = vst.msk [vmem:[#allocation3] sm:$0x3] %vm59_vm1, %v198_v48 }
 0x2d0   :  { %v204_v49 = vpop.permute.xlu1 %203 }
 0x2d1   :  { %206 = vst.msk [vmem:[#allocation4] sm:$0x3] %vm59_vm1, %v204_v49 }
 0x2d4   :  { %v224_v50 = vld [vmem:[#allocation2] sm:$0x3] }
 0x2d5   :  { %v225_v51 = vpack.c.bf16 %v224_v50, %v224_v50  ;;  %v300_v62 = vld [vmem:[#allocation3] sm:$0x3] }
 0x2d7   :  { %1398 = vmatmul.mubr.msk.bf16.vlgmr.msra.gmra.mrb[0].mxu1 %vm88_vm2, %v225_v51 }
 0x2d8   :  { %576 = vmatpush1.bf16.msra.mxu1 %v1658_v3  ;;  %607 = vmatprep.mubr.bf16.mxu1 %v1616_v1  ;;  %v329_v63 = vld [vmem:[#allocation4] sm:$0x3] }
 0x2d9   :  { %577 = vmatprep.subr.bf16.mxu1 %v1666_v4 }
 0x2dc   :  { %578 = vmatpush1.bf16.msra.mxu1 %v1671_v5 }
 0x2dd   :  { %897 = vmatprep.subr.bf16.mxu1 %v1651_v0 }
 0x3aa   :  { %v287_v54 = vpop.f32.mrb[0].mxu1 }
 0x3ab   :  { %v296_v55 = vadd.f32 %v1399_v52, %v287_v54  ;;  %v289_v56 = vpop.f32.mrb[1].mxu1 }
 0x3ac   :  { %v299_v57 = vadd.f32 %v1400_v53, %v289_v56  ;;  %v291_v58 = vpop.f32.mrb[2].mxu1 }
 0x3ad   :  { %1504 = vtanh.f32 %v296_v55  ;;  %v292_v59 = vpop.f32.mrb[3].mxu1  ;;  %v1401_v2 = vmul.f32 -1.442695, %v296_v55 }
 0x3ae   :  { %1506 = vtanh.f32 %v299_v57  ;;  %v1402_v6 = vmul.f32 -1.442695, %v299_v57 }
 0x3af   :  { %1508 = vpow2.f32 %v1401_v2 }
 0x3b0   :  { %1510 = vpow2.f32 %v1402_v6 }
 0x3b7   :  { %v1505_v60 = vpop.eup %1504 }
 0x3b8   :  { %v1507_v61 = vpop.eup %1506  ;;  %314 = vrot.lane.b32.xlu0 %v1505_v60, %s1619_s28 }
 0x3b9   :  { %343 = vrot.lane.b32.xlu1 %v1507_v61, %s1619_s28  ;;  %v1509_v7 = vpop.eup %1508 }
 0x3ba   :  { %v1511_v8 = vpop.eup %1510  ;;  %v304_v9 = vadd.f32 1.0, %v1509_v7 }
 0x3bb   :  { %v333_v10 = vadd.f32 1.0, %v1511_v8 }
 0x3bc   :  { %309 = vrot.lane.b32.xlu0 %v300_v62, %s1618_s23  ;;  %1512 = vrcp.f32 %v304_v9 }
 0x3bd   :  { %338 = vrot.lane.b32.xlu1 %v329_v63, %s1618_s23  ;;  %1514 = vrcp.f32 %v333_v10 }
 0x3c6   :  { %v1513_v11 = vpop.eup %1512 }
 0x3c7   :  { %v1515_v13 = vpop.eup %1514 }
 0x42a   :  { %v315_v12 = vpop.permute.xlu0 %314 }
 0x42b   :  { %v317_v14 = vmul.f32 %v1513_v11, %v315_v12  ;;  %v344_v15 = vpop.permute.xlu1 %343 }
 0x42c   :  { %v346_v16 = vmul.f32 %v1515_v13, %v344_v15 }
 0x42d   :  { %319 = vrot.lane.b32.xlu0 %v317_v14, %s1618_s23 }
 0x42e   :  { %348 = vrot.lane.b32.xlu1 %v346_v16, %s1618_s23  ;;  %v310_v17 = vpop.permute.xlu0 %309 }
 0x42f   :  { %v339_v18 = vpop.permute.xlu1 %338  ;;  %v312_v19 = vmul.f32 %v1513_v11, %v310_v17 }
 0x430   :  { %v341_v20 = vmul.f32 %v1515_v13, %v339_v18 }
 0x49f   :  { %v320_v21 = vpop.permute.xlu0 %319 }
 0x4a0   :  { %v322_v22 = vadd.f32 %v320_v21, %v312_v19  ;;  %v349_v23 = vpop.permute.xlu1 %348 }
 0x4a1   :  { %v351_v24 = vadd.f32 %v349_v23, %v341_v20  ;;  %v1422_v23 = vld [vmem:[%s2004_s1 + $0x8] sm:$0x3] }
 0x4a2   :  { %1516 = vtanh.f32 %v322_v22 }
 0x4a3   :  { %1518 = vtanh.f32 %v351_v24 }
 0x4ac   :  { %v1517_v25 = vpop.eup %1516 }
 0x4ad   :  { %v1519_v26 = vpop.eup %1518  ;;  %325 = vrot.lane.b32.xlu0 %v1517_v25, %s1620_s29 }
 0x4ae   :  { %354 = vrot.lane.b32.xlu1 %v1519_v26, %s1620_s29 }
 0x51f   :  { %v326_v27 = vpop.permute.xlu0 %325 }
 0x520   :  { %v328_v28 = vmul.f32 %v1513_v11, %v326_v27  ;;  %v355_v29 = vpop.permute.xlu1 %354 }
 0x521   :  { %v1737_v30 = vmul.f32 %v1515_v13, %v355_v29 }
 0x522   :  { %369 = vrot.lane.b32.xlu0 %v328_v28, %s1621_s30 }
 0x523   :  { %374 = vrot.lane.b32.xlu1 %v1737_v30, %s1619_s28 }
 0x526   :  { %359 = vrot.lane.b32.xlu0 %v322_v22, %s1622_s5  ;;  %v1421_v22 = vld [vmem:[%s2003_s0 + $0x6] sm:$0x3] }
 0x527   :  { %364 = vrot.lane.b32.xlu1 %v351_v24, %s1622_s5 }
 0x594   :  { %v370_v31 = vpop.permute.xlu0 %369 }
 0x595   :  { %372 = vst.msk [vmem:[#allocation2] sm:$0x3] %vm59_vm1, %v370_v31  ;;  %1403 = vst.msk [vmem:[%s2005_s3 + $0x2] sm:$0x3] %vm59_vm1, %v370_v31  ;;  %v375_v32 = vpop.permute.xlu1 %374 }
 0x596   :  { %377 = vst.msk [vmem:[#allocation2] sm:$0x3] %vm216_vm3, %v375_v32 }
 0x598   :  { %v360_v33 = vpop.permute.xlu0 %359 }
 0x599   :  { %362 = vst.msk [vmem:[#allocation3] sm:$0x3] %vm59_vm1, %v360_v33  ;;  %v365_v34 = vpop.permute.xlu1 %364 }
 0x59a   :  { %367 = vst.msk [vmem:[#allocation4] sm:$0x3] %vm59_vm1, %v365_v34 }
 0x59d   :  { %v385_v35 = vld [vmem:[#allocation2] sm:$0x3] }
 0x59e   :  { %v386_v36 = vpack.c.bf16 %v385_v35, %v385_v35 }
 0x5a0   :  { %1409 = vmatmul.mubr.msk.bf16.vlgmr.msra.gmra.mrb[4].mxu0 %vm88_vm2, %v386_v36 }
 0x5a1   :  { %737 = vmatpush1.bf16.msra.mxu0 %v1658_v3  ;;  %768 = vmatprep.mubr.bf16.mxu0 %v1616_v1  ;;  %v490_v48 = vld [vmem:[#allocation4] sm:$0x3] }
 0x5a2   :  { %738 = vmatprep.subr.bf16.mxu0 %v1666_v4 }
 0x5a5   :  { %739 = vmatpush1.bf16.msra.mxu0 %v1671_v5 }
 0x5a6   :  { %1058 = vmatprep.subr.bf16.mxu0 %v1651_v0  ;;  %v461_v0 = vld [vmem:[#allocation3] sm:$0x3] }
 0x673   :  { %v448_v39 = vpop.f32.mrb[4].mxu0 }
 0x674   :  { %v457_v40 = vadd.f32 %v1410_v37, %v448_v39  ;;  %v450_v41 = vpop.f32.mrb[5].mxu0 }
 0x675   :  { %v460_v42 = vadd.f32 %v1411_v38, %v450_v41  ;;  %v452_v43 = vpop.f32.mrb[6].mxu0 }
 0x676   :  { %1520 = vtanh.f32 %v457_v40  ;;  %v453_v44 = vpop.f32.mrb[7].mxu0  ;;  %v1412_v49 = vmul.f32 -1.442695, %v457_v40 }
 0x677   :  { %1522 = vtanh.f32 %v460_v42  ;;  %v1413_v50 = vmul.f32 -1.442695, %v460_v42 }
 0x678   :  { %1524 = vpow2.f32 %v1412_v49 }
 0x679   :  { %1526 = vpow2.f32 %v1413_v50 }
 0x680   :  { %v1521_v46 = vpop.eup %1520 }
 0x681   :  { %v1523_v47 = vpop.eup %1522  ;;  %475 = vrot.lane.b32.xlu0 %v1521_v46, %s1619_s28 }
 0x682   :  { %504 = vrot.lane.b32.xlu1 %v1523_v47, %s1619_s28  ;;  %v1525_v51 = vpop.eup %1524 }
 0x683   :  { %v1527_v52 = vpop.eup %1526  ;;  %v465_v53 = vadd.f32 1.0, %v1525_v51 }
 0x684   :  { %v494_v54 = vadd.f32 1.0, %v1527_v52 }
 0x685   :  { %470 = vrot.lane.b32.xlu0 %v461_v0, %s1618_s23  ;;  %1528 = vrcp.f32 %v465_v53 }
 0x686   :  { %499 = vrot.lane.b32.xlu1 %v490_v48, %s1618_s23  ;;  %1530 = vrcp.f32 %v494_v54 }
 0x68f   :  { %v1529_v55 = vpop.eup %1528 }
 0x690   :  { %v1531_v57 = vpop.eup %1530 }
 0x6f3   :  { %v476_v56 = vpop.permute.xlu0 %475 }
 0x6f4   :  { %v478_v58 = vmul.f32 %v1529_v55, %v476_v56  ;;  %v505_v59 = vpop.permute.xlu1 %504 }
 0x6f5   :  { %v507_v60 = vmul.f32 %v1531_v57, %v505_v59 }
 0x6f6   :  { %480 = vrot.lane.b32.xlu0 %v478_v58, %s1618_s23 }
 0x6f7   :  { %509 = vrot.lane.b32.xlu1 %v507_v60, %s1618_s23  ;;  %v471_v61 = vpop.permute.xlu0 %470 }
 0x6f8   :  { %v500_v62 = vpop.permute.xlu1 %499  ;;  %v473_v63 = vmul.f32 %v1529_v55, %v471_v61 }
 0x6f9   :  { %v502_v2 = vmul.f32 %v1531_v57, %v500_v62 }
 0x768   :  { %v481_v6 = vpop.permute.xlu0 %480 }
 0x769   :  { %v483_v7 = vadd.f32 %v481_v6, %v473_v63  ;;  %v510_v8 = vpop.permute.xlu1 %509 }
 0x76a   :  { %v512_v9 = vadd.f32 %v510_v8, %v502_v2  ;;  %v1432_v8 = vld [vmem:[%s2003_s0 + $0x8] sm:$0x3] }
 0x76b   :  { %1532 = vtanh.f32 %v483_v7 }
 0x76c   :  { %1534 = vtanh.f32 %v512_v9 }
 0x775   :  { %v1533_v10 = vpop.eup %1532 }
 0x776   :  { %v1535_v11 = vpop.eup %1534  ;;  %486 = vrot.lane.b32.xlu0 %v1533_v10, %s1620_s29 }
 0x777   :  { %515 = vrot.lane.b32.xlu1 %v1535_v11, %s1620_s29 }
 0x7e8   :  { %v487_v12 = vpop.permute.xlu0 %486 }
 0x7e9   :  { %v489_v13 = vmul.f32 %v1529_v55, %v487_v12  ;;  %v516_v14 = vpop.permute.xlu1 %515 }
 0x7ea   :  { %v1772_v15 = vmul.f32 %v1531_v57, %v516_v14 }
 0x7eb   :  { %530 = vrot.lane.b32.xlu0 %v489_v13, %s1621_s30 }
 0x7ec   :  { %535 = vrot.lane.b32.xlu1 %v1772_v15, %s1619_s28 }
 0x7ef   :  { %520 = vrot.lane.b32.xlu0 %v483_v7, %s1622_s5 }
 0x7f0   :  { %525 = vrot.lane.b32.xlu1 %v512_v9, %s1622_s5  ;;  %v1433_v9 = vld [vmem:[%s2004_s1 + $0x6] sm:$0x3] }
 0x85d   :  { %v531_v16 = vpop.permute.xlu0 %530 }
 0x85e   :  { %533 = vst.msk [vmem:[#allocation2] sm:$0x3] %vm59_vm1, %v531_v16  ;;  %1414 = vst.msk [vmem:[%s2005_s3 + $0x4] sm:$0x3] %vm59_vm1, %v531_v16  ;;  %v536_v17 = vpop.permute.xlu1 %535 }
 0x85f   :  { %538 = vst.msk [vmem:[#allocation2] sm:$0x3] %vm216_vm3, %v536_v17 }
 0x861   :  { %v521_v18 = vpop.permute.xlu0 %520 }
 0x862   :  { %523 = vst.msk [vmem:[#allocation3] sm:$0x3] %vm59_vm1, %v521_v18  ;;  %v526_v19 = vpop.permute.xlu1 %525 }
 0x863   :  { %528 = vst.msk [vmem:[#allocation4] sm:$0x3] %vm59_vm1, %v526_v19 }
 0x866   :  { %v546_v20 = vld [vmem:[#allocation2] sm:$0x3] }
 0x867   :  { %v547_v21 = vpack.c.bf16 %v546_v20, %v546_v20 }
 0x869   :  { %1420 = vmatmul.mubr.msk.bf16.vlgmr.msra.gmra.mrb[4].mxu1 %vm88_vm2, %v547_v21  ;;  %v622_v33 = vld [vmem:[#allocation3] sm:$0x3] }
 0x86a   :  { %898 = vmatpush1.bf16.msra.mxu1 %v1658_v3  ;;  %929 = vmatprep.mubr.bf16.mxu1 %v1616_v1  ;;  %v651_v34 = vld [vmem:[#allocation4] sm:$0x3] }
 0x86b   :  { %899 = vmatprep.subr.bf16.mxu1 %v1666_v4 }
 0x86e   :  { %900 = vmatpush1.bf16.msra.mxu1 %v1671_v5 }
 0x93c   :  { %v609_v24 = vpop.f32.mrb[4].mxu1 }
 0x93d   :  { %v618_v25 = vadd.f32 %v1421_v22, %v609_v24  ;;  %v611_v26 = vpop.f32.mrb[5].mxu1 }
 0x93e   :  { %v621_v27 = vadd.f32 %v1422_v23, %v611_v26  ;;  %v613_v28 = vpop.f32.mrb[6].mxu1 }
 0x93f   :  { %1536 = vtanh.f32 %v618_v25  ;;  %v614_v29 = vpop.f32.mrb[7].mxu1  ;;  %v1423_v35 = vmul.f32 -1.442695, %v618_v25 }
 0x940   :  { %1538 = vtanh.f32 %v621_v27  ;;  %v1424_v36 = vmul.f32 -1.442695, %v621_v27 }
 0x941   :  { %1540 = vpow2.f32 %v1423_v35 }
 0x942   :  { %1542 = vpow2.f32 %v1424_v36 }
 0x949   :  { %v1537_v31 = vpop.eup %1536 }
 0x94a   :  { %v1539_v32 = vpop.eup %1538  ;;  %636 = vrot.lane.b32.xlu0 %v1537_v31, %s1619_s28 }
 0x94b   :  { %665 = vrot.lane.b32.xlu1 %v1539_v32, %s1619_s28  ;;  %v1541_v37 = vpop.eup %1540 }
 0x94c   :  { %v1543_v38 = vpop.eup %1542  ;;  %v626_v39 = vadd.f32 1.0, %v1541_v37 }
 0x94d   :  { %v655_v40 = vadd.f32 1.0, %v1543_v38 }
 0x94e   :  { %631 = vrot.lane.b32.xlu0 %v622_v33, %s1618_s23  ;;  %1544 = vrcp.f32 %v626_v39 }
 0x94f   :  { %660 = vrot.lane.b32.xlu1 %v651_v34, %s1618_s23  ;;  %1546 = vrcp.f32 %v655_v40 }
 0x958   :  { %v1545_v41 = vpop.eup %1544 }
 0x959   :  { %v1547_v43 = vpop.eup %1546 }
 0x9bc   :  { %v637_v42 = vpop.permute.xlu0 %636 }
 0x9bd   :  { %v639_v44 = vmul.f32 %v1545_v41, %v637_v42  ;;  %v666_v46 = vpop.permute.xlu1 %665 }
 0x9be   :  { %v668_v47 = vmul.f32 %v1547_v43, %v666_v46 }
 0x9bf   :  { %641 = vrot.lane.b32.xlu0 %v639_v44, %s1618_s23 }
 0x9c0   :  { %670 = vrot.lane.b32.xlu1 %v668_v47, %s1618_s23  ;;  %v632_v0 = vpop.permute.xlu0 %631 }
 0x9c1   :  { %v661_v48 = vpop.permute.xlu1 %660  ;;  %v634_v49 = vmul.f32 %v1545_v41, %v632_v0 }
 0x9c2   :  { %v663_v50 = vmul.f32 %v1547_v43, %v661_v48 }
 0xa31   :  { %v642_v51 = vpop.permute.xlu0 %641 }
 0xa32   :  { %v644_v52 = vadd.f32 %v642_v51, %v634_v49  ;;  %v671_v53 = vpop.permute.xlu1 %670  ;;  %v1443_v51 = vld [vmem:[%s2003_s0 + $0xa] sm:$0x3] }
 0xa33   :  { %v673_v54 = vadd.f32 %v671_v53, %v663_v50 }
 0xa34   :  { %1548 = vtanh.f32 %v644_v52 }
 0xa35   :  { %1550 = vtanh.f32 %v673_v54 }
 0xa3e   :  { %v1549_v55 = vpop.eup %1548 }
 0xa3f   :  { %v1551_v56 = vpop.eup %1550  ;;  %647 = vrot.lane.b32.xlu0 %v1549_v55, %s1620_s29 }
 0xa40   :  { %676 = vrot.lane.b32.xlu1 %v1551_v56, %s1620_s29 }
 0xab1   :  { %v648_v57 = vpop.permute.xlu0 %647 }
 0xab2   :  { %v650_v58 = vmul.f32 %v1545_v41, %v648_v57  ;;  %v677_v59 = vpop.permute.xlu1 %676 }
 0xab3   :  { %v1806_v60 = vmul.f32 %v1547_v43, %v677_v59 }
 0xab4   :  { %691 = vrot.lane.b32.xlu0 %v650_v58, %s1621_s30 }
 0xab5   :  { %696 = vrot.lane.b32.xlu1 %v1806_v60, %s1619_s28 }
 0xab8   :  { %681 = vrot.lane.b32.xlu0 %v644_v52, %s1622_s5  ;;  %v1444_v52 = vld [vmem:[%s2004_s1 + $0x4] sm:$0x3] }
 0xab9   :  { %686 = vrot.lane.b32.xlu1 %v673_v54, %s1622_s5 }
 0xb26   :  { %v692_v61 = vpop.permute.xlu0 %691 }
 0xb27   :  { %694 = vst.msk [vmem:[#allocation2] sm:$0x3] %vm59_vm1, %v692_v61  ;;  %1425 = vst.msk [vmem:[%s2005_s3 + $0x6] sm:$0x3] %vm59_vm1, %v692_v61  ;;  %v697_v62 = vpop.permute.xlu1 %696 }
 0xb28   :  { %699 = vst.msk [vmem:[#allocation2] sm:$0x3] %vm216_vm3, %v697_v62 }
 0xb2a   :  { %v682_v63 = vpop.permute.xlu0 %681 }
 0xb2b   :  { %684 = vst.msk [vmem:[#allocation3] sm:$0x3] %vm59_vm1, %v682_v63  ;;  %v687_v2 = vpop.permute.xlu1 %686 }
 0xb2c   :  { %689 = vst.msk [vmem:[#allocation4] sm:$0x3] %vm59_vm1, %v687_v2 }
 0xb2f   :  { %v707_v6 = vld [vmem:[#allocation2] sm:$0x3] }
 0xb30   :  { %v708_v7 = vpack.c.bf16 %v707_v6, %v707_v6 }
 0xb32   :  { %1431 = vmatmul.mubr.msk.bf16.vlgmr.msra.gmra.mrb[8].mxu0 %vm88_vm2, %v708_v7 }
 0xb33   :  { %1059 = vmatpush1.bf16.msra.mxu0 %v1658_v3  ;;  %1090 = vmatprep.mubr.bf16.mxu0 %v1616_v1  ;;  %v812_v17 = vld [vmem:[#allocation4] sm:$0x3] }
 0xb34   :  { %1060 = vmatprep.subr.bf16.mxu0 %v1666_v4 }
 0xb37   :  { %1061 = vmatpush1.bf16.msra.mxu0 %v1671_v5  ;;  %v783_v5 = vld [vmem:[#allocation3] sm:$0x3] }
 0xc05   :  { %v770_v10 = vpop.f32.mrb[8].mxu0 }
 0xc06   :  { %v779_v11 = vadd.f32 %v1432_v8, %v770_v10  ;;  %v772_v12 = vpop.f32.mrb[9].mxu0 }
 0xc07   :  { %v782_v13 = vadd.f32 %v1433_v9, %v772_v12  ;;  %v774_v14 = vpop.f32.mrb[10].mxu0 }
 0xc08   :  { %1552 = vtanh.f32 %v779_v11  ;;  %v775_v3 = vpop.f32.mrb[11].mxu0  ;;  %v1434_v18 = vmul.f32 -1.442695, %v779_v11 }
 0xc09   :  { %1554 = vtanh.f32 %v782_v13  ;;  %v1435_v19 = vmul.f32 -1.442695, %v782_v13 }
 0xc0a   :  { %1556 = vpow2.f32 %v1434_v18 }
 0xc0b   :  { %1558 = vpow2.f32 %v1435_v19 }
 0xc12   :  { %v1553_v16 = vpop.eup %1552 }
 0xc13   :  { %v1555_v4 = vpop.eup %1554  ;;  %797 = vrot.lane.b32.xlu0 %v1553_v16, %s1619_s28 }
 0xc14   :  { %826 = vrot.lane.b32.xlu1 %v1555_v4, %s1619_s28  ;;  %v1557_v20 = vpop.eup %1556 }
 0xc15   :  { %v1559_v21 = vpop.eup %1558  ;;  %v787_v22 = vadd.f32 1.0, %v1557_v20 }
 0xc16   :  { %v816_v23 = vadd.f32 1.0, %v1559_v21 }
 0xc17   :  { %792 = vrot.lane.b32.xlu0 %v783_v5, %s1618_s23  ;;  %1560 = vrcp.f32 %v787_v22 }
 0xc18   :  { %821 = vrot.lane.b32.xlu1 %v812_v17, %s1618_s23  ;;  %1562 = vrcp.f32 %v816_v23 }
 0xc21   :  { %v1561_v24 = vpop.eup %1560 }
 0xc22   :  { %v1563_v26 = vpop.eup %1562 }
 0xc85   :  { %v798_v25 = vpop.permute.xlu0 %797 }
 0xc86   :  { %v800_v27 = vmul.f32 %v1561_v24, %v798_v25  ;;  %v827_v28 = vpop.permute.xlu1 %826 }
 0xc87   :  { %v829_v29 = vmul.f32 %v1563_v26, %v827_v28 }
 0xc88   :  { %802 = vrot.lane.b32.xlu0 %v800_v27, %s1618_s23 }
 0xc89   :  { %831 = vrot.lane.b32.xlu1 %v829_v29, %s1618_s23  ;;  %v793_v31 = vpop.permute.xlu0 %792 }
 0xc8a   :  { %v822_v32 = vpop.permute.xlu1 %821  ;;  %v795_v33 = vmul.f32 %v1561_v24, %v793_v31 }
 0xc8b   :  { %v824_v34 = vmul.f32 %v1563_v26, %v822_v32 }
 0xcfa   :  { %v803_v35 = vpop.permute.xlu0 %802 }
 0xcfb   :  { %v805_v36 = vadd.f32 %v803_v35, %v795_v33  ;;  %v832_v37 = vpop.permute.xlu1 %831  ;;  %v1454_v35 = vld [vmem:[%s2003_s0 + $0xc] sm:$0x3] }
 0xcfc   :  { %v834_v38 = vadd.f32 %v832_v37, %v824_v34 }
 0xcfd   :  { %1564 = vtanh.f32 %v805_v36 }
 0xcfe   :  { %1566 = vtanh.f32 %v834_v38 }
 0xd07   :  { %v1565_v39 = vpop.eup %1564 }
 0xd08   :  { %v1567_v40 = vpop.eup %1566  ;;  %808 = vrot.lane.b32.xlu0 %v1565_v39, %s1620_s29 }
 0xd09   :  { %837 = vrot.lane.b32.xlu1 %v1567_v40, %s1620_s29 }
 0xd7a   :  { %v809_v41 = vpop.permute.xlu0 %808 }
 0xd7b   :  { %v811_v42 = vmul.f32 %v1561_v24, %v809_v41  ;;  %v838_v43 = vpop.permute.xlu1 %837 }
 0xd7c   :  { %v1840_v44 = vmul.f32 %v1563_v26, %v838_v43 }
 0xd7d   :  { %852 = vrot.lane.b32.xlu0 %v811_v42, %s1621_s30 }
 0xd7e   :  { %857 = vrot.lane.b32.xlu1 %v1840_v44, %s1619_s28 }
 0xd81   :  { %842 = vrot.lane.b32.xlu0 %v805_v36, %s1622_s5  ;;  %v1455_v36 = vld [vmem:[%s2004_s1 + $0x2] sm:$0x3] }
 0xd82   :  { %847 = vrot.lane.b32.xlu1 %v834_v38, %s1622_s5 }
 0xdef   :  { %v853_v46 = vpop.permute.xlu0 %852 }
 0xdf0   :  { %855 = vst.msk [vmem:[#allocation2] sm:$0x3] %vm59_vm1, %v853_v46  ;;  %1436 = vst.msk [vmem:[%s2005_s3 + $0x8] sm:$0x3] %vm59_vm1, %v853_v46  ;;  %v858_v47 = vpop.permute.xlu1 %857 }
 0xdf1   :  { %860 = vst.msk [vmem:[#allocation2] sm:$0x3] %vm216_vm3, %v858_v47 }
 0xdf3   :  { %v843_v0 = vpop.permute.xlu0 %842 }
 0xdf4   :  { %845 = vst.msk [vmem:[#allocation3] sm:$0x3] %vm59_vm1, %v843_v0  ;;  %v848_v48 = vpop.permute.xlu1 %847 }
 0xdf5   :  { %850 = vst.msk [vmem:[#allocation4] sm:$0x3] %vm59_vm1, %v848_v48 }
 0xdf8   :  { %v868_v49 = vld [vmem:[#allocation2] sm:$0x3] }
 0xdf9   :  { %v869_v50 = vpack.c.bf16 %v868_v49, %v868_v49 }
 0xdfb   :  { %1442 = vmatmul.mubr.msk.bf16.vlgmr.msra.gmra.mrb[8].mxu1 %vm88_vm2, %v869_v50 }
 0xdfc   :  { %1251 = vmatprep.mubr.bf16.mxu1 %v1616_v1  ;;  %v944_v1 = vld [vmem:[#allocation3] sm:$0x3]  ;;  %v973_v62 = vld [vmem:[#allocation4] sm:$0x3] }
 0xece   :  { %v931_v53 = vpop.f32.mrb[8].mxu1 }
 0xecf   :  { %v940_v54 = vadd.f32 %v1443_v51, %v931_v53  ;;  %v933_v55 = vpop.f32.mrb[9].mxu1 }
 0xed0   :  { %v943_v56 = vadd.f32 %v1444_v52, %v933_v55  ;;  %v935_v57 = vpop.f32.mrb[10].mxu1 }
 0xed1   :  { %1568 = vtanh.f32 %v940_v54  ;;  %v936_v58 = vpop.f32.mrb[11].mxu1  ;;  %v1445_v63 = vmul.f32 -1.442695, %v940_v54 }
 0xed2   :  { %1570 = vtanh.f32 %v943_v56  ;;  %v1446_v2 = vmul.f32 -1.442695, %v943_v56 }
 0xed3   :  { %1572 = vpow2.f32 %v1445_v63 }
 0xed4   :  { %1574 = vpow2.f32 %v1446_v2 }
 0xedb   :  { %v1569_v59 = vpop.eup %1568 }
 0xedc   :  { %v1571_v61 = vpop.eup %1570  ;;  %958 = vrot.lane.b32.xlu0 %v1569_v59, %s1619_s28 }
 0xedd   :  { %987 = vrot.lane.b32.xlu1 %v1571_v61, %s1619_s28  ;;  %v1573_v6 = vpop.eup %1572 }
 0xede   :  { %v1575_v7 = vpop.eup %1574  ;;  %v948_v8 = vadd.f32 1.0, %v1573_v6 }
 0xedf   :  { %v977_v9 = vadd.f32 1.0, %v1575_v7 }
 0xee0   :  { %953 = vrot.lane.b32.xlu0 %v944_v1, %s1618_s23  ;;  %1576 = vrcp.f32 %v948_v8 }
 0xee1   :  { %982 = vrot.lane.b32.xlu1 %v973_v62, %s1618_s23  ;;  %1578 = vrcp.f32 %v977_v9 }
 0xeea   :  { %v1577_v10 = vpop.eup %1576 }
 0xeeb   :  { %v1579_v12 = vpop.eup %1578 }
 0xf4e   :  { %v959_v11 = vpop.permute.xlu0 %958 }
 0xf4f   :  { %v961_v13 = vmul.f32 %v1577_v10, %v959_v11  ;;  %v988_v14 = vpop.permute.xlu1 %987  ;;  %v1482_v11 = vld [vmem:[%s2002_s2] ss:$8 sps:$4 sm:$0xff]  }
 0xf50   :  { %v990_v3 = vmul.f32 %v1579_v12, %v988_v14  ;;  %v1487_v14 = vld [vmem:[%s2002_s2 + $0x14] ss:$8 sps:$4 sm:$0xff]  }
 0xf51   :  { %963 = vrot.lane.b32.xlu0 %v961_v13, %s1618_s23  ;;  %v1485_v13 = vld [vmem:[%s2002_s2 + $0x10] ss:$8 sps:$4 sm:$0xff]  }
 0xf52   :  { %992 = vrot.lane.b32.xlu1 %v990_v3, %s1618_s23  ;;  %v954_v16 = vpop.permute.xlu0 %953 }
 0xf53   :  { %v983_v4 = vpop.permute.xlu1 %982  ;;  %v956_v5 = vmul.f32 %v1577_v10, %v954_v16 }
 0xf54   :  { %v985_v17 = vmul.f32 %v1579_v12, %v983_v4 }
 0xfc3   :  { %v964_v18 = vpop.permute.xlu0 %963 }
 0xfc4   :  { %v966_v19 = vadd.f32 %v964_v18, %v956_v5  ;;  %v993_v20 = vpop.permute.xlu1 %992 }
 0xfc5   :  { %v995_v21 = vadd.f32 %v993_v20, %v985_v17 }
 0xfc6   :  { %1580 = vtanh.f32 %v966_v19 }
 0xfc7   :  { %1582 = vtanh.f32 %v995_v21 }
 0xfd0   :  { %v1581_v22 = vpop.eup %1580 }
 0xfd1   :  { %v1583_v23 = vpop.eup %1582  ;;  %969 = vrot.lane.b32.xlu0 %v1581_v22, %s1620_s29 }
 0xfd2   :  { %998 = vrot.lane.b32.xlu1 %v1583_v23, %s1620_s29  ;;  %v1465_v23 = vld [vmem:[%s2003_s0 + $0xe] sm:$0x3] }
0x1043   :  { %v970_v24 = vpop.permute.xlu0 %969 }
0x1044   :  { %v972_v25 = vmul.f32 %v1577_v10, %v970_v24  ;;  %v999_v26 = vpop.permute.xlu1 %998  ;;  %v1263_v24 = vld [vmem:[%s2004_s1] sm:$0x3] }
0x1045   :  { %v1871_v27 = vmul.f32 %v1579_v12, %v999_v26  ;;  %v1484_v12 = vld [vmem:[%s2002_s2 + $0x4] ss:$8 sps:$4 sm:$0xff]  }
0x1046   :  { %1013 = vrot.lane.b32.xlu0 %v972_v25, %s1621_s30  ;;  %1219 = vmatprep.subr.bf16.mxu1 %v1484_v12 }
0x1047   :  { %1018 = vrot.lane.b32.xlu1 %v1871_v27, %s1619_s28  ;;  %1220 = vmatpush1.bf16.msra.mxu1 %v1482_v11 }
0x1048   :  { %1221 = vmatprep.subr.bf16.mxu1 %v1487_v14 }
0x104a   :  { %1003 = vrot.lane.b32.xlu0 %v966_v19, %s1622_s5 }
0x104b   :  { %1008 = vrot.lane.b32.xlu1 %v995_v21, %s1622_s5  ;;  %1222 = vmatpush1.bf16.msra.mxu1 %v1485_v13 }
0x10b8   :  { %v1014_v28 = vpop.permute.xlu0 %1013 }
0x10b9   :  { %1016 = vst.msk [vmem:[#allocation2] sm:$0x3] %vm59_vm1, %v1014_v28  ;;  %1447 = vst.msk [vmem:[%s2005_s3 + $0xa] sm:$0x3] %vm59_vm1, %v1014_v28  ;;  %v1019_v29 = vpop.permute.xlu1 %1018 }
0x10ba   :  { %1021 = vst.msk [vmem:[#allocation2] sm:$0x3] %vm216_vm3, %v1019_v29 }
0x10bc   :  { %v1004_v31 = vpop.permute.xlu0 %1003 }
0x10bd   :  { %1006 = vst.msk [vmem:[#allocation3] sm:$0x3] %vm59_vm1, %v1004_v31  ;;  %v1009_v32 = vpop.permute.xlu1 %1008 }
0x10be   :  { %1011 = vst.msk [vmem:[#allocation4] sm:$0x3] %vm59_vm1, %v1009_v32 }
0x10c1   :  { %v1029_v33 = vld [vmem:[#allocation2] sm:$0x3] }
0x10c2   :  { %v1030_v34 = vpack.c.bf16 %v1029_v33, %v1029_v33 }
0x10c4   :  { %1453 = vmatmul.mubr.msk.bf16.vlgmr.msra.gmra.mrb[12].mxu0 %vm88_vm2, %v1030_v34  ;;  %v1105_v47 = vld [vmem:[#allocation3] sm:$0x3] }
0x10c5   :  { %v1134_v0 = vld [vmem:[#allocation4] sm:$0x3] }
0x1197   :  { %v1092_v37 = vpop.f32.mrb[12].mxu0 }
0x1198   :  { %v1101_v38 = vadd.f32 %v1454_v35, %v1092_v37  ;;  %v1094_v39 = vpop.f32.mrb[13].mxu0 }
0x1199   :  { %v1104_v40 = vadd.f32 %v1455_v36, %v1094_v39  ;;  %v1096_v41 = vpop.f32.mrb[14].mxu0 }
0x119a   :  { %1584 = vtanh.f32 %v1101_v38  ;;  %v1097_v42 = vpop.f32.mrb[15].mxu0  ;;  %v1456_v48 = vmul.f32 -1.442695, %v1101_v38 }
0x119b   :  { %1586 = vtanh.f32 %v1104_v40  ;;  %v1457_v49 = vmul.f32 -1.442695, %v1104_v40 }
0x119c   :  { %1588 = vpow2.f32 %v1456_v48 }
0x119d   :  { %1590 = vpow2.f32 %v1457_v49 }
0x11a4   :  { %v1585_v43 = vpop.eup %1584 }
0x11a5   :  { %v1587_v46 = vpop.eup %1586  ;;  %1119 = vrot.lane.b32.xlu0 %v1585_v43, %s1619_s28 }
0x11a6   :  { %1148 = vrot.lane.b32.xlu1 %v1587_v46, %s1619_s28  ;;  %v1589_v50 = vpop.eup %1588 }
0x11a7   :  { %v1591_v51 = vpop.eup %1590  ;;  %v1109_v52 = vadd.f32 1.0, %v1589_v50 }
0x11a8   :  { %v1138_v53 = vadd.f32 1.0, %v1591_v51 }
0x11a9   :  { %1114 = vrot.lane.b32.xlu0 %v1105_v47, %s1618_s23  ;;  %1592 = vrcp.f32 %v1109_v52 }
0x11aa   :  { %1143 = vrot.lane.b32.xlu1 %v1134_v0, %s1618_s23  ;;  %1594 = vrcp.f32 %v1138_v53 }
0x11b3   :  { %v1593_v54 = vpop.eup %1592 }
0x11b4   :  { %v1595_v56 = vpop.eup %1594 }
0x1217   :  { %v1120_v55 = vpop.permute.xlu0 %1119 }
0x1218   :  { %v1122_v57 = vmul.f32 %v1593_v54, %v1120_v55  ;;  %v1149_v58 = vpop.permute.xlu1 %1148 }
0x1219   :  { %v1151_v59 = vmul.f32 %v1595_v56, %v1149_v58 }
0x121a   :  { %1124 = vrot.lane.b32.xlu0 %v1122_v57, %s1618_s23 }
0x121b   :  { %1153 = vrot.lane.b32.xlu1 %v1151_v59, %s1618_s23  ;;  %v1115_v61 = vpop.permute.xlu0 %1114 }
0x121c   :  { %v1144_v1 = vpop.permute.xlu1 %1143  ;;  %v1117_v62 = vmul.f32 %v1593_v54, %v1115_v61 }
0x121d   :  { %v1146_v63 = vmul.f32 %v1595_v56, %v1144_v1 }
0x128c   :  { %v1125_v2 = vpop.permute.xlu0 %1124 }
0x128d   :  { %v1127_v6 = vadd.f32 %v1125_v2, %v1117_v62  ;;  %v1154_v7 = vpop.permute.xlu1 %1153 }
0x128e   :  { %v1156_v8 = vadd.f32 %v1154_v7, %v1146_v63 }
0x128f   :  { %1596 = vtanh.f32 %v1127_v6 }
0x1290   :  { %1598 = vtanh.f32 %v1156_v8 }
0x1299   :  { %v1597_v9 = vpop.eup %1596 }
0x129a   :  { %v1599_v10 = vpop.eup %1598  ;;  %1130 = vrot.lane.b32.xlu0 %v1597_v9, %s1620_s29 }
0x129b   :  { %1159 = vrot.lane.b32.xlu1 %v1599_v10, %s1620_s29 }
0x130c   :  { %v1131_v3 = vpop.permute.xlu0 %1130 }
0x130d   :  { %v1133_v16 = vmul.f32 %v1593_v54, %v1131_v3  ;;  %v1160_v4 = vpop.permute.xlu1 %1159 }
0x130e   :  { %v1913_v5 = vmul.f32 %v1595_v56, %v1160_v4 }
0x130f   :  { %1174 = vrot.lane.b32.xlu0 %v1133_v16, %s1621_s30 }
0x1310   :  { %1179 = vrot.lane.b32.xlu1 %v1913_v5, %s1619_s28 }
0x1313   :  { %1164 = vrot.lane.b32.xlu0 %v1127_v6, %s1622_s5 }
0x1314   :  { %1169 = vrot.lane.b32.xlu1 %v1156_v8, %s1622_s5 }
0x1381   :  { %v1175_v17 = vpop.permute.xlu0 %1174 }
0x1382   :  { %1177 = vst.msk [vmem:[#allocation2] sm:$0x3] %vm59_vm1, %v1175_v17  ;;  %1458 = vst.msk [vmem:[%s2005_s3 + $0xc] sm:$0x3] %vm59_vm1, %v1175_v17  ;;  %v1180_v18 = vpop.permute.xlu1 %1179 }
0x1383   :  { %1182 = vst.msk [vmem:[#allocation2] sm:$0x3] %vm216_vm3, %v1180_v18 }
0x1385   :  { %v1165_v19 = vpop.permute.xlu0 %1164 }
0x1386   :  { %1167 = vst.msk [vmem:[#allocation3] sm:$0x3] %vm59_vm1, %v1165_v19  ;;  %v1170_v20 = vpop.permute.xlu1 %1169 }
0x1387   :  { %1172 = vst.msk [vmem:[#allocation4] sm:$0x3] %vm59_vm1, %v1170_v20 }
0x138a   :  { %v1190_v21 = vld [vmem:[#allocation2] sm:$0x3] }
0x138b   :  { %v1191_v22 = vpack.c.bf16 %v1190_v21, %v1190_v21 }
0x138d   :  { %1464 = vmatmul.mubr.msk.bf16.vlgmr.msra.gmra.mrb[12].mxu1 %vm88_vm2, %v1191_v22  ;;  %v1265_v35 = vld [vmem:[#allocation3] sm:$0x3] }
0x138e   :  { %v1294_v36 = vld [vmem:[#allocation4] sm:$0x3] }
0x1460   :  { %v1253_v25 = vpop.f32.mrb[12].mxu1 }
0x1461   :  { %v1262_v26 = vadd.f32 %v1465_v23, %v1253_v25  ;;  %v1255_v28 = vpop.f32.mrb[13].mxu1 }
0x1462   :  { %v1264_v29 = vadd.f32 %v1263_v24, %v1255_v28  ;;  %v1257_v31 = vpop.f32.mrb[14].mxu1 }
0x1463   :  { %1600 = vtanh.f32 %v1262_v26  ;;  %v1258_v32 = vpop.f32.mrb[15].mxu1  ;;  %v1466_v37 = vmul.f32 -1.442695, %v1262_v26 }
0x1464   :  { %1602 = vtanh.f32 %v1264_v29  ;;  %v1467_v38 = vmul.f32 -1.442695, %v1264_v29 }
0x1465   :  { %1604 = vpow2.f32 %v1466_v37 }
0x1466   :  { %1606 = vpow2.f32 %v1467_v38 }
0x146d   :  { %v1601_v33 = vpop.eup %1600 }
0x146e   :  { %v1603_v34 = vpop.eup %1602  ;;  %1279 = vrot.lane.b32.xlu0 %v1601_v33, %s1619_s28 }
0x146f   :  { %1308 = vrot.lane.b32.xlu1 %v1603_v34, %s1619_s28  ;;  %v1605_v39 = vpop.eup %1604 }
0x1470   :  { %v1607_v40 = vpop.eup %1606  ;;  %v1269_v41 = vadd.f32 1.0, %v1605_v39 }
0x1471   :  { %v1298_v42 = vadd.f32 1.0, %v1607_v40 }
0x1472   :  { %1274 = vrot.lane.b32.xlu0 %v1265_v35, %s1618_s23  ;;  %1608 = vrcp.f32 %v1269_v41 }
0x1473   :  { %1303 = vrot.lane.b32.xlu1 %v1294_v36, %s1618_s23  ;;  %1610 = vrcp.f32 %v1298_v42 }
0x147c   :  { %v1609_v43 = vpop.eup %1608 }
0x147d   :  { %v1611_v47 = vpop.eup %1610 }
0x14e0   :  { %v1280_v46 = vpop.permute.xlu0 %1279 }
0x14e1   :  { %v1282_v0 = vmul.f32 %v1609_v43, %v1280_v46  ;;  %v1309_v48 = vpop.permute.xlu1 %1308 }
0x14e2   :  { %v1311_v49 = vmul.f32 %v1611_v47, %v1309_v48 }
0x14e3   :  { %1284 = vrot.lane.b32.xlu0 %v1282_v0, %s1618_s23 }
0x14e4   :  { %1313 = vrot.lane.b32.xlu1 %v1311_v49, %s1618_s23  ;;  %v1275_v50 = vpop.permute.xlu0 %1274 }
0x14e5   :  { %v1304_v51 = vpop.permute.xlu1 %1303  ;;  %v1277_v52 = vmul.f32 %v1609_v43, %v1275_v50 }
0x14e6   :  { %v1306_v53 = vmul.f32 %v1611_v47, %v1304_v51 }
0x1555   :  { %v1285_v54 = vpop.permute.xlu0 %1284 }
0x1556   :  { %v1287_v55 = vadd.f32 %v1285_v54, %v1277_v52  ;;  %v1314_v56 = vpop.permute.xlu1 %1313 }
0x1557   :  { %v1316_v57 = vadd.f32 %v1314_v56, %v1306_v53 }
0x1558   :  { %1612 = vtanh.f32 %v1287_v55 }
0x1559   :  { %1614 = vtanh.f32 %v1316_v57 }
0x1562   :  { %v1613_v58 = vpop.eup %1612 }
0x1563   :  { %v1615_v59 = vpop.eup %1614  ;;  %1290 = vrot.lane.b32.xlu0 %v1613_v58, %s1620_s29 }
0x1564   :  { %1319 = vrot.lane.b32.xlu1 %v1615_v59, %s1620_s29 }
0x1567   :  { %380 = vrot.lane.b32.xlu0 %v1737_v30, %s1621_s30 }
0x1568   :  { %219 = vrot.lane.b32.xlu1 %v1703_v45, %s1621_s30 }
0x156b   :  { %702 = vrot.lane.b32.xlu0 %v1806_v60, %s1621_s30 }
0x156c   :  { %541 = vrot.lane.b32.xlu1 %v1772_v15, %s1621_s30 }
0x156f   :  { %1024 = vrot.lane.b32.xlu0 %v1871_v27, %s1621_s30 }
0x1570   :  { %863 = vrot.lane.b32.xlu1 %v1840_v44, %s1621_s30 }
0x1573   :  { %1324 = vrot.lane.b32.xlu0 %v1287_v55, %s1622_s5 }
0x1574   :  { %1185 = vrot.lane.b32.xlu1 %v1913_v5, %s1621_s30 }
0x1578   :  { %1329 = vrot.lane.b32.xlu1 %v1316_v57, %s1622_s5 }
0x15d5   :  { %v1291_v45 = vpop.permute.xlu0 %1290 }
0x15d6   :  { %v1293_v30 = vmul.f32 %v1609_v43, %v1291_v45  ;;  %v1320_v61 = vpop.permute.xlu1 %1319 }
0x15d7   :  { %v1322_v60 = vmul.f32 %v1611_v47, %v1320_v61 }
0x15d8   :  { %1334 = vrot.lane.b32.xlu0 %v1293_v30, %s1621_s30 }
0x15d9   :  { %1345 = vrot.lane.b32.xlu1 %v1322_v60, %s1621_s30  ;;  %v381_v15 = vpop.permute.xlu0 %380 }
0x15da   :  { %1404 = vst.msk [vmem:[%s2006_s4 + $0xc] sm:$0x3] %vm59_vm1, %v381_v15  ;;  %v220_v44 = vpop.permute.xlu1 %219 }
0x15db   :  { %1393 = vst.msk [vmem:[%s2006_s4 + $0xe] sm:$0x3] %vm59_vm1, %v220_v44 }
0x15dc   :  { %1339 = vrot.lane.b32.xlu0 %v1322_v60, %s1619_s28 }
0x15dd   :  { %v703_v27 = vpop.permute.xlu0 %702 }
0x15de   :  { %1426 = vst.msk [vmem:[%s2006_s4 + $0x8] sm:$0x3] %vm59_vm1, %v703_v27  ;;  %v542_v1 = vpop.permute.xlu1 %541 }
0x15df   :  { %1415 = vst.msk [vmem:[%s2006_s4 + $0xa] sm:$0x3] %vm59_vm1, %v542_v1 }
0x15e1   :  { %v1025_v62 = vpop.permute.xlu0 %1024 }
0x15e2   :  { %1448 = vst.msk [vmem:[%s2006_s4 + $0x4] sm:$0x3] %vm59_vm1, %v1025_v62  ;;  %v864_v63 = vpop.permute.xlu1 %863 }
0x15e3   :  { %1437 = vst.msk [vmem:[%s2006_s4 + $0x6] sm:$0x3] %vm59_vm1, %v864_v63 }
0x15e5   :  { %v1325_v2 = vpop.permute.xlu0 %1324 }
0x15e6   :  { %1327 = vst.msk [vmem:[#allocation3] sm:$0x3] %vm59_vm1, %v1325_v2  ;;  %v1186_v6 = vpop.permute.xlu1 %1185 }
0x15e7   :  { %1459 = vst.msk [vmem:[%s2006_s4 + $0x2] sm:$0x3] %vm59_vm1, %v1186_v6 }
0x15ea   :  { %v1330_v7 = vpop.permute.xlu1 %1329 }
0x15eb   :  { %1332 = vst.msk [vmem:[#allocation4] sm:$0x3] %vm59_vm1, %v1330_v7 }
0x164a   :  { %v1335_v8 = vpop.permute.xlu0 %1334 }
0x164b   :  { %1337 = vst.msk [vmem:[#allocation2] sm:$0x3] %vm59_vm1, %v1335_v8  ;;  %1468 = vst.msk [vmem:[%s2005_s3 + $0xe] sm:$0x3] %vm59_vm1, %v1335_v8  ;;  %v1346_v9 = vpop.permute.xlu1 %1345 }
0x164c   :  { %1348 = vst.msk [vmem:[%s2006_s4] sm:$0x3] %vm59_vm1, %v1346_v9 }
0x164e   :  { %v1340_v10 = vpop.permute.xlu0 %1339 }
0x164f   :  { %1342 = vst.msk [vmem:[#allocation2] sm:$0x3] %vm216_vm3, %v1340_v10 }

// kernel: transcription_model_forward.13
= control target key start
LH: loop header
LB: loop body
LE: loop exit
PB: predicated region body
PF: predicated region fallthrough
CT: control target
= control target key end

     0   :  { %14 = vsyncpa [#allocation6], 0  ;;  %vm69_vm0 = vcmask 254976   ;;  %v2807_v2 = vmov 0   ;;  %v2808_v5 = vmov 0.0   ;;  %vm71_vm1 = vcmask 123904   ;;  %s3411_s0 = inlined_call_operand.vmem [shape: f32[8,2,128], index: 0, kind: input, shape index: {}]   ;;  %s3412_s1 = inlined_call_operand.vmem [shape: f32[8,2,128], index: 1, kind: input, shape index: {}]   ;;  %s3413_s2 = inlined_call_operand.vmem [shape: bf16[32,256], index: 2, kind: input, shape index: {}]   ;;  %s3414_s3 = inlined_call_operand.vmem [shape: bf16[16,128], index: 3, kind: input, shape index: {}]   ;;  %s3415_s4 = inlined_call_operand.vmem [shape: bf16[16,128], index: 4, kind: input, shape index: {}]   ;;  %s3416_s5 = inlined_call_operand.hbm [shape: f32[8,2,16], index: 5, kind: output, shape index: {0}]   ;;  %s3417_s6 = inlined_call_operand.hbm [shape: f32[8,2,16], index: 6, kind: output, shape index: {1}]   ;;  %s3418_s7 = inlined_call_operand.vmem [shape: f32[8,2,128], index: 7, kind: output, shape index: {2}]   ;;  %s3419_s8 = inlined_call_operand.vmem [shape: f32[8,2,128], index: 8, kind: output, shape index: {3}]  }
   0x1   :  { %v2866_v0 = vld [vmem:[%s3413_s2 + $0x4] ss:$8 sps:$4 sm:$0xff]   ;;  %v2871_v1 = vld [vmem:[%s3413_s2] ss:$8 sps:$4 sm:$0xff]   ;;  %136 = vmatprep.mubr.bf16.mxu0 %v2807_v2  ;;  %v2878_v3 = vld [vmem:[%s3413_s2 + $0x14] ss:$8 sps:$4 sm:$0xff]   ;;  %2494 = vmatprep.subr.bf16.mxu1 %v2808_v5 }
   0x2   :  { %104 = vmatprep.subr.bf16.mxu0 %v2866_v0  ;;  %v2883_v4 = vld [vmem:[%s3413_s2 + $0x10] ss:$8 sps:$4 sm:$0xff]   ;;  %70 = vst.msk [vmem:[#allocation2] sm:$0x3] %vm69_vm0, %v2808_v5  ;;  %vm100_vm2 = vcmask 261120   ;;  %s2809_s13 = smov 16  }
   0x3   :  { %105 = vmatpush1.bf16.msra.mxu0 %v2871_v1  ;;  %72 = vst.msk [vmem:[#allocation3] sm:$0x3] %vm71_vm1, %v2808_v5  ;;  %73 = vst.msk [vmem:[#allocation4] sm:$0x3] %vm71_vm1, %v2808_v5 }
   0x4   :  { %106 = vmatprep.subr.bf16.mxu0 %v2878_v3 }
   0x7   :  { %107 = vmatpush1.bf16.msra.mxu0 %v2883_v4 }
   0x8   :  { %379 = vmatprep.subr.bf16.mxu0 %v2866_v0 }
   0x9   :  { %v74_v6 = vld [vmem:[#allocation2] sm:$0x3] }
   0xa   :  { %v75_v7 = vpack.c.bf16 %v74_v6, %v74_v6  ;;  %v150_v8 = vld [vmem:[#allocation3] sm:$0x3]  ;;  %v179_v9 = vld [vmem:[#allocation4] sm:$0x3] }
   0xb   :  { %159 = vrot.lane.b32.xlu1 %v150_v8, %s2809_s13 }
   0xc   :  { %2350 = vmatmul.mubr.msk.bf16.vlgmr.msra.gmra.mrb[0].mxu0 %vm100_vm2, %v75_v7 }
   0xd   :  { %380 = vmatpush1.bf16.msra.mxu0 %v2871_v1  ;;  %411 = vmatprep.mubr.bf16.mxu0 %v2807_v2 }
   0xe   :  { %381 = vmatprep.subr.bf16.mxu0 %v2878_v3 }
   0xf   :  { %188 = vrot.lane.b32.xlu1 %v179_v9, %s2809_s13 }
  0x10   :  { %15 = vsyncpa [#allocation8], 0  ;;  %v145_v10 = vld [vmem:[%s3411_s0] sm:$0x3]  ;;  %v2351_v12 = vld [vmem:[%s3412_s1 + $0xe] sm:$0x3] }
  0x11   :  { %382 = vmatpush1.bf16.msra.mxu0 %v2883_v4  ;;  %s2810_s18 = smov 96   ;;  %s2811_s19 = smov 32   ;;  %vm228_vm3 = vcmask 255104   ;;  %v2364_v52 = vld [vmem:[%s3411_s0 + $0x2] sm:$0x3]  ;;  %vm2814_vm4 = vmmov 0  }
  0x12   :  { %2512 = vmatprep.subr.bf16.mxu0 %v2808_v5  ;;  %s2812_s20 = smov 80   ;;  %s2813_s21 = smov 112   ;;  %v2365_v53 = vld [vmem:[%s3412_s1 + $0xc] sm:$0x3]  ;;  %2496 = vmatprep.mubr.msk.bf16.mxu1 %vm2814_vm4, %v2808_v5  ;;  %vm248_vm5 = vcmask 130048  }
  0x7d   :  { %v160_v32 = vpop.permute.xlu1 %159 }
  0x81   :  { %v189_v34 = vpop.permute.xlu1 %188 }
  0xdf   :  { %v138_v11 = vpop.f32.mrb[0].mxu0 }
  0xe0   :  { %v146_v13 = vadd.f32 %v145_v10, %v138_v11  ;;  %v140_v14 = vpop.f32.mrb[1].mxu0 }
  0xe1   :  { %v142_v15 = vpop.f32.mrb[2].mxu0  ;;  %v149_v16 = vadd.f32 %v2351_v12, %v140_v14 }
  0xe2   :  { %2629 = vtanh.f32 %v146_v13  ;;  %v143_v17 = vpop.f32.mrb[3].mxu0  ;;  %v2352_v20 = vmul.f32 -1.442695, %v146_v13 }
  0xe3   :  { %2631 = vtanh.f32 %v149_v16  ;;  %v2353_v21 = vmul.f32 -1.442695, %v149_v16 }
  0xe4   :  { %2633 = vpow2.f32 %v2352_v20 }
  0xe5   :  { %2635 = vpow2.f32 %v2353_v21 }
  0xec   :  { %v2630_v18 = vpop.eup %2629 }
  0xed   :  { %164 = vrot.lane.b32.xlu0 %v2630_v18, %s2810_s18  ;;  %v2632_v19 = vpop.eup %2631 }
  0xee   :  { %v2634_v22 = vpop.eup %2633 }
  0xef   :  { %v154_v23 = vadd.f32 1.0, %v2634_v22  ;;  %v2636_v24 = vpop.eup %2635 }
  0xf0   :  { %v183_v25 = vadd.f32 1.0, %v2636_v24 }
  0xf1   :  { %193 = vrot.lane.b32.xlu0 %v2632_v19, %s2810_s18  ;;  %2637 = vrcp.f32 %v154_v23  ;;  %v2607_v23 = vld [vmem:[%s3414_s3] sm:$0xff]  }
  0xf2   :  { %2639 = vrcp.f32 %v183_v25  ;;  %2495 = vmatpush3.bf16.msra.mxu1 %v2607_v23 }
  0xf3   :  { %2500 = vmatprep.subr.bf16.mxu1 %v2808_v5 }
  0xfb   :  { %v2638_v26 = vpop.eup %2637 }
  0xfc   :  { %v2640_v29 = vpop.eup %2639  ;;  %v162_v33 = vmul.f32 %v2638_v26, %v160_v32 }
  0xfd   :  { %v191_v37 = vmul.f32 %v2640_v29, %v189_v34 }
 0x15f   :  { %v165_v27 = vpop.permute.xlu0 %164 }
 0x160   :  { %v167_v28 = vmul.f32 %v2638_v26, %v165_v27 }
 0x162   :  { %169 = vrot.lane.b32.xlu0 %v167_v28, %s2809_s13 }
 0x163   :  { %v194_v30 = vpop.permute.xlu0 %193 }
 0x164   :  { %v196_v31 = vmul.f32 %v2640_v29, %v194_v30 }
 0x166   :  { %198 = vrot.lane.b32.xlu1 %v196_v31, %s2809_s13 }
 0x1d4   :  { %v170_v35 = vpop.permute.xlu0 %169 }
 0x1d5   :  { %v172_v36 = vadd.f32 %v170_v35, %v162_v33  ;;  %v2608_v35 = vld [vmem:[%s3415_s4] sm:$0xff]  }
 0x1d7   :  { %2641 = vtanh.f32 %v172_v36 }
 0x1d8   :  { %v199_v38 = vpop.permute.xlu1 %198 }
 0x1d9   :  { %v201_v39 = vadd.f32 %v199_v38, %v191_v37  ;;  %v2609_v38 = vld [vmem:[%s3414_s3] sm:$0xff]  }
 0x1db   :  { %2643 = vtanh.f32 %v201_v39 }
 0x1e1   :  { %v2642_v40 = vpop.eup %2641 }
 0x1e2   :  { %175 = vrot.lane.b32.xlu0 %v2642_v40, %s2811_s19 }
 0x1e5   :  { %v2644_v41 = vpop.eup %2643 }
 0x1e6   :  { %204 = vrot.lane.b32.xlu1 %v2644_v41, %s2811_s19 }
 0x254   :  { %v176_v42 = vpop.permute.xlu0 %175 }
 0x255   :  { %v2915_v43 = vmul.f32 %v2638_v26, %v176_v42 }
 0x257   :  { %220 = vrot.lane.b32.xlu0 %v2915_v43, %s2812_s20 }
 0x258   :  { %v205_v44 = vpop.permute.xlu1 %204 }
 0x259   :  { %v2919_v45 = vmul.f32 %v2640_v29, %v205_v44  ;;  %v236_v29 = vpack.c.bf16 %v2915_v43, %v2915_v43 }
 0x25b   :  { %209 = vrot.lane.b32.xlu0 %v172_v36, %s2813_s21  ;;  %225 = vrot.lane.b32.xlu1 %v2919_v45, %s2810_s18  ;;  %v293_v30 = vpack.c.bf16 %v2919_v45, %v2919_v45 }
 0x25f   :  { %215 = vrot.lane.b32.xlu1 %v201_v39, %s2813_s21 }
 0x2c9   :  { %v221_v46 = vpop.permute.xlu0 %220 }
 0x2ca   :  { %223 = vst.msk [vmem:[#allocation2] sm:$0x3] %vm71_vm1, %v221_v46  ;;  %230 = vst.msk [vmem:[#allocation5] sm:$0x3] %vm71_vm1, %v221_v46 }
 0x2cd   :  { %v210_v47 = vpop.permute.xlu0 %209  ;;  %v226_v48 = vpop.permute.xlu1 %225 }
 0x2ce   :  { %213 = vst.msk [vmem:[#allocation3] sm:$0x3] %vm71_vm1, %v210_v47 }
 0x2cf   :  { %229 = vst.msk [vmem:[#allocation2] sm:$0x3] %vm228_vm3, %v226_v48 }
 0x2d1   :  { %v216_v49 = vpop.permute.xlu1 %215 }
 0x2d2   :  { %218 = vst.msk [vmem:[#allocation4] sm:$0x3] %vm71_vm1, %v216_v49 }
 0x2d5   :  { %v426_v62 = vld [vmem:[#allocation3] sm:$0x3] }
 0x2d6   :  { %v350_v50 = vld [vmem:[#allocation2] sm:$0x3] }
 0x2d7   :  { %v351_v51 = vpack.c.bf16 %v350_v50, %v350_v50 }
 0x2d9   :  { %2363 = vmatmul.mubr.msk.bf16.vlgmr.msra.gmra.mrb[4].mxu0 %vm100_vm2, %v351_v51  ;;  %v455_v63 = vld [vmem:[#allocation4] sm:$0x3] }
 0x2da   :  { %2514 = vmatprep.mubr.msk.bf16.mxu0 %vm2814_vm4, %v2808_v5 }
 0x3ac   :  { %v413_v54 = vpop.f32.mrb[4].mxu0 }
 0x3ad   :  { %v422_v55 = vadd.f32 %v2364_v52, %v413_v54  ;;  %v415_v56 = vpop.f32.mrb[5].mxu0 }
 0x3ae   :  { %v425_v57 = vadd.f32 %v2365_v53, %v415_v56  ;;  %v417_v58 = vpop.f32.mrb[6].mxu0 }
 0x3af   :  { %2645 = vtanh.f32 %v422_v55  ;;  %v418_v59 = vpop.f32.mrb[7].mxu0  ;;  %v2366_v6 = vmul.f32 -1.442695, %v422_v55 }
 0x3b0   :  { %2647 = vtanh.f32 %v425_v57  ;;  %v2367_v7 = vmul.f32 -1.442695, %v425_v57 }
 0x3b1   :  { %2649 = vpow2.f32 %v2366_v6 }
 0x3b2   :  { %2651 = vpow2.f32 %v2367_v7 }
 0x3b9   :  { %v2646_v60 = vpop.eup %2645 }
 0x3ba   :  { %v2648_v61 = vpop.eup %2647  ;;  %440 = vrot.lane.b32.xlu0 %v2646_v60, %s2810_s18  ;;  %v2379_v60 = vld [vmem:[%s3411_s0 + $0x4] sm:$0x3] }
 0x3bb   :  { %469 = vrot.lane.b32.xlu1 %v2648_v61, %s2810_s18  ;;  %v2650_v8 = vpop.eup %2649  ;;  %v2380_v61 = vld [vmem:[%s3412_s1 + $0xa] sm:$0x3] }
 0x3bc   :  { %v2652_v9 = vpop.eup %2651  ;;  %v430_v10 = vadd.f32 1.0, %v2650_v8 }
 0x3bd   :  { %v459_v11 = vadd.f32 1.0, %v2652_v9 }
 0x3be   :  { %435 = vrot.lane.b32.xlu0 %v426_v62, %s2809_s13  ;;  %2653 = vrcp.f32 %v430_v10 }
 0x3bf   :  { %464 = vrot.lane.b32.xlu1 %v455_v63, %s2809_s13  ;;  %2655 = vrcp.f32 %v459_v11 }
 0x3c8   :  { %v2654_v12 = vpop.eup %2653 }
 0x3c9   :  { %v2656_v14 = vpop.eup %2655 }
 0x42c   :  { %v441_v13 = vpop.permute.xlu0 %440 }
 0x42d   :  { %v443_v15 = vmul.f32 %v2654_v12, %v441_v13  ;;  %v470_v16 = vpop.permute.xlu1 %469 }
 0x42e   :  { %v472_v17 = vmul.f32 %v2656_v14, %v470_v16 }
 0x42f   :  { %445 = vrot.lane.b32.xlu0 %v443_v15, %s2809_s13 }
 0x430   :  { %474 = vrot.lane.b32.xlu1 %v472_v17, %s2809_s13  ;;  %v436_v18 = vpop.permute.xlu0 %435 }
 0x431   :  { %v465_v19 = vpop.permute.xlu1 %464  ;;  %v438_v20 = vmul.f32 %v2654_v12, %v436_v18 }
 0x432   :  { %v467_v21 = vmul.f32 %v2656_v14, %v465_v19 }
 0x4a1   :  { %v446_v22 = vpop.permute.xlu0 %445 }
 0x4a2   :  { %v448_v24 = vadd.f32 %v446_v22, %v438_v20  ;;  %v475_v25 = vpop.permute.xlu1 %474 }
 0x4a3   :  { %v477_v26 = vadd.f32 %v475_v25, %v467_v21 }
 0x4a4   :  { %2657 = vtanh.f32 %v448_v24 }
 0x4a5   :  { %2659 = vtanh.f32 %v477_v26 }
 0x4ae   :  { %v2658_v27 = vpop.eup %2657 }
 0x4af   :  { %v2660_v28 = vpop.eup %2659  ;;  %451 = vrot.lane.b32.xlu0 %v2658_v27, %s2811_s19 }
 0x4b0   :  { %480 = vrot.lane.b32.xlu1 %v2660_v28, %s2811_s19 }
 0x4b3   :  { %240 = vrot.lane.b32.xlu0 %v236_v29, %s2812_s20 }
 0x4b4   :  { %297 = vrot.lane.b32.xlu1 %v293_v30, %s2812_s20 }
 0x521   :  { %v452_v31 = vpop.permute.xlu0 %451 }
 0x522   :  { %v454_v32 = vmul.f32 %v2654_v12, %v452_v31  ;;  %v481_v33 = vpop.permute.xlu1 %480  ;;  %v2610_v31 = vld [vmem:[%s3415_s4] sm:$0xff]  }
 0x523   :  { %v2959_v34 = vmul.f32 %v2656_v14, %v481_v33  ;;  %2513 = vmatpush3.bf16.msra.mxu0 %v2610_v31 }
 0x524   :  { %495 = vrot.lane.b32.xlu0 %v454_v32, %s2812_s20  ;;  %v511_v37 = vpack.c.bf16 %v454_v32, %v454_v32  ;;  %2518 = vmatprep.subr.bf16.mxu0 %v2808_v5 }
 0x525   :  { %v241_v36 = vpop.permute.xlu0 %240  ;;  %500 = vrot.lane.b32.xlu1 %v2959_v34, %s2810_s18 }
 0x526   :  { %2497 = vmatmul.mubr.msk.bf16.vlgmr.msra.gmra.mrb[0].mxu1 %vm248_vm5, %v241_v36  ;;  %v298_v39 = vpop.permute.xlu1 %297 }
 0x527   :  { %2501 = vmatpush3.bf16.msra.mxu1 %v2608_v35  ;;  %2502 = vmatprep.mubr.msk.bf16.mxu1 %vm2814_vm4, %v2808_v5 }
 0x528   :  { %515 = vrot.lane.b32.xlu0 %v511_v37, %s2812_s20  ;;  %2506 = vmatprep.subr.bf16.mxu1 %v2808_v5 }
 0x529   :  { %485 = vrot.lane.b32.xlu1 %v448_v24, %s2813_s21 }
 0x52c   :  { %490 = vrot.lane.b32.xlu0 %v477_v26, %s2813_s21 }
 0x52e   :  { %2503 = vmatmul.mubr.msk.bf16.vlgmr.msra.gmra.mrb[4].mxu1 %vm248_vm5, %v298_v39 }
 0x52f   :  { %2507 = vmatpush3.bf16.msra.mxu1 %v2609_v38  ;;  %2508 = vmatprep.mubr.msk.bf16.mxu1 %vm2814_vm4, %v2808_v5  ;;  %v568_v38 = vpack.c.bf16 %v2959_v34, %v2959_v34 }
 0x530   :  { %654 = vmatprep.subr.bf16.mxu1 %v2866_v0 }
 0x596   :  { %v496_v40 = vpop.permute.xlu0 %495 }
 0x597   :  { %498 = vst.msk [vmem:[#allocation2] sm:$0x3] %vm71_vm1, %v496_v40  ;;  %505 = vst.msk [vmem:[#allocation5 + $0x2] sm:$0x3] %vm71_vm1, %v496_v40  ;;  %v501_v41 = vpop.permute.xlu1 %500 }
 0x598   :  { %503 = vst.msk [vmem:[#allocation2] sm:$0x3] %vm228_vm3, %v501_v41 }
 0x59a   :  { %v516_v42 = vpop.permute.xlu0 %515 }
 0x59b   :  { %2509 = vmatmul.mubr.msk.bf16.vlgmr.msra.gmra.mrb[8].mxu1 %vm248_vm5, %v516_v42  ;;  %v486_v43 = vpop.permute.xlu1 %485 }
 0x59c   :  { %655 = vmatpush1.bf16.msra.mxu1 %v2871_v1  ;;  %488 = vst.msk [vmem:[#allocation3] sm:$0x3] %vm71_vm1, %v486_v43  ;;  %686 = vmatprep.mubr.bf16.mxu1 %v2807_v2  ;;  %v2611_v43 = vld [vmem:[%s3414_s3] sm:$0xff]  }
 0x59d   :  { %656 = vmatprep.subr.bf16.mxu1 %v2878_v3 }
 0x59e   :  { %v491_v44 = vpop.permute.xlu0 %490 }
 0x59f   :  { %v625_v46 = vld [vmem:[#allocation2] sm:$0x3]  ;;  %493 = vst.msk [vmem:[#allocation4] sm:$0x3] %vm71_vm1, %v491_v44 }
 0x5a0   :  { %657 = vmatpush1.bf16.msra.mxu1 %v2883_v4  ;;  %v626_v47 = vpack.c.bf16 %v625_v46, %v625_v46 }
 0x5a1   :  { %2524 = vmatprep.subr.bf16.mxu1 %v2808_v5 }
 0x5a3   :  { %2378 = vmatmul.mubr.msk.bf16.vlgmr.msra.gmra.mrb[12].mxu1 %vm100_vm2, %v626_v47  ;;  %v701_v12 = vld [vmem:[#allocation3] sm:$0x3] }
 0x5a4   :  { %2526 = vmatprep.mubr.msk.bf16.mxu1 %vm2814_vm4, %v2808_v5 }
 0x5a6   :  { %v730_v13 = vld [vmem:[#allocation4] sm:$0x3] }
 0x5f9   :  { %v286_v48 = vpop.f32.mrb[0].mxu1 }
 0x5fa   :  { %292 = vst [vmem:[%s3418_s7] sm:$0x3] %v286_v48  ;;  %v2498_v49 = vpop.f32.mrb[1].mxu1 }
 0x5fb   :  { %v289_v50 = vpop.f32.mrb[2].mxu1 }
 0x5fc   :  { %v2499_v51 = vpop.f32.mrb[3].mxu1 }
 0x601   :  { %v342_v52 = vpop.f32.mrb[4].mxu1 }
 0x602   :  { %2358 = vst [vmem:[%s3419_s8 + $0xe] sm:$0x3] %v342_v52  ;;  %v2504_v53 = vpop.f32.mrb[5].mxu1 }
 0x603   :  { %v345_v54 = vpop.f32.mrb[6].mxu1 }
 0x604   :  { %v2505_v55 = vpop.f32.mrb[7].mxu1 }
 0x66e   :  { %v560_v56 = vpop.f32.mrb[8].mxu1 }
 0x66f   :  { %2370 = vst [vmem:[%s3418_s7 + $0x2] sm:$0x3] %v560_v56  ;;  %v2510_v57 = vpop.f32.mrb[9].mxu1 }
 0x670   :  { %v563_v58 = vpop.f32.mrb[10].mxu1 }
 0x671   :  { %v2511_v59 = vpop.f32.mrb[11].mxu1 }
 0x676   :  { %v688_v62 = vpop.f32.mrb[12].mxu1 }
 0x677   :  { %v697_v63 = vadd.f32 %v2379_v60, %v688_v62  ;;  %v690_v6 = vpop.f32.mrb[13].mxu1  ;;  %v2394_v62 = vld [vmem:[%s3411_s0 + $0x6] sm:$0x3] }
 0x678   :  { %v700_v7 = vadd.f32 %v2380_v61, %v690_v6  ;;  %v692_v8 = vpop.f32.mrb[14].mxu1 }
 0x679   :  { %2661 = vtanh.f32 %v697_v63  ;;  %v693_v9 = vpop.f32.mrb[15].mxu1  ;;  %v2381_v14 = vmul.f32 -1.442695, %v697_v63  ;;  %v2395_v63 = vld [vmem:[%s3412_s1 + $0x8] sm:$0x3] }
 0x67a   :  { %2663 = vtanh.f32 %v700_v7  ;;  %v2382_v15 = vmul.f32 -1.442695, %v700_v7 }
 0x67b   :  { %2665 = vpow2.f32 %v2381_v14 }
 0x67c   :  { %2667 = vpow2.f32 %v2382_v15 }
 0x683   :  { %v2662_v10 = vpop.eup %2661 }
 0x684   :  { %v2664_v11 = vpop.eup %2663  ;;  %715 = vrot.lane.b32.xlu1 %v2662_v10, %s2810_s18 }
 0x685   :  { %744 = vrot.lane.b32.xlu0 %v2664_v11, %s2810_s18  ;;  %v2666_v16 = vpop.eup %2665 }
 0x686   :  { %v2668_v17 = vpop.eup %2667  ;;  %v705_v18 = vadd.f32 1.0, %v2666_v16 }
 0x687   :  { %v734_v19 = vadd.f32 1.0, %v2668_v17 }
 0x688   :  { %710 = vrot.lane.b32.xlu1 %v701_v12, %s2809_s13  ;;  %2669 = vrcp.f32 %v705_v18 }
 0x689   :  { %739 = vrot.lane.b32.xlu0 %v730_v13, %s2809_s13  ;;  %2671 = vrcp.f32 %v734_v19 }
 0x692   :  { %v2670_v20 = vpop.eup %2669 }
 0x693   :  { %v2672_v22 = vpop.eup %2671 }
 0x6f6   :  { %v716_v21 = vpop.permute.xlu1 %715 }
 0x6f7   :  { %v718_v23 = vmul.f32 %v2670_v20, %v716_v21  ;;  %v745_v24 = vpop.permute.xlu0 %744 }
 0x6f8   :  { %v747_v25 = vmul.f32 %v2672_v22, %v745_v24 }
 0x6f9   :  { %720 = vrot.lane.b32.xlu1 %v718_v23, %s2809_s13 }
 0x6fa   :  { %749 = vrot.lane.b32.xlu0 %v747_v25, %s2809_s13  ;;  %v711_v26 = vpop.permute.xlu1 %710 }
 0x6fb   :  { %v740_v27 = vpop.permute.xlu0 %739  ;;  %v713_v28 = vmul.f32 %v2670_v20, %v711_v26 }
 0x6fc   :  { %v742_v29 = vmul.f32 %v2672_v22, %v740_v27 }
 0x76b   :  { %v721_v30 = vpop.permute.xlu1 %720 }
 0x76c   :  { %v723_v32 = vadd.f32 %v721_v30, %v713_v28  ;;  %v750_v33 = vpop.permute.xlu0 %749 }
 0x76d   :  { %v752_v35 = vadd.f32 %v750_v33, %v742_v29  ;;  %v2612_v33 = vld [vmem:[%s3415_s4] sm:$0xff]  }
 0x76e   :  { %2673 = vtanh.f32 %v723_v32  ;;  %2525 = vmatpush3.bf16.msra.mxu1 %v2612_v33 }
 0x76f   :  { %2675 = vtanh.f32 %v752_v35  ;;  %2530 = vmatprep.subr.bf16.mxu1 %v2808_v5 }
 0x778   :  { %v2674_v36 = vpop.eup %2673 }
 0x779   :  { %v2676_v37 = vpop.eup %2675  ;;  %726 = vrot.lane.b32.xlu1 %v2674_v36, %s2811_s19 }
 0x77a   :  { %755 = vrot.lane.b32.xlu0 %v2676_v37, %s2811_s19 }
 0x77d   :  { %572 = vrot.lane.b32.xlu1 %v568_v38, %s2812_s20 }
 0x7eb   :  { %v727_v39 = vpop.permute.xlu1 %726 }
 0x7ec   :  { %v729_v40 = vmul.f32 %v2670_v20, %v727_v39  ;;  %v756_v41 = vpop.permute.xlu0 %755 }
 0x7ed   :  { %v3025_v42 = vmul.f32 %v2672_v22, %v756_v41 }
 0x7ee   :  { %770 = vrot.lane.b32.xlu0 %v729_v40, %s2812_s20  ;;  %v786_v46 = vpack.c.bf16 %v729_v40, %v729_v40 }
 0x7ef   :  { %775 = vrot.lane.b32.xlu1 %v3025_v42, %s2810_s18  ;;  %v573_v44 = vpop.permute.xlu1 %572  ;;  %v843_v40 = vpack.c.bf16 %v3025_v42, %v3025_v42 }
 0x7f0   :  { %2515 = vmatmul.mubr.msk.bf16.vlgmr.msra.gmra.mrb[8].mxu0 %vm248_vm5, %v573_v44 }
 0x7f1   :  { %2519 = vmatpush3.bf16.msra.mxu0 %v2611_v43  ;;  %2520 = vmatprep.mubr.msk.bf16.mxu0 %vm2814_vm4, %v2808_v5 }
 0x7f2   :  { %790 = vrot.lane.b32.xlu0 %v786_v46, %s2812_s20  ;;  %929 = vmatprep.subr.bf16.mxu0 %v2866_v0 }
 0x7f3   :  { %760 = vrot.lane.b32.xlu1 %v723_v32, %s2813_s21 }
 0x7f6   :  { %765 = vrot.lane.b32.xlu0 %v752_v35, %s2813_s21 }
 0x860   :  { %v771_v47 = vpop.permute.xlu0 %770 }
 0x861   :  { %773 = vst.msk [vmem:[#allocation2] sm:$0x3] %vm71_vm1, %v771_v47  ;;  %780 = vst.msk [vmem:[#allocation5 + $0x4] sm:$0x3] %vm71_vm1, %v771_v47  ;;  %v776_v48 = vpop.permute.xlu1 %775  ;;  %v2613_v47 = vld [vmem:[%s3414_s3] sm:$0xff]  }
 0x862   :  { %778 = vst.msk [vmem:[#allocation2] sm:$0x3] %vm228_vm3, %v776_v48 }
 0x864   :  { %v791_v49 = vpop.permute.xlu0 %790 }
 0x865   :  { %2521 = vmatmul.mubr.msk.bf16.vlgmr.msra.gmra.mrb[12].mxu0 %vm248_vm5, %v791_v49  ;;  %v761_v50 = vpop.permute.xlu1 %760 }
 0x866   :  { %930 = vmatpush1.bf16.msra.mxu0 %v2871_v1  ;;  %763 = vst.msk [vmem:[#allocation3] sm:$0x3] %vm71_vm1, %v761_v50  ;;  %961 = vmatprep.mubr.bf16.mxu0 %v2807_v2 }
 0x867   :  { %931 = vmatprep.subr.bf16.mxu0 %v2878_v3 }
 0x868   :  { %v766_v51 = vpop.permute.xlu0 %765 }
 0x869   :  { %v900_v52 = vld [vmem:[#allocation2] sm:$0x3]  ;;  %768 = vst.msk [vmem:[#allocation4] sm:$0x3] %vm71_vm1, %v766_v51 }
 0x86a   :  { %932 = vmatpush1.bf16.msra.mxu0 %v2883_v4  ;;  %v901_v53 = vpack.c.bf16 %v900_v52, %v900_v52 }
 0x86b   :  { %2536 = vmatprep.subr.bf16.mxu0 %v2808_v5 }
 0x86d   :  { %2393 = vmatmul.mubr.msk.bf16.vlgmr.msra.gmra.mrb[16].mxu0 %vm100_vm2, %v901_v53  ;;  %v976_v14 = vld [vmem:[#allocation3] sm:$0x3] }
 0x86e   :  { %2538 = vmatprep.mubr.msk.bf16.mxu0 %vm2814_vm4, %v2808_v5 }
 0x870   :  { %v1005_v15 = vld [vmem:[#allocation4] sm:$0x3] }
 0x8c3   :  { %v617_v54 = vpop.f32.mrb[8].mxu0 }
 0x8c4   :  { %2373 = vst [vmem:[%s3419_s8 + $0xc] sm:$0x3] %v617_v54  ;;  %v2516_v55 = vpop.f32.mrb[9].mxu0 }
 0x8c5   :  { %v620_v56 = vpop.f32.mrb[10].mxu0 }
 0x8c6   :  { %v2517_v57 = vpop.f32.mrb[11].mxu0 }
 0x938   :  { %v835_v58 = vpop.f32.mrb[12].mxu0 }
 0x939   :  { %2385 = vst [vmem:[%s3418_s7 + $0x4] sm:$0x3] %v835_v58  ;;  %v2522_v59 = vpop.f32.mrb[13].mxu0 }
 0x93a   :  { %v838_v60 = vpop.f32.mrb[14].mxu0 }
 0x93b   :  { %v2523_v61 = vpop.f32.mrb[15].mxu0 }
 0x93c   :  { %v2409_v61 = vld [vmem:[%s3411_s0 + $0x8] sm:$0x3] }
 0x940   :  { %v963_v6 = vpop.f32.mrb[16].mxu0 }
 0x941   :  { %v972_v7 = vadd.f32 %v2394_v62, %v963_v6  ;;  %v965_v8 = vpop.f32.mrb[17].mxu0  ;;  %v2410_v62 = vld [vmem:[%s3412_s1 + $0x6] sm:$0x3] }
 0x942   :  { %v975_v9 = vadd.f32 %v2395_v63, %v965_v8  ;;  %v967_v10 = vpop.f32.mrb[18].mxu0 }
 0x943   :  { %2677 = vtanh.f32 %v972_v7  ;;  %v968_v11 = vpop.f32.mrb[19].mxu0  ;;  %v2396_v16 = vmul.f32 -1.442695, %v972_v7 }
 0x944   :  { %2679 = vtanh.f32 %v975_v9  ;;  %v2397_v17 = vmul.f32 -1.442695, %v975_v9 }
 0x945   :  { %2681 = vpow2.f32 %v2396_v16 }
 0x946   :  { %2683 = vpow2.f32 %v2397_v17 }
 0x94d   :  { %v2678_v12 = vpop.eup %2677 }
 0x94e   :  { %v2680_v13 = vpop.eup %2679  ;;  %990 = vrot.lane.b32.xlu1 %v2678_v12, %s2810_s18 }
 0x94f   :  { %1019 = vrot.lane.b32.xlu0 %v2680_v13, %s2810_s18  ;;  %v2682_v18 = vpop.eup %2681 }
 0x950   :  { %v2684_v19 = vpop.eup %2683  ;;  %v980_v20 = vadd.f32 1.0, %v2682_v18 }
 0x951   :  { %v1009_v21 = vadd.f32 1.0, %v2684_v19 }
 0x952   :  { %985 = vrot.lane.b32.xlu1 %v976_v14, %s2809_s13  ;;  %2685 = vrcp.f32 %v980_v20 }
 0x953   :  { %1014 = vrot.lane.b32.xlu0 %v1005_v15, %s2809_s13  ;;  %2687 = vrcp.f32 %v1009_v21 }
 0x95c   :  { %v2686_v22 = vpop.eup %2685 }
 0x95d   :  { %v2688_v24 = vpop.eup %2687 }
 0x9c0   :  { %v991_v23 = vpop.permute.xlu1 %990 }
 0x9c1   :  { %v993_v25 = vmul.f32 %v2686_v22, %v991_v23  ;;  %v1020_v26 = vpop.permute.xlu0 %1019 }
 0x9c2   :  { %v1022_v27 = vmul.f32 %v2688_v24, %v1020_v26 }
 0x9c3   :  { %995 = vrot.lane.b32.xlu1 %v993_v25, %s2809_s13 }
 0x9c4   :  { %1024 = vrot.lane.b32.xlu0 %v1022_v27, %s2809_s13  ;;  %v986_v28 = vpop.permute.xlu1 %985 }
 0x9c5   :  { %v1015_v29 = vpop.permute.xlu0 %1014  ;;  %v988_v30 = vmul.f32 %v2686_v22, %v986_v28 }
 0x9c6   :  { %v1017_v31 = vmul.f32 %v2688_v24, %v1015_v29 }
 0xa35   :  { %v996_v32 = vpop.permute.xlu1 %995 }
 0xa36   :  { %v998_v35 = vadd.f32 %v996_v32, %v988_v30  ;;  %v1025_v36 = vpop.permute.xlu0 %1024  ;;  %v2614_v32 = vld [vmem:[%s3415_s4] sm:$0xff]  }
 0xa37   :  { %v1027_v37 = vadd.f32 %v1025_v36, %v1017_v31  ;;  %2537 = vmatpush3.bf16.msra.mxu0 %v2614_v32 }
 0xa38   :  { %2689 = vtanh.f32 %v998_v35  ;;  %2542 = vmatprep.subr.bf16.mxu0 %v2808_v5 }
 0xa39   :  { %2691 = vtanh.f32 %v1027_v37 }
 0xa42   :  { %v2690_v38 = vpop.eup %2689 }
 0xa43   :  { %v2692_v39 = vpop.eup %2691  ;;  %1001 = vrot.lane.b32.xlu1 %v2690_v38, %s2811_s19 }
 0xa44   :  { %1030 = vrot.lane.b32.xlu0 %v2692_v39, %s2811_s19 }
 0xa47   :  { %847 = vrot.lane.b32.xlu1 %v843_v40, %s2812_s20 }
 0xab5   :  { %v1002_v41 = vpop.permute.xlu1 %1001 }
 0xab6   :  { %v1004_v43 = vmul.f32 %v2686_v22, %v1002_v41  ;;  %v1031_v44 = vpop.permute.xlu0 %1030 }
 0xab7   :  { %v3081_v46 = vmul.f32 %v2688_v24, %v1031_v44 }
 0xab8   :  { %1045 = vrot.lane.b32.xlu0 %v1004_v43, %s2812_s20  ;;  %v1061_v49 = vpack.c.bf16 %v1004_v43, %v1004_v43 }
 0xab9   :  { %v848_v48 = vpop.permute.xlu1 %847  ;;  %1050 = vrot.lane.b32.xlu1 %v3081_v46, %s2810_s18  ;;  %v1118_v39 = vpack.c.bf16 %v3081_v46, %v3081_v46 }
 0xaba   :  { %2527 = vmatmul.mubr.msk.bf16.vlgmr.msra.gmra.mrb[16].mxu1 %vm248_vm5, %v848_v48 }
 0xabb   :  { %2531 = vmatpush3.bf16.msra.mxu1 %v2613_v47  ;;  %2532 = vmatprep.mubr.msk.bf16.mxu1 %vm2814_vm4, %v2808_v5  ;;  %v2615_v47 = vld [vmem:[%s3414_s3] sm:$0xff]  }
 0xabc   :  { %1065 = vrot.lane.b32.xlu0 %v1061_v49, %s2812_s20  ;;  %1204 = vmatprep.subr.bf16.mxu1 %v2866_v0 }
 0xabd   :  { %1035 = vrot.lane.b32.xlu1 %v998_v35, %s2813_s21 }
 0xac0   :  { %1040 = vrot.lane.b32.xlu0 %v1027_v37, %s2813_s21 }
 0xb2a   :  { %v1046_v50 = vpop.permute.xlu0 %1045 }
 0xb2b   :  { %1048 = vst.msk [vmem:[#allocation2] sm:$0x3] %vm71_vm1, %v1046_v50  ;;  %1055 = vst.msk [vmem:[#allocation5 + $0x6] sm:$0x3] %vm71_vm1, %v1046_v50  ;;  %v1051_v51 = vpop.permute.xlu1 %1050  ;;  %v2757_v50 = vld [vmem:[%s3413_s2 + $0x4] ss:$8 sps:$4 sm:$0xff]  }
 0xb2c   :  { %1053 = vst.msk [vmem:[#allocation2] sm:$0x3] %vm228_vm3, %v1051_v51 }
 0xb2e   :  { %v1066_v52 = vpop.permute.xlu0 %1065 }
 0xb2f   :  { %v1036_v53 = vpop.permute.xlu1 %1035  ;;  %2533 = vmatmul.mubr.msk.bf16.vlgmr.msra.gmra.mrb[20].mxu1 %vm248_vm5, %v1066_v52 }
 0xb30   :  { %1038 = vst.msk [vmem:[#allocation3] sm:$0x3] %vm71_vm1, %v1036_v53  ;;  %1205 = vmatpush1.bf16.msra.mxu1 %v2871_v1  ;;  %1236 = vmatprep.mubr.bf16.mxu1 %v2807_v2  ;;  %v3160_v53 = vld [vmem:[%s3413_s2 + $0x14] ss:$8 sps:$4 sm:$0xff]  }
 0xb31   :  { %1206 = vmatprep.subr.bf16.mxu1 %v2878_v3 }
 0xb32   :  { %v1041_v0 = vpop.permute.xlu0 %1040 }
 0xb33   :  { %1043 = vst.msk [vmem:[#allocation4] sm:$0x3] %vm71_vm1, %v1041_v0  ;;  %v1175_v54 = vld [vmem:[#allocation2] sm:$0x3] }
 0xb34   :  { %1207 = vmatpush1.bf16.msra.mxu1 %v2883_v4  ;;  %v1176_v55 = vpack.c.bf16 %v1175_v54, %v1175_v54 }
 0xb35   :  { %2548 = vmatprep.subr.bf16.mxu1 %v2808_v5 }
 0xb37   :  { %2408 = vmatmul.mubr.msk.bf16.vlgmr.msra.gmra.mrb[24].mxu1 %vm100_vm2, %v1176_v55  ;;  %v1251_v13 = vld [vmem:[#allocation3] sm:$0x3] }
 0xb38   :  { %2550 = vmatprep.mubr.msk.bf16.mxu1 %vm2814_vm4, %v2808_v5  ;;  %v2758_v55 = vld [vmem:[%s3413_s2] ss:$8 sps:$4 sm:$0xff]  }
 0xb3a   :  { %v1280_v14 = vld [vmem:[#allocation4] sm:$0x3] }
 0xb8d   :  { %v892_v56 = vpop.f32.mrb[16].mxu1 }
 0xb8e   :  { %2388 = vst [vmem:[%s3419_s8 + $0xa] sm:$0x3] %v892_v56  ;;  %v2528_v1 = vpop.f32.mrb[17].mxu1  ;;  %v3170_v56 = vld [vmem:[%s3413_s2 + $0x10] ss:$8 sps:$4 sm:$0xff]  }
 0xb8f   :  { %v895_v3 = vpop.f32.mrb[18].mxu1 }
 0xb90   :  { %v2529_v57 = vpop.f32.mrb[19].mxu1 }
 0xc02   :  { %v1110_v58 = vpop.f32.mrb[20].mxu1 }
 0xc03   :  { %2400 = vst [vmem:[%s3418_s7 + $0x6] sm:$0x3] %v1110_v58  ;;  %v2534_v4 = vpop.f32.mrb[21].mxu1 }
 0xc04   :  { %v1113_v59 = vpop.f32.mrb[22].mxu1 }
 0xc05   :  { %v2535_v60 = vpop.f32.mrb[23].mxu1 }
 0xc0a   :  { %v1238_v63 = vpop.f32.mrb[24].mxu1 }
 0xc0b   :  { %v1247_v6 = vadd.f32 %v2409_v61, %v1238_v63  ;;  %v1240_v7 = vpop.f32.mrb[25].mxu1 }
 0xc0c   :  { %v1250_v8 = vadd.f32 %v2410_v62, %v1240_v7  ;;  %v1242_v9 = vpop.f32.mrb[26].mxu1  ;;  %v2424_v7 = vld [vmem:[%s3411_s0 + $0xa] sm:$0x3] }
 0xc0d   :  { %2693 = vtanh.f32 %v1247_v6  ;;  %v1243_v10 = vpop.f32.mrb[27].mxu1  ;;  %v2411_v15 = vmul.f32 -1.442695, %v1247_v6 }
 0xc0e   :  { %2695 = vtanh.f32 %v1250_v8  ;;  %v2412_v16 = vmul.f32 -1.442695, %v1250_v8  ;;  %v2425_v8 = vld [vmem:[%s3412_s1 + $0x4] sm:$0x3] }
 0xc0f   :  { %2697 = vpow2.f32 %v2411_v15 }
 0xc10   :  { %2699 = vpow2.f32 %v2412_v16 }
 0xc17   :  { %v2694_v11 = vpop.eup %2693 }
 0xc18   :  { %v2696_v12 = vpop.eup %2695  ;;  %1265 = vrot.lane.b32.xlu1 %v2694_v11, %s2810_s18 }
 0xc19   :  { %1294 = vrot.lane.b32.xlu0 %v2696_v12, %s2810_s18  ;;  %v2698_v17 = vpop.eup %2697 }
 0xc1a   :  { %v2700_v18 = vpop.eup %2699  ;;  %v1255_v19 = vadd.f32 1.0, %v2698_v17 }
 0xc1b   :  { %v1284_v20 = vadd.f32 1.0, %v2700_v18 }
 0xc1c   :  { %1260 = vrot.lane.b32.xlu1 %v1251_v13, %s2809_s13  ;;  %2701 = vrcp.f32 %v1255_v19 }
 0xc1d   :  { %1289 = vrot.lane.b32.xlu0 %v1280_v14, %s2809_s13  ;;  %2703 = vrcp.f32 %v1284_v20 }
 0xc26   :  { %v2702_v21 = vpop.eup %2701 }
 0xc27   :  { %v2704_v23 = vpop.eup %2703 }
 0xc8a   :  { %v1266_v22 = vpop.permute.xlu1 %1265 }
 0xc8b   :  { %v1268_v24 = vmul.f32 %v2702_v21, %v1266_v22  ;;  %v1295_v25 = vpop.permute.xlu0 %1294 }
 0xc8c   :  { %v1297_v26 = vmul.f32 %v2704_v23, %v1295_v25 }
 0xc8d   :  { %1270 = vrot.lane.b32.xlu1 %v1268_v24, %s2809_s13 }
 0xc8e   :  { %1299 = vrot.lane.b32.xlu0 %v1297_v26, %s2809_s13  ;;  %v1261_v27 = vpop.permute.xlu1 %1260 }
 0xc8f   :  { %v1290_v28 = vpop.permute.xlu0 %1289  ;;  %v1263_v29 = vmul.f32 %v2702_v21, %v1261_v27 }
 0xc90   :  { %v1292_v30 = vmul.f32 %v2704_v23, %v1290_v28 }
 0xcff   :  { %v1271_v31 = vpop.permute.xlu1 %1270 }
 0xd00   :  { %v1273_v33 = vadd.f32 %v1271_v31, %v1263_v29  ;;  %v1300_v35 = vpop.permute.xlu0 %1299 }
 0xd01   :  { %v1302_v36 = vadd.f32 %v1300_v35, %v1292_v30 }
 0xd02   :  { %2705 = vtanh.f32 %v1273_v33 }
 0xd03   :  { %2707 = vtanh.f32 %v1302_v36 }
 0xd0c   :  { %v2706_v37 = vpop.eup %2705 }
 0xd0d   :  { %v2708_v38 = vpop.eup %2707  ;;  %1276 = vrot.lane.b32.xlu1 %v2706_v37, %s2811_s19  ;;  %v2619_v37 = vld [vmem:[%s3415_s4] sm:$0xff]  }
 0xd0e   :  { %1305 = vrot.lane.b32.xlu0 %v2708_v38, %s2811_s19  ;;  %2549 = vmatpush3.bf16.msra.mxu1 %v2619_v37 }
 0xd0f   :  { %2554 = vmatprep.subr.bf16.mxu1 %v2808_v5 }
 0xd11   :  { %1122 = vrot.lane.b32.xlu1 %v1118_v39, %s2812_s20 }
 0xd7f   :  { %v1277_v40 = vpop.permute.xlu1 %1276 }
 0xd80   :  { %v1279_v41 = vmul.f32 %v2702_v21, %v1277_v40  ;;  %v1306_v43 = vpop.permute.xlu0 %1305 }
 0xd81   :  { %v3137_v44 = vmul.f32 %v2704_v23, %v1306_v43 }
 0xd82   :  { %1320 = vrot.lane.b32.xlu0 %v1279_v41, %s2812_s20  ;;  %v1336_v49 = vpack.c.bf16 %v1279_v41, %v1279_v41 }
 0xd83   :  { %v1123_v48 = vpop.permute.xlu1 %1122  ;;  %1325 = vrot.lane.b32.xlu1 %v3137_v44, %s2810_s18 }
 0xd84   :  { %2539 = vmatmul.mubr.msk.bf16.vlgmr.msra.gmra.mrb[20].mxu0 %vm248_vm5, %v1123_v48 }
 0xd85   :  { %2543 = vmatpush3.bf16.msra.mxu0 %v2615_v47  ;;  %2544 = vmatprep.mubr.msk.bf16.mxu0 %vm2814_vm4, %v2808_v5  ;;  %v1393_v47 = vpack.c.bf16 %v3137_v44, %v3137_v44 }
 0xd86   :  { %1340 = vrot.lane.b32.xlu0 %v1336_v49, %s2812_s20  ;;  %1479 = vmatprep.subr.bf16.mxu0 %v2757_v50 }
 0xd87   :  { %1310 = vrot.lane.b32.xlu1 %v1273_v33, %s2813_s21 }
 0xd8a   :  { %1315 = vrot.lane.b32.xlu0 %v1302_v36, %s2813_s21 }
 0xdf4   :  { %v1321_v51 = vpop.permute.xlu0 %1320 }
 0xdf5   :  { %1323 = vst.msk [vmem:[#allocation2] sm:$0x3] %vm71_vm1, %v1321_v51  ;;  %1330 = vst.msk [vmem:[#allocation5 + $0x8] sm:$0x3] %vm71_vm1, %v1321_v51  ;;  %v1326_v52 = vpop.permute.xlu1 %1325 }
 0xdf6   :  { %1328 = vst.msk [vmem:[#allocation2] sm:$0x3] %vm228_vm3, %v1326_v52  ;;  %v2620_v52 = vld [vmem:[%s3414_s3] sm:$0xff]  }
 0xdf8   :  { %v1341_v0 = vpop.permute.xlu0 %1340 }
 0xdf9   :  { %v1311_v54 = vpop.permute.xlu1 %1310  ;;  %2545 = vmatmul.mubr.msk.bf16.vlgmr.msra.gmra.mrb[24].mxu0 %vm248_vm5, %v1341_v0  ;;  %v3216_v0 = vld [vmem:[%s3413_s2 + $0x4] ss:$8 sps:$4 sm:$0xff]  }
 0xdfa   :  { %1313 = vst.msk [vmem:[#allocation3] sm:$0x3] %vm71_vm1, %v1311_v54  ;;  %1480 = vmatpush1.bf16.msra.mxu0 %v2758_v55  ;;  %1511 = vmatprep.mubr.bf16.mxu0 %v2807_v2 }
 0xdfb   :  { %1481 = vmatprep.subr.bf16.mxu0 %v3160_v53 }
 0xdfc   :  { %v1316_v1 = vpop.permute.xlu0 %1315 }
 0xdfd   :  { %1318 = vst.msk [vmem:[#allocation4] sm:$0x3] %vm71_vm1, %v1316_v1  ;;  %v1450_v3 = vld [vmem:[#allocation2] sm:$0x3] }
 0xdfe   :  { %1482 = vmatpush1.bf16.msra.mxu0 %v3170_v56  ;;  %v1451_v57 = vpack.c.bf16 %v1450_v3, %v1450_v3 }
 0xdff   :  { %2560 = vmatprep.subr.bf16.mxu0 %v2808_v5 }
 0xe01   :  { %2423 = vmatmul.mubr.msk.bf16.vlgmr.msra.gmra.mrb[28].mxu0 %vm100_vm2, %v1451_v57  ;;  %v1526_v17 = vld [vmem:[#allocation3] sm:$0x3] }
 0xe02   :  { %2562 = vmatprep.mubr.msk.bf16.mxu0 %vm2814_vm4, %v2808_v5  ;;  %v3233_v57 = vld [vmem:[%s3413_s2] ss:$8 sps:$4 sm:$0xff]  }
 0xe04   :  { %v1555_v18 = vld [vmem:[#allocation4] sm:$0x3] }
 0xe57   :  { %v1167_v58 = vpop.f32.mrb[20].mxu0 }
 0xe58   :  { %2403 = vst [vmem:[%s3419_s8 + $0x8] sm:$0x3] %v1167_v58  ;;  %v2540_v4 = vpop.f32.mrb[21].mxu0 }
 0xe59   :  { %v1170_v59 = vpop.f32.mrb[22].mxu0 }
 0xe5a   :  { %v2541_v60 = vpop.f32.mrb[23].mxu0 }
 0xecc   :  { %v1385_v61 = vpop.f32.mrb[24].mxu0 }
 0xecd   :  { %2415 = vst [vmem:[%s3418_s7 + $0x8] sm:$0x3] %v1385_v61  ;;  %v2546_v62 = vpop.f32.mrb[25].mxu0 }
 0xece   :  { %v1388_v63 = vpop.f32.mrb[26].mxu0 }
 0xecf   :  { %v2547_v6 = vpop.f32.mrb[27].mxu0 }
 0xed4   :  { %v1513_v9 = vpop.f32.mrb[28].mxu0 }
 0xed5   :  { %v1522_v10 = vadd.f32 %v2424_v7, %v1513_v9  ;;  %v1515_v11 = vpop.f32.mrb[29].mxu0 }
 0xed6   :  { %v1525_v12 = vadd.f32 %v2425_v8, %v1515_v11  ;;  %v1517_v13 = vpop.f32.mrb[30].mxu0 }
 0xed7   :  { %2709 = vtanh.f32 %v1522_v10  ;;  %v1518_v14 = vpop.f32.mrb[31].mxu0  ;;  %v2426_v19 = vmul.f32 -1.442695, %v1522_v10  ;;  %v2440_v13 = vld [vmem:[%s3412_s1 + $0x2] sm:$0x3] }
 0xed8   :  { %2711 = vtanh.f32 %v1525_v12  ;;  %v2427_v20 = vmul.f32 -1.442695, %v1525_v12  ;;  %v2439_v12 = vld [vmem:[%s3411_s0 + $0xc] sm:$0x3] }
 0xed9   :  { %2713 = vpow2.f32 %v2426_v19 }
 0xeda   :  { %2715 = vpow2.f32 %v2427_v20 }
 0xee1   :  { %v2710_v15 = vpop.eup %2709 }
 0xee2   :  { %v2712_v16 = vpop.eup %2711  ;;  %1540 = vrot.lane.b32.xlu1 %v2710_v15, %s2810_s18 }
 0xee3   :  { %1569 = vrot.lane.b32.xlu0 %v2712_v16, %s2810_s18  ;;  %v2714_v21 = vpop.eup %2713 }
 0xee4   :  { %v2716_v22 = vpop.eup %2715  ;;  %v1530_v23 = vadd.f32 1.0, %v2714_v21 }
 0xee5   :  { %v1559_v24 = vadd.f32 1.0, %v2716_v22 }
 0xee6   :  { %1535 = vrot.lane.b32.xlu1 %v1526_v17, %s2809_s13  ;;  %2717 = vrcp.f32 %v1530_v23 }
 0xee7   :  { %1564 = vrot.lane.b32.xlu0 %v1555_v18, %s2809_s13  ;;  %2719 = vrcp.f32 %v1559_v24 }
 0xef0   :  { %v2718_v25 = vpop.eup %2717 }
 0xef1   :  { %v2720_v27 = vpop.eup %2719 }
 0xf54   :  { %v1541_v26 = vpop.permute.xlu1 %1540 }
 0xf55   :  { %v1543_v28 = vmul.f32 %v2718_v25, %v1541_v26  ;;  %v1570_v29 = vpop.permute.xlu0 %1569 }
 0xf56   :  { %v1572_v30 = vmul.f32 %v2720_v27, %v1570_v29 }
 0xf57   :  { %1545 = vrot.lane.b32.xlu1 %v1543_v28, %s2809_s13 }
 0xf58   :  { %1574 = vrot.lane.b32.xlu0 %v1572_v30, %s2809_s13  ;;  %v1536_v31 = vpop.permute.xlu1 %1535 }
 0xf59   :  { %v1565_v32 = vpop.permute.xlu0 %1564  ;;  %v1538_v33 = vmul.f32 %v2718_v25, %v1536_v31 }
 0xf5a   :  { %v1567_v35 = vmul.f32 %v2720_v27, %v1565_v32 }
 0xfc9   :  { %v1546_v36 = vpop.permute.xlu1 %1545 }
 0xfca   :  { %v1548_v38 = vadd.f32 %v1546_v36, %v1538_v33  ;;  %v1575_v39 = vpop.permute.xlu0 %1574 }
 0xfcb   :  { %v1577_v40 = vadd.f32 %v1575_v39, %v1567_v35 }
 0xfcc   :  { %2721 = vtanh.f32 %v1548_v38 }
 0xfcd   :  { %2723 = vtanh.f32 %v1577_v40 }
 0xfd6   :  { %v2722_v41 = vpop.eup %2721 }
 0xfd7   :  { %v2724_v43 = vpop.eup %2723  ;;  %1551 = vrot.lane.b32.xlu1 %v2722_v41, %s2811_s19 }
 0xfd8   :  { %1580 = vrot.lane.b32.xlu0 %v2724_v43, %s2811_s19  ;;  %v2624_v43 = vld [vmem:[%s3415_s4] sm:$0xff]  }
 0xfd9   :  { %2561 = vmatpush3.bf16.msra.mxu0 %v2624_v43 }
 0xfda   :  { %2566 = vmatprep.subr.bf16.mxu0 %v2808_v5 }
 0xfdb   :  { %1397 = vrot.lane.b32.xlu1 %v1393_v47, %s2812_s20 }
0x1049   :  { %v1552_v48 = vpop.permute.xlu1 %1551 }
0x104a   :  { %v1554_v49 = vmul.f32 %v2718_v25, %v1552_v48  ;;  %v1581_v50 = vpop.permute.xlu0 %1580 }
0x104b   :  { %v3207_v51 = vmul.f32 %v2720_v27, %v1581_v50 }
0x104c   :  { %1595 = vrot.lane.b32.xlu0 %v1554_v49, %s2812_s20  ;;  %v1611_v55 = vpack.c.bf16 %v1554_v49, %v1554_v49 }
0x104d   :  { %v1398_v54 = vpop.permute.xlu1 %1397  ;;  %1600 = vrot.lane.b32.xlu1 %v3207_v51, %s2810_s18 }
0x104e   :  { %2551 = vmatmul.mubr.msk.bf16.vlgmr.msra.gmra.mrb[28].mxu1 %vm248_vm5, %v1398_v54  ;;  %v1668_v54 = vpack.c.bf16 %v3207_v51, %v3207_v51 }
0x104f   :  { %2555 = vmatpush3.bf16.msra.mxu1 %v2620_v52  ;;  %2556 = vmatprep.mubr.msk.bf16.mxu1 %vm2814_vm4, %v2808_v5 }
0x1050   :  { %1615 = vrot.lane.b32.xlu0 %v1611_v55, %s2812_s20  ;;  %1754 = vmatprep.subr.bf16.mxu1 %v3216_v0 }
0x1051   :  { %1585 = vrot.lane.b32.xlu1 %v1548_v38, %s2813_s21 }
0x1054   :  { %1590 = vrot.lane.b32.xlu0 %v1577_v40, %s2813_s21 }
0x10be   :  { %v1596_v1 = vpop.permute.xlu0 %1595 }
0x10bf   :  { %1598 = vst.msk [vmem:[#allocation2] sm:$0x3] %vm71_vm1, %v1596_v1  ;;  %1605 = vst.msk [vmem:[#allocation5 + $0xa] sm:$0x3] %vm71_vm1, %v1596_v1  ;;  %v1601_v3 = vpop.permute.xlu1 %1600 }
0x10c0   :  { %1603 = vst.msk [vmem:[#allocation2] sm:$0x3] %vm228_vm3, %v1601_v3 }
0x10c2   :  { %v1616_v58 = vpop.permute.xlu0 %1615 }
0x10c3   :  { %v1586_v4 = vpop.permute.xlu1 %1585  ;;  %2557 = vmatmul.mubr.msk.bf16.vlgmr.msra.gmra.mrb[32].mxu1 %vm248_vm5, %v1616_v58 }
0x10c4   :  { %1588 = vst.msk [vmem:[#allocation3] sm:$0x3] %vm71_vm1, %v1586_v4  ;;  %1755 = vmatpush1.bf16.msra.mxu1 %v3233_v57  ;;  %1786 = vmatprep.mubr.bf16.mxu1 %v2807_v2  ;;  %v2625_v4 = vld [vmem:[%s3414_s3] sm:$0xff]  }
0x10c5   :  { %1756 = vmatprep.subr.bf16.mxu1 %v3160_v53 }
0x10c6   :  { %v1591_v59 = vpop.permute.xlu0 %1590 }
0x10c7   :  { %1593 = vst.msk [vmem:[#allocation4] sm:$0x3] %vm71_vm1, %v1591_v59  ;;  %v1725_v60 = vld [vmem:[#allocation2] sm:$0x3] }
0x10c8   :  { %1757 = vmatpush1.bf16.msra.mxu1 %v3170_v56  ;;  %v1726_v61 = vpack.c.bf16 %v1725_v60, %v1725_v60 }
0x10c9   :  { %2572 = vmatprep.subr.bf16.mxu1 %v2808_v5 }
0x10cb   :  { %2438 = vmatmul.mubr.msk.bf16.vlgmr.msra.gmra.mrb[36].mxu1 %vm100_vm2, %v1726_v61  ;;  %v1801_v22 = vld [vmem:[#allocation3] sm:$0x3] }
0x10cc   :  { %2574 = vmatprep.mubr.msk.bf16.mxu1 %vm2814_vm4, %v2808_v5 }
0x10ce   :  { %v1830_v23 = vld [vmem:[#allocation4] sm:$0x3] }
0x1121   :  { %v1442_v62 = vpop.f32.mrb[28].mxu1 }
0x1122   :  { %2418 = vst [vmem:[%s3419_s8 + $0x6] sm:$0x3] %v1442_v62  ;;  %v2552_v63 = vpop.f32.mrb[29].mxu1 }
0x1123   :  { %v1445_v6 = vpop.f32.mrb[30].mxu1 }
0x1124   :  { %v2553_v7 = vpop.f32.mrb[31].mxu1 }
0x1196   :  { %v1660_v8 = vpop.f32.mrb[32].mxu1 }
0x1197   :  { %2430 = vst [vmem:[%s3418_s7 + $0xa] sm:$0x3] %v1660_v8  ;;  %v2558_v9 = vpop.f32.mrb[33].mxu1 }
0x1198   :  { %v1663_v10 = vpop.f32.mrb[34].mxu1 }
0x1199   :  { %v2559_v11 = vpop.f32.mrb[35].mxu1 }
0x119e   :  { %v1788_v14 = vpop.f32.mrb[36].mxu1 }
0x119f   :  { %v1797_v15 = vadd.f32 %v2439_v12, %v1788_v14  ;;  %v1790_v16 = vpop.f32.mrb[37].mxu1  ;;  %v2073_v14 = vld [vmem:[%s3412_s1] sm:$0x3] }
0x11a0   :  { %v1800_v17 = vadd.f32 %v2440_v13, %v1790_v16  ;;  %v1792_v18 = vpop.f32.mrb[38].mxu1  ;;  %v2454_v13 = vld [vmem:[%s3411_s0 + $0xe] sm:$0x3] }
0x11a1   :  { %2725 = vtanh.f32 %v1797_v15  ;;  %v1793_v19 = vpop.f32.mrb[39].mxu1  ;;  %v2441_v24 = vmul.f32 -1.442695, %v1797_v15 }
0x11a2   :  { %2727 = vtanh.f32 %v1800_v17  ;;  %v2442_v25 = vmul.f32 -1.442695, %v1800_v17 }
0x11a3   :  { %2729 = vpow2.f32 %v2441_v24 }
0x11a4   :  { %2731 = vpow2.f32 %v2442_v25 }
0x11ab   :  { %v2726_v20 = vpop.eup %2725 }
0x11ac   :  { %v2728_v21 = vpop.eup %2727  ;;  %1815 = vrot.lane.b32.xlu1 %v2726_v20, %s2810_s18 }
0x11ad   :  { %1844 = vrot.lane.b32.xlu0 %v2728_v21, %s2810_s18  ;;  %v2730_v26 = vpop.eup %2729 }
0x11ae   :  { %v2732_v27 = vpop.eup %2731  ;;  %v1805_v28 = vadd.f32 1.0, %v2730_v26 }
0x11af   :  { %v1834_v29 = vadd.f32 1.0, %v2732_v27 }
0x11b0   :  { %1810 = vrot.lane.b32.xlu1 %v1801_v22, %s2809_s13  ;;  %2733 = vrcp.f32 %v1805_v28 }
0x11b1   :  { %1839 = vrot.lane.b32.xlu0 %v1830_v23, %s2809_s13  ;;  %2735 = vrcp.f32 %v1834_v29 }
0x11ba   :  { %v2734_v30 = vpop.eup %2733 }
0x11bb   :  { %v2736_v32 = vpop.eup %2735 }
0x121e   :  { %v1816_v31 = vpop.permute.xlu1 %1815 }
0x121f   :  { %v1818_v33 = vmul.f32 %v2734_v30, %v1816_v31  ;;  %v1845_v35 = vpop.permute.xlu0 %1844 }
0x1220   :  { %v1847_v36 = vmul.f32 %v2736_v32, %v1845_v35 }
0x1221   :  { %1820 = vrot.lane.b32.xlu1 %v1818_v33, %s2809_s13 }
0x1222   :  { %1849 = vrot.lane.b32.xlu0 %v1847_v36, %s2809_s13  ;;  %v1811_v37 = vpop.permute.xlu1 %1810 }
0x1223   :  { %v1840_v38 = vpop.permute.xlu0 %1839  ;;  %v1813_v39 = vmul.f32 %v2734_v30, %v1811_v37 }
0x1224   :  { %v1842_v40 = vmul.f32 %v2736_v32, %v1840_v38 }
0x1293   :  { %v1821_v41 = vpop.permute.xlu1 %1820 }
0x1294   :  { %v1823_v47 = vadd.f32 %v1821_v41, %v1813_v39  ;;  %v1850_v48 = vpop.permute.xlu0 %1849 }
0x1295   :  { %v1852_v49 = vadd.f32 %v1850_v48, %v1842_v40 }
0x1296   :  { %2737 = vtanh.f32 %v1823_v47 }
0x1297   :  { %2739 = vtanh.f32 %v1852_v49 }
0x12a0   :  { %v2738_v50 = vpop.eup %2737 }
0x12a1   :  { %v2740_v52 = vpop.eup %2739  ;;  %1826 = vrot.lane.b32.xlu1 %v2738_v50, %s2811_s19 }
0x12a2   :  { %1855 = vrot.lane.b32.xlu0 %v2740_v52, %s2811_s19 }
0x12a5   :  { %1672 = vrot.lane.b32.xlu1 %v1668_v54, %s2812_s20 }
0x1313   :  { %v1827_v55 = vpop.permute.xlu1 %1826 }
0x1314   :  { %v1829_v1 = vmul.f32 %v2734_v30, %v1827_v55  ;;  %v1856_v3 = vpop.permute.xlu0 %1855 }
0x1315   :  { %v3273_v58 = vmul.f32 %v2736_v32, %v1856_v3 }
0x1316   :  { %1870 = vrot.lane.b32.xlu0 %v1829_v1, %s2812_s20  ;;  %v1886_v60 = vpack.c.bf16 %v1829_v1, %v1829_v1  ;;  %v2628_v1 = vld [vmem:[%s3415_s4] sm:$0xff]  }
0x1317   :  { %v1673_v59 = vpop.permute.xlu1 %1672  ;;  %1875 = vrot.lane.b32.xlu1 %v3273_v58, %s2810_s18  ;;  %v1943_v55 = vpack.c.bf16 %v3273_v58, %v3273_v58 }
0x1318   :  { %2563 = vmatmul.mubr.msk.bf16.vlgmr.msra.gmra.mrb[32].mxu0 %vm248_vm5, %v1673_v59 }
0x1319   :  { %2567 = vmatpush3.bf16.msra.mxu0 %v2625_v4  ;;  %2568 = vmatprep.mubr.msk.bf16.mxu0 %vm2814_vm4, %v2808_v5 }
0x131a   :  { %1890 = vrot.lane.b32.xlu0 %v1886_v60, %s2812_s20  ;;  %2029 = vmatprep.subr.bf16.mxu0 %v3216_v0 }
0x131b   :  { %1860 = vrot.lane.b32.xlu1 %v1823_v47, %s2813_s21  ;;  %v2626_v47 = vld [vmem:[%s3415_s4] sm:$0xff]  }
0x131c   :  { %2573 = vmatpush3.bf16.msra.mxu1 %v2626_v47 }
0x131d   :  { %2578 = vmatprep.subr.bf16.mxu1 %v2808_v5 }
0x131e   :  { %1865 = vrot.lane.b32.xlu0 %v1852_v49, %s2813_s21 }
0x1388   :  { %v1871_v61 = vpop.permute.xlu0 %1870 }
0x1389   :  { %1873 = vst.msk [vmem:[#allocation2] sm:$0x3] %vm71_vm1, %v1871_v61  ;;  %1880 = vst.msk [vmem:[#allocation5 + $0xc] sm:$0x3] %vm71_vm1, %v1871_v61  ;;  %v1876_v62 = vpop.permute.xlu1 %1875  ;;  %v2627_v61 = vld [vmem:[%s3414_s3] sm:$0xff]   ;;  %s2815_s3 = smov [#allocation5]  }
0x138a   :  { %1878 = vst.msk [vmem:[#allocation2] sm:$0x3] %vm228_vm3, %v1876_v62  ;;  %s2283_s4 = sshll.u32 %s2815_s3, 4  ;;  %s2284_s4 = int_to_ptr.vmem [resolvable:$true] %s2283_s4 }
0x138b   :  { %p2764_p1 = scmp.lt.s32.totalorder %s2284_s4, %s2284_s4 }
0x138c   :  { %v1891_v63 = vpop.permute.xlu0 %1890 }
0x138d   :  { %v1861_v6 = vpop.permute.xlu1 %1860  ;;  %2569 = vmatmul.mubr.msk.bf16.vlgmr.msra.gmra.mrb[36].mxu0 %vm248_vm5, %v1891_v63 }
0x138e   :  { %1863 = vst.msk [vmem:[#allocation3] sm:$0x3] %vm71_vm1, %v1861_v6  ;;  %2030 = vmatpush1.bf16.msra.mxu0 %v3233_v57  ;;  %2061 = vmatprep.mubr.bf16.mxu0 %v2807_v2 }
0x138f   :  { %2031 = vmatprep.subr.bf16.mxu0 %v3160_v53 }
0x1390   :  { %v1866_v0 = vpop.permute.xlu0 %1865 }
0x1391   :  { %1868 = vst.msk [vmem:[#allocation4] sm:$0x3] %vm71_vm1, %v1866_v0  ;;  %v2000_v7 = vld [vmem:[#allocation2] sm:$0x3] }
0x1392   :  { %2032 = vmatpush1.bf16.msra.mxu0 %v3170_v56  ;;  %v2001_v8 = vpack.c.bf16 %v2000_v7, %v2000_v7 }
0x1393   :  { %2584 = vmatprep.subr.bf16.mxu0 %v2808_v5 }
0x1395   :  { %2453 = vmatmul.mubr.msk.bf16.vlgmr.msra.gmra.mrb[40].mxu0 %vm100_vm2, %v2001_v8  ;;  %v2075_v23 = vld [vmem:[#allocation3] sm:$0x3] }
0x1396   :  { %2586 = vmatprep.mubr.msk.bf16.mxu0 %vm2814_vm4, %v2808_v5  ;;  %2585 = vmatpush3.bf16.msra.mxu0 %v2628_v1 }
0x1398   :  { %v2104_v24 = vld [vmem:[#allocation4] sm:$0x3] }
0x13eb   :  { %v1717_v9 = vpop.f32.mrb[32].mxu0 }
0x13ec   :  { %2433 = vst [vmem:[%s3419_s8 + $0x4] sm:$0x3] %v1717_v9  ;;  %v2564_v2 = vpop.f32.mrb[33].mxu0 }
0x13ed   :  { %v1720_v53 = vpop.f32.mrb[34].mxu0 }
0x13ee   :  { %v2565_v57 = vpop.f32.mrb[35].mxu0 }
0x1460   :  { %v1935_v10 = vpop.f32.mrb[36].mxu0 }
0x1461   :  { %2445 = vst [vmem:[%s3418_s7 + $0xc] sm:$0x3] %v1935_v10  ;;  %v2570_v56 = vpop.f32.mrb[37].mxu0 }
0x1462   :  { %v1938_v11 = vpop.f32.mrb[38].mxu0 }
0x1463   :  { %v2571_v12 = vpop.f32.mrb[39].mxu0 }
0x1468   :  { %v2063_v15 = vpop.f32.mrb[40].mxu0 }
0x1469   :  { %v2072_v16 = vadd.f32 %v2454_v13, %v2063_v15  ;;  %v2065_v17 = vpop.f32.mrb[41].mxu0 }
0x146a   :  { %v2074_v18 = vadd.f32 %v2073_v14, %v2065_v17  ;;  %v2067_v19 = vpop.f32.mrb[42].mxu0 }
0x146b   :  { %2741 = vtanh.f32 %v2072_v16  ;;  %v2068_v20 = vpop.f32.mrb[43].mxu0  ;;  %v2455_v25 = vmul.f32 -1.442695, %v2072_v16 }
0x146c   :  { %2743 = vtanh.f32 %v2074_v18  ;;  %v2456_v26 = vmul.f32 -1.442695, %v2074_v18 }
0x146d   :  { %2745 = vpow2.f32 %v2455_v25 }
0x146e   :  { %2747 = vpow2.f32 %v2456_v26 }
0x1475   :  { %v2742_v21 = vpop.eup %2741 }
0x1476   :  { %v2744_v22 = vpop.eup %2743  ;;  %2089 = vrot.lane.b32.xlu1 %v2742_v21, %s2810_s18 }
0x1477   :  { %2118 = vrot.lane.b32.xlu0 %v2744_v22, %s2810_s18  ;;  %v2746_v27 = vpop.eup %2745 }
0x1478   :  { %v2748_v28 = vpop.eup %2747  ;;  %v2079_v29 = vadd.f32 1.0, %v2746_v27 }
0x1479   :  { %v2108_v30 = vadd.f32 1.0, %v2748_v28 }
0x147a   :  { %2084 = vrot.lane.b32.xlu1 %v2075_v23, %s2809_s13  ;;  %2749 = vrcp.f32 %v2079_v29 }
0x147b   :  { %2113 = vrot.lane.b32.xlu0 %v2104_v24, %s2809_s13  ;;  %2751 = vrcp.f32 %v2108_v30 }
0x1484   :  { %v2750_v31 = vpop.eup %2749 }
0x1485   :  { %v2752_v33 = vpop.eup %2751 }
0x14e8   :  { %v2090_v32 = vpop.permute.xlu1 %2089 }
0x14e9   :  { %v2092_v35 = vmul.f32 %v2750_v31, %v2090_v32  ;;  %v2119_v36 = vpop.permute.xlu0 %2118 }
0x14ea   :  { %v2121_v37 = vmul.f32 %v2752_v33, %v2119_v36 }
0x14eb   :  { %2094 = vrot.lane.b32.xlu1 %v2092_v35, %s2809_s13 }
0x14ec   :  { %2123 = vrot.lane.b32.xlu0 %v2121_v37, %s2809_s13  ;;  %v2085_v38 = vpop.permute.xlu1 %2084 }
0x14ed   :  { %v2114_v39 = vpop.permute.xlu0 %2113  ;;  %v2087_v40 = vmul.f32 %v2750_v31, %v2085_v38 }
0x14ee   :  { %v2116_v41 = vmul.f32 %v2752_v33, %v2114_v39 }
0x155d   :  { %v2095_v43 = vpop.permute.xlu1 %2094 }
0x155e   :  { %v2097_v48 = vadd.f32 %v2095_v43, %v2087_v40  ;;  %v2124_v49 = vpop.permute.xlu0 %2123 }
0x155f   :  { %v2126_v50 = vadd.f32 %v2124_v49, %v2116_v41 }
0x1560   :  { %2753 = vtanh.f32 %v2097_v48 }
0x1561   :  { %2755 = vtanh.f32 %v2126_v50 }
0x156a   :  { %v2754_v52 = vpop.eup %2753 }
0x156b   :  { %v2756_v54 = vpop.eup %2755  ;;  %2100 = vrot.lane.b32.xlu1 %v2754_v52, %s2811_s19 }
0x156c   :  { %2129 = vrot.lane.b32.xlu0 %v2756_v54, %s2811_s19 }
0x156f   :  { %1947 = vrot.lane.b32.xlu1 %v1943_v55, %s2812_s20 }
0x15dd   :  { %v2101_v3 = vpop.permute.xlu1 %2100 }
0x15de   :  { %v2103_v4 = vmul.f32 %v2750_v31, %v2101_v3  ;;  %v2130_v59 = vpop.permute.xlu0 %2129 }
0x15df   :  { %v2132_v60 = vmul.f32 %v2752_v33, %v2130_v59 }
0x15e0   :  { %v2159_v62 = vpack.c.bf16 %v2103_v4, %v2103_v4 }
0x15e1   :  { %v2216_v63 = vpack.c.bf16 %v2132_v60, %v2132_v60  ;;  %v1948_v6 = vpop.permute.xlu1 %1947 }
0x15e2   :  { %2575 = vmatmul.mubr.msk.bf16.vlgmr.msra.gmra.mrb[40].mxu1 %vm248_vm5, %v1948_v6  ;;  %2163 = vrot.lane.b32.xlu0 %v2159_v62, %s2812_s20 }
0x15e3   :  { %2220 = vrot.lane.b32.xlu1 %v2216_v63, %s2812_s20  ;;  %2579 = vmatpush3.bf16.msra.mxu1 %v2627_v61 }
0x15e4   :  { %2580 = vmatprep.mubr.msk.bf16.mxu1 %vm2814_vm4, %v2808_v5 }
0x15e6   :  { %231 = vrot.lane.b32.xlu0 %v2919_v45, %s2812_s20 }
0x15e7   :  { %506 = vrot.lane.b32.xlu1 %v2959_v34, %s2812_s20 }
0x15ea   :  { %781 = vrot.lane.b32.xlu0 %v3025_v42, %s2812_s20 }
0x15eb   :  { %1056 = vrot.lane.b32.xlu1 %v3081_v46, %s2812_s20 }
0x15ee   :  { %1331 = vrot.lane.b32.xlu0 %v3137_v44, %s2812_s20 }
0x15ef   :  { %1606 = vrot.lane.b32.xlu1 %v3207_v51, %s2812_s20 }
0x15f2   :  { %1881 = vrot.lane.b32.xlu0 %v3273_v58, %s2812_s20 }
0x15f3   :  { %2144 = vrot.lane.b32.xlu1 %v2103_v4, %s2812_s20 }
0x15f6   :  { %2155 = vrot.lane.b32.xlu0 %v2132_v60, %s2812_s20 }
0x15f7   :  { %2134 = vrot.lane.b32.xlu1 %v2097_v48, %s2813_s21 }
0x15fa   :  { %2139 = vrot.lane.b32.xlu0 %v2126_v50, %s2813_s21  ;;  %s2759_s21 = scalar_lea.vmem %s2284_s4, 256 }
0x15fb   :  { %2149 = vrot.lane.b32.xlu1 %v2132_v60, %s2810_s18  ;;  %s2816_s18 = smov [#allocation7]   ;;  %p2760_p0 = scmp.ne.s32.totalorder %s2284_s4, %s2759_s21 }
0x15fc   :  { %s2299_s20 = sshll.u32 %s2816_s18, 4  ;;  %p2765_p2 = scmp.lt.s32.totalorder %s2759_s21, %s2759_s21  ;;  %s2300_s20 = int_to_ptr.vmem [resolvable:$true] %s2299_s20 }
0x15fe   :  { %p2766_p3 = por %p2765_p2, %p2764_p1 }
0x1600   :  { %p2767_p4 = pnand %p2766_p3, %p2760_p0 }
0x1654   :  { %v2164_v5 = vpop.permute.xlu0 %2163 }
0x1655   :  { %v2221_v45 = vpop.permute.xlu1 %2220  ;;  %2581 = vmatmul.mubr.msk.bf16.vlgmr.msra.gmra.mrb[44].mxu1 %vm248_vm5, %v2164_v5 }
0x1656   :  { %2587 = vmatmul.mubr.msk.bf16.vlgmr.msra.gmra.mrb[44].mxu0 %vm248_vm5, %v2221_v45 }
0x1658   :  { %v232_v34 = vpop.permute.xlu0 %231 }
0x1659   :  { %235 = vst.msk [vmem:[#allocation7 + $0xe] sm:$0x3] %vm71_vm1, %v232_v34  ;;  %v507_v42 = vpop.permute.xlu1 %506 }
0x165a   :  { %510 = vst.msk [vmem:[#allocation7 + $0xc] sm:$0x3] %vm71_vm1, %v507_v42 }
0x165c   :  { %v782_v46 = vpop.permute.xlu0 %781 }
0x165d   :  { %785 = vst.msk [vmem:[#allocation7 + $0xa] sm:$0x3] %vm71_vm1, %v782_v46  ;;  %v1057_v44 = vpop.permute.xlu1 %1056 }
0x165e   :  { %1060 = vst.msk [vmem:[#allocation7 + $0x8] sm:$0x3] %vm71_vm1, %v1057_v44 }
0x1660   :  { %v1332_v51 = vpop.permute.xlu0 %1331 }
0x1661   :  { %1335 = vst.msk [vmem:[#allocation7 + $0x6] sm:$0x3] %vm71_vm1, %v1332_v51  ;;  %v1607_v58 = vpop.permute.xlu1 %1606 }
0x1662   :  { %1610 = vst.msk [vmem:[#allocation7 + $0x4] sm:$0x3] %vm71_vm1, %v1607_v58 }
0x1664   :  { %v1882_v0 = vpop.permute.xlu0 %1881 }
0x1665   :  { %1885 = vst.msk [vmem:[#allocation7 + $0x2] sm:$0x3] %vm71_vm1, %v1882_v0  ;;  %v2145_v7 = vpop.permute.xlu1 %2144 }
0x1666   :  { %2147 = vst.msk [vmem:[#allocation2] sm:$0x3] %vm71_vm1, %v2145_v7  ;;  %2154 = vst.msk [vmem:[#allocation5 + $0xe] sm:$0x3] %vm71_vm1, %v2145_v7 }
0x1668   :  { %v2156_v8 = vpop.permute.xlu0 %2155 }
0x1669   :  { %2158 = vst.msk [vmem:[#allocation7] sm:$0x3] %vm71_vm1, %v2156_v8  ;;  %v2135_v9 = vpop.permute.xlu1 %2134 }
0x166a   :  { %2137 = vst.msk [vmem:[#allocation3] sm:$0x3] %vm71_vm1, %v2135_v9 }
0x166c   :  { %v2140_v2 = vpop.permute.xlu0 %2139 }
0x166d   :  { %2142 = vst.msk [vmem:[#allocation4] sm:$0x3] %vm71_vm1, %v2140_v2  ;;  %v2150_v53 = vpop.permute.xlu1 %2149 }
0x166e   :  { %2152 = vst.msk [vmem:[#allocation2] sm:$0x3] %vm228_vm3, %v2150_v53 }
0x166f   :  { %2770 = shalt.err (!%p2767_p4)
}
0x1670   :  { %s2771_s10 = scalar_lea.hbm %s3416_s5, 256 }
0x1671   :  { %p2772_p5 = scmp.ne.s32.totalorder %s3416_s5, %s2771_s10  ;;  %p2775_p6 = scmp.lt.u32.totalorder %s2771_s10, %s3416_s5 }
0x1673   :  { %p2777_p7 = pnand %p2775_p6, %p2772_p5 }
0x1675   :  { %2780 = shalt.err (!%p2777_p7)
}
0x1676   :  { %s2817_s16 = smov 2   ;;  %s2781_s23 = scalar_lea.vmem %s2300_s20, 256 }
0x1677   :  { %2289 = dma.vmem_to_hbm [thread:$0]  %s2284_s4, 256, %s3416_s5, [#allocation6], %s2811_s19, %s2811_s19, %s2817_s16  }
0x1678   :  { %p2782_p8 = scmp.ne.s32.totalorder %s2300_s20, %s2781_s23  ;;  %p2786_p9 = scmp.lt.s32.totalorder %s2300_s20, %s2300_s20 }
0x1679   :  { %p2787_p10 = scmp.lt.s32.totalorder %s2781_s23, %s2781_s23 }
0x167b   :  { %p2788_p11 = por %p2787_p10, %p2786_p9 }
0x167d   :  { %p2789_p12 = pnand %p2788_p11, %p2782_p8 }
0x167f   :  { %2792 = shalt.err (!%p2789_p12)
}
0x1680   :  { %s2793_s2 = scalar_lea.hbm %s3417_s6, 256 }
0x1681   :  { %p2794_p13 = scmp.ne.s32.totalorder %s3417_s6, %s2793_s2  ;;  %p2797_p0 = scmp.lt.u32.totalorder %s2793_s2, %s3417_s6 }
0x1683   :  { %p2799_p1 = pnand %p2797_p0, %p2794_p13 }
0x1685   :  { %2802 = shalt.err (!%p2799_p1)
}
0x1686   :  { %2305 = dma.vmem_to_hbm [thread:$0]  %s2300_s20, 256, %s3417_s6, [#allocation8], %s2811_s19, %s2811_s19, %s2817_s16  }
0x16b5   :  { %v1992_v57 = vpop.f32.mrb[40].mxu1 }
0x16b6   :  { %2448 = vst [vmem:[%s3419_s8 + $0x2] sm:$0x3] %v1992_v57  ;;  %v2576_v10 = vpop.f32.mrb[41].mxu1 }
0x16b7   :  { %v1995_v56 = vpop.f32.mrb[42].mxu1 }
0x16b8   :  { %v2577_v11 = vpop.f32.mrb[43].mxu1 }
0x1728   :  { %v2208_v12 = vpop.f32.mrb[44].mxu1 }
0x1729   :  { %2459 = vst [vmem:[%s3418_s7 + $0xe] sm:$0x3] %v2208_v12  ;;  %v2582_v13 = vpop.f32.mrb[45].mxu1  ;;  %v2265_v14 = vpop.f32.mrb[44].mxu0 }
0x172a   :  { %2271 = vst [vmem:[%s3419_s8] sm:$0x3] %v2265_v14  ;;  %v2211_v15 = vpop.f32.mrb[46].mxu1  ;;  %v2588_v16 = vpop.f32.mrb[45].mxu0 }
0x172b   :  { %v2583_v17 = vpop.f32.mrb[47].mxu1  ;;  %v2268_v18 = vpop.f32.mrb[46].mxu0 }
0x172c   :  { %v2589_v19 = vpop.f32.mrb[47].mxu0 }
0x172d   :  { %2803 = dma.done.wait [#allocation6], 256  }
0x172e   :  { %2804 = vsyncadd [#allocation6], 4294967040 }
0x172f   :  { %2805 = dma.done.wait [#allocation8], 256  }
0x1730   :  { %2806 = vsyncadd [#allocation8], 4294967040 }
0x1731   :  { %2328 = vsyncpa [#allocation6], 1 }
0x1732   :  { %2329 = vsyncpa [#allocation8], 1 }

// kernel: transcription_model_forward.9
= control target key start
LH: loop header
LB: loop body
LE: loop exit
PB: predicated region body
PF: predicated region fallthrough
CT: control target
= control target key end

     0   :  { %s7870_s29 = smov 0   ;;  %s9545_s0 = inlined_call_operand.vmem [shape: f32[2,16,8,1], index: 0, kind: input, shape index: {}]   ;;  %s9546_s1 = inlined_call_operand.vmem [shape: bf16[3,3,1,2], index: 1, kind: input, shape index: {}]   ;;  %s9547_s2 = inlined_call_operand.vmem [shape: f32[1,2], index: 2, kind: input, shape index: {}]   ;;  %s9548_s3 = inlined_call_operand.vmem [shape: bf16[3,3,2,2], index: 3, kind: input, shape index: {}]   ;;  %s9549_s4 = inlined_call_operand.vmem [shape: f32[1,2], index: 4, kind: input, shape index: {}]   ;;  %s9550_s5 = inlined_call_operand.vmem [shape: bf16[3,3,2,4], index: 5, kind: input, shape index: {}]   ;;  %s9551_s6 = inlined_call_operand.vmem [shape: f32[1,4], index: 6, kind: input, shape index: {}]   ;;  %s9552_s7 = inlined_call_operand.vmem [shape: bf16[16,4,32], index: 7, kind: input, shape index: {}]   ;;  %s9553_s8 = inlined_call_operand.vmem [shape: f32[1,32], index: 8, kind: input, shape index: {}]   ;;  %s9554_s9 = inlined_call_operand.vmem [shape: bf16[32,128], index: 9, kind: input, shape index: {}]   ;;  %s9555_s10 = inlined_call_operand.vmem [shape: f32[1,128], index: 10, kind: input, shape index: {}]   ;;  %s9556_s11 = inlined_call_operand.vmem [shape: bf16[32,128], index: 11, kind: input, shape index: {}]   ;;  %s9557_s12 = inlined_call_operand.vmem [shape: f32[1,128], index: 12, kind: input, shape index: {}]   ;;  %s9558_s13 = inlined_call_operand.vmem [shape: f32[2,8,128], index: 13, kind: output, shape index: {0}]   ;;  %s9559_s14 = inlined_call_operand.vmem [shape: f32[2,8,128], index: 14, kind: output, shape index: {1}]  }
   0x1 LB: > { %s6206_s30 = sadd.s32 4294967295, %s7790_s29   ;;  %p6210_p0 = scmp.ge.s32.totalorder %s7790_s29, 1  ;;  %s7790_s29 = sphi %s7870_s29, %s25_s29  }
   0x2   : > { %p415_p1 = scmp.lt.s32.totalorder %s7790_s29, 3 }
   0x4   : > { %p416_p2 = pnand %p6210_p0, %p415_p1 }
   0x6   : > { %419 = sbr.rel (%p416_p2) target bundleno = 1985 (0x7c1), region = 72 }
   0xd   : > { %vm715_vm0 = vcmask 1040384   ;;  %v6232_v0 = vld [vmem:[%s9546_s1 + $0x2] sm:$0x1]  ;;  %p464_p3 = scmp.lt.s32.totalorder %s6206_s30, 1  ;;  %vm478_vm1 = vcmask 7168   ;;  %v7792_v1 = vmov 0  }
   0xe   : > { %v7882_v2 = vsel %vm715_vm0, 65535, %v7792_v1  ;;  %vm480_vm2 = vcmask 1024   ;;  %vm485_vm3 = vcmask 0   ;;  %v6241_v3 = vld [vmem:[%s9546_s1 + $0x3] sm:$0x1]  ;;  %v9560_v5 = vmov 0.0  }
   0xf   : > { %v7888_v4 = vand.u32 %v6232_v0, %v7882_v2  ;;  %s9649_s30 = smov (!%p464_p3, %s6206_s30), 1  ;;  %479 = vst.msk [vmem:[#allocation2] sm:$0xff] %vm478_vm1, %v9560_v5  ;;  %483 = vst.msk [vmem:[#allocation2 + $0x110] sm:$0xff] %vm478_vm1, %v9560_v5  ;;  %v7963_v6 = vand.u32 %v6241_v3, %v7882_v2  ;;  %v6215_v7 = vld [vmem:[%s9546_s1 + $0x1] sm:$0x1]  ;;  %vm522_vm4 = vcmask 15360  }
  0x10   : > { %481 = vst.msk [vmem:[#allocation2 + $0x8] sm:$0x3] %vm480_vm2, %v9560_v5  ;;  %484 = vst.msk [vmem:[#allocation2 + $0x118] sm:$0x3] %vm480_vm2, %v9560_v5  ;;  %s6485_s21 = sshll.u32 %s9649_s30, 7  ;;  %v719_v8 = vand.u32 %v6215_v7, %v7882_v2  ;;  %vm524_vm5 = vcmask 11264  }
  0x11   : > { %505 = vst.msk [vmem:[#allocation2 + $0x19] sm:$0x1] %vm485_vm3, %v9560_v5  ;;  %487 = vst.msk [vmem:[#allocation2 + $0x10] sm:$0x1] %vm485_vm3, %v9560_v5  ;;  %6803 = vmatprep.subr.bf16.mxu0 %v7888_v4  ;;  %s7983_s24 = scalar_lea.vmem %s9545_s0, %s6485_s21  ;;  %v664_v26 = vld [vmem:[%s9546_s1] sm:$0x1] }
  0x12   : > { %488 = vst.msk [vmem:[#allocation2 + $0x20] sm:$0x1] %vm485_vm3, %v9560_v5  ;;  %489 = vst.msk [vmem:[#allocation2 + $0x30] sm:$0x1] %vm485_vm3, %v9560_v5  ;;  %6804 = vmatpush3.bf16.msra.mxu0 %v7888_v4  ;;  %v607_v9 = vld [vmem:[%s7983_s24] sm:$0xff]  ;;  %v608_v10 = vld [vmem:[%s7983_s24 + $0x8] sm:$0xff]  ;;  %6767 = vmatprep.subr.bf16.mxu1 %v719_v8  ;;  %v843_v28 = vand.u32 %v7882_v2, %v664_v26 }
  0x13   : > { %490 = vst.msk [vmem:[#allocation2 + $0x40] sm:$0x1] %vm485_vm3, %v9560_v5  ;;  %491 = vst.msk [vmem:[#allocation2 + $0x50] sm:$0x1] %vm485_vm3, %v9560_v5  ;;  %6821 = vmatprep.subr.bf16.mxu0 %v7963_v6  ;;  %v609_v11 = vld [vmem:[%s7983_s24 + $0x10] sm:$0xff]  ;;  %v610_v12 = vld [vmem:[%s7983_s24 + $0x18] sm:$0xff]  ;;  %6768 = vmatpush3.bf16.msra.mxu1 %v719_v8 }
  0x14   : > { %492 = vst.msk [vmem:[#allocation2 + $0x60] sm:$0x1] %vm485_vm3, %v9560_v5  ;;  %493 = vst.msk [vmem:[#allocation2 + $0x70] sm:$0x1] %vm485_vm3, %v9560_v5  ;;  %v611_v13 = vld [vmem:[%s7983_s24 + $0x20] sm:$0xff]  ;;  %v612_v14 = vld [vmem:[%s7983_s24 + $0x28] sm:$0xff]  ;;  %6785 = vmatprep.subr.bf16.mxu1 %v843_v28 }
  0x15   : > { %494 = vst.msk [vmem:[#allocation2 + $0x80] sm:$0x1] %vm485_vm3, %v9560_v5  ;;  %495 = vst.msk [vmem:[#allocation2 + $0x90] sm:$0x1] %vm485_vm3, %v9560_v5  ;;  %v613_v15 = vld [vmem:[%s7983_s24 + $0x30] sm:$0xff]  ;;  %v614_v16 = vld [vmem:[%s7983_s24 + $0x38] sm:$0xff] }
  0x16   : > { %496 = vst.msk [vmem:[#allocation2 + $0xa0] sm:$0x1] %vm485_vm3, %v9560_v5  ;;  %497 = vst.msk [vmem:[#allocation2 + $0xb0] sm:$0x1] %vm485_vm3, %v9560_v5  ;;  %v615_v17 = vld [vmem:[%s7983_s24 + $0x40] sm:$0xff]  ;;  %v616_v18 = vld [vmem:[%s7983_s24 + $0x48] sm:$0xff] }
  0x17   : > { %498 = vst.msk [vmem:[#allocation2 + $0xc0] sm:$0x1] %vm485_vm3, %v9560_v5  ;;  %499 = vst.msk [vmem:[#allocation2 + $0xd0] sm:$0x1] %vm485_vm3, %v9560_v5  ;;  %v617_v19 = vld [vmem:[%s7983_s24 + $0x50] sm:$0xff]  ;;  %v618_v20 = vld [vmem:[%s7983_s24 + $0x58] sm:$0xff] }
  0x18   : > { %500 = vst.msk [vmem:[#allocation2 + $0xe0] sm:$0x1] %vm485_vm3, %v9560_v5  ;;  %501 = vst.msk [vmem:[#allocation2 + $0xf0] sm:$0x1] %vm485_vm3, %v9560_v5  ;;  %v619_v21 = vld [vmem:[%s7983_s24 + $0x60] sm:$0xff]  ;;  %v620_v22 = vld [vmem:[%s7983_s24 + $0x68] sm:$0xff] }
  0x19   : > { %502 = vst.msk [vmem:[#allocation2 + $0x100] sm:$0x1] %vm485_vm3, %v9560_v5  ;;  %506 = vst.msk [vmem:[#allocation2 + $0x29] sm:$0x1] %vm485_vm3, %v9560_v5  ;;  %v621_v23 = vld [vmem:[%s7983_s24 + $0x70] sm:$0xff]  ;;  %v622_v24 = vld [vmem:[%s7983_s24 + $0x78] sm:$0xff] }
  0x1a   : > { %507 = vst.msk [vmem:[#allocation2 + $0x39] sm:$0x1] %vm485_vm3, %v9560_v5  ;;  %508 = vst.msk [vmem:[#allocation2 + $0x49] sm:$0x1] %vm485_vm3, %v9560_v5  ;;  %v6250_v27 = vld [vmem:[%s9546_s1 + $0x4] sm:$0x1] }
  0x1b   : > { %509 = vst.msk [vmem:[#allocation2 + $0x59] sm:$0x1] %vm485_vm3, %v9560_v5  ;;  %510 = vst.msk [vmem:[#allocation2 + $0x69] sm:$0x1] %vm485_vm3, %v9560_v5  ;;  %v1325_v41 = vand.u32 %v6250_v27, %v7882_v2  ;;  %v665_v48 = vld [vmem:[#allocation2 + $0x1] sm:$0xff]  ;;  %vm529_vm6 = vcmask 9216  }
  0x1c   : > { %511 = vst.msk [vmem:[#allocation2 + $0x79] sm:$0x1] %vm485_vm3, %v9560_v5  ;;  %512 = vst.msk [vmem:[#allocation2 + $0x89] sm:$0x1] %vm485_vm3, %v9560_v5  ;;  %vm5216_vm7 = vcmask 1041408   ;;  %vm7794_vm8 = vmmov 0  }
  0x1d   : > { %513 = vst.msk [vmem:[#allocation2 + $0x99] sm:$0x1] %vm485_vm3, %v9560_v5  ;;  %514 = vst.msk [vmem:[#allocation2 + $0xa9] sm:$0x1] %vm485_vm3, %v9560_v5  ;;  %vm5212_vm9 = vcmask 31744   ;;  %vm5950_vm10 = vcmask 261120  }
  0x1e   : > { %515 = vst.msk [vmem:[#allocation2 + $0xb9] sm:$0x1] %vm485_vm3, %v9560_v5  ;;  %516 = vst.msk [vmem:[#allocation2 + $0xc9] sm:$0x1] %vm485_vm3, %v9560_v5  ;;  %s6213_s23 = sshll.u32 %s9649_s30, 3 }
  0x1f   : > { %517 = vst.msk [vmem:[#allocation2 + $0xd9] sm:$0x1] %vm485_vm3, %v9560_v5  ;;  %518 = vst.msk [vmem:[#allocation2 + $0xe9] sm:$0x1] %vm485_vm3, %v9560_v5  ;;  %s472_s28 = scalar_lea.vmem %s9558_s13, %s6213_s23  ;;  %s476_s18 = scalar_lea.vmem %s9559_s14, %s6213_s23 }
  0x20   : > { %519 = vst.msk [vmem:[#allocation2 + $0xf9] sm:$0x1] %vm485_vm3, %v9560_v5  ;;  %520 = vst.msk [vmem:[#allocation2 + $0x109] sm:$0x1] %vm485_vm3, %v9560_v5 }
  0x21   : > { %486 = vst.msk [vmem:[#allocation2] sm:$0x1] %vm485_vm3, %v9560_v5  ;;  %504 = vst.msk [vmem:[#allocation2 + $0x9] sm:$0x1] %vm485_vm3, %v9560_v5 }
  0x22   : > { %521 = vst.msk [vmem:[#allocation2 + $0x119] sm:$0x1] %vm485_vm3, %v9560_v5  ;;  %503 = vst.msk [vmem:[#allocation2 + $0x110] sm:$0x1] %vm485_vm3, %v9560_v5 }
  0x23   : > { %624 = vst.msk [vmem:[#allocation2 + $0x11] sm:$0xff] %vm478_vm1, %v607_v9  ;;  %625 = vst.msk [vmem:[#allocation2 + $0x21] sm:$0xff] %vm478_vm1, %v608_v10 }
  0x24   : > { %626 = vst.msk [vmem:[#allocation2 + $0x31] sm:$0xff] %vm478_vm1, %v609_v11  ;;  %627 = vst.msk [vmem:[#allocation2 + $0x41] sm:$0xff] %vm478_vm1, %v610_v12 }
  0x25   : > { %628 = vst.msk [vmem:[#allocation2 + $0x51] sm:$0xff] %vm478_vm1, %v611_v13  ;;  %629 = vst.msk [vmem:[#allocation2 + $0x61] sm:$0xff] %vm478_vm1, %v612_v14  ;;  %v6259_v13 = vld [vmem:[%s9546_s1 + $0x5] sm:$0x1] }
  0x26   : > { %630 = vst.msk [vmem:[#allocation2 + $0x71] sm:$0xff] %vm478_vm1, %v613_v15  ;;  %631 = vst.msk [vmem:[#allocation2 + $0x81] sm:$0xff] %vm478_vm1, %v614_v16 }
  0x27   : > { %632 = vst.msk [vmem:[#allocation2 + $0x91] sm:$0xff] %vm478_vm1, %v615_v17  ;;  %633 = vst.msk [vmem:[#allocation2 + $0xa1] sm:$0xff] %vm478_vm1, %v616_v18  ;;  %v1491_v18 = vand.u32 %v6259_v13, %v7882_v2 }
  0x28   : > { %634 = vst.msk [vmem:[#allocation2 + $0xb1] sm:$0xff] %vm478_vm1, %v617_v19  ;;  %635 = vst.msk [vmem:[#allocation2 + $0xc1] sm:$0xff] %vm478_vm1, %v618_v20  ;;  %v942_v25 = vld [vmem:[#allocation2 + $0x2] sm:$0xff] }
  0x29   : > { %636 = vst.msk [vmem:[#allocation2 + $0xd1] sm:$0xff] %vm478_vm1, %v619_v21  ;;  %637 = vst.msk [vmem:[#allocation2 + $0xe1] sm:$0xff] %vm478_vm1, %v620_v22 }
  0x2a   : > { %638 = vst.msk [vmem:[#allocation2 + $0xf1] sm:$0xff] %vm478_vm1, %v621_v23  ;;  %639 = vst.msk [vmem:[#allocation2 + $0x101] sm:$0xff] %vm478_vm1, %v622_v24  ;;  %v8025_v29 = vld [vmem:[#allocation2 + $0x12] sm:$0xff]  ;;  %v8027_v30 = vld [vmem:[#allocation2 + $0x22] sm:$0xff] }
  0x2b   : > { %v8029_v31 = vld [vmem:[#allocation2 + $0x32] sm:$0xff]  ;;  %v958_v32 = vpack.c.bf16 %v8025_v29, %v942_v25  ;;  %v8036_v34 = vld [vmem:[#allocation2 + $0x42] sm:$0xff]  ;;  %v1456_v37 = vpack.c.bf16 %v8027_v30, %v8025_v29 }
  0x2c   : > { %v8034_v33 = vpack.c.bf16 %v8029_v31, %v8027_v30  ;;  %v8038_v35 = vld [vmem:[#allocation2 + $0x52] sm:$0xff]  ;;  %v8040_v36 = vld [vmem:[#allocation2 + $0x62] sm:$0xff]  ;;  %v1457_v42 = vpack.c.bf16 %v8036_v34, %v8029_v31 }
  0x2d   : > { %v8046_v38 = vpack.c.bf16 %v8038_v35, %v8036_v34  ;;  %v8048_v39 = vld [vmem:[#allocation2 + $0x72] sm:$0xff]  ;;  %v8050_v40 = vld [vmem:[#allocation2 + $0x82] sm:$0xff]  ;;  %6805 = vmatprep.mubr.msk.bf16.mxu0 %vm478_vm1, %v958_v32 }
  0x2e   : > { %v8058_v44 = vld [vmem:[#allocation2 + $0x92] sm:$0xff]  ;;  %v8060_v45 = vld [vmem:[#allocation2 + $0xa2] sm:$0xff]  ;;  %6806 = vmatmul.mubr.msk.bf16.vlgmr.msra.gmra.mrb[0].mxu0 %vm478_vm1, %v8034_v33  ;;  %v8073_v49 = vpack.c.bf16 %v8048_v39, %v8040_v36  ;;  %v9581_v29 = vpack.c.bf16 %v8050_v40, %v8048_v39 }
  0x2f   : > { %6822 = vmatpush3.bf16.msra.mxu0 %v7963_v6  ;;  %6809 = vmatprep.mubr.msk.bf16.mxu0 %vm478_vm1, %v8046_v38  ;;  %v8077_v50 = vpack.c.bf16 %v8058_v44, %v8050_v40  ;;  %v8079_v51 = vld [vmem:[#allocation2 + $0x11] sm:$0xff]  ;;  %v8081_v52 = vld [vmem:[#allocation2 + $0x21] sm:$0xff]  ;;  %v9582_v30 = vpack.c.bf16 %v8060_v45, %v8058_v44 }
  0x30   : > { %6839 = vmatprep.subr.bf16.mxu0 %v1325_v41  ;;  %v8083_v53 = vld [vmem:[#allocation2 + $0x31] sm:$0xff]  ;;  %v8085_v54 = vld [vmem:[#allocation2 + $0x41] sm:$0xff]  ;;  %v681_v56 = vpack.c.bf16 %v8079_v51, %v665_v48 }
  0x31   : > { %v8087_v55 = vld [vmem:[#allocation2 + $0x51] sm:$0xff]  ;;  %v8092_v57 = vpack.c.bf16 %v8083_v53, %v8081_v52  ;;  %v1109_v61 = vld [vmem:[#allocation2 + $0x20] sm:$0xff] }
  0x32   : > { %v8096_v58 = vpack.c.bf16 %v8087_v55, %v8085_v54  ;;  %6769 = vmatprep.mubr.msk.bf16.mxu1 %vm478_vm1, %v681_v56  ;;  %v8103_v59 = vld [vmem:[#allocation2 + $0xb2] sm:$0xff]  ;;  %v8114_v63 = vld [vmem:[#allocation2 + $0x61] sm:$0xff] }
  0x33   : > { %6770 = vmatmul.mubr.msk.bf16.vlgmr.msra.gmra.mrb[0].mxu1 %vm478_vm1, %v8092_v57  ;;  %v1108_v60 = vld [vmem:[#allocation2 + $0x10] sm:$0xff]  ;;  %v8112_v62 = vpack.c.bf16 %v8103_v59, %v8060_v45  ;;  %v8118_v3 = vld [vmem:[#allocation2 + $0x81] sm:$0xff] }
  0x34   : > { %6773 = vmatprep.mubr.msk.bf16.mxu1 %vm478_vm1, %v8096_v58  ;;  %6786 = vmatpush3.bf16.msra.mxu1 %v843_v28  ;;  %v8116_v0 = vld [vmem:[#allocation2 + $0x71] sm:$0xff]  ;;  %v1124_v1 = vpack.c.bf16 %v1109_v61, %v1108_v60  ;;  %v1111_v10 = vld [vmem:[#allocation2 + $0x40] sm:$0xff] }
  0x35   : > { %7365 = vmatprep.subr.bf16.mxu1 %v7888_v4  ;;  %v8120_v6 = vld [vmem:[#allocation2 + $0x91] sm:$0xff]  ;;  %v8124_v7 = vpack.c.bf16 %v8116_v0, %v8114_v63  ;;  %v1113_v12 = vld [vmem:[#allocation2 + $0x60] sm:$0xff] }
  0x36   : > { %6810 = vmatmul.mubr.msk.bf16.gmra.mrb[4].mxu0 %vm478_vm1, %v8073_v49  ;;  %v8128_v8 = vpack.c.bf16 %v8120_v6, %v8118_v3  ;;  %v1110_v9 = vld [vmem:[#allocation2 + $0x30] sm:$0xff]  ;;  %v8140_v16 = vld [vmem:[#allocation2 + $0xa1] sm:$0xff] }
  0x37   : > { %6813 = vmatprep.mubr.msk.bf16.mxu0 %vm478_vm1, %v8077_v50  ;;  %v1112_v11 = vld [vmem:[#allocation2 + $0x50] sm:$0xff]  ;;  %v1125_v14 = vpack.c.bf16 %v1111_v10, %v1110_v9  ;;  %v8145_v19 = vld [vmem:[#allocation2 + $0xc1] sm:$0xff]  ;;  %v8174_v43 = vpack.c.bf16 %v1110_v9, %v1109_v61 }
  0x38   : > { %v1126_v15 = vpack.c.bf16 %v1113_v12, %v1112_v11  ;;  %v8142_v17 = vld [vmem:[#allocation2 + $0xb1] sm:$0xff]  ;;  %v1115_v24 = vld [vmem:[#allocation2 + $0x80] sm:$0xff] }
  0x39   : > { %v8147_v20 = vld [vmem:[#allocation2 + $0xd1] sm:$0xff]  ;;  %v8151_v21 = vpack.c.bf16 %v8142_v17, %v8140_v16  ;;  %v1117_v26 = vld [vmem:[#allocation2 + $0xa0] sm:$0xff] }
  0x3a   : > { %v8155_v22 = vpack.c.bf16 %v8147_v20, %v8145_v19  ;;  %v1114_v23 = vld [vmem:[#allocation2 + $0x70] sm:$0xff]  ;;  %v640_v28 = vld [vmem:[#allocation2] sm:$0xff] }
  0x3b   : > { %6774 = vmatmul.mubr.msk.bf16.gmra.mrb[4].mxu1 %vm478_vm1, %v8124_v7  ;;  %v1116_v25 = vld [vmem:[#allocation2 + $0x90] sm:$0xff]  ;;  %v1127_v27 = vpack.c.bf16 %v1115_v24, %v1114_v23  ;;  %v1287_v48 = vld [vmem:[#allocation2 + $0xe1] sm:$0xff] }
  0x3c   : > { %6777 = vmatprep.mubr.msk.bf16.mxu1 %vm478_vm1, %v8128_v8  ;;  %v1128_v32 = vpack.c.bf16 %v1117_v26, %v1116_v25  ;;  %v8163_v56 = vld [vmem:[#allocation2 + $0xf1] sm:$0xff]  ;;  %v1121_v5 = vld [vmem:[#allocation2 + $0xe0] sm:$0xff]  ;;  %v1626_v61 = vpack.c.bf16 %v1116_v25, %v1115_v24 }
  0x3d   : > { %v1118_v13 = vld [vmem:[#allocation2 + $0xb0] sm:$0xff]  ;;  %v6268_v9 = vld [vmem:[%s9546_s1 + $0x6] sm:$0x1] }
  0x3e   : > { %6814 = vmatmul.mubr.msk.bf16.gmra.mrb[8].mxu0 %vm478_vm1, %v8112_v62  ;;  %v1622_v40 = vld [vmem:[#allocation2 + $0x110] sm:$0xff] }
  0x3f   : > { %6823 = vmatprep.mubr.msk.bf16.mxu0 %vm478_vm1, %v1124_v1  ;;  %v656_v1 = vpack.c.bf16 %v1108_v60, %v640_v28  ;;  %v1122_v60 = vld [vmem:[#allocation2 + $0xf0] sm:$0xff]  ;;  %v8179_v28 = vpack.c.bf16 %v1112_v11, %v1111_v10  ;;  %v1627_v10 = vpack.c.bf16 %v1118_v13, %v1117_v26  ;;  %v6296_v26 = vld [vmem:[%s9548_s3 + $0x1] sm:$0x1] }
  0x40   : > { %v1954_v45 = vld [vmem:[#allocation2 + $0x112] sm:$0xff] }
  0x43   : > { %6778 = vmatmul.mubr.msk.bf16.gmra.mrb[8].mxu1 %vm478_vm1, %v8151_v21 }
  0x44   : > { %6781 = vmatprep.mubr.msk.bf16.mxu1 %vm478_vm1, %v8155_v22 }
  0x46   : > { %6824 = vmatmul.mubr.msk.bf16.vlgmr.msra.gmra.mrb[0].mxu0 %vm478_vm1, %v1125_v14  ;;  %v1119_v14 = vld [vmem:[#allocation2 + $0xc0] sm:$0xff] }
  0x47   : > { %6840 = vmatpush3.bf16.msra.mxu0 %v1325_v41  ;;  %6827 = vmatprep.mubr.msk.bf16.mxu0 %vm478_vm1, %v1126_v15  ;;  %v8166_v41 = vpack.c.bf16 %v8163_v56, %v1287_v48  ;;  %v1120_v15 = vld [vmem:[#allocation2 + $0xd0] sm:$0xff]  ;;  %v1129_v47 = vpack.c.bf16 %v1119_v14, %v1118_v13 }
  0x48   : > { %6857 = vmatprep.subr.bf16.mxu0 %v1491_v18  ;;  %v1130_v46 = vpack.c.bf16 %v1121_v5, %v1120_v15  ;;  %v1628_v11 = vpack.c.bf16 %v1120_v15, %v1119_v14  ;;  %v2185_v14 = vld [vmem:[%s9548_s3] sm:$0x1] }
  0x4b   : > { %6782 = vmatmul.mubr.msk.bf16.gmra.mrb[12].mxu1 %vm478_vm1, %v8166_v41 }
  0x4c   : > { %6787 = vmatprep.mubr.msk.bf16.mxu1 %vm478_vm1, %v656_v1 }
  0x4e   : > { %6828 = vmatmul.mubr.msk.bf16.gmra.mrb[4].mxu0 %vm478_vm1, %v1127_v27  ;;  %v8177_v27 = vld [vmem:[#allocation2 + $0x100] sm:$0xff] }
  0x4f   : > { %6831 = vmatprep.mubr.msk.bf16.mxu0 %vm478_vm1, %v1128_v32  ;;  %v1131_v32 = vpack.c.bf16 %v8177_v27, %v1122_v60 }
  0x53   : > { %6788 = vmatmul.mubr.msk.bf16.vlgmr.msra.gmra.mrb[0].mxu1 %vm478_vm1, %v8174_v43 }
  0x54   : > { %6791 = vmatprep.mubr.msk.bf16.mxu1 %vm478_vm1, %v8179_v28  ;;  %7366 = vmatpush3.bf16.msra.mxu1 %v7888_v4  ;;  %v1291_v4 = vpack.c.bf16 %v8085_v54, %v8083_v53  ;;  %v1293_v53 = vpack.c.bf16 %v8118_v3, %v8116_v0  ;;  %v1294_v54 = vpack.c.bf16 %v8140_v16, %v8120_v6  ;;  %v1289_v6 = vld [vmem:[#allocation2 + $0x101] sm:$0xff] }
  0x55   : > { %v1295_v0 = vpack.c.bf16 %v8145_v19, %v8142_v17  ;;  %v1296_v3 = vpack.c.bf16 %v1287_v48, %v8147_v20  ;;  %v1453_v16 = vld [vmem:[#allocation2 + $0xe2] sm:$0xff]  ;;  %v1297_v24 = vpack.c.bf16 %v1289_v6, %v8163_v56  ;;  %v9580_v20 = vpack.c.bf16 %v8040_v36, %v8038_v35  ;;  %7751 = vmatprep.subr.msk.bf16.mxu1 %vm715_vm0, %v6296_v26 }
  0x56   : > { %6832 = vmatmul.mubr.msk.bf16.gmra.mrb[8].mxu0 %vm478_vm1, %v1129_v47  ;;  %v1290_v47 = vpack.c.bf16 %v8081_v52, %v8079_v51  ;;  %v1292_v51 = vpack.c.bf16 %v8114_v63, %v8087_v55  ;;  %v1658_v52 = vand.u32 %v6268_v9, %v7882_v2  ;;  %v1451_v55 = vld [vmem:[#allocation2 + $0xc2] sm:$0xff]  ;;  %v1452_v63 = vld [vmem:[#allocation2 + $0xd2] sm:$0xff]  ;;  %v2237_v48 = vsel %vm715_vm0, %v6296_v26, 0 }
  0x57   : > { %6835 = vmatprep.mubr.msk.bf16.mxu0 %vm478_vm1, %v1130_v46  ;;  %v1625_v46 = vpack.c.bf16 %v1114_v23, %v1113_v12  ;;  %v8209_v12 = vpack.c.bf16 %v1452_v63, %v1451_v55  ;;  %v1454_v23 = vld [vmem:[#allocation2 + $0xf2] sm:$0xff]  ;;  %v6277_v17 = vld [vmem:[%s9546_s1 + $0x7] sm:$0x1]  ;;  %v1461_v31 = vpack.c.bf16 %v1451_v55, %v8103_v59  ;;  %v1462_v34 = vpack.c.bf16 %v1453_v16, %v1452_v63 }
  0x58   : > { %v1824_v19 = vand.u32 %v6277_v17, %v7882_v2  ;;  %v1455_v35 = vld [vmem:[#allocation2 + $0x102] sm:$0xff] }
  0x59   : > { %v1463_v36 = vpack.c.bf16 %v1455_v35, %v1454_v23 }
  0x5b   : > { %6792 = vmatmul.mubr.msk.bf16.gmra.mrb[4].mxu1 %vm478_vm1, %v1625_v46 }
  0x5c   : > { %6795 = vmatprep.mubr.msk.bf16.mxu1 %vm478_vm1, %v1626_v61 }
  0x5e   : > { %6836 = vmatmul.mubr.msk.bf16.gmra.mrb[12].mxu0 %vm478_vm1, %v1131_v32 }
  0x5f   : > { %6841 = vmatprep.mubr.msk.bf16.mxu0 %vm478_vm1, %v1290_v47 }
  0x63   : > { %6796 = vmatmul.mubr.msk.bf16.gmra.mrb[8].mxu1 %vm478_vm1, %v1627_v10 }
  0x64   : > { %6799 = vmatprep.mubr.msk.bf16.mxu1 %vm478_vm1, %v1628_v11 }
  0x66   : > { %6842 = vmatmul.mubr.msk.bf16.vlgmr.msra.gmra.mrb[0].mxu0 %vm478_vm1, %v1291_v4 }
  0x67   : > { %6858 = vmatpush3.bf16.msra.mxu0 %v1491_v18  ;;  %6845 = vmatprep.mubr.msk.bf16.mxu0 %vm478_vm1, %v1292_v51  ;;  %v1629_v18 = vpack.c.bf16 %v1122_v60, %v1121_v5  ;;  %v965_v5 = vpack.c.bf16 %v1454_v23, %v1453_v16  ;;  %v8500_v60 = vld [vmem:[%s9547_s2] ss:$0 sm:$0xff] }
  0x68   : > { %6875 = vmatprep.subr.bf16.mxu0 %v1658_v52 }
  0x6b   : > { %6800 = vmatmul.mubr.msk.bf16.gmra.mrb[12].mxu1 %vm478_vm1, %v1629_v18 }
  0x6c   : > { %6817 = vmatprep.mubr.msk.bf16.mxu1 %vm478_vm1, %v8209_v12 }
  0x6e   : > { %6846 = vmatmul.mubr.msk.bf16.gmra.mrb[4].mxu0 %vm478_vm1, %v1293_v53 }
  0x6f   : > { %6849 = vmatprep.mubr.msk.bf16.mxu0 %vm478_vm1, %v1294_v54 }
  0x76   : > { %6850 = vmatmul.mubr.msk.bf16.gmra.mrb[8].mxu0 %vm478_vm1, %v1295_v0 }
  0x77   : > { %6853 = vmatprep.mubr.msk.bf16.mxu0 %vm478_vm1, %v1296_v3  ;;  %6818 = vmatmul.mubr.msk.bf16.vlgmr.msra.gmra.mrb[12].mxu1 %vm478_vm1, %v965_v5 }
  0x78   : > { %6930 = vmatpush3.bf16.msra.mxu1 %v2237_v48  ;;  %v8558_v48 = vld [vmem:[%s9548_s3 + $0x2] sm:$0x1] }
  0x79   : > { %7752 = vmatprep.subr.msk.bf16.mxu1 %vm715_vm0, %v2185_v14 }
  0x7e   : > { %6854 = vmatmul.mubr.msk.bf16.gmra.mrb[12].mxu0 %vm478_vm1, %v1297_v24 }
  0x7f   : > { %6859 = vmatprep.mubr.msk.bf16.mxu0 %vm478_vm1, %v1456_v37  ;;  %v6286_v37 = vld [vmem:[%s9546_s1 + $0x8] sm:$0x1] }
  0x80   : > { %v1990_v39 = vand.u32 %v6286_v37, %v7882_v2  ;;  %v9583_v2 = vmov 0.0  }
  0x81   : > { %523 = vst.msk [vmem:[#allocation3] sm:$0xff] %vm522_vm4, %v9583_v2  ;;  %527 = vst.msk [vmem:[#allocation3 + $0x110] sm:$0xff] %vm522_vm4, %v9583_v2 }
  0x82   : > { %566 = vst.msk [vmem:[#allocation4] sm:$0xff] %vm522_vm4, %v9583_v2  ;;  %567 = vst.msk [vmem:[#allocation4 + $0x8] sm:$0xff] %vm522_vm4, %v9583_v2 }
  0x83   : > { %569 = vst.msk [vmem:[#allocation4 + $0x110] sm:$0xff] %vm522_vm4, %v9583_v2  ;;  %570 = vst.msk [vmem:[#allocation4 + $0x118] sm:$0xff] %vm522_vm4, %v9583_v2 }
  0x84   : > { %525 = vst.msk [vmem:[#allocation3 + $0x8] sm:$0xf] %vm524_vm5, %v9583_v2  ;;  %528 = vst.msk [vmem:[#allocation3 + $0x118] sm:$0xf] %vm524_vm5, %v9583_v2 }
  0x85   : > { %571 = vst.msk [vmem:[#allocation4] sm:$0xf] %vm524_vm5, %v9583_v2  ;;  %572 = vst.msk [vmem:[#allocation4 + $0x10] sm:$0xf] %vm524_vm5, %v9583_v2 }
  0x86   : > { %6860 = vmatmul.mubr.msk.bf16.vlgmr.msra.gmra.mrb[0].mxu0 %vm478_vm1, %v1457_v42  ;;  %v1630_v42 = vpack.c.bf16 %v1622_v40, %v8177_v27  ;;  %573 = vst.msk [vmem:[#allocation4 + $0x20] sm:$0xf] %vm524_vm5, %v9583_v2  ;;  %574 = vst.msk [vmem:[#allocation4 + $0x30] sm:$0xf] %vm524_vm5, %v9583_v2 }
  0x87   : > { %6876 = vmatpush3.bf16.msra.mxu0 %v1658_v52  ;;  %6863 = vmatprep.mubr.msk.bf16.mxu0 %vm478_vm1, %v9580_v20  ;;  %575 = vst.msk [vmem:[#allocation4 + $0x40] sm:$0xf] %vm524_vm5, %v9583_v2  ;;  %576 = vst.msk [vmem:[#allocation4 + $0x50] sm:$0xf] %vm524_vm5, %v9583_v2 }
  0x88   : > { %6893 = vmatprep.subr.bf16.mxu0 %v1824_v19  ;;  %577 = vst.msk [vmem:[#allocation4 + $0x60] sm:$0xf] %vm524_vm5, %v9583_v2  ;;  %578 = vst.msk [vmem:[#allocation4 + $0x70] sm:$0xf] %vm524_vm5, %v9583_v2 }
  0x89   : > { %579 = vst.msk [vmem:[#allocation4 + $0x80] sm:$0xf] %vm524_vm5, %v9583_v2  ;;  %580 = vst.msk [vmem:[#allocation4 + $0x90] sm:$0xf] %vm524_vm5, %v9583_v2 }
  0x8a   : > { %581 = vst.msk [vmem:[#allocation4 + $0xa0] sm:$0xf] %vm524_vm5, %v9583_v2  ;;  %582 = vst.msk [vmem:[#allocation4 + $0xb0] sm:$0xf] %vm524_vm5, %v9583_v2 }
  0x8b   : > { %583 = vst.msk [vmem:[#allocation4 + $0xc0] sm:$0xf] %vm524_vm5, %v9583_v2  ;;  %584 = vst.msk [vmem:[#allocation4 + $0xd0] sm:$0xf] %vm524_vm5, %v9583_v2  ;;  %v2186_v20 = vld [vmem:[#allocation3 + $0x2] sm:$0xff] }
  0x8c   : > { %585 = vst.msk [vmem:[#allocation4 + $0xe0] sm:$0xf] %vm524_vm5, %v9583_v2  ;;  %586 = vst.msk [vmem:[#allocation4 + $0xf0] sm:$0xf] %vm524_vm5, %v9583_v2 }
  0x8d   : > { %587 = vst.msk [vmem:[#allocation4 + $0x100] sm:$0xf] %vm524_vm5, %v9583_v2  ;;  %588 = vst.msk [vmem:[#allocation4 + $0x110] sm:$0xf] %vm524_vm5, %v9583_v2 }
  0x8e   : > { %6864 = vmatmul.mubr.msk.bf16.gmra.mrb[4].mxu0 %vm478_vm1, %v9581_v29  ;;  %589 = vst.msk [vmem:[#allocation4 + $0xc] sm:$0xf] %vm524_vm5, %v9583_v2  ;;  %590 = vst.msk [vmem:[#allocation4 + $0x1c] sm:$0xf] %vm524_vm5, %v9583_v2 }
  0x8f   : > { %6867 = vmatprep.mubr.msk.bf16.mxu0 %vm478_vm1, %v9582_v30  ;;  %591 = vst.msk [vmem:[#allocation4 + $0x2c] sm:$0xf] %vm524_vm5, %v9583_v2  ;;  %592 = vst.msk [vmem:[#allocation4 + $0x3c] sm:$0xf] %vm524_vm5, %v9583_v2 }
  0x90   : > { %593 = vst.msk [vmem:[#allocation4 + $0x4c] sm:$0xf] %vm524_vm5, %v9583_v2  ;;  %594 = vst.msk [vmem:[#allocation4 + $0x5c] sm:$0xf] %vm524_vm5, %v9583_v2 }
  0x91   : > { %595 = vst.msk [vmem:[#allocation4 + $0x6c] sm:$0xf] %vm524_vm5, %v9583_v2  ;;  %596 = vst.msk [vmem:[#allocation4 + $0x7c] sm:$0xf] %vm524_vm5, %v9583_v2 }
  0x92   : > { %597 = vst.msk [vmem:[#allocation4 + $0x8c] sm:$0xf] %vm524_vm5, %v9583_v2  ;;  %598 = vst.msk [vmem:[#allocation4 + $0x9c] sm:$0xf] %vm524_vm5, %v9583_v2 }
  0x93   : > { %599 = vst.msk [vmem:[#allocation4 + $0xac] sm:$0xf] %vm524_vm5, %v9583_v2  ;;  %600 = vst.msk [vmem:[#allocation4 + $0xbc] sm:$0xf] %vm524_vm5, %v9583_v2 }
  0x94   : > { %601 = vst.msk [vmem:[#allocation4 + $0xcc] sm:$0xf] %vm524_vm5, %v9583_v2  ;;  %602 = vst.msk [vmem:[#allocation4 + $0xdc] sm:$0xf] %vm524_vm5, %v9583_v2 }
  0x95   : > { %603 = vst.msk [vmem:[#allocation4 + $0xec] sm:$0xf] %vm524_vm5, %v9583_v2  ;;  %604 = vst.msk [vmem:[#allocation4 + $0xfc] sm:$0xf] %vm524_vm5, %v9583_v2 }
  0x96   : > { %6868 = vmatmul.mubr.msk.bf16.gmra.mrb[8].mxu0 %vm478_vm1, %v1461_v31  ;;  %605 = vst.msk [vmem:[#allocation4 + $0x10c] sm:$0xf] %vm524_vm5, %v9583_v2  ;;  %606 = vst.msk [vmem:[#allocation4 + $0x11c] sm:$0xf] %vm524_vm5, %v9583_v2 }
  0x97   : > { %6871 = vmatprep.mubr.msk.bf16.mxu0 %vm478_vm1, %v1462_v34  ;;  %530 = vst.msk [vmem:[#allocation3] sm:$0x3] %vm529_vm6, %v9583_v2  ;;  %531 = vst.msk [vmem:[#allocation3 + $0x10] sm:$0x3] %vm529_vm6, %v9583_v2 }
  0x98   : > { %532 = vst.msk [vmem:[#allocation3 + $0x20] sm:$0x3] %vm529_vm6, %v9583_v2  ;;  %533 = vst.msk [vmem:[#allocation3 + $0x30] sm:$0x3] %vm529_vm6, %v9583_v2 }
  0x99   : > { %534 = vst.msk [vmem:[#allocation3 + $0x40] sm:$0x3] %vm529_vm6, %v9583_v2  ;;  %535 = vst.msk [vmem:[#allocation3 + $0x50] sm:$0x3] %vm529_vm6, %v9583_v2 }
  0x9a   : > { %536 = vst.msk [vmem:[#allocation3 + $0x60] sm:$0x3] %vm529_vm6, %v9583_v2  ;;  %537 = vst.msk [vmem:[#allocation3 + $0x70] sm:$0x3] %vm529_vm6, %v9583_v2 }
  0x9b   : > { %538 = vst.msk [vmem:[#allocation3 + $0x80] sm:$0x3] %vm529_vm6, %v9583_v2  ;;  %539 = vst.msk [vmem:[#allocation3 + $0x90] sm:$0x3] %vm529_vm6, %v9583_v2 }
  0x9c   : > { %540 = vst.msk [vmem:[#allocation3 + $0xa0] sm:$0x3] %vm529_vm6, %v9583_v2  ;;  %541 = vst.msk [vmem:[#allocation3 + $0xb0] sm:$0x3] %vm529_vm6, %v9583_v2 }
  0x9d   : > { %542 = vst.msk [vmem:[#allocation3 + $0xc0] sm:$0x3] %vm529_vm6, %v9583_v2  ;;  %543 = vst.msk [vmem:[#allocation3 + $0xd0] sm:$0x3] %vm529_vm6, %v9583_v2 }
  0x9e   : > { %6872 = vmatmul.mubr.msk.bf16.gmra.mrb[12].mxu0 %vm478_vm1, %v1463_v36  ;;  %544 = vst.msk [vmem:[#allocation3 + $0xe0] sm:$0x3] %vm529_vm6, %v9583_v2  ;;  %545 = vst.msk [vmem:[#allocation3 + $0xf0] sm:$0x3] %vm529_vm6, %v9583_v2 }
  0x9f   : > { %6877 = vmatprep.mubr.msk.bf16.mxu0 %vm478_vm1, %v8174_v43  ;;  %v1788_v43 = vld [vmem:[#allocation2 + $0x111] sm:$0xff]  ;;  %546 = vst.msk [vmem:[#allocation3 + $0x100] sm:$0x3] %vm529_vm6, %v9583_v2  ;;  %547 = vst.msk [vmem:[#allocation3 + $0x110] sm:$0x3] %vm529_vm6, %v9583_v2 }
  0xa0   : > { %v1796_v44 = vpack.c.bf16 %v1788_v43, %v1289_v6  ;;  %549 = vst.msk [vmem:[#allocation3 + $0x1a] sm:$0x3] %vm529_vm6, %v9583_v2  ;;  %550 = vst.msk [vmem:[#allocation3 + $0x2a] sm:$0x3] %vm529_vm6, %v9583_v2 }
  0xa1   : > { %551 = vst.msk [vmem:[#allocation3 + $0x3a] sm:$0x3] %vm529_vm6, %v9583_v2  ;;  %552 = vst.msk [vmem:[#allocation3 + $0x4a] sm:$0x3] %vm529_vm6, %v9583_v2 }
  0xa2   : > { %553 = vst.msk [vmem:[#allocation3 + $0x5a] sm:$0x3] %vm529_vm6, %v9583_v2  ;;  %554 = vst.msk [vmem:[#allocation3 + $0x6a] sm:$0x3] %vm529_vm6, %v9583_v2 }
  0xa3   : > { %555 = vst.msk [vmem:[#allocation3 + $0x7a] sm:$0x3] %vm529_vm6, %v9583_v2  ;;  %556 = vst.msk [vmem:[#allocation3 + $0x8a] sm:$0x3] %vm529_vm6, %v9583_v2 }
  0xa4   : > { %557 = vst.msk [vmem:[#allocation3 + $0x9a] sm:$0x3] %vm529_vm6, %v9583_v2  ;;  %558 = vst.msk [vmem:[#allocation3 + $0xaa] sm:$0x3] %vm529_vm6, %v9583_v2 }
  0xa5   : > { %559 = vst.msk [vmem:[#allocation3 + $0xba] sm:$0x3] %vm529_vm6, %v9583_v2  ;;  %560 = vst.msk [vmem:[#allocation3 + $0xca] sm:$0x3] %vm529_vm6, %v9583_v2 }
  0xa6   : > { %6878 = vmatmul.mubr.msk.bf16.vlgmr.msra.gmra.mrb[0].mxu0 %vm478_vm1, %v8179_v28  ;;  %561 = vst.msk [vmem:[#allocation3 + $0xda] sm:$0x3] %vm529_vm6, %v9583_v2  ;;  %562 = vst.msk [vmem:[#allocation3 + $0xea] sm:$0x3] %vm529_vm6, %v9583_v2 }
  0xa7   : > { %6894 = vmatpush3.bf16.msra.mxu0 %v1824_v19  ;;  %6881 = vmatprep.mubr.msk.bf16.mxu0 %vm478_vm1, %v1625_v46  ;;  %563 = vst.msk [vmem:[#allocation3 + $0xfa] sm:$0x3] %vm529_vm6, %v9583_v2  ;;  %564 = vst.msk [vmem:[#allocation3 + $0x10a] sm:$0x3] %vm529_vm6, %v9583_v2 }
  0xa8   : > { %6911 = vmatprep.subr.bf16.mxu0 %v1990_v39  ;;  %548 = vst.msk [vmem:[#allocation3 + $0xa] sm:$0x3] %vm529_vm6, %v9583_v2  ;;  %565 = vst.msk [vmem:[#allocation3 + $0x11a] sm:$0x3] %vm529_vm6, %v9583_v2 }
  0xae   : > { %6882 = vmatmul.mubr.msk.bf16.gmra.mrb[4].mxu0 %vm478_vm1, %v1626_v61 }
  0xaf   : > { %6885 = vmatprep.mubr.msk.bf16.mxu0 %vm478_vm1, %v1627_v10 }
  0xb6   : > { %6886 = vmatmul.mubr.msk.bf16.gmra.mrb[8].mxu0 %vm478_vm1, %v1628_v11 }
  0xb7   : > { %6889 = vmatprep.mubr.msk.bf16.mxu0 %vm478_vm1, %v1629_v18 }
  0xbe   : > { %6890 = vmatmul.mubr.msk.bf16.gmra.mrb[12].mxu0 %vm478_vm1, %v1630_v42 }
  0xbf   : > { %6895 = vmatprep.mubr.msk.bf16.mxu0 %vm478_vm1, %v8092_v57  ;;  %v1962_v57 = vpack.c.bf16 %v1954_v45, %v1455_v35 }
  0xc6   : > { %6896 = vmatmul.mubr.msk.bf16.vlgmr.msra.gmra.mrb[0].mxu0 %vm478_vm1, %v8096_v58 }
  0xc7   : > { %6912 = vmatpush3.bf16.msra.mxu0 %v1990_v39  ;;  %6899 = vmatprep.mubr.msk.bf16.mxu0 %vm478_vm1, %v8124_v7 }
  0xce   : > { %6900 = vmatmul.mubr.msk.bf16.gmra.mrb[4].mxu0 %vm478_vm1, %v8128_v8 }
  0xcf   : > { %6903 = vmatprep.mubr.msk.bf16.mxu0 %vm478_vm1, %v8151_v21 }
  0xd6   : > { %6904 = vmatmul.mubr.msk.bf16.gmra.mrb[8].mxu0 %vm478_vm1, %v8155_v22 }
  0xd7   : > { %6907 = vmatprep.mubr.msk.bf16.mxu0 %vm478_vm1, %v8166_v41 }
  0xde   : > { %6908 = vmatmul.mubr.msk.bf16.gmra.mrb[12].mxu0 %vm478_vm1, %v1796_v44 }
  0xdf   : > { %6913 = vmatprep.mubr.msk.bf16.mxu0 %vm478_vm1, %v8034_v33 }
  0xe6   : > { %6914 = vmatmul.mubr.msk.bf16.vlgmr.msra.gmra.mrb[0].mxu0 %vm478_vm1, %v8046_v38 }
  0xe7   : > { %6917 = vmatprep.mubr.msk.bf16.mxu0 %vm478_vm1, %v8073_v49 }
  0xee   : > { %6918 = vmatmul.mubr.msk.bf16.gmra.mrb[4].mxu0 %vm478_vm1, %v8077_v50 }
  0xef   : > { %6921 = vmatprep.mubr.msk.bf16.mxu0 %vm478_vm1, %v8112_v62 }
  0xf6   : > { %6922 = vmatmul.mubr.msk.bf16.gmra.mrb[8].mxu0 %vm478_vm1, %v8209_v12 }
  0xf7   : > { %6925 = vmatprep.mubr.msk.bf16.mxu0 %vm478_vm1, %v965_v5 }
  0xfe   : > { %6926 = vmatmul.mubr.msk.bf16.gmra.mrb[12].mxu0 %vm478_vm1, %v1962_v57 }
 0x126   : > { %v8308_v33 = vpop.f32.mrb[0].mxu1 }
 0x127   : > { %v8310_v38 = vpop.f32.mrb[1].mxu1 }
 0x128   : > { %v8312_v49 = vpop.f32.mrb[2].mxu1 }
 0x129   : > { %v8314_v58 = vpop.f32.mrb[3].mxu1 }
 0x12e   : > { %v8316_v50 = vpop.f32.mrb[4].mxu1 }
 0x12f   : > { %v8318_v59 = vpop.f32.mrb[5].mxu1 }
 0x130   : > { %v8320_v62 = vpop.f32.mrb[6].mxu1 }
 0x131   : > { %v8322_v7 = vpop.f32.mrb[7].mxu1 }
 0x136   : > { %v8324_v8 = vpop.f32.mrb[8].mxu1 }
 0x137   : > { %v8326_v21 = vpop.f32.mrb[9].mxu1 }
 0x138   : > { %v8328_v22 = vpop.f32.mrb[10].mxu1 }
 0x139   : > { %v8330_v25 = vpop.f32.mrb[11].mxu1 }
 0x14a   : > { %v8485_v56 = vpop.f32.mrb[12].mxu1 }
 0x14b   : > { %v8487_v41 = vpop.f32.mrb[13].mxu1 }
 0x14c   : > { %v8489_v1 = vpop.f32.mrb[14].mxu1 }
 0x14d   : > { %v8491_v13 = vpop.f32.mrb[15].mxu1 }
 0x1b9   : > { %v6915_v15 = vpop.f32.mrb[0].mxu0 }
 0x1ba   : > { %v7367_v27 = vadd.f32 %v6915_v15, %v8308_v33  ;;  %v2026_v28 = vpop.f32.mrb[1].mxu0 }
 0x1bb   : > { %v7368_v32 = vadd.f32 %v2026_v28, %v8310_v38  ;;  %v6916_v47 = vpop.f32.mrb[2].mxu0 }
 0x1bc   : > { %v2114_v46 = vadd.f32 %v7367_v27, %v8500_v60  ;;  %v7369_v61 = vadd.f32 %v6916_v47, %v8312_v49  ;;  %v2029_v9 = vpop.f32.mrb[3].mxu0 }
 0x1bd   : > { %v2112_v4 = vadd.f32 %v7368_v32, %v8500_v60  ;;  %v7370_v51 = vadd.f32 %v2029_v9, %v8314_v58 }
 0x1be   : > { %v2130_v52 = vmax.f32 %v2114_v46, 0.0  ;;  %v2115_v10 = vadd.f32 %v7369_v61, %v8500_v60 }
 0x1bf   : > { %v2128_v11 = vmax.f32 %v2112_v4, 0.0  ;;  %v2113_v53 = vadd.f32 %v7370_v51, %v8500_v60 }
 0x1c0   : > { %2147 = vst.msk [vmem:[#allocation3 + $0x32] sm:$0xff] %vm522_vm4, %v2130_v52  ;;  %v2131_v54 = vmax.f32 %v2115_v10, 0.0 }
 0x1c1   : > { %2145 = vst.msk [vmem:[#allocation3 + $0x12] sm:$0xff] %vm522_vm4, %v2128_v11  ;;  %v2129_v55 = vmax.f32 %v2113_v53, 0.0  ;;  %v6919_v63 = vpop.f32.mrb[4].mxu0 }
 0x1c2   : > { %2148 = vst.msk [vmem:[#allocation3 + $0x42] sm:$0xff] %vm522_vm4, %v2131_v54  ;;  %v7371_v12 = vadd.f32 %v6919_v63, %v8316_v50  ;;  %v2042_v18 = vpop.f32.mrb[5].mxu0 }
 0x1c3   : > { %2146 = vst.msk [vmem:[#allocation3 + $0x22] sm:$0xff] %vm522_vm4, %v2129_v55  ;;  %v7372_v0 = vadd.f32 %v2042_v18, %v8318_v59  ;;  %v6920_v3 = vpop.f32.mrb[6].mxu0 }
 0x1c4   : > { %v2118_v6 = vadd.f32 %v7371_v12, %v8500_v60  ;;  %v7373_v16 = vadd.f32 %v6920_v3, %v8320_v62  ;;  %v2045_v23 = vpop.f32.mrb[7].mxu0  ;;  %v2361_v62 = vsel %vm715_vm0, %v2185_v14, 0 }
 0x1c5   : > { %v2116_v5 = vadd.f32 %v7372_v0, %v8500_v60  ;;  %v7374_v24 = vadd.f32 %v2045_v23, %v8322_v7 }
 0x1c6   : > { %v2134_v17 = vmax.f32 %v2118_v6, 0.0  ;;  %v2119_v19 = vadd.f32 %v7373_v16, %v8500_v60 }
 0x1c7   : > { %v2132_v29 = vmax.f32 %v2116_v5, 0.0  ;;  %v2117_v30 = vadd.f32 %v7374_v24, %v8500_v60  ;;  %v8525_v35 = vld [vmem:[#allocation3 + $0x32] sm:$0xff] }
 0x1c8   : > { %2151 = vst.msk [vmem:[#allocation3 + $0x72] sm:$0xff] %vm522_vm4, %v2134_v17  ;;  %v2135_v31 = vmax.f32 %v2119_v19, 0.0  ;;  %v8523_v34 = vld [vmem:[#allocation3 + $0x12] sm:$0xff] }
 0x1c9   : > { %2149 = vst.msk [vmem:[#allocation3 + $0x52] sm:$0xff] %vm522_vm4, %v2132_v29  ;;  %v2133_v36 = vmax.f32 %v2117_v30, 0.0  ;;  %v6923_v37 = vpop.f32.mrb[8].mxu0  ;;  %v2202_v39 = vpack.c.bf16 %v8523_v34, %v2186_v20  ;;  %v8529_v40 = vld [vmem:[#allocation3 + $0x42] sm:$0xff]  ;;  %v8531_v42 = vld [vmem:[#allocation3 + $0x34] sm:$0xff] }
 0x1ca   : > { %v8533_v43 = vld [vmem:[#allocation3 + $0x44] sm:$0xff]  ;;  %2152 = vst.msk [vmem:[#allocation3 + $0x82] sm:$0xff] %vm522_vm4, %v2135_v31  ;;  %v7375_v44 = vadd.f32 %v6923_v37, %v8324_v8  ;;  %v2058_v45 = vpop.f32.mrb[9].mxu0 }
 0x1cb   : > { %v8537_v57 = vld [vmem:[#allocation3 + $0x22] sm:$0xff]  ;;  %2150 = vst.msk [vmem:[#allocation3 + $0x62] sm:$0xff] %vm522_vm4, %v2133_v36  ;;  %v7376_v58 = vadd.f32 %v2058_v45, %v8326_v21  ;;  %v6924_v50 = vpop.f32.mrb[10].mxu0  ;;  %6931 = vmatprep.mubr.msk.bf16.mxu1 %vm522_vm4, %v2202_v39  ;;  %v8560_v21 = vld [vmem:[#allocation3 + $0x14] sm:$0xff] }
 0x1cc   : > { %v8539_v33 = vld [vmem:[#allocation3 + $0x24] sm:$0xff]  ;;  %v8550_v59 = vpack.c.bf16 %v8525_v35, %v8537_v57  ;;  %v2122_v7 = vadd.f32 %v7375_v44, %v8500_v60  ;;  %v7377_v8 = vadd.f32 %v6924_v50, %v8328_v22  ;;  %v2061_v26 = vpop.f32.mrb[11].mxu0 }
 0x1cd   : > { %v2120_v27 = vadd.f32 %v7376_v58, %v8500_v60  ;;  %v7378_v28 = vadd.f32 %v2061_v26, %v8330_v25  ;;  %v8730_v38 = vpack.c.bf16 %v8531_v42, %v8539_v33 }
 0x1ce   : > { %6932 = vmatmul.mubr.msk.bf16.vlgmr.msra.gmra.mrb[16].mxu1 %vm522_vm4, %v8550_v59  ;;  %v2138_v14 = vmax.f32 %v2122_v7, 0.0  ;;  %v2123_v32 = vadd.f32 %v7377_v8, %v8500_v60  ;;  %v2460_v7 = vld [vmem:[#allocation3 + $0x4] sm:$0xff] }
 0x1cf   : > { %6948 = vmatpush3.bf16.msra.mxu1 %v2361_v62  ;;  %v2136_v47 = vmax.f32 %v2120_v27, 0.0  ;;  %v2121_v46 = vadd.f32 %v7378_v28, %v8500_v60  ;;  %v8577_v9 = vld [vmem:[#allocation3 + $0x72] sm:$0xff]  ;;  %v2476_v17 = vpack.c.bf16 %v8560_v21, %v2460_v7  ;;  %9588 = vst [vmem:[#allocation9_spill] sm:$0xff] %v8730_v38 }
 0x1d0   : > { %7753 = vmatprep.subr.msk.bf16.mxu1 %vm715_vm0, %v8558_v48  ;;  %2155 = vst.msk [vmem:[#allocation3 + $0xb2] sm:$0xff] %vm522_vm4, %v2138_v14  ;;  %v2139_v61 = vmax.f32 %v2123_v32, 0.0  ;;  %v8575_v25 = vld [vmem:[#allocation3 + $0x52] sm:$0xff] }
 0x1d1   : > { %2153 = vst.msk [vmem:[#allocation3 + $0x92] sm:$0xff] %vm522_vm4, %v2136_v47  ;;  %v2137_v4 = vmax.f32 %v2121_v46, 0.0  ;;  %v6927_v51 = vpop.f32.mrb[12].mxu0  ;;  %v8582_v52 = vpack.c.bf16 %v8575_v25, %v8529_v40  ;;  %v8584_v10 = vld [vmem:[#allocation3 + $0x82] sm:$0xff]  ;;  %v8586_v11 = vld [vmem:[#allocation3 + $0x74] sm:$0xff] }
 0x1d2   : > { %v8588_v53 = vld [vmem:[#allocation3 + $0x84] sm:$0xff]  ;;  %2156 = vst.msk [vmem:[#allocation3 + $0xc2] sm:$0xff] %vm522_vm4, %v2139_v61  ;;  %v7379_v54 = vadd.f32 %v6927_v51, %v8485_v56  ;;  %v2074_v55 = vpop.f32.mrb[13].mxu0  ;;  %v8610_v24 = vld [vmem:[#allocation3 + $0x54] sm:$0xff] }
 0x1d3   : > { %v8592_v63 = vld [vmem:[#allocation3 + $0x62] sm:$0xff]  ;;  %2154 = vst.msk [vmem:[#allocation3 + $0xa2] sm:$0xff] %vm522_vm4, %v2137_v4  ;;  %v7380_v3 = vadd.f32 %v2074_v55, %v8487_v41  ;;  %v6928_v6 = vpop.f32.mrb[14].mxu0  ;;  %6935 = vmatprep.mubr.msk.bf16.mxu1 %vm522_vm4, %v8582_v52  ;;  %v8668_v61 = vld [vmem:[#allocation3 + $0x10] sm:$0xff] }
 0x1d4   : > { %v8594_v12 = vld [vmem:[#allocation3 + $0x64] sm:$0xff]  ;;  %v8606_v56 = vpack.c.bf16 %v8577_v9, %v8592_v63  ;;  %v2126_v16 = vadd.f32 %v7379_v54, %v8500_v60  ;;  %v7381_v23 = vadd.f32 %v6928_v6, %v8489_v1  ;;  %v2077_v5 = vpop.f32.mrb[15].mxu0 }
 0x1d5   : > { %v2124_v41 = vadd.f32 %v7380_v3, %v8500_v60  ;;  %v7382_v19 = vadd.f32 %v2077_v5, %v8491_v13  ;;  %v2161_v46 = vld [vmem:[#allocation3] sm:$0xff] }
 0x1d6   : > { %6936 = vmatmul.mubr.msk.bf16.gmra.mrb[20].mxu1 %vm522_vm4, %v8606_v56  ;;  %v2142_v29 = vmax.f32 %v2126_v16, 0.0  ;;  %v2127_v30 = vadd.f32 %v7381_v23, %v8500_v60  ;;  %v2177_v6 = vpack.c.bf16 %v8668_v61, %v2161_v46  ;;  %v2163_v5 = vld [vmem:[#allocation3 + $0x20] sm:$0xff] }
 0x1d7   : > { %v2140_v1 = vmax.f32 %v2124_v41, 0.0  ;;  %v2125_v31 = vadd.f32 %v7382_v19, %v8500_v60  ;;  %v8625_v39 = vld [vmem:[#allocation3 + $0xb2] sm:$0xff]  ;;  %v2169_v23 = vld [vmem:[#allocation3 + $0x80] sm:$0xff] }
 0x1d8   : > { %2159 = vst.msk [vmem:[#allocation3 + $0xf2] sm:$0xff] %vm522_vm4, %v2142_v29  ;;  %v2143_v36 = vmax.f32 %v2127_v30, 0.0  ;;  %v8623_v37 = vld [vmem:[#allocation3 + $0x92] sm:$0xff]  ;;  %v2511_v30 = vsel %vm715_vm0, %v8558_v48, 0 }
 0x1d9   : > { %2157 = vst.msk [vmem:[#allocation3 + $0xd2] sm:$0xff] %vm522_vm4, %v2140_v1  ;;  %v2141_v13 = vmax.f32 %v2125_v31, 0.0  ;;  %v8630_v44 = vpack.c.bf16 %v8623_v37, %v8584_v10  ;;  %v8632_v45 = vld [vmem:[#allocation3 + $0xc2] sm:$0xff]  ;;  %v8634_v58 = vld [vmem:[#allocation3 + $0xb4] sm:$0xff] }
 0x1da   : > { %v8636_v50 = vld [vmem:[#allocation3 + $0xc4] sm:$0xff]  ;;  %2160 = vst.msk [vmem:[#allocation3 + $0x102] sm:$0xff] %vm522_vm4, %v2143_v36  ;;  %v8654_v27 = vld [vmem:[#allocation3 + $0x94] sm:$0xff]  ;;  %v6322_v36 = vld [vmem:[%s9548_s3 + $0x3] sm:$0x1] }
 0x1db   : > { %9584 = vst [vmem:[#allocation5_spill] sm:$0xff] %v8630_v44  ;;  %v8639_v60 = vld [vmem:[#allocation3 + $0xa2] sm:$0xff]  ;;  %2158 = vst.msk [vmem:[#allocation3 + $0xe2] sm:$0xff] %vm522_vm4, %v2141_v13  ;;  %6939 = vmatprep.mubr.msk.bf16.mxu1 %vm522_vm4, %v8630_v44  ;;  %v2166_v41 = vld [vmem:[#allocation3 + $0x50] sm:$0xff]  ;;  %v2677_v15 = vsel %vm715_vm0, %v6322_v36, 0  ;;  %v8751_v7 = vpack.c.bf16 %v8654_v27, %v8588_v53 }
 0x1dc   : > { %v8641_v62 = vld [vmem:[#allocation3 + $0xa4] sm:$0xff]  ;;  %v8652_v26 = vpack.c.bf16 %v8625_v39, %v8639_v60  ;;  %v2164_v19 = vld [vmem:[#allocation3 + $0x30] sm:$0xff] }
 0x1dd   : > { %v8692_v29 = vpack.c.bf16 %v2164_v19, %v2163_v5  ;;  %v2165_v1 = vld [vmem:[#allocation3 + $0x40] sm:$0xff]  ;;  %v2170_v46 = vld [vmem:[#allocation3 + $0x90] sm:$0xff]  ;;  %9591 = vst [vmem:[#allocation12_spill] sm:$0xff] %v8751_v7 }
 0x1de   : > { %9585 = vst [vmem:[#allocation6_spill] sm:$0xff] %v8652_v26  ;;  %6940 = vmatmul.mubr.msk.bf16.gmra.mrb[24].mxu1 %vm522_vm4, %v8652_v26  ;;  %v8696_v31 = vpack.c.bf16 %v2166_v41, %v2165_v1  ;;  %v2167_v13 = vld [vmem:[#allocation3 + $0x60] sm:$0xff]  ;;  %v8708_v8 = vpack.c.bf16 %v2170_v46, %v2169_v23  ;;  %v2172_v0 = vld [vmem:[#allocation3 + $0xb0] sm:$0xff] }
 0x1df   : > { %v8672_v51 = vld [vmem:[#allocation3 + $0xf2] sm:$0xff]  ;;  %v2173_v49 = vld [vmem:[#allocation3 + $0xc0] sm:$0xff]  ;;  %v2644_v44 = vpack.c.bf16 %v2167_v13, %v2166_v41 }
 0x1e0   : > { %v8662_v32 = vld [vmem:[#allocation3 + $0xd2] sm:$0xff] }
 0x1e1   : > { %v8666_v47 = vpack.c.bf16 %v8662_v32, %v8632_v45  ;;  %v8682_v3 = vld [vmem:[#allocation3 + $0xd4] sm:$0xff]  ;;  %v2641_v41 = vld [vmem:[#allocation3 + $0x100] sm:$0xff] }
 0x1e2   : > { %v8670_v4 = vld [vmem:[#allocation3 + $0xe2] sm:$0xff]  ;;  %v2174_v14 = vld [vmem:[#allocation3 + $0xd0] sm:$0xff] }
 0x1e3   : > { %9586 = vst [vmem:[#allocation7_spill] sm:$0xff] %v8666_v47  ;;  %v8674_v54 = vld [vmem:[#allocation3 + $0xe4] sm:$0xff]  ;;  %6943 = vmatprep.mubr.msk.bf16.mxu1 %vm522_vm4, %v8666_v47  ;;  %v8680_v55 = vpack.c.bf16 %v8672_v51, %v8670_v4  ;;  %v8716_v22 = vpack.c.bf16 %v2174_v14, %v2173_v49  ;;  %v2176_v28 = vld [vmem:[#allocation3 + $0xf0] sm:$0xff] }
 0x1e4   : > { %v2175_v16 = vld [vmem:[#allocation3 + $0xe0] sm:$0xff] }
 0x1e5   : > { %9587 = vst [vmem:[#allocation8_spill] sm:$0xff] %v8680_v55  ;;  %v8722_v18 = vpack.c.bf16 %v2176_v28, %v2175_v16  ;;  %v6331_v47 = vld [vmem:[%s9548_s3 + $0x4] sm:$0x1] }
 0x1e6   : > { %6944 = vmatmul.mubr.msk.bf16.gmra.mrb[28].mxu1 %vm522_vm4, %v8680_v55  ;;  %v8735_v55 = vpack.c.bf16 %v8610_v24, %v8533_v43  ;;  %v2843_v26 = vsel %vm715_vm0, %v6331_v47, 0 }
 0x1e7   : > { %6949 = vmatprep.mubr.msk.bf16.mxu1 %vm522_vm4, %v2177_v6  ;;  %v2168_v6 = vld [vmem:[#allocation3 + $0x70] sm:$0xff] }
 0x1e8   : > { %v8706_v48 = vpack.c.bf16 %v2168_v6, %v2167_v13  ;;  %9589 = vst [vmem:[#allocation10_spill] sm:$0xff] %v8735_v55 }
 0x1ee   : > { %6950 = vmatmul.mubr.msk.bf16.vlgmr.msra.gmra.mrb[16].mxu1 %vm522_vm4, %v8692_v29 }
 0x1ef   : > { %6966 = vmatpush3.bf16.msra.mxu1 %v2511_v30  ;;  %6953 = vmatprep.mubr.msk.bf16.mxu1 %vm522_vm4, %v8696_v31  ;;  %v2171_v30 = vld [vmem:[#allocation3 + $0xa0] sm:$0xff] }
 0x1f0   : > { %7754 = vmatprep.subr.msk.bf16.mxu1 %vm715_vm0, %v6322_v36  ;;  %v8714_v20 = vpack.c.bf16 %v2172_v0, %v2171_v30  ;;  %v8763_v36 = vpack.c.bf16 %v8682_v3, %v8636_v50 }
 0x1f6   : > { %6954 = vmatmul.mubr.msk.bf16.gmra.mrb[20].mxu1 %vm522_vm4, %v8706_v48 }
 0x1f7   : > { %6957 = vmatprep.mubr.msk.bf16.mxu1 %vm522_vm4, %v8708_v8 }
 0x1fe   : > { %6958 = vmatmul.mubr.msk.bf16.gmra.mrb[24].mxu1 %vm522_vm4, %v8714_v20 }
 0x1ff   : > { %6961 = vmatprep.mubr.msk.bf16.mxu1 %vm522_vm4, %v8716_v22 }
 0x206   : > { %6962 = vmatmul.mubr.msk.bf16.gmra.mrb[28].mxu1 %vm522_vm4, %v8722_v18 }
 0x207   : > { %6967 = vmatprep.mubr.msk.bf16.mxu1 %vm522_vm4, %v2476_v17  ;;  %v8747_v17 = vpack.c.bf16 %v8586_v11, %v8594_v12 }
 0x209   : > { %9590 = vst [vmem:[#allocation11_spill] sm:$0xff] %v8747_v17 }
 0x20e   : > { %6968 = vmatmul.mubr.msk.bf16.vlgmr.msra.gmra.mrb[16].mxu1 %vm522_vm4, %v8730_v38  ;;  %v2643_v38 = vpack.c.bf16 %v2165_v1, %v2164_v19  ;;  %v2647_v19 = vpack.c.bf16 %v2173_v49, %v2172_v0  ;;  %v2649_v1 = vpack.c.bf16 %v2641_v41, %v2176_v28  ;;  %v6349_v49 = vld [vmem:[%s9548_s3 + $0x6] sm:$0x1]  ;;  %v9594_v0 = vpack.c.bf16 %v8529_v40, %v8525_v35 }
 0x20f   : > { %6984 = vmatpush3.bf16.msra.mxu1 %v2677_v15  ;;  %6971 = vmatprep.mubr.msk.bf16.mxu1 %vm522_vm4, %v8735_v55  ;;  %v8759_v15 = vpack.c.bf16 %v8634_v58, %v8641_v62  ;;  %v2475_v55 = vld [vmem:[#allocation3 + $0xf4] sm:$0xff]  ;;  %v9598_v35 = vpack.c.bf16 %v8632_v45, %v8625_v39  ;;  %v9599_v40 = vpack.c.bf16 %v8670_v4, %v8662_v32  ;;  %v3176_v39 = vsel %vm715_vm0, %v6349_v49, 0  ;;  %v6358_v45 = vld [vmem:[%s9548_s3 + $0x7] sm:$0x1] }
 0x210   : > { %7755 = vmatprep.subr.msk.bf16.mxu1 %vm715_vm0, %v6331_v47  ;;  %v2648_v47 = vpack.c.bf16 %v2175_v16, %v2174_v14  ;;  %v9604_v28 = vpack.c.bf16 %v8641_v62, %v8654_v27  ;;  %v9611_v27 = vld [vmem:[#allocation9_spill] sm:$0xff]  ;;  %v9613_v14 = vld [vmem:[#allocation11_spill] sm:$0xff]  ;;  %v9614_v32 = vld [vmem:[#allocation12_spill] sm:$0xff] }
 0x211   : > { %9592 = vst [vmem:[#allocation13_spill] sm:$0xff] %v8759_v15 }
 0x216   : > { %6972 = vmatmul.mubr.msk.bf16.gmra.mrb[20].mxu1 %vm522_vm4, %v8747_v17  ;;  %v8770_v17 = vpack.c.bf16 %v2475_v55, %v8674_v54 }
 0x217   : > { %6975 = vmatprep.mubr.msk.bf16.mxu1 %vm522_vm4, %v8751_v7  ;;  %v2642_v7 = vpack.c.bf16 %v2163_v5, %v8668_v61  ;;  %v2645_v61 = vpack.c.bf16 %v2169_v23, %v2168_v6  ;;  %v2646_v5 = vpack.c.bf16 %v2171_v30, %v2170_v46 }
 0x218   : > { %v9615_v4 = vld [vmem:[#allocation13_spill] sm:$0xff] }
 0x21e   : > { %6976 = vmatmul.mubr.msk.bf16.gmra.mrb[24].mxu1 %vm522_vm4, %v8759_v15  ;;  %v6340_v15 = vld [vmem:[%s9548_s3 + $0x5] sm:$0x1] }
 0x21f   : > { %6979 = vmatprep.mubr.msk.bf16.mxu1 %vm522_vm4, %v8763_v36 }
 0x226   : > { %6980 = vmatmul.mubr.msk.bf16.gmra.mrb[28].mxu1 %vm522_vm4, %v8770_v17 }
 0x227   : > { %6985 = vmatprep.mubr.msk.bf16.mxu1 %vm522_vm4, %v2642_v7 }
 0x22e   : > { %6986 = vmatmul.mubr.msk.bf16.vlgmr.msra.gmra.mrb[16].mxu1 %vm522_vm4, %v2643_v38  ;;  %v9593_v38 = vpack.c.bf16 %v8537_v57, %v8523_v34  ;;  %v9596_v34 = vpack.c.bf16 %v8584_v10, %v8577_v9  ;;  %v9597_v57 = vpack.c.bf16 %v8639_v60, %v8623_v37  ;;  %v6377_v10 = vld [vmem:[%s9550_s5 + $0x1] sm:$0x1]  ;;  %v9601_v60 = vpack.c.bf16 %v8533_v43, %v8531_v42 }
 0x22f   : > { %7002 = vmatpush3.bf16.msra.mxu1 %v2843_v26  ;;  %6989 = vmatprep.mubr.msk.bf16.mxu1 %vm522_vm4, %v2644_v44  ;;  %v3009_v44 = vsel %vm715_vm0, %v6340_v15, 0  ;;  %v9595_v26 = vpack.c.bf16 %v8592_v63, %v8575_v25  ;;  %v2807_v25 = vld [vmem:[#allocation3 + $0x102] sm:$0xff]  ;;  %v9600_v63 = vpack.c.bf16 %v8539_v33, %v8560_v21  ;;  %v3755_v37 = vsel %vm715_vm0, %v6377_v10, 0 }
 0x230   : > { %7756 = vmatprep.subr.msk.bf16.mxu1 %vm715_vm0, %v6340_v15  ;;  %v2815_v9 = vpack.c.bf16 %v2807_v25, %v8672_v51  ;;  %7760 = vmatprep.subr.msk.bf16.mxu0 %vm715_vm0, %v6377_v10  ;;  %v9602_v33 = vpack.c.bf16 %v8594_v12, %v8610_v24  ;;  %v9603_v21 = vpack.c.bf16 %v8588_v53, %v8586_v11  ;;  %v2973_v12 = vld [vmem:[#allocation3 + $0x104] sm:$0xff]  ;;  %v3342_v11 = vsel %vm715_vm0, %v6358_v45, 0  ;;  %v3472_v51 = vld [vmem:[#allocation3 + $0x114] sm:$0xff] }
 0x231   : > { %7092 = vmatpush3.bf16.msra.mxu0 %v3755_v37  ;;  %v9605_v42 = vpack.c.bf16 %v8636_v50, %v8634_v58  ;;  %v9606_v43 = vpack.c.bf16 %v8674_v54, %v8682_v3  ;;  %v2981_v24 = vpack.c.bf16 %v2973_v12, %v2475_v55  ;;  %v6367_v53 = vld [vmem:[%s9548_s3 + $0x8] sm:$0x1]  ;;  %v3140_v58 = vld [vmem:[#allocation3 + $0x110] sm:$0xff]  ;;  %v3480_v54 = vpack.c.bf16 %v3472_v51, %v2973_v12  ;;  %v3703_v55 = vld [vmem:[%s9550_s5] sm:$0x1] }
 0x232   : > { %v3148_v50 = vpack.c.bf16 %v3140_v58, %v2641_v41  ;;  %v3508_v62 = vsel %vm715_vm0, %v6367_v53, 0  ;;  %7761 = vmatprep.subr.msk.bf16.mxu0 %vm715_vm0, %v3703_v55  ;;  %v8921_v3 = vld [vmem:[%s9549_s4] ss:$0 sm:$0xff]  ;;  %v8970_v12 = vld [vmem:[%s9550_s5 + $0x2] sm:$0x1] }
 0x236   : > { %6990 = vmatmul.mubr.msk.bf16.gmra.mrb[20].mxu1 %vm522_vm4, %v2645_v61 }
 0x237   : > { %6993 = vmatprep.mubr.msk.bf16.mxu1 %vm522_vm4, %v2646_v5 }
 0x23e   : > { %6994 = vmatmul.mubr.msk.bf16.gmra.mrb[24].mxu1 %vm522_vm4, %v2647_v19 }
 0x23f   : > { %6997 = vmatprep.mubr.msk.bf16.mxu1 %vm522_vm4, %v2648_v47 }
 0x246   : > { %6998 = vmatmul.mubr.msk.bf16.gmra.mrb[28].mxu1 %vm522_vm4, %v2649_v1 }
 0x247   : > { %7003 = vmatprep.mubr.msk.bf16.mxu1 %vm522_vm4, %v9593_v38 }
 0x24e   : > { %7004 = vmatmul.mubr.msk.bf16.vlgmr.msra.gmra.mrb[16].mxu1 %vm522_vm4, %v9594_v0 }
 0x24f   : > { %7020 = vmatpush3.bf16.msra.mxu1 %v3009_v44  ;;  %7007 = vmatprep.mubr.msk.bf16.mxu1 %vm522_vm4, %v9595_v26  ;;  %v3704_v44 = vld [vmem:[#allocation4 + $0x4] sm:$0xff] }
 0x250   : > { %7757 = vmatprep.subr.msk.bf16.mxu1 %vm715_vm0, %v6349_v49 }
 0x256   : > { %7008 = vmatmul.mubr.msk.bf16.gmra.mrb[20].mxu1 %vm522_vm4, %v9596_v34 }
 0x257   : > { %7011 = vmatprep.mubr.msk.bf16.mxu1 %vm522_vm4, %v9597_v57 }
 0x25e   : > { %7012 = vmatmul.mubr.msk.bf16.gmra.mrb[24].mxu1 %vm522_vm4, %v9598_v35 }
 0x25f   : > { %7015 = vmatprep.mubr.msk.bf16.mxu1 %vm522_vm4, %v9599_v40 }
 0x266   : > { %7016 = vmatmul.mubr.msk.bf16.gmra.mrb[28].mxu1 %vm522_vm4, %v2815_v9 }
 0x267   : > { %7021 = vmatprep.mubr.msk.bf16.mxu1 %vm522_vm4, %v9600_v63 }
 0x26e   : > { %7022 = vmatmul.mubr.msk.bf16.vlgmr.msra.gmra.mrb[16].mxu1 %vm522_vm4, %v9601_v60 }
 0x26f   : > { %7038 = vmatpush3.bf16.msra.mxu1 %v3176_v39  ;;  %7025 = vmatprep.mubr.msk.bf16.mxu1 %vm522_vm4, %v9602_v33 }
 0x270   : > { %7758 = vmatprep.subr.msk.bf16.mxu1 %vm715_vm0, %v6358_v45 }
 0x276   : > { %7026 = vmatmul.mubr.msk.bf16.gmra.mrb[20].mxu1 %vm522_vm4, %v9603_v21  ;;  %v3879_v21 = vsel %vm715_vm0, %v3703_v55, 0 }
 0x277   : > { %7029 = vmatprep.mubr.msk.bf16.mxu1 %vm522_vm4, %v9604_v28 }
 0x27e   : > { %7030 = vmatmul.mubr.msk.bf16.gmra.mrb[24].mxu1 %vm522_vm4, %v9605_v42 }
 0x27f   : > { %7033 = vmatprep.mubr.msk.bf16.mxu1 %vm522_vm4, %v9606_v43 }
 0x286   : > { %7034 = vmatmul.mubr.msk.bf16.gmra.mrb[28].mxu1 %vm522_vm4, %v2981_v24 }
 0x287   : > { %7039 = vmatprep.mubr.msk.bf16.mxu1 %vm522_vm4, %v8692_v29 }
 0x28e   : > { %7040 = vmatmul.mubr.msk.bf16.vlgmr.msra.gmra.mrb[16].mxu1 %vm522_vm4, %v8696_v31 }
 0x28f   : > { %7056 = vmatpush3.bf16.msra.mxu1 %v3342_v11  ;;  %7043 = vmatprep.mubr.msk.bf16.mxu1 %vm522_vm4, %v8706_v48 }
 0x290   : > { %7759 = vmatprep.subr.msk.bf16.mxu1 %vm715_vm0, %v6367_v53 }
 0x296   : > { %7044 = vmatmul.mubr.msk.bf16.gmra.mrb[20].mxu1 %vm522_vm4, %v8708_v8  ;;  %v3306_v8 = vld [vmem:[#allocation3 + $0x112] sm:$0xff] }
 0x297   : > { %7047 = vmatprep.mubr.msk.bf16.mxu1 %vm522_vm4, %v8714_v20  ;;  %v9609_v20 = vld [vmem:[#allocation7_spill] sm:$0xff] }
 0x29e   : > { %7048 = vmatmul.mubr.msk.bf16.gmra.mrb[24].mxu1 %vm522_vm4, %v8716_v22  ;;  %v9607_v22 = vld [vmem:[#allocation5_spill] sm:$0xff] }
 0x29f   : > { %7051 = vmatprep.mubr.msk.bf16.mxu1 %vm522_vm4, %v8722_v18  ;;  %v9608_v18 = vld [vmem:[#allocation6_spill] sm:$0xff] }
 0x2a6   : > { %7052 = vmatmul.mubr.msk.bf16.gmra.mrb[28].mxu1 %vm522_vm4, %v3148_v50 }
 0x2a7   : > { %7057 = vmatprep.mubr.msk.bf16.mxu1 %vm522_vm4, %v8550_v59  ;;  %v9610_v59 = vld [vmem:[#allocation8_spill] sm:$0xff] }
 0x2ae   : > { %7058 = vmatmul.mubr.msk.bf16.vlgmr.msra.gmra.mrb[16].mxu1 %vm522_vm4, %v8582_v52  ;;  %v3314_v52 = vpack.c.bf16 %v3306_v8, %v2807_v25 }
 0x2af   : > { %7074 = vmatpush3.bf16.msra.mxu1 %v3508_v62  ;;  %7061 = vmatprep.mubr.msk.bf16.mxu1 %vm522_vm4, %v8606_v56  ;;  %v9612_v56 = vld [vmem:[#allocation10_spill] sm:$0xff] }
 0x2b0   : > { %7253 = vmatprep.subr.bf16.mxu1 %v9583_v2 }
 0x2b6   : > { %7062 = vmatmul.mubr.msk.bf16.gmra.mrb[20].mxu1 %vm522_vm4, %v9607_v22 }
 0x2b7   : > { %7065 = vmatprep.mubr.msk.bf16.mxu1 %vm522_vm4, %v9608_v18 }
 0x2be   : > { %7066 = vmatmul.mubr.msk.bf16.gmra.mrb[24].mxu1 %vm522_vm4, %v9609_v20 }
 0x2bf   : > { %7069 = vmatprep.mubr.msk.bf16.mxu1 %vm522_vm4, %v9610_v59 }
 0x2c6   : > { %7070 = vmatmul.mubr.msk.bf16.gmra.mrb[28].mxu1 %vm522_vm4, %v3314_v52 }
 0x2c7   : > { %7075 = vmatprep.mubr.msk.bf16.mxu1 %vm522_vm4, %v9611_v27 }
 0x2ce   : > { %7076 = vmatmul.mubr.msk.bf16.vlgmr.msra.gmra.mrb[16].mxu1 %vm522_vm4, %v9612_v56 }
 0x2cf   : > { %7079 = vmatprep.mubr.msk.bf16.mxu1 %vm522_vm4, %v9613_v14 }
 0x2d6   : > { %7080 = vmatmul.mubr.msk.bf16.gmra.mrb[20].mxu1 %vm522_vm4, %v9614_v32 }
 0x2d7   : > { %7083 = vmatprep.mubr.msk.bf16.mxu1 %vm522_vm4, %v9615_v4 }
 0x2de   : > { %7084 = vmatmul.mubr.msk.bf16.gmra.mrb[24].mxu1 %vm522_vm4, %v8763_v36 }
 0x2df   : > { %7087 = vmatprep.mubr.msk.bf16.mxu1 %vm522_vm4, %v8770_v17 }
 0x2e6   : > { %7088 = vmatmul.mubr.msk.bf16.gmra.mrb[28].mxu1 %vm522_vm4, %v3480_v54 }
 0x2e7   : > { %7255 = vmatprep.mubr.msk.bf16.mxu1 %vm7794_vm8, %v9583_v2 }
 0x3a1   : > { %v7077_v16 = vpop.f32.mrb[16].mxu1 }
 0x3a2   : > { %v3632_v23 = vadd.f32 %v7077_v16, %v8921_v3  ;;  %v3544_v29 = vpop.f32.mrb[17].mxu1 }
 0x3a3   : > { %v3630_v31 = vadd.f32 %v8921_v3, %v3544_v29  ;;  %v7078_v13 = vpop.f32.mrb[18].mxu1 }
 0x3a4   : > { %v3648_v46 = vmax.f32 %v3632_v23, 0.0  ;;  %v3633_v6 = vadd.f32 %v7078_v13, %v8921_v3  ;;  %v3547_v48 = vpop.f32.mrb[19].mxu1 }
 0x3a5   : > { %v3646_v30 = vmax.f32 %v3630_v31, 0.0  ;;  %v3631_v17 = vadd.f32 %v8921_v3, %v3547_v48 }
 0x3a6   : > { %3665 = vst.msk [vmem:[#allocation4 + $0x34] sm:$0xff] %vm522_vm4, %v3648_v46  ;;  %v3649_v7 = vmax.f32 %v3633_v6, 0.0 }
 0x3a7   : > { %3663 = vst.msk [vmem:[#allocation4 + $0x14] sm:$0xff] %vm522_vm4, %v3646_v30  ;;  %v3647_v15 = vmax.f32 %v3631_v17, 0.0 }
 0x3a8   : > { %3666 = vst.msk [vmem:[#allocation4 + $0x44] sm:$0xff] %vm522_vm4, %v3649_v7 }
 0x3a9   : > { %3664 = vst.msk [vmem:[#allocation4 + $0x24] sm:$0xff] %vm522_vm4, %v3647_v15  ;;  %v7081_v36 = vpop.f32.mrb[20].mxu1 }
 0x3aa   : > { %v3636_v61 = vadd.f32 %v7081_v36, %v8921_v3  ;;  %v3560_v5 = vpop.f32.mrb[21].mxu1 }
 0x3ab   : > { %v3634_v19 = vadd.f32 %v8921_v3, %v3560_v5  ;;  %v7082_v47 = vpop.f32.mrb[22].mxu1 }
 0x3ac   : > { %v3652_v41 = vmax.f32 %v3636_v61, 0.0  ;;  %v3637_v1 = vadd.f32 %v7082_v47, %v8921_v3  ;;  %v3563_v38 = vpop.f32.mrb[23].mxu1 }
 0x3ad   : > { %v3650_v49 = vmax.f32 %v3634_v19, 0.0  ;;  %v3635_v0 = vadd.f32 %v8921_v3, %v3563_v38  ;;  %v8938_v57 = vld [vmem:[#allocation4 + $0x34] sm:$0xff] }
 0x3ae   : > { %3669 = vst.msk [vmem:[#allocation4 + $0x74] sm:$0xff] %vm522_vm4, %v3652_v41  ;;  %v3653_v26 = vmax.f32 %v3637_v1, 0.0  ;;  %v8936_v34 = vld [vmem:[#allocation4 + $0x14] sm:$0xff] }
 0x3af   : > { %3667 = vst.msk [vmem:[#allocation4 + $0x54] sm:$0xff] %vm522_vm4, %v3650_v49  ;;  %v3651_v35 = vmax.f32 %v3635_v0, 0.0  ;;  %v3720_v40 = vpack.c.bf16 %v8936_v34, %v3704_v44  ;;  %v8942_v25 = vld [vmem:[#allocation4 + $0x44] sm:$0xff]  ;;  %v8944_v9 = vld [vmem:[#allocation4 + $0x38] sm:$0xff] }
 0x3b0   : > { %v8946_v10 = vld [vmem:[#allocation4 + $0x48] sm:$0xff]  ;;  %3670 = vst.msk [vmem:[#allocation4 + $0x84] sm:$0xff] %vm522_vm4, %v3653_v26  ;;  %v8964_v28 = vld [vmem:[#allocation4 + $0x18] sm:$0xff] }
 0x3b1   : > { %v8949_v63 = vld [vmem:[#allocation4 + $0x24] sm:$0xff]  ;;  %3668 = vst.msk [vmem:[#allocation4 + $0x64] sm:$0xff] %vm522_vm4, %v3651_v35  ;;  %v7085_v60 = vpop.f32.mrb[24].mxu1  ;;  %7093 = vmatprep.mubr.msk.bf16.mxu0 %vm522_vm4, %v3720_v40 }
 0x3b2   : > { %v8951_v37 = vld [vmem:[#allocation4 + $0x28] sm:$0xff]  ;;  %v8961_v33 = vpack.c.bf16 %v8938_v57, %v8949_v63  ;;  %v3640_v42 = vadd.f32 %v7085_v60, %v8921_v3  ;;  %v3576_v43 = vpop.f32.mrb[25].mxu1 }
 0x3b3   : > { %v3638_v53 = vadd.f32 %v8921_v3, %v3576_v43  ;;  %v7086_v58 = vpop.f32.mrb[26].mxu1  ;;  %v3978_v35 = vld [vmem:[#allocation4 + $0x8] sm:$0xff]  ;;  %v9135_v39 = vpack.c.bf16 %v8944_v9, %v8951_v37 }
 0x3b4   : > { %7094 = vmatmul.mubr.msk.bf16.vlgmr.msra.gmra.mrb[16].mxu0 %vm522_vm4, %v8961_v33  ;;  %v3656_v50 = vmax.f32 %v3640_v42, 0.0  ;;  %v3641_v62 = vadd.f32 %v7086_v58, %v8921_v3  ;;  %v3579_v22 = vpop.f32.mrb[27].mxu1  ;;  %v3994_v6 = vpack.c.bf16 %v8964_v28, %v3978_v35 }
 0x3b5   : > { %7110 = vmatpush3.bf16.msra.mxu0 %v3879_v21  ;;  %v3654_v18 = vmax.f32 %v3638_v53, 0.0  ;;  %v3639_v20 = vadd.f32 %v8921_v3, %v3579_v22  ;;  %v8986_v52 = vld [vmem:[#allocation4 + $0x74] sm:$0xff]  ;;  %9620 = vst [vmem:[#allocation9_spill] sm:$0xff] %v9135_v39 }
 0x3b6   : > { %7762 = vmatprep.subr.msk.bf16.mxu0 %vm715_vm0, %v8970_v12  ;;  %3673 = vst.msk [vmem:[#allocation4 + $0xb4] sm:$0xff] %vm522_vm4, %v3656_v50  ;;  %v3657_v59 = vmax.f32 %v3641_v62, 0.0  ;;  %v8984_v8 = vld [vmem:[#allocation4 + $0x54] sm:$0xff]  ;;  %v3679_v50 = vld [vmem:[#allocation4] sm:$0xff] }
 0x3b7   : > { %3671 = vst.msk [vmem:[#allocation4 + $0x94] sm:$0xff] %vm522_vm4, %v3654_v18  ;;  %v3655_v27 = vmax.f32 %v3639_v20, 0.0  ;;  %v8991_v56 = vpack.c.bf16 %v8984_v8, %v8942_v25  ;;  %v8993_v14 = vld [vmem:[#allocation4 + $0x84] sm:$0xff]  ;;  %v8995_v32 = vld [vmem:[#allocation4 + $0x78] sm:$0xff]  ;;  %v9073_v62 = vld [vmem:[#allocation4 + $0x10] sm:$0xff] }
 0x3b8   : > { %v8997_v4 = vld [vmem:[#allocation4 + $0x88] sm:$0xff]  ;;  %3674 = vst.msk [vmem:[#allocation4 + $0xc4] sm:$0xff] %vm522_vm4, %v3657_v59  ;;  %v9015_v31 = vld [vmem:[#allocation4 + $0x58] sm:$0xff] }
 0x3b9   : > { %v9000_v51 = vld [vmem:[#allocation4 + $0x64] sm:$0xff]  ;;  %3672 = vst.msk [vmem:[#allocation4 + $0xa4] sm:$0xff] %vm522_vm4, %v3655_v27  ;;  %v7089_v23 = vpop.f32.mrb[28].mxu1  ;;  %7097 = vmatprep.mubr.msk.bf16.mxu0 %vm522_vm4, %v8991_v56 }
 0x3ba   : > { %v9002_v54 = vld [vmem:[#allocation4 + $0x68] sm:$0xff]  ;;  %v9013_v29 = vpack.c.bf16 %v8986_v52, %v9000_v51  ;;  %v3644_v13 = vadd.f32 %v7089_v23, %v8921_v3  ;;  %v3592_v46 = vpop.f32.mrb[29].mxu1  ;;  %v3695_v23 = vpack.c.bf16 %v9073_v62, %v3679_v50 }
 0x3bb   : > { %v3642_v30 = vadd.f32 %v8921_v3, %v3592_v46  ;;  %v7090_v17 = vpop.f32.mrb[30].mxu1  ;;  %v3687_v46 = vld [vmem:[#allocation4 + $0x80] sm:$0xff] }
 0x3bc   : > { %7098 = vmatmul.mubr.msk.bf16.gmra.mrb[20].mxu0 %vm522_vm4, %v9013_v29  ;;  %v3660_v7 = vmax.f32 %v3644_v13, 0.0  ;;  %v3645_v15 = vadd.f32 %v7090_v17, %v8921_v3  ;;  %v3595_v36 = vpop.f32.mrb[31].mxu1  ;;  %v3684_v17 = vld [vmem:[#allocation4 + $0x50] sm:$0xff] }
 0x3bd   : > { %v3658_v61 = vmax.f32 %v3642_v30, 0.0  ;;  %v3643_v5 = vadd.f32 %v8921_v3, %v3595_v36  ;;  %v9030_v41 = vld [vmem:[#allocation4 + $0xb4] sm:$0xff]  ;;  %v3681_v30 = vld [vmem:[#allocation4 + $0x20] sm:$0xff]  ;;  %v4029_v36 = vsel %vm715_vm0, %v8970_v12, 0 }
 0x3be   : > { %3677 = vst.msk [vmem:[#allocation4 + $0xf4] sm:$0xff] %vm522_vm4, %v3660_v7  ;;  %v3661_v19 = vmax.f32 %v3645_v15, 0.0  ;;  %v9028_v47 = vld [vmem:[#allocation4 + $0x94] sm:$0xff] }
 0x3bf   : > { %3675 = vst.msk [vmem:[#allocation4 + $0xd4] sm:$0xff] %vm522_vm4, %v3658_v61  ;;  %v3659_v1 = vmax.f32 %v3643_v5, 0.0  ;;  %v9035_v38 = vpack.c.bf16 %v9028_v47, %v8993_v14  ;;  %v9037_v44 = vld [vmem:[#allocation4 + $0xc4] sm:$0xff]  ;;  %v9039_v49 = vld [vmem:[#allocation4 + $0xb8] sm:$0xff]  ;;  %v3682_v7 = vld [vmem:[#allocation4 + $0x30] sm:$0xff] }
 0x3c0   : > { %v9041_v0 = vld [vmem:[#allocation4 + $0xc8] sm:$0xff]  ;;  %3678 = vst.msk [vmem:[#allocation4 + $0x104] sm:$0xff] %vm522_vm4, %v3661_v19  ;;  %v9059_v21 = vld [vmem:[#allocation4 + $0x98] sm:$0xff]  ;;  %v9097_v15 = vpack.c.bf16 %v3682_v7, %v3681_v30  ;;  %v3683_v61 = vld [vmem:[#allocation4 + $0x40] sm:$0xff] }
 0x3c1   : > { %9616 = vst [vmem:[#allocation5_spill] sm:$0xff] %v9035_v38  ;;  %v9044_v3 = vld [vmem:[#allocation4 + $0xa4] sm:$0xff]  ;;  %3676 = vst.msk [vmem:[#allocation4 + $0xe4] sm:$0xff] %vm522_vm4, %v3659_v1  ;;  %7101 = vmatprep.mubr.msk.bf16.mxu0 %vm522_vm4, %v9035_v38  ;;  %v9101_v5 = vpack.c.bf16 %v3684_v17, %v3683_v61  ;;  %v6403_v19 = vld [vmem:[%s9550_s5 + $0x3] sm:$0x1]  ;;  %v9156_v35 = vpack.c.bf16 %v9059_v21, %v8997_v4 }
 0x3c2   : > { %v9046_v26 = vld [vmem:[#allocation4 + $0xa8] sm:$0xff]  ;;  %v9057_v60 = vpack.c.bf16 %v9030_v41, %v9044_v3  ;;  %v3685_v1 = vld [vmem:[#allocation4 + $0x60] sm:$0xff]  ;;  %v3688_v50 = vld [vmem:[#allocation4 + $0x90] sm:$0xff]  ;;  %v4195_v24 = vsel %vm715_vm0, %v6403_v19, 0 }
 0x3c3   : > { %v9113_v40 = vpack.c.bf16 %v3688_v50, %v3687_v46  ;;  %v3690_v16 = vld [vmem:[#allocation4 + $0xb0] sm:$0xff]  ;;  %v3691_v45 = vld [vmem:[#allocation4 + $0xc0] sm:$0xff]  ;;  %9623 = vst [vmem:[#allocation12_spill] sm:$0xff] %v9156_v35  ;;  %v4162_v38 = vpack.c.bf16 %v3685_v1, %v3684_v17 }
 0x3c4   : > { %9617 = vst [vmem:[#allocation6_spill] sm:$0xff] %v9057_v60  ;;  %7102 = vmatmul.mubr.msk.bf16.gmra.mrb[24].mxu0 %vm522_vm4, %v9057_v60 }
 0x3c5   : > { %v9077_v18 = vld [vmem:[#allocation4 + $0xf4] sm:$0xff] }
 0x3c6   : > { %v9067_v53 = vld [vmem:[#allocation4 + $0xd4] sm:$0xff] }
 0x3c7   : > { %v9071_v58 = vpack.c.bf16 %v9067_v53, %v9037_v44  ;;  %v9087_v27 = vld [vmem:[#allocation4 + $0xd8] sm:$0xff]  ;;  %v3692_v43 = vld [vmem:[#allocation4 + $0xd0] sm:$0xff]  ;;  %v4159_v17 = vld [vmem:[#allocation4 + $0x100] sm:$0xff] }
 0x3c8   : > { %v9075_v22 = vld [vmem:[#allocation4 + $0xe4] sm:$0xff]  ;;  %v9121_v11 = vpack.c.bf16 %v3692_v43, %v3691_v45  ;;  %v3694_v42 = vld [vmem:[#allocation4 + $0xf0] sm:$0xff] }
 0x3c9   : > { %9618 = vst [vmem:[#allocation7_spill] sm:$0xff] %v9071_v58  ;;  %v9079_v20 = vld [vmem:[#allocation4 + $0xe8] sm:$0xff]  ;;  %7105 = vmatprep.mubr.msk.bf16.mxu0 %vm522_vm4, %v9071_v58  ;;  %v9085_v59 = vpack.c.bf16 %v9077_v18, %v9075_v22  ;;  %v3693_v13 = vld [vmem:[#allocation4 + $0xe0] sm:$0xff] }
 0x3ca   : > { %v9127_v55 = vpack.c.bf16 %v3694_v42, %v3693_v13  ;;  %v6412_v58 = vld [vmem:[%s9550_s5 + $0x4] sm:$0x1] }
 0x3cb   : > { %9619 = vst [vmem:[#allocation8_spill] sm:$0xff] %v9085_v59  ;;  %v4361_v60 = vsel %vm715_vm0, %v6412_v58, 0 }
 0x3cc   : > { %7106 = vmatmul.mubr.msk.bf16.gmra.mrb[28].mxu0 %vm522_vm4, %v9085_v59  ;;  %v9140_v59 = vpack.c.bf16 %v9015_v31, %v8946_v10 }
 0x3cd   : > { %7111 = vmatprep.mubr.msk.bf16.mxu0 %vm522_vm4, %v3695_v23  ;;  %v3686_v23 = vld [vmem:[#allocation4 + $0x70] sm:$0xff] }
 0x3ce   : > { %v9111_v12 = vpack.c.bf16 %v3686_v23, %v3685_v1  ;;  %9621 = vst [vmem:[#allocation10_spill] sm:$0xff] %v9140_v59  ;;  %v5197_v1 = vld [vmem:[%s9552_s7 + $0x2] sm:$0x3] }
 0x3d4   : > { %7112 = vmatmul.mubr.msk.bf16.vlgmr.msra.gmra.mrb[16].mxu0 %vm522_vm4, %v9097_v15 }
 0x3d5   : > { %7128 = vmatpush3.bf16.msra.mxu0 %v4029_v36  ;;  %7115 = vmatprep.mubr.msk.bf16.mxu0 %vm522_vm4, %v9101_v5  ;;  %v3689_v36 = vld [vmem:[#allocation4 + $0xa0] sm:$0xff] }
 0x3d6   : > { %7763 = vmatprep.subr.msk.bf16.mxu0 %vm715_vm0, %v6403_v19  ;;  %v9119_v48 = vpack.c.bf16 %v3690_v16, %v3689_v36  ;;  %v9168_v19 = vpack.c.bf16 %v9087_v27, %v9041_v0 }
 0x3dc   : > { %7116 = vmatmul.mubr.msk.bf16.gmra.mrb[20].mxu0 %vm522_vm4, %v9111_v12 }
 0x3dd   : > { %7119 = vmatprep.mubr.msk.bf16.mxu0 %vm522_vm4, %v9113_v40 }
 0x3e4   : > { %7120 = vmatmul.mubr.msk.bf16.gmra.mrb[24].mxu0 %vm522_vm4, %v9119_v48 }
 0x3e5   : > { %7123 = vmatprep.mubr.msk.bf16.mxu0 %vm522_vm4, %v9121_v11 }
 0x3ec   : > { %7124 = vmatmul.mubr.msk.bf16.gmra.mrb[28].mxu0 %vm522_vm4, %v9127_v55 }
 0x3ed   : > { %7129 = vmatprep.mubr.msk.bf16.mxu0 %vm522_vm4, %v3994_v6  ;;  %v9152_v6 = vpack.c.bf16 %v8995_v32, %v9002_v54 }
 0x3ef   : > { %9622 = vst [vmem:[#allocation11_spill] sm:$0xff] %v9152_v6 }
 0x3f4   : > { %7130 = vmatmul.mubr.msk.bf16.vlgmr.msra.gmra.mrb[16].mxu0 %vm522_vm4, %v9135_v39  ;;  %v4161_v39 = vpack.c.bf16 %v3683_v61, %v3682_v7  ;;  %v4165_v7 = vpack.c.bf16 %v3691_v45, %v3690_v16  ;;  %v4167_v61 = vpack.c.bf16 %v4159_v17, %v3694_v42  ;;  %v6430_v45 = vld [vmem:[%s9550_s5 + $0x6] sm:$0x1]  ;;  %v9626_v16 = vpack.c.bf16 %v8942_v25, %v8938_v57 }
 0x3f5   : > { %7146 = vmatpush3.bf16.msra.mxu0 %v4195_v24  ;;  %7133 = vmatprep.mubr.msk.bf16.mxu0 %vm522_vm4, %v9140_v59  ;;  %v9164_v24 = vpack.c.bf16 %v9039_v49, %v9046_v26  ;;  %v3993_v59 = vld [vmem:[#allocation4 + $0xf8] sm:$0xff]  ;;  %v9630_v57 = vpack.c.bf16 %v9037_v44, %v9030_v41  ;;  %v9631_v25 = vpack.c.bf16 %v9075_v22, %v9067_v53  ;;  %v4694_v41 = vsel %vm715_vm0, %v6430_v45, 0  ;;  %v6439_v44 = vld [vmem:[%s9550_s5 + $0x7] sm:$0x1] }
 0x3f6   : > { %7764 = vmatprep.subr.msk.bf16.mxu0 %vm715_vm0, %v6412_v58  ;;  %v4166_v58 = vpack.c.bf16 %v3693_v13, %v3692_v43  ;;  %v9636_v42 = vpack.c.bf16 %v9046_v26, %v9059_v21  ;;  %v9645_v43 = vld [vmem:[#allocation11_spill] sm:$0xff]  ;;  %v9646_v53 = vld [vmem:[#allocation12_spill] sm:$0xff] }
 0x3f7   : > { %9624 = vst [vmem:[#allocation13_spill] sm:$0xff] %v9164_v24 }
 0x3fc   : > { %7134 = vmatmul.mubr.msk.bf16.gmra.mrb[20].mxu0 %vm522_vm4, %v9152_v6  ;;  %v9175_v6 = vpack.c.bf16 %v3993_v59, %v9079_v20 }
 0x3fd   : > { %7137 = vmatprep.mubr.msk.bf16.mxu0 %vm522_vm4, %v9156_v35  ;;  %v4160_v35 = vpack.c.bf16 %v3681_v30, %v9073_v62  ;;  %v4163_v62 = vpack.c.bf16 %v3687_v46, %v3686_v23  ;;  %v4164_v30 = vpack.c.bf16 %v3689_v36, %v3688_v50  ;;  %v5264_v36 = vsel %vm5216_vm7, %v5197_v1, 0 }
 0x3fe   : > { %v9647_v22 = vld [vmem:[#allocation13_spill] sm:$0xff] }
 0x404   : > { %7138 = vmatmul.mubr.msk.bf16.gmra.mrb[24].mxu0 %vm522_vm4, %v9164_v24  ;;  %v6421_v24 = vld [vmem:[%s9550_s5 + $0x5] sm:$0x1] }
 0x405   : > { %7141 = vmatprep.mubr.msk.bf16.mxu0 %vm522_vm4, %v9168_v19 }
 0x40c   : > { %7142 = vmatmul.mubr.msk.bf16.gmra.mrb[28].mxu0 %vm522_vm4, %v9175_v6 }
 0x40d   : > { %7147 = vmatprep.mubr.msk.bf16.mxu0 %vm522_vm4, %v4160_v35 }
 0x414   : > { %7148 = vmatmul.mubr.msk.bf16.vlgmr.msra.gmra.mrb[16].mxu0 %vm522_vm4, %v4161_v39  ;;  %v9625_v39 = vpack.c.bf16 %v8949_v63, %v8936_v34  ;;  %v9628_v34 = vpack.c.bf16 %v8993_v14, %v8986_v52  ;;  %v9629_v63 = vpack.c.bf16 %v9044_v3, %v9028_v47  ;;  %v5196_v14 = vld [vmem:[%s9552_s7] sm:$0x3]  ;;  %v9633_v3 = vpack.c.bf16 %v8946_v10, %v8944_v9 }
 0x415   : > { %7164 = vmatpush3.bf16.msra.mxu0 %v4361_v60  ;;  %7151 = vmatprep.mubr.msk.bf16.mxu0 %vm522_vm4, %v4162_v38  ;;  %v4527_v38 = vsel %vm715_vm0, %v6421_v24, 0  ;;  %v9627_v60 = vpack.c.bf16 %v9000_v51, %v8984_v8  ;;  %v4325_v8 = vld [vmem:[#allocation4 + $0x104] sm:$0xff]  ;;  %v9632_v51 = vpack.c.bf16 %v8951_v37, %v8964_v28  ;;  %v5218_v47 = vsel %vm5216_vm7, %v5196_v14, 0 }
 0x416   : > { %7765 = vmatprep.subr.msk.bf16.mxu0 %vm715_vm0, %v6421_v24  ;;  %v4333_v52 = vpack.c.bf16 %v4325_v8, %v9077_v18  ;;  %7254 = vmatpush3.bf16.msra.mxu1 %v5218_v47  ;;  %v9634_v37 = vpack.c.bf16 %v9002_v54, %v9015_v31  ;;  %v9635_v28 = vpack.c.bf16 %v8997_v4, %v8995_v32  ;;  %v4491_v54 = vld [vmem:[#allocation4 + $0x108] sm:$0xff]  ;;  %v4860_v32 = vsel %vm715_vm0, %v6439_v44, 0  ;;  %v4990_v18 = vld [vmem:[#allocation4 + $0x118] sm:$0xff] }
 0x417   : > { %7259 = vmatprep.subr.bf16.mxu1 %v9583_v2  ;;  %v9637_v9 = vpack.c.bf16 %v9041_v0, %v9039_v49  ;;  %v9638_v10 = vpack.c.bf16 %v9079_v20, %v9087_v27  ;;  %v4499_v31 = vpack.c.bf16 %v4491_v54, %v3993_v59  ;;  %v6448_v4 = vld [vmem:[%s9550_s5 + $0x8] sm:$0x1]  ;;  %v4658_v49 = vld [vmem:[#allocation4 + $0x110] sm:$0xff]  ;;  %v4998_v20 = vpack.c.bf16 %v4990_v18, %v4491_v54  ;;  %v9323_v59 = vld [vmem:[%s9551_s6] ss:$0 sm:$0xff] }
 0x418   : > { %v4666_v0 = vpack.c.bf16 %v4658_v49, %v4159_v17  ;;  %v5026_v26 = vsel %vm715_vm0, %v6448_v4, 0  ;;  %v5201_v49 = vld [vmem:[%s9552_s7 + $0xa] sm:$0x3] }
 0x41c   : > { %7152 = vmatmul.mubr.msk.bf16.gmra.mrb[20].mxu0 %vm522_vm4, %v4163_v62 }
 0x41d   : > { %7155 = vmatprep.mubr.msk.bf16.mxu0 %vm522_vm4, %v4164_v30  ;;  %v5198_v30 = vld [vmem:[%s9552_s7 + $0x4] sm:$0x3] }
 0x41e   : > { %v5310_v17 = vsel %vm5216_vm7, %v5198_v30, 0 }
 0x424   : > { %7156 = vmatmul.mubr.msk.bf16.gmra.mrb[24].mxu0 %vm522_vm4, %v4165_v7 }
 0x425   : > { %7159 = vmatprep.mubr.msk.bf16.mxu0 %vm522_vm4, %v4166_v58 }
 0x42c   : > { %7160 = vmatmul.mubr.msk.bf16.gmra.mrb[28].mxu0 %vm522_vm4, %v4167_v61 }
 0x42d   : > { %7165 = vmatprep.mubr.msk.bf16.mxu0 %vm522_vm4, %v9625_v39 }
 0x434   : > { %7166 = vmatmul.mubr.msk.bf16.vlgmr.msra.gmra.mrb[16].mxu0 %vm522_vm4, %v9626_v16 }
 0x435   : > { %7182 = vmatpush3.bf16.msra.mxu0 %v4527_v38  ;;  %7169 = vmatprep.mubr.msk.bf16.mxu0 %vm522_vm4, %v9627_v60 }
 0x436   : > { %7766 = vmatprep.subr.msk.bf16.mxu0 %vm715_vm0, %v6430_v45 }
 0x43c   : > { %7170 = vmatmul.mubr.msk.bf16.gmra.mrb[20].mxu0 %vm522_vm4, %v9628_v34 }
 0x43d   : > { %7173 = vmatprep.mubr.msk.bf16.mxu0 %vm522_vm4, %v9629_v63 }
 0x444   : > { %7174 = vmatmul.mubr.msk.bf16.gmra.mrb[24].mxu0 %vm522_vm4, %v9630_v57  ;;  %v5199_v57 = vld [vmem:[%s9552_s7 + $0x6] sm:$0x3] }
 0x445   : > { %7177 = vmatprep.mubr.msk.bf16.mxu0 %vm522_vm4, %v9631_v25  ;;  %v5356_v14 = vsel %vm5216_vm7, %v5199_v57, 0 }
 0x44c   : > { %7178 = vmatmul.mubr.msk.bf16.gmra.mrb[28].mxu0 %vm522_vm4, %v4333_v52 }
 0x44d   : > { %7183 = vmatprep.mubr.msk.bf16.mxu0 %vm522_vm4, %v9632_v51 }
 0x454   : > { %7184 = vmatmul.mubr.msk.bf16.vlgmr.msra.gmra.mrb[16].mxu0 %vm522_vm4, %v9633_v3 }
 0x455   : > { %7200 = vmatpush3.bf16.msra.mxu0 %v4694_v41  ;;  %7187 = vmatprep.mubr.msk.bf16.mxu0 %vm522_vm4, %v9634_v37 }
 0x456   : > { %7767 = vmatprep.subr.msk.bf16.mxu0 %vm715_vm0, %v6439_v44 }
 0x45c   : > { %7188 = vmatmul.mubr.msk.bf16.gmra.mrb[20].mxu0 %vm522_vm4, %v9635_v28 }
 0x45d   : > { %7191 = vmatprep.mubr.msk.bf16.mxu0 %vm522_vm4, %v9636_v42 }
 0x464   : > { %7192 = vmatmul.mubr.msk.bf16.gmra.mrb[24].mxu0 %vm522_vm4, %v9637_v9  ;;  %v5200_v9 = vld [vmem:[%s9552_s7 + $0x8] sm:$0x3] }
 0x465   : > { %7195 = vmatprep.mubr.msk.bf16.mxu0 %vm522_vm4, %v9638_v10 }
 0x46c   : > { %7196 = vmatmul.mubr.msk.bf16.gmra.mrb[28].mxu0 %vm522_vm4, %v4499_v31 }
 0x46d   : > { %7201 = vmatprep.mubr.msk.bf16.mxu0 %vm522_vm4, %v9097_v15 }
 0x474   : > { %7202 = vmatmul.mubr.msk.bf16.vlgmr.msra.gmra.mrb[16].mxu0 %vm522_vm4, %v9101_v5 }
 0x475   : > { %7218 = vmatpush3.bf16.msra.mxu0 %v4860_v32  ;;  %7205 = vmatprep.mubr.msk.bf16.mxu0 %vm522_vm4, %v9111_v12  ;;  %v5402_v32 = vsel %vm5216_vm7, %v5200_v9, 0 }
 0x476   : > { %7768 = vmatprep.subr.msk.bf16.mxu0 %vm715_vm0, %v6448_v4 }
 0x47c   : > { %7206 = vmatmul.mubr.msk.bf16.gmra.mrb[20].mxu0 %vm522_vm4, %v9113_v40  ;;  %v9642_v40 = vld [vmem:[#allocation8_spill] sm:$0xff] }
 0x47d   : > { %7209 = vmatprep.mubr.msk.bf16.mxu0 %vm522_vm4, %v9119_v48  ;;  %v9641_v48 = vld [vmem:[#allocation7_spill] sm:$0xff] }
 0x484   : > { %7210 = vmatmul.mubr.msk.bf16.gmra.mrb[24].mxu0 %vm522_vm4, %v9121_v11  ;;  %v9639_v11 = vld [vmem:[#allocation5_spill] sm:$0xff] }
 0x485   : > { %7213 = vmatprep.mubr.msk.bf16.mxu0 %vm522_vm4, %v9127_v55  ;;  %v9640_v55 = vld [vmem:[#allocation6_spill] sm:$0xff] }
 0x48c   : > { %7214 = vmatmul.mubr.msk.bf16.gmra.mrb[28].mxu0 %vm522_vm4, %v4666_v0 }
 0x48d   : > { %7219 = vmatprep.mubr.msk.bf16.mxu0 %vm522_vm4, %v8961_v33  ;;  %v4824_v33 = vld [vmem:[#allocation4 + $0x114] sm:$0xff] }
 0x48e   : > { %v4832_v21 = vpack.c.bf16 %v4824_v33, %v4325_v8 }
 0x494   : > { %7220 = vmatmul.mubr.msk.bf16.vlgmr.msra.gmra.mrb[16].mxu0 %vm522_vm4, %v8991_v56  ;;  %v9643_v56 = vld [vmem:[#allocation9_spill] sm:$0xff] }
 0x495   : > { %7236 = vmatpush3.bf16.msra.mxu0 %v5026_v26  ;;  %7223 = vmatprep.mubr.msk.bf16.mxu0 %vm522_vm4, %v9013_v29  ;;  %v9644_v29 = vld [vmem:[#allocation10_spill] sm:$0xff] }
 0x49c   : > { %7224 = vmatmul.mubr.msk.bf16.gmra.mrb[20].mxu0 %vm522_vm4, %v9639_v11  ;;  %v5448_v11 = vsel %vm5216_vm7, %v5201_v49, 0 }
 0x49d   : > { %7227 = vmatprep.mubr.msk.bf16.mxu0 %vm522_vm4, %v9640_v55 }
 0x4a4   : > { %7228 = vmatmul.mubr.msk.bf16.gmra.mrb[24].mxu0 %vm522_vm4, %v9641_v48  ;;  %v5202_v48 = vld [vmem:[%s9552_s7 + $0xc] sm:$0x3] }
 0x4a5   : > { %7231 = vmatprep.mubr.msk.bf16.mxu0 %vm522_vm4, %v9642_v40 }
 0x4ac   : > { %7232 = vmatmul.mubr.msk.bf16.gmra.mrb[28].mxu0 %vm522_vm4, %v4832_v21  ;;  %v5494_v21 = vsel %vm5216_vm7, %v5202_v48, 0 }
 0x4ad   : > { %7237 = vmatprep.mubr.msk.bf16.mxu0 %vm522_vm4, %v9643_v56 }
 0x4b4   : > { %7238 = vmatmul.mubr.msk.bf16.vlgmr.msra.gmra.mrb[16].mxu0 %vm522_vm4, %v9644_v29  ;;  %v5203_v29 = vld [vmem:[%s9552_s7 + $0xe] sm:$0x3] }
 0x4b5   : > { %7241 = vmatprep.mubr.msk.bf16.mxu0 %vm522_vm4, %v9645_v43 }
 0x4bc   : > { %7242 = vmatmul.mubr.msk.bf16.gmra.mrb[20].mxu0 %vm522_vm4, %v9646_v53 }
 0x4bd   : > { %7245 = vmatprep.mubr.msk.bf16.mxu0 %vm522_vm4, %v9647_v22  ;;  %v5540_v22 = vsel %vm5216_vm7, %v5203_v29, 0 }
 0x4c4   : > { %7246 = vmatmul.mubr.msk.bf16.gmra.mrb[24].mxu0 %vm522_vm4, %v9168_v19 }
 0x4c5   : > { %7249 = vmatprep.mubr.msk.bf16.mxu0 %vm522_vm4, %v9175_v6 }
 0x4cc   : > { %7250 = vmatmul.mubr.msk.bf16.gmra.mrb[28].mxu0 %vm522_vm4, %v4998_v20  ;;  %v5204_v20 = vld [vmem:[%s9552_s7 + $0x10] sm:$0x3] }
 0x587   : > { %v7239_v27 = vpop.f32.mrb[16].mxu0 }
 0x588   : > { %v5062_v13 = vpop.f32.mrb[17].mxu0  ;;  %v5150_v7 = vadd.f32 %v7239_v27, %v9323_v59 }
 0x589   : > { %v5148_v46 = vadd.f32 %v9323_v59, %v5062_v13  ;;  %v7240_v15 = vpop.f32.mrb[18].mxu0  ;;  %v5586_v13 = vsel %vm5216_vm7, %v5204_v20, 0 }
 0x58a   : > { %v5065_v5 = vpop.f32.mrb[19].mxu0  ;;  %v5166_v45 = vmax.f32 %v5150_v7, 0.0  ;;  %v5151_v52 = vadd.f32 %v7240_v15, %v9323_v59 }
 0x58b   : > { %v5164_v50 = vmax.f32 %v5148_v46, 0.0  ;;  %v5149_v12 = vadd.f32 %v9323_v59, %v5065_v5  ;;  %v5205_v46 = vld [vmem:[%s9552_s7 + $0x12] sm:$0x3] }
 0x58c   : > { %v5182_v8 = vpack.c.bf16 %v5166_v45, %v5166_v45  ;;  %v5167_v44 = vmax.f32 %v5151_v52, 0.0  ;;  %v5632_v5 = vsel %vm5216_vm7, %v5205_v46, 0  ;;  %v5210_v45 = vld [vmem:[%s9552_s7 + $0x1c] sm:$0x3] }
 0x58d   : > { %v5180_v23 = vpack.c.bf16 %v5164_v50, %v5164_v50  ;;  %v5165_v24 = vmax.f32 %v5149_v12, 0.0  ;;  %v5206_v50 = vld [vmem:[%s9552_s7 + $0x14] sm:$0x3] }
 0x58e   : > { %v5183_v54 = vpack.c.bf16 %v5167_v44, %v5167_v44  ;;  %v5678_v12 = vsel %vm5216_vm7, %v5206_v50, 0 }
 0x58f   : > { %v7243_v6 = vpop.f32.mrb[20].mxu0  ;;  %7256 = vmatmul.mubr.msk.bf16.vlgmr.msra.gmra.mrb[32].mxu1 %vm5212_vm9, %v5180_v23  ;;  %v5181_v58 = vpack.c.bf16 %v5165_v24, %v5165_v24 }
 0x590   : > { %7260 = vmatpush3.bf16.msra.mxu1 %v5264_v36  ;;  %v5078_v35 = vpop.f32.mrb[21].mxu0  ;;  %7261 = vmatprep.mubr.msk.bf16.mxu1 %vm7794_vm8, %v9583_v2  ;;  %v5154_v40 = vadd.f32 %v7243_v6, %v9323_v59  ;;  %v5207_v6 = vld [vmem:[%s9552_s7 + $0x16] sm:$0x3] }
 0x591   : > { %v9334_v19 = vpop.f32.mrb[22].mxu0  ;;  %7265 = vmatprep.subr.bf16.mxu1 %v9583_v2  ;;  %v5152_v31 = vadd.f32 %v9323_v59, %v5078_v35  ;;  %v5724_v24 = vsel %vm5216_vm7, %v5207_v6, 0 }
 0x592   : > { %v5081_v62 = vpop.f32.mrb[23].mxu0  ;;  %v5170_v56 = vmax.f32 %v5154_v40, 0.0  ;;  %v5155_v53 = vadd.f32 %v9334_v19, %v9323_v59 }
 0x593   : > { %v5168_v4 = vmax.f32 %v5152_v31, 0.0  ;;  %v5153_v26 = vadd.f32 %v9323_v59, %v5081_v62  ;;  %v5208_v62 = vld [vmem:[%s9552_s7 + $0x18] sm:$0x3] }
 0x594   : > { %v5186_v43 = vpack.c.bf16 %v5170_v56, %v5170_v56  ;;  %v5171_v18 = vmax.f32 %v5155_v53, 0.0  ;;  %v5770_v7 = vsel %vm5216_vm7, %v5208_v62, 0 }
 0x595   : > { %v5184_v0 = vpack.c.bf16 %v5168_v4, %v5168_v4  ;;  %v5169_v55 = vmax.f32 %v5153_v26, 0.0 }
 0x596   : > { %v5187_v27 = vpack.c.bf16 %v5171_v18, %v5171_v18 }
 0x597   : > { %v7247_v61 = vpop.f32.mrb[24].mxu0  ;;  %7262 = vmatmul.mubr.msk.bf16.vlgmr.msra.gmra.mrb[36].mxu1 %vm5212_vm9, %v5181_v58  ;;  %v5185_v33 = vpack.c.bf16 %v5169_v55, %v5169_v55 }
 0x598   : > { %v9344_v39 = vadd.f32 %v7247_v61, %v9323_v59  ;;  %7266 = vmatpush3.bf16.msra.mxu1 %v5310_v17  ;;  %v5094_v38 = vpop.f32.mrb[25].mxu0  ;;  %7267 = vmatprep.mubr.msk.bf16.mxu1 %vm7794_vm8, %v9583_v2  ;;  %v5209_v17 = vld [vmem:[%s9552_s7 + $0x1a] sm:$0x3] }
 0x599   : > { %v9349_v16 = vadd.f32 %v9323_v59, %v5094_v38  ;;  %v7248_v60 = vpop.f32.mrb[26].mxu0  ;;  %7271 = vmatprep.subr.bf16.mxu1 %v9583_v2 }
 0x59a   : > { %v9353_v34 = vadd.f32 %v7248_v60, %v9323_v59  ;;  %v5097_v63 = vpop.f32.mrb[27].mxu0  ;;  %v5174_v36 = vmax.f32 %v9344_v39, 0.0  ;;  %v5816_v39 = vsel %vm5216_vm7, %v5209_v17, 0  ;;  %v5862_v60 = vsel %vm5216_vm7, %v5210_v45, 0 }
 0x59b   : > { %v9359_v25 = vadd.f32 %v9323_v59, %v5097_v63  ;;  %v5211_v63 = vld [vmem:[%s9552_s7 + $0x1e] sm:$0x3] }
 0x59c   : > { %v5190_v35 = vpack.c.bf16 %v5174_v36, %v5174_v36  ;;  %v5175_v19 = vmax.f32 %v9353_v34, 0.0 }
 0x59d   : > { %v5173_v1 = vmax.f32 %v9359_v25, 0.0  ;;  %v5908_v25 = vsel %vm5216_vm7, %v5211_v63, 0 }
 0x59e   : > { %v5191_v30 = vpack.c.bf16 %v5175_v19, %v5175_v19 }
 0x59f   : > { %v7251_v51 = vpop.f32.mrb[28].mxu0  ;;  %7268 = vmatmul.mubr.msk.bf16.vlgmr.msra.gmra.mrb[40].mxu1 %vm5212_vm9, %v5182_v8  ;;  %v5189_v23 = vpack.c.bf16 %v5173_v1, %v5173_v1 }
 0x5a0   : > { %v9365_v47 = vadd.f32 %v7251_v51, %v9323_v59  ;;  %7272 = vmatpush3.bf16.msra.mxu1 %v5356_v14  ;;  %v5110_v41 = vpop.f32.mrb[29].mxu0  ;;  %7273 = vmatprep.mubr.msk.bf16.mxu1 %vm7794_vm8, %v9583_v2  ;;  %v7780_v14 = vld [vmem:[%s9554_s9] sm:$0xff]   ;;  %v7781_v51 = vld [vmem:[%s9554_s9 + $0x8] sm:$0xff]  }
 0x5a1   : > { %v9370_v3 = vadd.f32 %v9323_v59, %v5110_v41  ;;  %v7252_v37 = vpop.f32.mrb[30].mxu0  ;;  %7277 = vmatprep.subr.bf16.mxu1 %v9583_v2 }
 0x5a2   : > { %v9374_v28 = vadd.f32 %v7252_v37, %v9323_v59  ;;  %v5113_v42 = vpop.f32.mrb[31].mxu0  ;;  %v5178_v34 = vmax.f32 %v9365_v47, 0.0 }
 0x5a3   : > { %v9380_v10 = vadd.f32 %v9323_v59, %v5113_v42  ;;  %v5172_v59 = vmax.f32 %v9349_v16, 0.0  ;;  %v5176_v58 = vmax.f32 %v9370_v3, 0.0 }
 0x5a4   : > { %v5194_v57 = vpack.c.bf16 %v5178_v34, %v5178_v34  ;;  %v5179_v8 = vmax.f32 %v9374_v28, 0.0 }
 0x5a5   : > { %v5188_v15 = vpack.c.bf16 %v5172_v59, %v5172_v59  ;;  %v5192_v61 = vpack.c.bf16 %v5176_v58, %v5176_v58  ;;  %v5177_v38 = vmax.f32 %v9380_v10, 0.0 }
 0x5a6   : > { %v5195_v52 = vpack.c.bf16 %v5179_v8, %v5179_v8 }
 0x5a7   : > { %7274 = vmatmul.mubr.msk.bf16.vlgmr.msra.gmra.mrb[44].mxu1 %vm5212_vm9, %v5183_v54  ;;  %v5193_v16 = vpack.c.bf16 %v5177_v38, %v5177_v38 }
 0x5a8   : > { %7278 = vmatpush3.bf16.msra.mxu1 %v5402_v32  ;;  %7279 = vmatprep.mubr.msk.bf16.mxu1 %vm7794_vm8, %v9583_v2 }
 0x5a9   : > { %7283 = vmatprep.subr.bf16.mxu1 %v9583_v2 }
 0x5af   : > { %7280 = vmatmul.mubr.msk.bf16.vlgmr.msra.gmra.mrb[48].mxu1 %vm5212_vm9, %v5184_v0 }
 0x5b0   : > { %7284 = vmatpush3.bf16.msra.mxu1 %v5448_v11  ;;  %7285 = vmatprep.mubr.msk.bf16.mxu1 %vm7794_vm8, %v9583_v2 }
 0x5b1   : > { %7289 = vmatprep.subr.bf16.mxu1 %v9583_v2 }
 0x5b7   : > { %7286 = vmatmul.mubr.msk.bf16.vlgmr.msra.gmra.mrb[52].mxu1 %vm5212_vm9, %v5185_v33 }
 0x5b8   : > { %7290 = vmatpush3.bf16.msra.mxu1 %v5494_v21  ;;  %7291 = vmatprep.mubr.msk.bf16.mxu1 %vm7794_vm8, %v9583_v2 }
 0x5b9   : > { %7295 = vmatprep.subr.bf16.mxu1 %v9583_v2 }
 0x5bf   : > { %7292 = vmatmul.mubr.msk.bf16.vlgmr.msra.gmra.mrb[56].mxu1 %vm5212_vm9, %v5186_v43 }
 0x5c0   : > { %7296 = vmatpush3.bf16.msra.mxu1 %v5540_v22  ;;  %7297 = vmatprep.mubr.msk.bf16.mxu1 %vm7794_vm8, %v9583_v2 }
 0x5c1   : > { %7301 = vmatprep.subr.bf16.mxu1 %v9583_v2 }
 0x5c7   : > { %7298 = vmatmul.mubr.msk.bf16.vlgmr.msra.gmra.mrb[60].mxu1 %vm5212_vm9, %v5187_v27 }
 0x5c8   : > { %7302 = vmatpush3.bf16.msra.mxu1 %v5586_v13  ;;  %7303 = vmatprep.mubr.msk.bf16.mxu1 %vm7794_vm8, %v9583_v2 }
 0x5c9   : > { %7307 = vmatprep.subr.bf16.mxu1 %v9583_v2 }
 0x5cf   : > { %7304 = vmatmul.mubr.msk.bf16.vlgmr.msra.gmra.mrb[64].mxu1 %vm5212_vm9, %v5188_v15 }
 0x5d0   : > { %7308 = vmatpush3.bf16.msra.mxu1 %v5632_v5  ;;  %7309 = vmatprep.mubr.msk.bf16.mxu1 %vm7794_vm8, %v9583_v2 }
 0x5d1   : > { %7313 = vmatprep.subr.bf16.mxu1 %v9583_v2 }
 0x5d7   : > { %7310 = vmatmul.mubr.msk.bf16.vlgmr.msra.gmra.mrb[68].mxu1 %vm5212_vm9, %v5189_v23 }
 0x5d8   : > { %7314 = vmatpush3.bf16.msra.mxu1 %v5678_v12  ;;  %7315 = vmatprep.mubr.msk.bf16.mxu1 %vm7794_vm8, %v9583_v2 }
 0x5d9   : > { %7319 = vmatprep.subr.bf16.mxu1 %v9583_v2 }
 0x5df   : > { %7316 = vmatmul.mubr.msk.bf16.vlgmr.msra.gmra.mrb[72].mxu1 %vm5212_vm9, %v5190_v35 }
 0x5e0   : > { %7320 = vmatpush3.bf16.msra.mxu1 %v5724_v24  ;;  %7321 = vmatprep.mubr.msk.bf16.mxu1 %vm7794_vm8, %v9583_v2 }
 0x5e1   : > { %7325 = vmatprep.subr.bf16.mxu1 %v9583_v2 }
 0x5e7   : > { %7322 = vmatmul.mubr.msk.bf16.vlgmr.msra.gmra.mrb[76].mxu1 %vm5212_vm9, %v5191_v30 }
 0x5e8   : > { %7326 = vmatpush3.bf16.msra.mxu1 %v5770_v7  ;;  %7327 = vmatprep.mubr.msk.bf16.mxu1 %vm7794_vm8, %v9583_v2 }
 0x5e9   : > { %7331 = vmatprep.subr.bf16.mxu1 %v9583_v2 }
 0x5ef   : > { %7328 = vmatmul.mubr.msk.bf16.vlgmr.msra.gmra.mrb[80].mxu1 %vm5212_vm9, %v5192_v61 }
 0x5f0   : > { %7332 = vmatpush3.bf16.msra.mxu1 %v5816_v39  ;;  %7333 = vmatprep.mubr.msk.bf16.mxu1 %vm7794_vm8, %v9583_v2 }
 0x5f1   : > { %7337 = vmatprep.subr.bf16.mxu1 %v9583_v2 }
 0x5f7   : > { %7334 = vmatmul.mubr.msk.bf16.vlgmr.msra.gmra.mrb[84].mxu1 %vm5212_vm9, %v5193_v16 }
 0x5f8   : > { %7338 = vmatpush3.bf16.msra.mxu1 %v5862_v60  ;;  %7339 = vmatprep.mubr.msk.bf16.mxu1 %vm7794_vm8, %v9583_v2 }
 0x5f9   : > { %7343 = vmatprep.subr.bf16.mxu1 %v9583_v2 }
 0x5ff   : > { %7340 = vmatmul.mubr.msk.bf16.vlgmr.msra.gmra.mrb[88].mxu1 %vm5212_vm9, %v5194_v57 }
 0x600   : > { %7344 = vmatpush3.bf16.msra.mxu1 %v5908_v25  ;;  %7345 = vmatprep.mubr.msk.bf16.mxu1 %vm7794_vm8, %v9583_v2 }
 0x601   : > { %7349 = vmatprep.subr.bf16.mxu1 %v9583_v2 }
 0x607   : > { %7346 = vmatmul.mubr.msk.bf16.vlgmr.msra.gmra.mrb[92].mxu1 %vm5212_vm9, %v5195_v52 }
 0x608   : > { %7353 = vmatprep.mubr.msk.bf16.mxu1 %vm7794_vm8, %v9583_v2  ;;  %7350 = vmatpush3.bf16.msra.mxu1 %v7780_v14 }
 0x609   : > { %7351 = vmatprep.subr.bf16.mxu1 %v9583_v2 }
 0x60c   : > { %7352 = vmatpush3.bf16.msra.mxu1 %v7781_v51 }
 0x60d   : > { %7357 = vmatprep.subr.bf16.mxu1 %v9583_v2 }
 0x662   : > { %v5254_v47 = vpop.f32.mrb[32].mxu1 }
 0x663   : > { %v7257_v41 = vpop.f32.mrb[33].mxu1  ;;  %v5951_v28 = vsel %vm5950_vm10, %v5254_v47, 0.0 }
 0x664   : > { %v5257_v44 = vpop.f32.mrb[34].mxu1 }
 0x665   : > { %v7258_v3 = vpop.f32.mrb[35].mxu1 }
 0x66a   : > { %v5300_v37 = vpop.f32.mrb[36].mxu1 }
 0x66b   : > { %v5952_v42 = vsel %vm5950_vm10, %v5300_v37, 0.0  ;;  %v7263_v9 = vpop.f32.mrb[37].mxu1 }
 0x66c   : > { %v5953_v10 = vadd.f32 %v5952_v42, %v5951_v28  ;;  %v5303_v54 = vpop.f32.mrb[38].mxu1 }
 0x66d   : > { %v7264_v31 = vpop.f32.mrb[39].mxu1 }
 0x672   : > { %v5346_v32 = vpop.f32.mrb[40].mxu1 }
 0x673   : > { %v5954_v4 = vsel %vm5950_vm10, %v5346_v32, 0.0  ;;  %v7269_v49 = vpop.f32.mrb[41].mxu1 }
 0x674   : > { %v5955_v0 = vadd.f32 %v5954_v4, %v5953_v10  ;;  %v5349_v26 = vpop.f32.mrb[42].mxu1 }
 0x675   : > { %v7270_v11 = vpop.f32.mrb[43].mxu1 }
 0x67a   : > { %v5392_v55 = vpop.f32.mrb[44].mxu1 }
 0x67b   : > { %v5956_v48 = vsel %vm5950_vm10, %v5392_v55, 0.0  ;;  %v7275_v40 = vpop.f32.mrb[45].mxu1 }
 0x67c   : > { %v5957_v33 = vadd.f32 %v5956_v48, %v5955_v0  ;;  %v5395_v21 = vpop.f32.mrb[46].mxu1 }
 0x67d   : > { %v7276_v56 = vpop.f32.mrb[47].mxu1 }
 0x682   : > { %v5438_v29 = vpop.f32.mrb[48].mxu1 }
 0x683   : > { %v5958_v43 = vsel %vm5950_vm10, %v5438_v29, 0.0  ;;  %v7281_v53 = vpop.f32.mrb[49].mxu1 }
 0x684   : > { %v5959_v22 = vadd.f32 %v5958_v43, %v5957_v33  ;;  %v5441_v18 = vpop.f32.mrb[50].mxu1 }
 0x685   : > { %v7282_v20 = vpop.f32.mrb[51].mxu1 }
 0x686   : > { %v6474_v20 = vld [vmem:[%s9553_s8] ss:$0 sm:$0xff] }
 0x68a   : > { %v5484_v27 = vpop.f32.mrb[52].mxu1 }
 0x68b   : > { %v5960_v13 = vsel %vm5950_vm10, %v5484_v27, 0.0  ;;  %v7287_v59 = vpop.f32.mrb[53].mxu1 }
 0x68c   : > { %v5961_v46 = vadd.f32 %v5960_v13, %v5959_v22  ;;  %v5487_v15 = vpop.f32.mrb[54].mxu1 }
 0x68d   : > { %v7288_v5 = vpop.f32.mrb[55].mxu1 }
 0x68e   : > { %v7782_v5 = vld [vmem:[%s9556_s11] sm:$0xff]  }
 0x692   : > { %v5530_v1 = vpop.f32.mrb[56].mxu1 }
 0x693   : > { %v5962_v50 = vsel %vm5950_vm10, %v5530_v1, 0.0  ;;  %v7293_v23 = vpop.f32.mrb[57].mxu1 }
 0x694   : > { %v5963_v12 = vadd.f32 %v5962_v50, %v5961_v46  ;;  %v5533_v36 = vpop.f32.mrb[58].mxu1  ;;  %v7783_v50 = vld [vmem:[%s9556_s11 + $0x8] sm:$0xff]   ;;  %v6475_v23 = vld [vmem:[%s9555_s10] ss:$0 sm:$0xff] }
 0x695   : > { %v7294_v6 = vpop.f32.mrb[59].mxu1 }
 0x69a   : > { %v5576_v35 = vpop.f32.mrb[60].mxu1 }
 0x69b   : > { %v5964_v24 = vsel %vm5950_vm10, %v5576_v35, 0.0  ;;  %v7299_v19 = vpop.f32.mrb[61].mxu1 }
 0x69c   : > { %v5965_v62 = vadd.f32 %v5964_v24, %v5963_v12  ;;  %v5579_v30 = vpop.f32.mrb[62].mxu1 }
 0x69d   : > { %v7300_v7 = vpop.f32.mrb[63].mxu1 }
 0x6a2   : > { %v5622_v58 = vpop.f32.mrb[64].mxu1 }
 0x6a3   : > { %v5966_v17 = vsel %vm5950_vm10, %v5622_v58, 0.0  ;;  %v7305_v61 = vpop.f32.mrb[65].mxu1 }
 0x6a4   : > { %v5967_v39 = vadd.f32 %v5966_v17, %v5965_v62  ;;  %v5625_v38 = vpop.f32.mrb[66].mxu1 }
 0x6a5   : > { %v7306_v45 = vpop.f32.mrb[67].mxu1 }
 0x6aa   : > { %v5668_v16 = vpop.f32.mrb[68].mxu1 }
 0x6ab   : > { %v5968_v60 = vsel %vm5950_vm10, %v5668_v16, 0.0  ;;  %v7311_v34 = vpop.f32.mrb[69].mxu1 }
 0x6ac   : > { %v5969_v63 = vadd.f32 %v5968_v60, %v5967_v39  ;;  %v5671_v57 = vpop.f32.mrb[70].mxu1 }
 0x6ad   : > { %v7312_v25 = vpop.f32.mrb[71].mxu1 }
 0x6b2   : > { %v5714_v8 = vpop.f32.mrb[72].mxu1 }
 0x6b3   : > { %v5970_v52 = vsel %vm5950_vm10, %v5714_v8, 0.0  ;;  %v7317_v14 = vpop.f32.mrb[73].mxu1 }
 0x6b4   : > { %v5971_v51 = vadd.f32 %v5970_v52, %v5969_v63  ;;  %v5717_v47 = vpop.f32.mrb[74].mxu1 }
 0x6b5   : > { %v7318_v41 = vpop.f32.mrb[75].mxu1 }
 0x6ba   : > { %v5760_v44 = vpop.f32.mrb[76].mxu1 }
 0x6bb   : > { %v5972_v3 = vsel %vm5950_vm10, %v5760_v44, 0.0  ;;  %v7323_v37 = vpop.f32.mrb[77].mxu1 }
 0x6bc   : > { %v5973_v28 = vadd.f32 %v5972_v3, %v5971_v51  ;;  %v5763_v42 = vpop.f32.mrb[78].mxu1 }
 0x6bd   : > { %v7324_v9 = vpop.f32.mrb[79].mxu1 }
 0x6c2   : > { %v5806_v10 = vpop.f32.mrb[80].mxu1 }
 0x6c3   : > { %v5974_v54 = vsel %vm5950_vm10, %v5806_v10, 0.0  ;;  %v7329_v31 = vpop.f32.mrb[81].mxu1 }
 0x6c4   : > { %v5975_v32 = vadd.f32 %v5974_v54, %v5973_v28  ;;  %v5809_v4 = vpop.f32.mrb[82].mxu1 }
 0x6c5   : > { %v7330_v49 = vpop.f32.mrb[83].mxu1 }
 0x6ca   : > { %v5852_v0 = vpop.f32.mrb[84].mxu1 }
 0x6cb   : > { %v5976_v26 = vsel %vm5950_vm10, %v5852_v0, 0.0  ;;  %v7335_v11 = vpop.f32.mrb[85].mxu1 }
 0x6cc   : > { %v5977_v55 = vadd.f32 %v5976_v26, %v5975_v32  ;;  %v5855_v48 = vpop.f32.mrb[86].mxu1 }
 0x6cd   : > { %v7336_v40 = vpop.f32.mrb[87].mxu1 }
 0x6d2   : > { %v5898_v33 = vpop.f32.mrb[88].mxu1 }
 0x6d3   : > { %v5978_v21 = vsel %vm5950_vm10, %v5898_v33, 0.0  ;;  %v7341_v56 = vpop.f32.mrb[89].mxu1 }
 0x6d4   : > { %v5979_v29 = vadd.f32 %v5978_v21, %v5977_v55  ;;  %v5901_v43 = vpop.f32.mrb[90].mxu1 }
 0x6d5   : > { %v7342_v53 = vpop.f32.mrb[91].mxu1 }
 0x6da   : > { %v5944_v22 = vpop.f32.mrb[92].mxu1 }
 0x6db   : > { %v5980_v18 = vsel %vm5950_vm10, %v5944_v22, 0.0  ;;  %v7347_v27 = vpop.f32.mrb[93].mxu1 }
 0x6dc   : > { %v5981_v13 = vadd.f32 %v5980_v18, %v5979_v29  ;;  %v5947_v59 = vpop.f32.mrb[94].mxu1 }
 0x6dd   : > { %v7348_v46 = vpop.f32.mrb[95].mxu1 }
 0x6de   : > { %v5989_v15 = vadd.f32 %v6474_v20, %v5981_v13 }
 0x6e0   : > { %v5990_v1 = vpack.c.bf16 %v5989_v15, %v5989_v15 }
 0x6e2   : > { %7354 = vmatmul.mubr.msk.bf16.vlgmr.msra.gmra.mrb[96].mxu1 %vm5950_vm10, %v5990_v1 }
 0x6e3   : > { %7358 = vmatpush3.bf16.msra.mxu1 %v7782_v5  ;;  %7361 = vmatprep.mubr.msk.bf16.mxu1 %vm7794_vm8, %v9583_v2 }
 0x6e4   : > { %7359 = vmatprep.subr.bf16.mxu1 %v9583_v2  ;;  %v6479_v2 = vld [vmem:[%s9557_s12] ss:$0 sm:$0xff] }
 0x6e7   : > { %7360 = vmatpush3.bf16.msra.mxu1 %v7783_v50 }
 0x6ea   : > { %7362 = vmatmul.mubr.msk.bf16.vlgmr.msra.gmra.mrb[100].mxu1 %vm5950_vm10, %v5990_v1 }
 0x7b5   : > { %v6051_v12 = vpop.f32.mrb[96].mxu1 }
 0x7b6   : > { %v6052_v36 = vadd.f32 %v6475_v23, %v6051_v12  ;;  %v7355_v6 = vpop.f32.mrb[97].mxu1 }
 0x7b7   : > { %v6054_v35 = vpop.f32.mrb[98].mxu1 }
 0x7b8   : > { %6057 = vst [vmem:[%s472_s28] sm:$0xff] %v6052_v36  ;;  %v7356_v24 = vpop.f32.mrb[99].mxu1 }
 0x7bd   : > { %v6115_v19 = vpop.f32.mrb[100].mxu1 }
 0x7be   : > { %v6116_v62 = vadd.f32 %v6479_v2, %v6115_v19  ;;  %v7363_v30 = vpop.f32.mrb[101].mxu1 }
 0x7bf   : > { %v6118_v7 = vpop.f32.mrb[102].mxu1 }
 0x7c0   : > { %6121 = vst [vmem:[%s476_s18] sm:$0xff] %v6116_v62  ;;  %v7364_v58 = vpop.f32.mrb[103].mxu1 }
 0x7c1 PF: > { %s25_s29 = sadd.s32 1, %s7790_s29  }
 0x7c2   : > { %p22_p4 = scmp.ge.s32.totalorder %s25_s29, 4  }
 0x7c4   :  { %24 = sbr.rel (!%p22_p4) target bundleno = 1 (0x1), region = 147 }

</bundles_post_ra>
